<compile_context>
chip_gen: v7x
topology: tpu7x:2x2x1
jax: 0.10.0
libtpu: 0.0.40
codegen_flags: <defaults>
</compile_context>

<pallas_src>
import functools

import jax
import jax.numpy as jnp
from jax.experimental import pallas as pl
from jax.experimental.pallas import tpu as pltpu

_EPS = 1e-5                      # PyTorch GroupNorm default eps
_INV_SQRT2 = 0.7071067811865476


def _gelu_exact(x):
    # Exact-erf GELU.  erf via Abramowitz-Stegun 7.1.26 (|err| <= 1.5e-7),
    # built only from ops with guaranteed Mosaic lowerings (exp on the EUP).
    z = x * _INV_SQRT2
    az = jnp.abs(z)
    t = 1.0 / (1.0 + 0.3275911 * az)
    poly = t * (0.254829592 + t * (-0.284496736 + t * (1.421413741
               + t * (-1.453152027 + t * 1.061405429))))
    erf_abs = 1.0 - poly * jnp.exp(-az * az)
    erf = jnp.where(z >= 0.0, erf_abs, -erf_abs)
    return 0.5 * x * (1.0 + erf)


def _make_double_conv_kernel(H, W, Cin, Cmid, Cout, residual):
    def build_im2col(src_ref, im_ref, C):
        """im[h, w, k*C + c] = src[h+kh-1, w+kw-1, c]   (0 outside the image).

        src_ref: (H, W, C) ref.  im_ref: (H, W, 9*Cmax) scratch ref (only the
        first 9*C lane columns are used).  Only the border strips each tap
        never writes are zeroed -> interior is pure copy, no full zero-fill.
        """
        zero_row = jnp.zeros((1, W, C), jnp.float32)
        zero_col = jnp.zeros((H, 1, C), jnp.float32)
        for kh in range(3):
            for kw in range(3):
                dh, dw = kh - 1, kw - 1
                h0, h1 = max(0, -dh), H - max(0, dh)
                w0, w1 = max(0, -dw), W - max(0, dw)
                c0 = (kh * 3 + kw) * C
                c1 = c0 + C
                if dh != 0:                       # missing row strip
                    zr = 0 if dh < 0 else H - 1
                    im_ref[zr:zr + 1, :, c0:c1] = zero_row
                if dw != 0:                       # missing col strip
                    zc = 0 if dw < 0 else W - 1
                    im_ref[:, zc:zc + 1, c0:c1] = zero_col
                im_ref[h0:h1, w0:w1, c0:c1] = (
                    src_ref[h0 + dh:h1 + dh, w0 + dw:w1 + dw, :])

    def conv3x3_gn(src_ref, im_ref, C, w_ref, g_ref, b_ref):
        """3x3 conv (pad=1, no bias) + GroupNorm(1) on one sample -> (H*W, Co)."""
        build_im2col(src_ref, im_ref, C)
        # One MXU dot with K = 9*C instead of nine K=C dots + 8 VPU adds.
        patches = im_ref[:, :, :9 * C].reshape(H * W, 9 * C)
        acc = jnp.dot(patches, w_ref[...], preferred_element_type=jnp.float32)
        # GroupNorm(num_groups=1): stats over the whole sample. Two-pass
        # variance for stability, folded into a single scale/shift pass.
        mean = jnp.mean(acc, keepdims=True)            # (1, 1)
        d = acc - mean
        var = jnp.mean(d * d, keepdims=True)           # (1, 1)
        rstd = jax.lax.rsqrt(var + _EPS)
        scale = g_ref[...] * rstd                      # (1, Co)
        shift = b_ref[...] - mean * scale              # (1, Co)
        return acc * scale + shift                     # (H*W, Co)

    def kernel(x_ref, w1_ref, g1_ref, b1_ref, w2_ref, g2_ref, b2_ref,
               o_ref, im_ref, h_ref):
        h = _gelu_exact(conv3x3_gn(x_ref, im_ref, Cin, w1_ref, g1_ref, b1_ref))
        # Stage GELU(conv1) in VMEM so conv2's taps are ref slices (no value
        # relayouts / vreg pressure from holding the whole sample in values).
        h_ref[...] = h.reshape(H, W, Cmid)
        y = conv3x3_gn(h_ref, im_ref, Cmid, w2_ref, g2_ref, b2_ref)
        if residual:
            y = _gelu_exact(x_ref[...].reshape(H * W, Cout) + y)
        o_ref[...] = y.reshape(H, W, Cout).astype(o_ref.dtype)

    return kernel


def _round_up(x, m):
    return (x + m - 1) // m * m


def _tile_bytes(*dims):
    dims = list(dims)
    dims[-1] = _round_up(dims[-1], 128)
    if len(dims) >= 2:
        dims[-2] = _round_up(dims[-2], 8)
    n = 1
    for d in dims:
        n *= d
    return n * 4   # f32


def _vmem_limit_bytes(H, W, Cin, Cmid, Cout):
    cmax = max(Cin, Cmid)
    need = (
        2 * _tile_bytes(H, W, Cin)                              # input block (2x buf)
        + 2 * _tile_bytes(H, W, Cout)                           # output block (2x buf)
        + 2 * (_tile_bytes(9 * Cin, Cmid) + _tile_bytes(9 * Cmid, Cout))
        + 4 * (_tile_bytes(1, Cmid) + _tile_bytes(1, Cout))     # affine params
        + _tile_bytes(H, W, 9 * cmax)                           # shared im2col scratch
        + _tile_bytes(H, W, Cmid)                               # staged GELU(conv1)
    )
    return int(min(max(2 * need, 32 << 20), 100 << 20))


@functools.partial(jax.jit, static_argnames=("residual",))
def double_conv(x_nchw, params, residual=False):
    """DoubleConv.forward.  x_nchw: (N, Cin, H, W) float32 -> (N, Cout, H, W)."""
    N, Cin, H, W = x_nchw.shape
    Cmid = params["w1"].shape[0]
    Cout = params["w2"].shape[0]
    if residual and Cin != Cout:
        raise ValueError("residual=True requires in_channels == out_channels")

    f32 = jnp.float32
    # NCHW -> NHWC: channels become the lane (minor) dim for the whole kernel.
    x_nhwc = jnp.transpose(x_nchw, (0, 2, 3, 1)).astype(f32)
    # Conv weights: OIHW -> (kh, kw, ci, co) -> (9*ci, co); cast once here.
    w1m = jnp.transpose(params["w1"], (2, 3, 1, 0)).reshape(9 * Cin, Cmid).astype(f32)
    w2m = jnp.transpose(params["w2"], (2, 3, 1, 0)).reshape(9 * Cmid, Cout).astype(f32)
    g1 = params["g1"].reshape(1, Cmid).astype(f32)
    b1 = params["b1"].reshape(1, Cmid).astype(f32)
    g2 = params["g2"].reshape(1, Cout).astype(f32)
    b2 = params["b2"].reshape(1, Cout).astype(f32)

    kernel = _make_double_conv_kernel(H, W, Cin, Cmid, Cout, residual)
    rep2 = lambda n: (0, 0)   # weights / affine params: resident, same block every step

    out_nhwc = pl.pallas_call(
        kernel,
        out_shape=jax.ShapeDtypeStruct((N, H, W, Cout), f32),
        grid=(N,),
        in_specs=[
            pl.BlockSpec((None, H, W, Cin), lambda n: (n, 0, 0, 0)),
            pl.BlockSpec((9 * Cin, Cmid), rep2),
            pl.BlockSpec((1, Cmid), rep2),
            pl.BlockSpec((1, Cmid), rep2),
            pl.BlockSpec((9 * Cmid, Cout), rep2),
            pl.BlockSpec((1, Cout), rep2),
            pl.BlockSpec((1, Cout), rep2),
        ],
        out_specs=pl.BlockSpec((None, H, W, Cout), lambda n: (n, 0, 0, 0)),
        scratch_shapes=[
            pltpu.VMEM((H, W, 9 * max(Cin, Cmid)), f32),   # shared im2col (both convs)
            pltpu.VMEM((H, W, Cmid), f32),                 # staged GELU(conv1) output
        ],
        compiler_params=pltpu.CompilerParams(
            # Batch samples are independent -> shard across TCs on v7x.
            dimension_semantics=("parallel",),
            vmem_limit_bytes=_vmem_limit_bytes(H, W, Cin, Cmid, Cout),
        ),
    )(x_nhwc, w1m, g1, b1, w2m, g2, b2)

    # NHWC -> NCHW
    return jnp.transpose(out_nhwc, (0, 3, 1, 2))


# ----------------------------- pure-JAX reference -----------------------------
def _ref_double_conv(x, params, residual=False):
    def conv(x, w):
        return jax.lax.conv_general_dilated(
            x, w, (1, 1), ((1, 1), (1, 1)),
            dimension_numbers=("NCHW", "OIHW", "NCHW"),
            precision=jax.lax.Precision.HIGHEST)

    def gn(x, g, b):
        mean = jnp.mean(x, axis=(1, 2, 3), keepdims=True)
        var = jnp.mean(jnp.square(x - mean), axis=(1, 2, 3), keepdims=True)
        xn = (x - mean) * jax.lax.rsqrt(var + _EPS)
        return xn * g[None, :, None, None] + b[None, :, None, None]

    def gelu(v):  # exact erf GELU (PyTorch nn.GELU default)
        return 0.5 * v * (1.0 + jax.lax.erf(v * _INV_SQRT2))

    h = gelu(gn(conv(x, params["w1"]), params["g1"], params["b1"]))
    y = gn(conv(h, params["w2"]), params["g2"], params["b2"])
    if residual:
        return gelu(x + y)
    return y


if __name__ == "__main__":
    key = jax.random.PRNGKey(0)
    N, Cin, Cout, H, W = 2, 4, 8, 16, 16
    k = jax.random.split(key, 8)

    # Deterministic synthetic parameters (shapes as in DoubleConv.__init__,
    # mid_channels = out_channels; conv bias=False; GroupNorm affine params).
    params = {
        "w1": 0.1 * jax.random.normal(k[0], (Cout, Cin, 3, 3), jnp.float32),
        "g1": 1.0 + 0.1 * jax.random.normal(k[1], (Cout,), jnp.float32),
        "b1": 0.1 * jax.random.normal(k[2], (Cout,), jnp.float32),
        "w2": 0.1 * jax.random.normal(k[3], (Cout, Cout, 3, 3), jnp.float32),
        "g2": 1.0 + 0.1 * jax.random.normal(k[4], (Cout,), jnp.float32),
        "b2": 0.1 * jax.random.normal(k[5], (Cout,), jnp.float32),
    }
    x = jax.random.normal(k[6], (N, Cin, H, W), jnp.float32)

    # residual=False path
    out = jax.block_until_ready(double_conv(x, params, residual=False))
    ref = _ref_double_conv(x, params, residual=False)
    assert out.shape == (N, Cout, H, W)
    err = float(jnp.max(jnp.abs(out - ref)))
    assert err < 5e-3, f"residual=False max abs err {err}"

    # residual=True path (requires in_channels == out_channels)
    params_r = {
        "w1": 0.1 * jax.random.normal(k[0], (Cin, Cin, 3, 3), jnp.float32),
        "g1": jnp.ones((Cin,), jnp.float32),
        "b1": jnp.zeros((Cin,), jnp.float32),
        "w2": 0.1 * jax.random.normal(k[3], (Cin, Cin, 3, 3), jnp.float32),
        "g2": jnp.ones((Cin,), jnp.float32),
        "b2": jnp.zeros((Cin,), jnp.float32),
    }
    out_r = jax.block_until_ready(double_conv(x, params_r, residual=True))
    ref_r = _ref_double_conv(x, params_r, residual=True)
    err_r = float(jnp.max(jnp.abs(out_r - ref_r)))
    assert err_r < 5e-3, f"residual=True max abs err {err_r}"

    print("KERNEL_OK")
</pallas_src>

<mosaic_0001>
module attributes {stable_mosaic.version = 11 : i64} {
  func.func @kernel(%arg0: i32, %arg1: memref<1x16x16x4xf32, #tpu.memory_space<vmem>>, %arg2: memref<36x8xf32, #tpu.memory_space<vmem>>, %arg3: memref<1x8xf32, #tpu.memory_space<vmem>>, %arg4: memref<1x8xf32, #tpu.memory_space<vmem>>, %arg5: memref<72x8xf32, #tpu.memory_space<vmem>>, %arg6: memref<1x8xf32, #tpu.memory_space<vmem>>, %arg7: memref<1x8xf32, #tpu.memory_space<vmem>>, %arg8: memref<1x16x16x8xf32, #tpu.memory_space<vmem>>, %arg9: memref<16x16x72xf32, #tpu.memory_space<vmem>>, %arg10: memref<16x16x8xf32, #tpu.memory_space<vmem>>) attributes {dimension_semantics = [#tpu.dimension_semantics<parallel>], iteration_bounds = array<i64: 2>, scalar_prefetch = 0 : i64, scratch_operands = 2 : i64, tpu.core_type = #tpu.core_type<tc>, window_params = [{transform_indices = @transform_0, window_bounds = array<i64: 1, 16, 16, 4>}, {pipeline_mode = #tpu.pipeline_mode<synchronous>, transform_indices = @transform_1, window_bounds = array<i64: 36, 8>}, {pipeline_mode = #tpu.pipeline_mode<synchronous>, transform_indices = @transform_2, window_bounds = array<i64: 1, 8>}, {pipeline_mode = #tpu.pipeline_mode<synchronous>, transform_indices = @transform_3, window_bounds = array<i64: 1, 8>}, {pipeline_mode = #tpu.pipeline_mode<synchronous>, transform_indices = @transform_4, window_bounds = array<i64: 72, 8>}, {pipeline_mode = #tpu.pipeline_mode<synchronous>, transform_indices = @transform_5, window_bounds = array<i64: 1, 8>}, {pipeline_mode = #tpu.pipeline_mode<synchronous>, transform_indices = @transform_6, window_bounds = array<i64: 1, 8>}, {transform_indices = @transform_7, window_bounds = array<i64: 1, 16, 16, 8>}]} {
    %cst = arith.constant 0.000000e+00 : f32
    %0 = vector.broadcast %cst : f32 to vector<1x16x4xf32>
    %cst_0 = arith.constant 0.000000e+00 : f32
    %1 = vector.broadcast %cst_0 : f32 to vector<16x1x4xf32>
    %c0 = arith.constant 0 : index
    %c0_1 = arith.constant 0 : index
    %c0_2 = arith.constant 0 : index
    %2 = vector.load %arg9[%c0, %c0_1, %c0_2] : memref<16x16x72xf32, #tpu.memory_space<vmem>>, vector<1x16x4xf32>
    tpu.vector_store %arg9[%c0, %c0_1, %c0_2], %0 {strides = array<i32>} : memref<16x16x72xf32, #tpu.memory_space<vmem>>, vector<1x16x4xf32>,
    %c0_3 = arith.constant 0 : index
    %c0_4 = arith.constant 0 : index
    %c0_5 = arith.constant 0 : index
    %3 = vector.load %arg9[%c0_3, %c0_4, %c0_5] : memref<16x16x72xf32, #tpu.memory_space<vmem>>, vector<16x1x4xf32>
    tpu.vector_store %arg9[%c0_3, %c0_4, %c0_5], %1 {strides = array<i32>} : memref<16x16x72xf32, #tpu.memory_space<vmem>>, vector<16x1x4xf32>,
    %c0_6 = arith.constant 0 : index
    %c0_7 = arith.constant 0 : index
    %c0_8 = arith.constant 0 : index
    %c0_9 = arith.constant 0 : index
    %4 = vector.load %arg1[%c0_6, %c0_7, %c0_8, %c0_9] : memref<1x16x16x4xf32, #tpu.memory_space<vmem>>, vector<1x15x15x4xf32>
    %5 = vector.shape_cast %4 : vector<1x15x15x4xf32> to vector<15x15x4xf32>
    %c1 = arith.constant 1 : index
    %c1_10 = arith.constant 1 : index
    %c0_11 = arith.constant 0 : index
    %6 = vector.load %arg9[%c1, %c1_10, %c0_11] : memref<16x16x72xf32, #tpu.memory_space<vmem>>, vector<15x15x4xf32>
    tpu.vector_store %arg9[%c1, %c1_10, %c0_11], %5 {strides = array<i32>} : memref<16x16x72xf32, #tpu.memory_space<vmem>>, vector<15x15x4xf32>,
    %c0_12 = arith.constant 0 : index
    %c0_13 = arith.constant 0 : index
    %c4 = arith.constant 4 : index
    %7 = vector.load %arg9[%c0_12, %c0_13, %c4] : memref<16x16x72xf32, #tpu.memory_space<vmem>>, vector<1x16x4xf32>
    tpu.vector_store %arg9[%c0_12, %c0_13, %c4], %0 {strides = array<i32>} : memref<16x16x72xf32, #tpu.memory_space<vmem>>, vector<1x16x4xf32>,
    %c0_14 = arith.constant 0 : index
    %c0_15 = arith.constant 0 : index
    %c0_16 = arith.constant 0 : index
    %c0_17 = arith.constant 0 : index
    %8 = vector.load %arg1[%c0_14, %c0_15, %c0_16, %c0_17] : memref<1x16x16x4xf32, #tpu.memory_space<vmem>>, vector<1x15x16x4xf32>
    %9 = vector.shape_cast %8 : vector<1x15x16x4xf32> to vector<15x16x4xf32>
    %c1_18 = arith.constant 1 : index
    %c0_19 = arith.constant 0 : index
    %c4_20 = arith.constant 4 : index
    %10 = vector.load %arg9[%c1_18, %c0_19, %c4_20] : memref<16x16x72xf32, #tpu.memory_space<vmem>>, vector<15x16x4xf32>
    tpu.vector_store %arg9[%c1_18, %c0_19, %c4_20], %9 {strides = array<i32>} : memref<16x16x72xf32, #tpu.memory_space<vmem>>, vector<15x16x4xf32>,
    %c0_21 = arith.constant 0 : index
    %c0_22 = arith.constant 0 : index
    %c8 = arith.constant 8 : index
    %11 = vector.load %arg9[%c0_21, %c0_22, %c8] : memref<16x16x72xf32, #tpu.memory_space<vmem>>, vector<1x16x4xf32>
    tpu.vector_store %arg9[%c0_21, %c0_22, %c8], %0 {strides = array<i32>} : memref<16x16x72xf32, #tpu.memory_space<vmem>>, vector<1x16x4xf32>,
    %c0_23 = arith.constant 0 : index
    %c15 = arith.constant 15 : index
    %c8_24 = arith.constant 8 : index
    %12 = vector.load %arg9[%c0_23, %c15, %c8_24] : memref<16x16x72xf32, #tpu.memory_space<vmem>>, vector<16x1x4xf32>
    tpu.vector_store %arg9[%c0_23, %c15, %c8_24], %1 {strides = array<i32>} : memref<16x16x72xf32, #tpu.memory_space<vmem>>, vector<16x1x4xf32>,
    %c0_25 = arith.constant 0 : index
    %c0_26 = arith.constant 0 : index
    %c1_27 = arith.constant 1 : index
    %c0_28 = arith.constant 0 : index
    %13 = vector.load %arg1[%c0_25, %c0_26, %c1_27, %c0_28] : memref<1x16x16x4xf32, #tpu.memory_space<vmem>>, vector<1x15x15x4xf32>
    %14 = vector.shape_cast %13 : vector<1x15x15x4xf32> to vector<15x15x4xf32>
    %c1_29 = arith.constant 1 : index
    %c0_30 = arith.constant 0 : index
    %c8_31 = arith.constant 8 : index
    %15 = vector.load %arg9[%c1_29, %c0_30, %c8_31] : memref<16x16x72xf32, #tpu.memory_space<vmem>>, vector<15x15x4xf32>
    tpu.vector_store %arg9[%c1_29, %c0_30, %c8_31], %14 {strides = array<i32>} : memref<16x16x72xf32, #tpu.memory_space<vmem>>, vector<15x15x4xf32>,
    %c0_32 = arith.constant 0 : index
    %c0_33 = arith.constant 0 : index
    %c12 = arith.constant 12 : index
    %16 = vector.load %arg9[%c0_32, %c0_33, %c12] : memref<16x16x72xf32, #tpu.memory_space<vmem>>, vector<16x1x4xf32>
    tpu.vector_store %arg9[%c0_32, %c0_33, %c12], %1 {strides = array<i32>} : memref<16x16x72xf32, #tpu.memory_space<vmem>>, vector<16x1x4xf32>,
    %c0_34 = arith.constant 0 : index
    %c0_35 = arith.constant 0 : index
    %c0_36 = arith.constant 0 : index
    %c0_37 = arith.constant 0 : index
    %17 = vector.load %arg1[%c0_34, %c0_35, %c0_36, %c0_37] : memref<1x16x16x4xf32, #tpu.memory_space<vmem>>, vector<1x16x15x4xf32>
    %18 = vector.shape_cast %17 : vector<1x16x15x4xf32> to vector<16x15x4xf32>
    %c0_38 = arith.constant 0 : index
    %c1_39 = arith.constant 1 : index
    %c12_40 = arith.constant 12 : index
    %19 = vector.load %arg9[%c0_38, %c1_39, %c12_40] : memref<16x16x72xf32, #tpu.memory_space<vmem>>, vector<16x15x4xf32>
    tpu.vector_store %arg9[%c0_38, %c1_39, %c12_40], %18 {strides = array<i32>} : memref<16x16x72xf32, #tpu.memory_space<vmem>>, vector<16x15x4xf32>,
    %c0_41 = arith.constant 0 : index
    %c0_42 = arith.constant 0 : index
    %c0_43 = arith.constant 0 : index
    %c0_44 = arith.constant 0 : index
    %20 = vector.load %arg1[%c0_41, %c0_42, %c0_43, %c0_44] : memref<1x16x16x4xf32, #tpu.memory_space<vmem>>, vector<1x16x16x4xf32>
    %21 = vector.shape_cast %20 : vector<1x16x16x4xf32> to vector<16x16x4xf32>
    %c0_45 = arith.constant 0 : index
    %c0_46 = arith.constant 0 : index
    %c16 = arith.constant 16 : index
    %22 = vector.load %arg9[%c0_45, %c0_46, %c16] : memref<16x16x72xf32, #tpu.memory_space<vmem>>, vector<16x16x4xf32>
    tpu.vector_store %arg9[%c0_45, %c0_46, %c16], %21 {strides = array<i32>} : memref<16x16x72xf32, #tpu.memory_space<vmem>>, vector<16x16x4xf32>,
    %c0_47 = arith.constant 0 : index
    %c15_48 = arith.constant 15 : index
    %c20 = arith.constant 20 : index
    %23 = vector.load %arg9[%c0_47, %c15_48, %c20] : memref<16x16x72xf32, #tpu.memory_space<vmem>>, vector<16x1x4xf32>
    tpu.vector_store %arg9[%c0_47, %c15_48, %c20], %1 {strides = array<i32>} : memref<16x16x72xf32, #tpu.memory_space<vmem>>, vector<16x1x4xf32>,
    %c0_49 = arith.constant 0 : index
    %c0_50 = arith.constant 0 : index
    %c1_51 = arith.constant 1 : index
    %c0_52 = arith.constant 0 : index
    %24 = vector.load %arg1[%c0_49, %c0_50, %c1_51, %c0_52] : memref<1x16x16x4xf32, #tpu.memory_space<vmem>>, vector<1x16x15x4xf32>
    %25 = vector.shape_cast %24 : vector<1x16x15x4xf32> to vector<16x15x4xf32>
    %c0_53 = arith.constant 0 : index
    %c0_54 = arith.constant 0 : index
    %c20_55 = arith.constant 20 : index
    %26 = vector.load %arg9[%c0_53, %c0_54, %c20_55] : memref<16x16x72xf32, #tpu.memory_space<vmem>>, vector<16x15x4xf32>
    tpu.vector_store %arg9[%c0_53, %c0_54, %c20_55], %25 {strides = array<i32>} : memref<16x16x72xf32, #tpu.memory_space<vmem>>, vector<16x15x4xf32>,
    %c15_56 = arith.constant 15 : index
    %c0_57 = arith.constant 0 : index
    %c24 = arith.constant 24 : index
    %27 = vector.load %arg9[%c15_56, %c0_57, %c24] : memref<16x16x72xf32, #tpu.memory_space<vmem>>, vector<1x16x4xf32>
    tpu.vector_store %arg9[%c15_56, %c0_57, %c24], %0 {strides = array<i32>} : memref<16x16x72xf32, #tpu.memory_space<vmem>>, vector<1x16x4xf32>,
    %c0_58 = arith.constant 0 : index
    %c0_59 = arith.constant 0 : index
    %c24_60 = arith.constant 24 : index
    %28 = vector.load %arg9[%c0_58, %c0_59, %c24_60] : memref<16x16x72xf32, #tpu.memory_space<vmem>>, vector<16x1x4xf32>
    tpu.vector_store %arg9[%c0_58, %c0_59, %c24_60], %1 {strides = array<i32>} : memref<16x16x72xf32, #tpu.memory_space<vmem>>, vector<16x1x4xf32>,
    %c0_61 = arith.constant 0 : index
    %c1_62 = arith.constant 1 : index
    %c0_63 = arith.constant 0 : index
    %c0_64 = arith.constant 0 : index
    %29 = vector.load %arg1[%c0_61, %c1_62, %c0_63, %c0_64] : memref<1x16x16x4xf32, #tpu.memory_space<vmem>>, vector<1x15x15x4xf32>
    %30 = vector.shape_cast %29 : vector<1x15x15x4xf32> to vector<15x15x4xf32>
    %c0_65 = arith.constant 0 : index
    %c1_66 = arith.constant 1 : index
    %c24_67 = arith.constant 24 : index
    %31 = vector.load %arg9[%c0_65, %c1_66, %c24_67] : memref<16x16x72xf32, #tpu.memory_space<vmem>>, vector<15x15x4xf32>
    tpu.vector_store %arg9[%c0_65, %c1_66, %c24_67], %30 {strides = array<i32>} : memref<16x16x72xf32, #tpu.memory_space<vmem>>, vector<15x15x4xf32>,
    %c15_68 = arith.constant 15 : index
    %c0_69 = arith.constant 0 : index
    %c28 = arith.constant 28 : index
    %32 = vector.load %arg9[%c15_68, %c0_69, %c28] : memref<16x16x72xf32, #tpu.memory_space<vmem>>, vector<1x16x4xf32>
    tpu.vector_store %arg9[%c15_68, %c0_69, %c28], %0 {strides = array<i32>} : memref<16x16x72xf32, #tpu.memory_space<vmem>>, vector<1x16x4xf32>,
    %c0_70 = arith.constant 0 : index
    %c1_71 = arith.constant 1 : index
    %c0_72 = arith.constant 0 : index
    %c0_73 = arith.constant 0 : index
    %33 = vector.load %arg1[%c0_70, %c1_71, %c0_72, %c0_73] : memref<1x16x16x4xf32, #tpu.memory_space<vmem>>, vector<1x15x16x4xf32>
    %34 = vector.shape_cast %33 : vector<1x15x16x4xf32> to vector<15x16x4xf32>
    %c0_74 = arith.constant 0 : index
    %c0_75 = arith.constant 0 : index
    %c28_76 = arith.constant 28 : index
    %35 = vector.load %arg9[%c0_74, %c0_75, %c28_76] : memref<16x16x72xf32, #tpu.memory_space<vmem>>, vector<15x16x4xf32>
    tpu.vector_store %arg9[%c0_74, %c0_75, %c28_76], %34 {strides = array<i32>} : memref<16x16x72xf32, #tpu.memory_space<vmem>>, vector<15x16x4xf32>,
    %c15_77 = arith.constant 15 : index
    %c0_78 = arith.constant 0 : index
    %c32 = arith.constant 32 : index
    %36 = vector.load %arg9[%c15_77, %c0_78, %c32] : memref<16x16x72xf32, #tpu.memory_space<vmem>>, vector<1x16x4xf32>
    tpu.vector_store %arg9[%c15_77, %c0_78, %c32], %0 {strides = array<i32>} : memref<16x16x72xf32, #tpu.memory_space<vmem>>, vector<1x16x4xf32>,
    %c0_79 = arith.constant 0 : index
    %c15_80 = arith.constant 15 : index
    %c32_81 = arith.constant 32 : index
    %37 = vector.load %arg9[%c0_79, %c15_80, %c32_81] : memref<16x16x72xf32, #tpu.memory_space<vmem>>, vector<16x1x4xf32>
    tpu.vector_store %arg9[%c0_79, %c15_80, %c32_81], %1 {strides = array<i32>} : memref<16x16x72xf32, #tpu.memory_space<vmem>>, vector<16x1x4xf32>,
    %c0_82 = arith.constant 0 : index
    %c1_83 = arith.constant 1 : index
    %c1_84 = arith.constant 1 : index
    %c0_85 = arith.constant 0 : index
    %38 = vector.load %arg1[%c0_82, %c1_83, %c1_84, %c0_85] : memref<1x16x16x4xf32, #tpu.memory_space<vmem>>, vector<1x15x15x4xf32>
    %39 = vector.shape_cast %38 : vector<1x15x15x4xf32> to vector<15x15x4xf32>
    %c0_86 = arith.constant 0 : index
    %c0_87 = arith.constant 0 : index
    %c32_88 = arith.constant 32 : index
    %40 = vector.load %arg9[%c0_86, %c0_87, %c32_88] : memref<16x16x72xf32, #tpu.memory_space<vmem>>, vector<15x15x4xf32>
    tpu.vector_store %arg9[%c0_86, %c0_87, %c32_88], %39 {strides = array<i32>} : memref<16x16x72xf32, #tpu.memory_space<vmem>>, vector<15x15x4xf32>,
    %c0_89 = arith.constant 0 : index
    %c0_90 = arith.constant 0 : index
    %c0_91 = arith.constant 0 : index
    %41 = vector.load %arg9[%c0_89, %c0_90, %c0_91] : memref<16x16x72xf32, #tpu.memory_space<vmem>>, vector<16x16x36xf32>
    %42 = vector.shape_cast %41 : vector<16x16x36xf32> to vector<256x36xf32>
    %c0_92 = arith.constant 0 : index
    %c0_93 = arith.constant 0 : index
    %43 = vector.load %arg2[%c0_92, %c0_93] : memref<36x8xf32, #tpu.memory_space<vmem>>, vector<36x8xf32>
    %cst_94 = arith.constant dense<0.000000e+00> : vector<256x8xf32>
    %44 = tpu.matmul %42, %43, %cst_94 {dimension_numbers = #tpu.dot_dimension_numbers<[1], [0], [0], [1], [0, 0, 1, 1], [], []>} : vector<256x36xf32>, vector<36x8xf32>, vector<256x8xf32> -> vector<256x8xf32>
    %45 = vector.shape_cast %44 : vector<256x8xf32> to vector<1x256x8xf32>
    %cst_95 = arith.constant dense<0.000000e+00> : vector<1xf32>
    %46 = vector.multi_reduction <add>, %45, %cst_95 [1, 2] : vector<1x256x8xf32> to vector<1xf32>
    %47 = vector.shape_cast %46 : vector<1xf32> to vector<1x1x1xf32>
    %48 = vector.extract %47[0, 0, 0] : f32 from vector<1x1x1xf32>
    %49 = vector.broadcast %48 : f32 to vector<1x1xf32>
    %cst_96 = arith.constant 2.048000e+03 : f32
    %50 = vector.broadcast %cst_96 : f32 to vector<1x1xf32>
    %51 = arith.divf %49, %50 : vector<1x1xf32>
    %52 = vector.broadcast %51 : vector<1x1xf32> to vector<256x8xf32>
    %53 = arith.subf %44, %52 : vector<256x8xf32>
    %54 = arith.mulf %53, %53 : vector<256x8xf32>
    %55 = vector.shape_cast %54 : vector<256x8xf32> to vector<1x256x8xf32>
    %cst_97 = arith.constant dense<0.000000e+00> : vector<1xf32>
    %56 = vector.multi_reduction <add>, %55, %cst_97 [1, 2] : vector<1x256x8xf32> to vector<1xf32>
    %57 = vector.shape_cast %56 : vector<1xf32> to vector<1x1x1xf32>
    %58 = vector.extract %57[0, 0, 0] : f32 from vector<1x1x1xf32>
    %59 = vector.broadcast %58 : f32 to vector<1x1xf32>
    %cst_98 = arith.constant 2.048000e+03 : f32
    %60 = vector.broadcast %cst_98 : f32 to vector<1x1xf32>
    %61 = arith.divf %59, %60 : vector<1x1xf32>
    %cst_99 = arith.constant 9.99999974E-6 : f32
    %62 = vector.broadcast %cst_99 : f32 to vector<1x1xf32>
    %63 = arith.addf %61, %62 : vector<1x1xf32>
    %64 = math.rsqrt %63 : vector<1x1xf32>
    %c0_100 = arith.constant 0 : index
    %c0_101 = arith.constant 0 : index
    %65 = vector.load %arg3[%c0_100, %c0_101] : memref<1x8xf32, #tpu.memory_space<vmem>>, vector<1x8xf32>
    %66 = vector.broadcast %64 : vector<1x1xf32> to vector<1x8xf32>
    %67 = arith.mulf %65, %66 : vector<1x8xf32>
    %c0_102 = arith.constant 0 : index
    %c0_103 = arith.constant 0 : index
    %68 = vector.load %arg4[%c0_102, %c0_103] : memref<1x8xf32, #tpu.memory_space<vmem>>, vector<1x8xf32>
    %69 = vector.broadcast %51 : vector<1x1xf32> to vector<1x8xf32>
    %70 = arith.mulf %69, %67 : vector<1x8xf32>
    %71 = arith.subf %68, %70 : vector<1x8xf32>
    %72 = vector.broadcast %67 : vector<1x8xf32> to vector<256x8xf32>
    %73 = arith.mulf %44, %72 : vector<256x8xf32>
    %74 = vector.broadcast %71 : vector<1x8xf32> to vector<256x8xf32>
    %75 = arith.addf %73, %74 : vector<256x8xf32>
    %cst_104 = arith.constant 0.707106769 : f32
    %76 = vector.broadcast %cst_104 : f32 to vector<256x8xf32>
    %77 = arith.mulf %75, %76 : vector<256x8xf32>
    %78 = math.absf %77 : vector<256x8xf32>
    %cst_105 = arith.constant 0.327591091 : f32
    %79 = vector.broadcast %cst_105 : f32 to vector<256x8xf32>
    %80 = arith.mulf %79, %78 : vector<256x8xf32>
    %cst_106 = arith.constant 1.000000e+00 : f32
    %81 = vector.broadcast %cst_106 : f32 to vector<256x8xf32>
    %82 = arith.addf %81, %80 : vector<256x8xf32>
    %cst_107 = arith.constant 1.000000e+00 : f32
    %83 = vector.broadcast %cst_107 : f32 to vector<256x8xf32>
    %84 = arith.divf %83, %82 : vector<256x8xf32>
    %cst_108 = arith.constant 1.06140542 : f32
    %85 = vector.broadcast %cst_108 : f32 to vector<256x8xf32>
    %86 = arith.mulf %84, %85 : vector<256x8xf32>
    %cst_109 = arith.constant -1.45315206 : f32
    %87 = vector.broadcast %cst_109 : f32 to vector<256x8xf32>
    %88 = arith.addf %87, %86 : vector<256x8xf32>
    %89 = arith.mulf %84, %88 : vector<256x8xf32>
    %cst_110 = arith.constant 1.42141378 : f32
    %90 = vector.broadcast %cst_110 : f32 to vector<256x8xf32>
    %91 = arith.addf %90, %89 : vector<256x8xf32>
    %92 = arith.mulf %84, %91 : vector<256x8xf32>
    %cst_111 = arith.constant -0.284496725 : f32
    %93 = vector.broadcast %cst_111 : f32 to vector<256x8xf32>
    %94 = arith.addf %93, %92 : vector<256x8xf32>
    %95 = arith.mulf %84, %94 : vector<256x8xf32>
    %cst_112 = arith.constant 0.254829586 : f32
    %96 = vector.broadcast %cst_112 : f32 to vector<256x8xf32>
    %97 = arith.addf %96, %95 : vector<256x8xf32>
    %98 = arith.mulf %84, %97 : vector<256x8xf32>
    %cst_113 = arith.constant 0.000000e+00 : f32
    %99 = vector.broadcast %cst_113 : f32 to vector<256x8xf32>
    %100 = arith.subf %99, %78 : vector<256x8xf32>
    %101 = arith.mulf %100, %78 : vector<256x8xf32>
    %102 = math.exp %101 : vector<256x8xf32>
    %103 = arith.mulf %98, %102 : vector<256x8xf32>
    %cst_114 = arith.constant 1.000000e+00 : f32
    %104 = vector.broadcast %cst_114 : f32 to vector<256x8xf32>
    %105 = arith.subf %104, %103 : vector<256x8xf32>
    %cst_115 = arith.constant 0.000000e+00 : f32
    %106 = vector.broadcast %cst_115 : f32 to vector<256x8xf32>
    %107 = arith.cmpf oge, %77, %106 : vector<256x8xf32>
    %cst_116 = arith.constant 0.000000e+00 : f32
    %108 = vector.broadcast %cst_116 : f32 to vector<256x8xf32>
    %109 = arith.subf %108, %105 : vector<256x8xf32>
    %110 = arith.select %107, %105, %109 : vector<256x8xi1>, vector<256x8xf32>
    %cst_117 = arith.constant 5.000000e-01 : f32
    %111 = vector.broadcast %cst_117 : f32 to vector<256x8xf32>
    %112 = arith.mulf %111, %75 : vector<256x8xf32>
    %cst_118 = arith.constant 1.000000e+00 : f32
    %113 = vector.broadcast %cst_118 : f32 to vector<256x8xf32>
    %114 = arith.addf %113, %110 : vector<256x8xf32>
    %115 = arith.mulf %112, %114 : vector<256x8xf32>
    %116 = vector.shape_cast %115 : vector<256x8xf32> to vector<16x16x8xf32>
    %c0_119 = arith.constant 0 : index
    %c0_120 = arith.constant 0 : index
    %c0_121 = arith.constant 0 : index
    %117 = vector.load %arg10[%c0_119, %c0_120, %c0_121] : memref<16x16x8xf32, #tpu.memory_space<vmem>>, vector<16x16x8xf32>
    tpu.vector_store %arg10[%c0_119, %c0_120, %c0_121], %116 {strides = array<i32>} : memref<16x16x8xf32, #tpu.memory_space<vmem>>, vector<16x16x8xf32>,
    %cst_122 = arith.constant 0.000000e+00 : f32
    %118 = vector.broadcast %cst_122 : f32 to vector<1x16x8xf32>
    %cst_123 = arith.constant 0.000000e+00 : f32
    %119 = vector.broadcast %cst_123 : f32 to vector<16x1x8xf32>
    %c0_124 = arith.constant 0 : index
    %c0_125 = arith.constant 0 : index
    %c0_126 = arith.constant 0 : index
    %120 = vector.load %arg9[%c0_124, %c0_125, %c0_126] : memref<16x16x72xf32, #tpu.memory_space<vmem>>, vector<1x16x8xf32>
    tpu.vector_store %arg9[%c0_124, %c0_125, %c0_126], %118 {strides = array<i32>} : memref<16x16x72xf32, #tpu.memory_space<vmem>>, vector<1x16x8xf32>,
    %c0_127 = arith.constant 0 : index
    %c0_128 = arith.constant 0 : index
    %c0_129 = arith.constant 0 : index
    %121 = vector.load %arg9[%c0_127, %c0_128, %c0_129] : memref<16x16x72xf32, #tpu.memory_space<vmem>>, vector<16x1x8xf32>
    tpu.vector_store %arg9[%c0_127, %c0_128, %c0_129], %119 {strides = array<i32>} : memref<16x16x72xf32, #tpu.memory_space<vmem>>, vector<16x1x8xf32>,
    %c0_130 = arith.constant 0 : index
    %c0_131 = arith.constant 0 : index
    %c0_132 = arith.constant 0 : index
    %122 = vector.load %arg10[%c0_130, %c0_131, %c0_132] : memref<16x16x8xf32, #tpu.memory_space<vmem>>, vector<15x15x8xf32>
    %c1_133 = arith.constant 1 : index
    %c1_134 = arith.constant 1 : index
    %c0_135 = arith.constant 0 : index
    %123 = vector.load %arg9[%c1_133, %c1_134, %c0_135] : memref<16x16x72xf32, #tpu.memory_space<vmem>>, vector<15x15x8xf32>
    tpu.vector_store %arg9[%c1_133, %c1_134, %c0_135], %122 {strides = array<i32>} : memref<16x16x72xf32, #tpu.memory_space<vmem>>, vector<15x15x8xf32>,
    %c0_136 = arith.constant 0 : index
    %c0_137 = arith.constant 0 : index
    %c8_138 = arith.constant 8 : index
    %124 = vector.load %arg9[%c0_136, %c0_137, %c8_138] : memref<16x16x72xf32, #tpu.memory_space<vmem>>, vector<1x16x8xf32>
    tpu.vector_store %arg9[%c0_136, %c0_137, %c8_138], %118 {strides = array<i32>} : memref<16x16x72xf32, #tpu.memory_space<vmem>>, vector<1x16x8xf32>,
    %c0_139 = arith.constant 0 : index
    %c0_140 = arith.constant 0 : index
    %c0_141 = arith.constant 0 : index
    %125 = vector.load %arg10[%c0_139, %c0_140, %c0_141] : memref<16x16x8xf32, #tpu.memory_space<vmem>>, vector<15x16x8xf32>
    %c1_142 = arith.constant 1 : index
    %c0_143 = arith.constant 0 : index
    %c8_144 = arith.constant 8 : index
    %126 = vector.load %arg9[%c1_142, %c0_143, %c8_144] : memref<16x16x72xf32, #tpu.memory_space<vmem>>, vector<15x16x8xf32>
    tpu.vector_store %arg9[%c1_142, %c0_143, %c8_144], %125 {strides = array<i32>} : memref<16x16x72xf32, #tpu.memory_space<vmem>>, vector<15x16x8xf32>,
    %c0_145 = arith.constant 0 : index
    %c0_146 = arith.constant 0 : index
    %c16_147 = arith.constant 16 : index
    %127 = vector.load %arg9[%c0_145, %c0_146, %c16_147] : memref<16x16x72xf32, #tpu.memory_space<vmem>>, vector<1x16x8xf32>
    tpu.vector_store %arg9[%c0_145, %c0_146, %c16_147], %118 {strides = array<i32>} : memref<16x16x72xf32, #tpu.memory_space<vmem>>, vector<1x16x8xf32>,
    %c0_148 = arith.constant 0 : index
    %c15_149 = arith.constant 15 : index
    %c16_150 = arith.constant 16 : index
    %128 = vector.load %arg9[%c0_148, %c15_149, %c16_150] : memref<16x16x72xf32, #tpu.memory_space<vmem>>, vector<16x1x8xf32>
    tpu.vector_store %arg9[%c0_148, %c15_149, %c16_150], %119 {strides = array<i32>} : memref<16x16x72xf32, #tpu.memory_space<vmem>>, vector<16x1x8xf32>,
    %c0_151 = arith.constant 0 : index
    %c1_152 = arith.constant 1 : index
    %c0_153 = arith.constant 0 : index
    %129 = vector.load %arg10[%c0_151, %c1_152, %c0_153] : memref<16x16x8xf32, #tpu.memory_space<vmem>>, vector<15x15x8xf32>
    %c1_154 = arith.constant 1 : index
    %c0_155 = arith.constant 0 : index
    %c16_156 = arith.constant 16 : index
    %130 = vector.load %arg9[%c1_154, %c0_155, %c16_156] : memref<16x16x72xf32, #tpu.memory_space<vmem>>, vector<15x15x8xf32>
    tpu.vector_store %arg9[%c1_154, %c0_155, %c16_156], %129 {strides = array<i32>} : memref<16x16x72xf32, #tpu.memory_space<vmem>>, vector<15x15x8xf32>,
    %c0_157 = arith.constant 0 : index
    %c0_158 = arith.constant 0 : index
    %c24_159 = arith.constant 24 : index
    %131 = vector.load %arg9[%c0_157, %c0_158, %c24_159] : memref<16x16x72xf32, #tpu.memory_space<vmem>>, vector<16x1x8xf32>
    tpu.vector_store %arg9[%c0_157, %c0_158, %c24_159], %119 {strides = array<i32>} : memref<16x16x72xf32, #tpu.memory_space<vmem>>, vector<16x1x8xf32>,
    %c0_160 = arith.constant 0 : index
    %c0_161 = arith.constant 0 : index
    %c0_162 = arith.constant 0 : index
    %132 = vector.load %arg10[%c0_160, %c0_161, %c0_162] : memref<16x16x8xf32, #tpu.memory_space<vmem>>, vector<16x15x8xf32>
    %c0_163 = arith.constant 0 : index
    %c1_164 = arith.constant 1 : index
    %c24_165 = arith.constant 24 : index
    %133 = vector.load %arg9[%c0_163, %c1_164, %c24_165] : memref<16x16x72xf32, #tpu.memory_space<vmem>>, vector<16x15x8xf32>
    tpu.vector_store %arg9[%c0_163, %c1_164, %c24_165], %132 {strides = array<i32>} : memref<16x16x72xf32, #tpu.memory_space<vmem>>, vector<16x15x8xf32>,
    %c0_166 = arith.constant 0 : index
    %c0_167 = arith.constant 0 : index
    %c0_168 = arith.constant 0 : index
    %134 = vector.load %arg10[%c0_166, %c0_167, %c0_168] : memref<16x16x8xf32, #tpu.memory_space<vmem>>, vector<16x16x8xf32>
    %c0_169 = arith.constant 0 : index
    %c0_170 = arith.constant 0 : index
    %c32_171 = arith.constant 32 : index
    %135 = vector.load %arg9[%c0_169, %c0_170, %c32_171] : memref<16x16x72xf32, #tpu.memory_space<vmem>>, vector<16x16x8xf32>
    tpu.vector_store %arg9[%c0_169, %c0_170, %c32_171], %134 {strides = array<i32>} : memref<16x16x72xf32, #tpu.memory_space<vmem>>, vector<16x16x8xf32>,
    %c0_172 = arith.constant 0 : index
    %c15_173 = arith.constant 15 : index
    %c40 = arith.constant 40 : index
    %136 = vector.load %arg9[%c0_172, %c15_173, %c40] : memref<16x16x72xf32, #tpu.memory_space<vmem>>, vector<16x1x8xf32>
    tpu.vector_store %arg9[%c0_172, %c15_173, %c40], %119 {strides = array<i32>} : memref<16x16x72xf32, #tpu.memory_space<vmem>>, vector<16x1x8xf32>,
    %c0_174 = arith.constant 0 : index
    %c1_175 = arith.constant 1 : index
    %c0_176 = arith.constant 0 : index
    %137 = vector.load %arg10[%c0_174, %c1_175, %c0_176] : memref<16x16x8xf32, #tpu.memory_space<vmem>>, vector<16x15x8xf32>
    %c0_177 = arith.constant 0 : index
    %c0_178 = arith.constant 0 : index
    %c40_179 = arith.constant 40 : index
    %138 = vector.load %arg9[%c0_177, %c0_178, %c40_179] : memref<16x16x72xf32, #tpu.memory_space<vmem>>, vector<16x15x8xf32>
    tpu.vector_store %arg9[%c0_177, %c0_178, %c40_179], %137 {strides = array<i32>} : memref<16x16x72xf32, #tpu.memory_space<vmem>>, vector<16x15x8xf32>,
    %c15_180 = arith.constant 15 : index
    %c0_181 = arith.constant 0 : index
    %c48 = arith.constant 48 : index
    %139 = vector.load %arg9[%c15_180, %c0_181, %c48] : memref<16x16x72xf32, #tpu.memory_space<vmem>>, vector<1x16x8xf32>
    tpu.vector_store %arg9[%c15_180, %c0_181, %c48], %118 {strides = array<i32>} : memref<16x16x72xf32, #tpu.memory_space<vmem>>, vector<1x16x8xf32>,
    %c0_182 = arith.constant 0 : index
    %c0_183 = arith.constant 0 : index
    %c48_184 = arith.constant 48 : index
    %140 = vector.load %arg9[%c0_182, %c0_183, %c48_184] : memref<16x16x72xf32, #tpu.memory_space<vmem>>, vector<16x1x8xf32>
    tpu.vector_store %arg9[%c0_182, %c0_183, %c48_184], %119 {strides = array<i32>} : memref<16x16x72xf32, #tpu.memory_space<vmem>>, vector<16x1x8xf32>,
    %c1_185 = arith.constant 1 : index
    %c0_186 = arith.constant 0 : index
    %c0_187 = arith.constant 0 : index
    %141 = vector.load %arg10[%c1_185, %c0_186, %c0_187] : memref<16x16x8xf32, #tpu.memory_space<vmem>>, vector<15x15x8xf32>
    %c0_188 = arith.constant 0 : index
    %c1_189 = arith.constant 1 : index
    %c48_190 = arith.constant 48 : index
    %142 = vector.load %arg9[%c0_188, %c1_189, %c48_190] : memref<16x16x72xf32, #tpu.memory_space<vmem>>, vector<15x15x8xf32>
    tpu.vector_store %arg9[%c0_188, %c1_189, %c48_190], %141 {strides = array<i32>} : memref<16x16x72xf32, #tpu.memory_space<vmem>>, vector<15x15x8xf32>,
    %c15_191 = arith.constant 15 : index
    %c0_192 = arith.constant 0 : index
    %c56 = arith.constant 56 : index
    %143 = vector.load %arg9[%c15_191, %c0_192, %c56] : memref<16x16x72xf32, #tpu.memory_space<vmem>>, vector<1x16x8xf32>
    tpu.vector_store %arg9[%c15_191, %c0_192, %c56], %118 {strides = array<i32>} : memref<16x16x72xf32, #tpu.memory_space<vmem>>, vector<1x16x8xf32>,
    %c1_193 = arith.constant 1 : index
    %c0_194 = arith.constant 0 : index
    %c0_195 = arith.constant 0 : index
    %144 = vector.load %arg10[%c1_193, %c0_194, %c0_195] : memref<16x16x8xf32, #tpu.memory_space<vmem>>, vector<15x16x8xf32>
    %c0_196 = arith.constant 0 : index
    %c0_197 = arith.constant 0 : index
    %c56_198 = arith.constant 56 : index
    %145 = vector.load %arg9[%c0_196, %c0_197, %c56_198] : memref<16x16x72xf32, #tpu.memory_space<vmem>>, vector<15x16x8xf32>
    tpu.vector_store %arg9[%c0_196, %c0_197, %c56_198], %144 {strides = array<i32>} : memref<16x16x72xf32, #tpu.memory_space<vmem>>, vector<15x16x8xf32>,
    %c15_199 = arith.constant 15 : index
    %c0_200 = arith.constant 0 : index
    %c64 = arith.constant 64 : index
    %146 = vector.load %arg9[%c15_199, %c0_200, %c64] : memref<16x16x72xf32, #tpu.memory_space<vmem>>, vector<1x16x8xf32>
    tpu.vector_store %arg9[%c15_199, %c0_200, %c64], %118 {strides = array<i32>} : memref<16x16x72xf32, #tpu.memory_space<vmem>>, vector<1x16x8xf32>,
    %c0_201 = arith.constant 0 : index
    %c15_202 = arith.constant 15 : index
    %c64_203 = arith.constant 64 : index
    %147 = vector.load %arg9[%c0_201, %c15_202, %c64_203] : memref<16x16x72xf32, #tpu.memory_space<vmem>>, vector<16x1x8xf32>
    tpu.vector_store %arg9[%c0_201, %c15_202, %c64_203], %119 {strides = array<i32>} : memref<16x16x72xf32, #tpu.memory_space<vmem>>, vector<16x1x8xf32>,
    %c1_204 = arith.constant 1 : index
    %c1_205 = arith.constant 1 : index
    %c0_206 = arith.constant 0 : index
    %148 = vector.load %arg10[%c1_204, %c1_205, %c0_206] : memref<16x16x8xf32, #tpu.memory_space<vmem>>, vector<15x15x8xf32>
    %c0_207 = arith.constant 0 : index
    %c0_208 = arith.constant 0 : index
    %c64_209 = arith.constant 64 : index
    %149 = vector.load %arg9[%c0_207, %c0_208, %c64_209] : memref<16x16x72xf32, #tpu.memory_space<vmem>>, vector<15x15x8xf32>
    tpu.vector_store %arg9[%c0_207, %c0_208, %c64_209], %148 {strides = array<i32>} : memref<16x16x72xf32, #tpu.memory_space<vmem>>, vector<15x15x8xf32>,
    %c0_210 = arith.constant 0 : index
    %c0_211 = arith.constant 0 : index
    %c0_212 = arith.constant 0 : index
    %150 = vector.load %arg9[%c0_210, %c0_211, %c0_212] : memref<16x16x72xf32, #tpu.memory_space<vmem>>, vector<16x16x72xf32>
    %151 = vector.shape_cast %150 : vector<16x16x72xf32> to vector<256x72xf32>
    %c0_213 = arith.constant 0 : index
    %c0_214 = arith.constant 0 : index
    %152 = vector.load %arg5[%c0_213, %c0_214] : memref<72x8xf32, #tpu.memory_space<vmem>>, vector<72x8xf32>
    %cst_215 = arith.constant dense<0.000000e+00> : vector<256x8xf32>
    %153 = tpu.matmul %151, %152, %cst_215 {dimension_numbers = #tpu.dot_dimension_numbers<[1], [0], [0], [1], [0, 0, 1, 1], [], []>} : vector<256x72xf32>, vector<72x8xf32>, vector<256x8xf32> -> vector<256x8xf32>
    %154 = vector.shape_cast %153 : vector<256x8xf32> to vector<1x256x8xf32>
    %cst_216 = arith.constant dense<0.000000e+00> : vector<1xf32>
    %155 = vector.multi_reduction <add>, %154, %cst_216 [1, 2] : vector<1x256x8xf32> to vector<1xf32>
    %156 = vector.shape_cast %155 : vector<1xf32> to vector<1x1x1xf32>
    %157 = vector.extract %156[0, 0, 0] : f32 from vector<1x1x1xf32>
    %158 = vector.broadcast %157 : f32 to vector<1x1xf32>
    %cst_217 = arith.constant 2.048000e+03 : f32
    %159 = vector.broadcast %cst_217 : f32 to vector<1x1xf32>
    %160 = arith.divf %158, %159 : vector<1x1xf32>
    %161 = vector.broadcast %160 : vector<1x1xf32> to vector<256x8xf32>
    %162 = arith.subf %153, %161 : vector<256x8xf32>
    %163 = arith.mulf %162, %162 : vector<256x8xf32>
    %164 = vector.shape_cast %163 : vector<256x8xf32> to vector<1x256x8xf32>
    %cst_218 = arith.constant dense<0.000000e+00> : vector<1xf32>
    %165 = vector.multi_reduction <add>, %164, %cst_218 [1, 2] : vector<1x256x8xf32> to vector<1xf32>
    %166 = vector.shape_cast %165 : vector<1xf32> to vector<1x1x1xf32>
    %167 = vector.extract %166[0, 0, 0] : f32 from vector<1x1x1xf32>
    %168 = vector.broadcast %167 : f32 to vector<1x1xf32>
    %cst_219 = arith.constant 2.048000e+03 : f32
    %169 = vector.broadcast %cst_219 : f32 to vector<1x1xf32>
    %170 = arith.divf %168, %169 : vector<1x1xf32>
    %cst_220 = arith.constant 9.99999974E-6 : f32
    %171 = vector.broadcast %cst_220 : f32 to vector<1x1xf32>
    %172 = arith.addf %170, %171 : vector<1x1xf32>
    %173 = math.rsqrt %172 : vector<1x1xf32>
    %c0_221 = arith.constant 0 : index
    %c0_222 = arith.constant 0 : index
    %174 = vector.load %arg6[%c0_221, %c0_222] : memref<1x8xf32, #tpu.memory_space<vmem>>, vector<1x8xf32>
    %175 = vector.broadcast %173 : vector<1x1xf32> to vector<1x8xf32>
    %176 = arith.mulf %174, %175 : vector<1x8xf32>
    %c0_223 = arith.constant 0 : index
    %c0_224 = arith.constant 0 : index
    %177 = vector.load %arg7[%c0_223, %c0_224] : memref<1x8xf32, #tpu.memory_space<vmem>>, vector<1x8xf32>
    %178 = vector.broadcast %160 : vector<1x1xf32> to vector<1x8xf32>
    %179 = arith.mulf %178, %176 : vector<1x8xf32>
    %180 = arith.subf %177, %179 : vector<1x8xf32>
    %181 = vector.broadcast %176 : vector<1x8xf32> to vector<256x8xf32>
    %182 = arith.mulf %153, %181 : vector<256x8xf32>
    %183 = vector.broadcast %180 : vector<1x8xf32> to vector<256x8xf32>
    %184 = arith.addf %182, %183 : vector<256x8xf32>
    %185 = vector.shape_cast %184 : vector<256x8xf32> to vector<16x16x8xf32>
    %c0_225 = arith.constant 0 : index
    %c0_226 = arith.constant 0 : index
    %c0_227 = arith.constant 0 : index
    %c0_228 = arith.constant 0 : index
    %186 = vector.load %arg8[%c0_225, %c0_226, %c0_227, %c0_228] : memref<1x16x16x8xf32, #tpu.memory_space<vmem>>, vector<1x16x16x8xf32>
    %187 = vector.shape_cast %186 : vector<1x16x16x8xf32> to vector<16x16x8xf32>
    %188 = vector.shape_cast %185 : vector<16x16x8xf32> to vector<1x16x16x8xf32>
    tpu.vector_store %arg8[%c0_225, %c0_226, %c0_227, %c0_228], %188 {strides = array<i32>} : memref<1x16x16x8xf32, #tpu.memory_space<vmem>>, vector<1x16x16x8xf32>,
    return
  }
  func.func @transform_0(%arg0: i32) -> (i32, i32, i32, i32) {
    %c0_i32 = arith.constant 0 : i32
    %c0_i32_0 = arith.constant 0 : i32
    %c0_i32_1 = arith.constant 0 : i32
    %c0_i32_2 = arith.constant 0 : i32
    return %arg0, %c0_i32, %c0_i32_0, %c0_i32_1 : i32, i32, i32, i32
  }
  func.func @transform_1(%arg0: i32) -> (i32, i32) {
    %c0_i32 = arith.constant 0 : i32
    %c0_i32_0 = arith.constant 0 : i32
    %c0_i32_1 = arith.constant 0 : i32
    return %c0_i32, %c0_i32_0 : i32, i32
  }
  func.func @transform_2(%arg0: i32) -> (i32, i32) {
    %c0_i32 = arith.constant 0 : i32
    %c0_i32_0 = arith.constant 0 : i32
    %c0_i32_1 = arith.constant 0 : i32
    return %c0_i32, %c0_i32_0 : i32, i32
  }
  func.func @transform_3(%arg0: i32) -> (i32, i32) {
    %c0_i32 = arith.constant 0 : i32
    %c0_i32_0 = arith.constant 0 : i32
    %c0_i32_1 = arith.constant 0 : i32
    return %c0_i32, %c0_i32_0 : i32, i32
  }
  func.func @transform_4(%arg0: i32) -> (i32, i32) {
    %c0_i32 = arith.constant 0 : i32
    %c0_i32_0 = arith.constant 0 : i32
    %c0_i32_1 = arith.constant 0 : i32
    return %c0_i32, %c0_i32_0 : i32, i32
  }
  func.func @transform_5(%arg0: i32) -> (i32, i32) {
    %c0_i32 = arith.constant 0 : i32
    %c0_i32_0 = arith.constant 0 : i32
    %c0_i32_1 = arith.constant 0 : i32
    return %c0_i32, %c0_i32_0 : i32, i32
  }
  func.func @transform_6(%arg0: i32) -> (i32, i32) {
    %c0_i32 = arith.constant 0 : i32
    %c0_i32_0 = arith.constant 0 : i32
    %c0_i32_1 = arith.constant 0 : i32
    return %c0_i32, %c0_i32_0 : i32, i32
  }
  func.func @transform_7(%arg0: i32) -> (i32, i32, i32, i32) {
    %c0_i32 = arith.constant 0 : i32
    %c0_i32_0 = arith.constant 0 : i32
    %c0_i32_1 = arith.constant 0 : i32
    %c0_i32_2 = arith.constant 0 : i32
    return %arg0, %c0_i32, %c0_i32_0, %c0_i32_1 : i32, i32, i32, i32
  }
}

</mosaic_0001>

<bundles_post_ra>
// kernel: double_conv.1
= control target key start
LH: loop header
LB: loop body
LE: loop exit
PB: predicated region body
PF: predicated region fallthrough
CT: control target
= control target key end

     0   :  { %s6539_s24 = smov 0   ;;  %s10662_s0 = inlined_call_operand.vmem [shape: f32[2,16,16,4], index: 0, kind: input, shape index: {}]   ;;  %s10663_s1 = inlined_call_operand.vmem [shape: f32[36,8], index: 1, kind: input, shape index: {}]   ;;  %s10664_s2 = inlined_call_operand.vmem [shape: f32[1,8], index: 2, kind: input, shape index: {}]   ;;  %s10665_s3 = inlined_call_operand.vmem [shape: f32[1,8], index: 3, kind: input, shape index: {}]   ;;  %s10666_s4 = inlined_call_operand.vmem [shape: f32[72,8], index: 4, kind: input, shape index: {}]   ;;  %s10667_s5 = inlined_call_operand.vmem [shape: f32[1,8], index: 5, kind: input, shape index: {}]   ;;  %s10668_s6 = inlined_call_operand.vmem [shape: f32[1,8], index: 6, kind: input, shape index: {}]   ;;  %s10669_s7 = inlined_call_operand.vmem [shape: f32[2,16,16,8], index: 7, kind: output, shape index: {}]  }
   0x1 LB: > { %s5913_s25 = sadd.s32 4294967295, %s6484_s24   ;;  %p5917_p0 = scmp.ge.s32.totalorder %s6484_s24, 1  ;;  %s6484_s24 = sphi %s6539_s24, %s17_s24  }
   0x2   : > { %p237_p1 = scmp.lt.s32.totalorder %s6484_s24, 3 }
   0x4   : > { %p238_p2 = pnand %p5917_p0, %p237_p1 }
   0x6   : > { %241 = sbr.rel (%p238_p2) target bundleno = 2945 (0xb81), region = 48 }
   0xd   : > { %p6547_p3 = scmp.lt.s32.totalorder %s5913_s25, 1  ;;  %vm10674_vm0 = vcmask 31744   ;;  %vm282_vm1 = vcmask 24576   ;;  %vm361_vm2 = vcmask 64544   ;;  %v10682_v0 = vmov 0.0   ;;  %s6487_s8 = smov 16  }
   0xe   : > { %280 = vst.msk [vmem:[#allocation2] sm:$0xff] %vm10674_vm0, %v10682_v0  ;;  %281 = vst.msk [vmem:[#allocation2 + $0x8] sm:$0xff] %vm10674_vm0, %v10682_v0  ;;  %vm544_vm3 = vcmask 97344   ;;  %vm10676_vm4 = vcmask 90176   ;;  %vm10679_vm5 = vcmask 122976   ;;  %s6488_s9 = smov 12  }
   0xf   : > { %284 = vst.msk [vmem:[#allocation2 + $0x10] sm:$0x1] %vm282_vm1, %v10682_v0  ;;  %285 = vst.msk [vmem:[#allocation2 + $0x20] sm:$0x1] %vm282_vm1, %v10682_v0  ;;  %s11681_s25 = smov (!%p6547_p3, %s5913_s25), 1  ;;  %s6489_s10 = smov 4  }
  0x10   : > { %286 = vst.msk [vmem:[#allocation2 + $0x30] sm:$0x1] %vm282_vm1, %v10682_v0  ;;  %287 = vst.msk [vmem:[#allocation2 + $0x40] sm:$0x1] %vm282_vm1, %v10682_v0  ;;  %s6079_s27 = sshll.u32 %s11681_s25, 8  ;;  %vm331_vm6 = vcmask 30720  }
  0x11   : > { %288 = vst.msk [vmem:[#allocation2 + $0x50] sm:$0x1] %vm282_vm1, %v10682_v0  ;;  %289 = vst.msk [vmem:[#allocation2 + $0x60] sm:$0x1] %vm282_vm1, %v10682_v0  ;;  %s6607_s30 = scalar_lea.vmem %s10662_s0, %s6079_s27  ;;  %s6490_s11 = smov 20   ;;  %v1979_v16 = vld [vmem:[%s10663_s1] sm:$0xff] }
  0x12   : > { %290 = vst.msk [vmem:[#allocation2 + $0x70] sm:$0x1] %vm282_vm1, %v10682_v0  ;;  %291 = vst.msk [vmem:[#allocation2 + $0x80] sm:$0x1] %vm282_vm1, %v10682_v0  ;;  %v956_v1 = vld [vmem:[%s6607_s30] sm:$0xff]  ;;  %v957_v2 = vld [vmem:[%s6607_s30 + $0x8] sm:$0xff] }
  0x13   : > { %292 = vst.msk [vmem:[#allocation2 + $0x90] sm:$0x1] %vm282_vm1, %v10682_v0  ;;  %293 = vst.msk [vmem:[#allocation2 + $0xa0] sm:$0x1] %vm282_vm1, %v10682_v0  ;;  %1020 = vrot.lane.b32.xlu1 %v956_v1, %s6487_s8  ;;  %826 = vrot.lane.b32.xlu0 %v956_v1, %s6488_s9  ;;  %v763_v3 = vld [vmem:[%s6607_s30 + $0x8] sm:$0x7f] }
  0x14   : > { %294 = vst.msk [vmem:[#allocation2 + $0xb0] sm:$0x1] %vm282_vm1, %v10682_v0  ;;  %295 = vst.msk [vmem:[#allocation2 + $0xc0] sm:$0x1] %vm282_vm1, %v10682_v0  ;;  %v764_v4 = vld [vmem:[%s6607_s30 + $0x10] sm:$0xff]  ;;  %v6622_v5 = vld [vmem:[%s6607_s30 + $0x20] sm:$0xff] }
  0x15   : > { %296 = vst.msk [vmem:[#allocation2 + $0xd0] sm:$0x1] %vm282_vm1, %v10682_v0  ;;  %297 = vst.msk [vmem:[#allocation2 + $0xe0] sm:$0x1] %vm282_vm1, %v10682_v0  ;;  %v6627_v6 = vld [vmem:[%s6607_s30 + $0x30] sm:$0xff]  ;;  %v1166_v8 = vld [vmem:[%s6607_s30 + $0x1] sm:$0xff] }
  0x16   : > { %298 = vst.msk [vmem:[#allocation2 + $0xf0] sm:$0x1] %vm282_vm1, %v10682_v0  ;;  %283 = vst.msk [vmem:[#allocation2] sm:$0x1] %vm282_vm1, %v10682_v0  ;;  %v1167_v7 = vld [vmem:[%s6607_s30 + $0x9] sm:$0x7f] }
  0x17   : > { %363 = vst.msk [vmem:[#allocation2 + $0x8] sm:$0xff] %vm361_vm2, %v10682_v0  ;;  %362 = vst.msk [vmem:[#allocation2] sm:$0xff] %vm361_vm2, %v10682_v0  ;;  %1022 = vrot.lane.b32.xlu1 %v957_v2, %s6487_s8  ;;  %828 = vrot.lane.b32.xlu0 %v763_v3, %s6488_s9  ;;  %v6636_v9 = vld [vmem:[%s6607_s30 + $0x40] sm:$0xff]  ;;  %v300_v10 = vld [vmem:[%s6607_s30 + $0x8] sm:$0x7f]  ;;  %s6491_s12 = smov 8  }
  0x18   : > { %546 = vst.msk [vmem:[#allocation2 + $0x8] sm:$0xff] %vm544_vm3, %v10682_v0  ;;  %545 = vst.msk [vmem:[#allocation2] sm:$0xff] %vm544_vm3, %v10682_v0  ;;  %v565_v11 = vld [vmem:[%s6607_s30 + $0x9] sm:$0x7f]  ;;  %v6648_v12 = vld [vmem:[%s6607_s30 + $0x50] sm:$0xff]  ;;  %s6492_s13 = smov 24  }
  0x19   : > { %548 = vst.msk [vmem:[#allocation2 + $0xf] sm:$0x1] %vm10676_vm4, %v10682_v0  ;;  %v5923_v13 = vld [vmem:[%s6607_s30 + $0x18] sm:$0x7f]  ;;  %v1980_v17 = vld [vmem:[%s10663_s1 + $0x8] sm:$0xff]  ;;  %s6493_s18 = smov 28  }
  0x1a   : > { %746 = vst.msk [vmem:[#allocation2] sm:$0x1] %vm10679_vm5, %v10682_v0  ;;  %v765_v14 = vld [vmem:[%s6607_s30 + $0x18] sm:$0x7f]  ;;  %v6283_v18 = vpack.c.bf16 %v1980_v17, %v1979_v16  ;;  %v1981_v20 = vld [vmem:[%s10663_s1 + $0x10] sm:$0xff]  ;;  %s6494_s23 = smov 32  }
  0x1b   : > { %330 = vst.msk [vmem:[#allocation2 + $0x11] sm:$0xff] %vm10674_vm0, %v956_v1  ;;  %333 = vst.msk [vmem:[#allocation2 + $0x21] sm:$0xff] %vm10674_vm0, %v764_v4  ;;  %426 = vrot.lane.b32.xlu1 %v957_v2, %s6489_s10  ;;  %424 = vrot.lane.b32.xlu0 %v956_v1, %s6489_s10  ;;  %v302_v15 = vld [vmem:[%s6607_s30 + $0x18] sm:$0x7f]  ;;  %v1983_v24 = vld [vmem:[%s10663_s1 + $0x20] sm:$0xf] }
  0x1c   : > { %335 = vst.msk [vmem:[#allocation2 + $0x31] sm:$0xff] %vm10674_vm0, %v6622_v5  ;;  %337 = vst.msk [vmem:[#allocation2 + $0x41] sm:$0xff] %vm10674_vm0, %v6627_v6  ;;  %v5953_v19 = vld [vmem:[%s6607_s30 + $0x18] sm:$0xff]  ;;  %6284 = vmatprep.subr.bf16.mxu0 %v6283_v18  ;;  %vm2081_vm7 = vcmask 1043456   ;;  %v6693_v28 = vld [vmem:[%s6607_s30 + $0x60] sm:$0xff]  ;;  %vm10670_vm8 = vcmask 130144  }
  0x1d   : > { %339 = vst.msk [vmem:[#allocation2 + $0x51] sm:$0xff] %vm10674_vm0, %v6636_v9  ;;  %341 = vst.msk [vmem:[#allocation2 + $0x61] sm:$0xff] %vm10674_vm0, %v6648_v12  ;;  %6286 = vmatpush3.bf16.msra.mxu0 %v6283_v18  ;;  %v1982_v21 = vld [vmem:[%s10663_s1 + $0x18] sm:$0xff]  ;;  %v5925_v29 = vld [vmem:[%s6607_s30 + $0x28] sm:$0x7f]  ;;  %vm1116_vm9 = vcmask 162944  }
  0x1e   : > { %332 = vst.msk [vmem:[#allocation2 + $0x19] sm:$0x7f] %vm331_vm6, %v300_v10  ;;  %334 = vst.msk [vmem:[#allocation2 + $0x29] sm:$0x7f] %vm331_vm6, %v302_v15  ;;  %v6287_v22 = vpack.c.bf16 %v1982_v21, %v1981_v20  ;;  %v5982_v23 = vld [vmem:[%s6607_s30 + $0x11] sm:$0xff]  ;;  %v5955_v32 = vld [vmem:[%s6607_s30 + $0x28] sm:$0xff] }
  0x1f   : > { %1232 = vrot.lane.b32.xlu1 %v1167_v7, %s6490_s11  ;;  %1230 = vrot.lane.b32.xlu0 %v1166_v8, %s6490_s11  ;;  %v5983_v25 = vld [vmem:[%s6607_s30 + $0x19] sm:$0x7f]  ;;  %343 = vst.msk [vmem:[#allocation2 + $0x71] sm:$0xff] %vm10674_vm0, %v6693_v28  ;;  %v767_v30 = vld [vmem:[%s6607_s30 + $0x28] sm:$0x7f]  ;;  %vm10671_vm10 = vcmask 129120  }
  0x20   : > { %6288 = vmatprep.subr.bf16.mxu0 %v6287_v22  ;;  %v1169_v26 = vld [vmem:[%s6607_s30 + $0x19] sm:$0x7f]  ;;  %v304_v31 = vld [vmem:[%s6607_s30 + $0x28] sm:$0x7f]  ;;  %v6728_v37 = vld [vmem:[%s6607_s30 + $0x70] sm:$0xff]  ;;  %vm1149_vm11 = vcmask 188576  }
  0x21   : > { %6290 = vmatpush3.bf16.msra.mxu0 %v6287_v22  ;;  %v567_v27 = vld [vmem:[%s6607_s30 + $0x19] sm:$0x7f]  ;;  %336 = vst.msk [vmem:[#allocation2 + $0x39] sm:$0x7f] %vm331_vm6, %v304_v31  ;;  %v5984_v33 = vld [vmem:[%s6607_s30 + $0x21] sm:$0xff]  ;;  %v5986_v42 = vld [vmem:[%s6607_s30 + $0x31] sm:$0xff] }
  0x22   : > { %6167 = vmatprep.subr.msk.mxu0 %vm2081_vm7, %v1983_v24  ;;  %v5985_v34 = vld [vmem:[%s6607_s30 + $0x29] sm:$0x7f]  ;;  %345 = vst.msk [vmem:[#allocation2 + $0x81] sm:$0xff] %vm10674_vm0, %v6728_v37  ;;  %v5927_v38 = vld [vmem:[%s6607_s30 + $0x38] sm:$0x7f]  ;;  %v6764_v48 = vld [vmem:[%s6607_s30 + $0x80] sm:$0xff] }
  0x23   : > { %626 = vrot.lane.b32.xlu1 %v565_v11, %s6491_s12  ;;  %624 = vrot.lane.b32.xlu0 %v1166_v8, %s6491_s12  ;;  %v1171_v35 = vld [vmem:[%s6607_s30 + $0x29] sm:$0x7f]  ;;  %v769_v39 = vld [vmem:[%s6607_s30 + $0x38] sm:$0x7f]  ;;  %347 = vst.msk [vmem:[#allocation2 + $0x91] sm:$0xff] %vm10674_vm0, %v6764_v48  ;;  %vm1328_vm12 = vcmask 194720  }
  0x24   : > { %v569_v36 = vld [vmem:[%s6607_s30 + $0x29] sm:$0x7f]  ;;  %v306_v40 = vld [vmem:[%s6607_s30 + $0x38] sm:$0x7f]  ;;  %vm10675_vm13 = vcmask 195744   ;;  %vm10677_vm14 = vcmask 221376  }
  0x25   : > { %6168 = vmatpush3.msk.msra.mxu0 %vm2081_vm7, %v1983_v24  ;;  %338 = vst.msk [vmem:[#allocation2 + $0x49] sm:$0x7f] %vm331_vm6, %v306_v40  ;;  %v5957_v41 = vld [vmem:[%s6607_s30 + $0x38] sm:$0xff]  ;;  %v5929_v49 = vld [vmem:[%s6607_s30 + $0x48] sm:$0x7f]  ;;  %vm715_vm15 = vcmask 96320  }
  0x26   : > { %v5987_v43 = vld [vmem:[%s6607_s30 + $0x39] sm:$0x7f]  ;;  %v771_v50 = vld [vmem:[%s6607_s30 + $0x48] sm:$0x7f]  ;;  %vm1361_vm1 = vcmask 228544   ;;  %vm10672_vm7 = vcmask 227520  }
  0x27   : > { %830 = vrot.lane.b32.xlu1 %v764_v4, %s6488_s9  ;;  %1442 = vrot.lane.b32.xlu0 %v764_v4, %s6492_s13  ;;  %v1173_v44 = vld [vmem:[%s6607_s30 + $0x39] sm:$0x7f]  ;;  %v308_v53 = vld [vmem:[%s6607_s30 + $0x48] sm:$0x7f]  ;;  %s6495_s15 = smov 40   ;;  %s6496_s16 = smov 48  }
  0x28   : > { %v571_v45 = vld [vmem:[%s6607_s30 + $0x39] sm:$0x7f]  ;;  %340 = vst.msk [vmem:[#allocation2 + $0x59] sm:$0x7f] %vm331_vm6, %v308_v53  ;;  %v5959_v56 = vld [vmem:[%s6607_s30 + $0x48] sm:$0xff]  ;;  %v6824_v10 = vld [vmem:[%s6607_s30 + $0x90] sm:$0xff] }
  0x29   : > { %v5988_v59 = vld [vmem:[%s6607_s30 + $0x41] sm:$0xff]  ;;  %v5989_v1 = vld [vmem:[%s6607_s30 + $0x49] sm:$0x7f]  ;;  %349 = vst.msk [vmem:[#allocation2 + $0xa1] sm:$0xff] %vm10674_vm0, %v6824_v10  ;;  %v5931_v11 = vld [vmem:[%s6607_s30 + $0x58] sm:$0x7f] }
  0x2a   : > { %v1175_v2 = vld [vmem:[%s6607_s30 + $0x49] sm:$0x7f]  ;;  %v310_v16 = vld [vmem:[%s6607_s30 + $0x58] sm:$0x7f]  ;;  %vm1984_vm0 = vcmask 293888   ;;  %s6497_s17 = smov 56  }
  0x2b   : > { %1444 = vrot.lane.b32.xlu1 %v5923_v13, %s6492_s13  ;;  %832 = vrot.lane.b32.xlu0 %v765_v14, %s6488_s9  ;;  %v773_v13 = vld [vmem:[%s6607_s30 + $0x58] sm:$0x7f]  ;;  %342 = vst.msk [vmem:[#allocation2 + $0x69] sm:$0x7f] %vm331_vm6, %v310_v16  ;;  %v5933_v40 = vld [vmem:[%s6607_s30 + $0x68] sm:$0x7f] }
  0x2f   : > { %1024 = vrot.lane.b32.xlu1 %v764_v4, %s6487_s8  ;;  %1626 = vrot.lane.b32.xlu0 %v764_v4, %s6493_s18 }
  0x33   : > { %1628 = vrot.lane.b32.xlu1 %v5953_v19, %s6493_s18  ;;  %1026 = vrot.lane.b32.xlu0 %v5953_v19, %s6487_s8 }
  0x37   : > { %428 = vrot.lane.b32.xlu1 %v764_v4, %s6489_s10  ;;  %1826 = vrot.lane.b32.xlu0 %v5982_v23, %s6494_s23 }
  0x3b   : > { %1234 = vrot.lane.b32.xlu1 %v5982_v23, %s6490_s11  ;;  %430 = vrot.lane.b32.xlu0 %v5953_v19, %s6489_s10  ;;  %v5961_v19 = vld [vmem:[%s6607_s30 + $0x58] sm:$0xff] }
  0x3f   : > { %1828 = vrot.lane.b32.xlu1 %v5983_v25, %s6494_s23  ;;  %1236 = vrot.lane.b32.xlu0 %v1169_v26, %s6490_s11 }
  0x43   : > { %630 = vrot.lane.b32.xlu1 %v567_v27, %s6491_s12  ;;  %628 = vrot.lane.b32.xlu0 %v5982_v23, %s6491_s12  ;;  %v5990_v23 = vld [vmem:[%s6607_s30 + $0x51] sm:$0xff] }
  0x47   : > { %834 = vrot.lane.b32.xlu1 %v6622_v5, %s6488_s9  ;;  %1446 = vrot.lane.b32.xlu0 %v6622_v5, %s6492_s13 }
  0x4b   : > { %1448 = vrot.lane.b32.xlu1 %v5925_v29, %s6492_s13  ;;  %836 = vrot.lane.b32.xlu0 %v767_v30, %s6488_s9  ;;  %v1177_v30 = vld [vmem:[%s6607_s30 + $0x59] sm:$0x7f] }
  0x4f   : > { %1028 = vrot.lane.b32.xlu1 %v6622_v5, %s6487_s8  ;;  %1630 = vrot.lane.b32.xlu0 %v6622_v5, %s6493_s18 }
  0x53   : > { %1632 = vrot.lane.b32.xlu1 %v5955_v32, %s6493_s18  ;;  %1030 = vrot.lane.b32.xlu0 %v5955_v32, %s6487_s8 }
  0x57   : > { %432 = vrot.lane.b32.xlu1 %v6622_v5, %s6489_s10  ;;  %1830 = vrot.lane.b32.xlu0 %v5984_v33, %s6494_s23  ;;  %v573_v5 = vld [vmem:[%s6607_s30 + $0x49] sm:$0x7f] }
  0x5b   : > { %1238 = vrot.lane.b32.xlu1 %v5984_v33, %s6490_s11  ;;  %434 = vrot.lane.b32.xlu0 %v5955_v32, %s6489_s10 }
  0x5f   : > { %1832 = vrot.lane.b32.xlu1 %v5985_v34, %s6494_s23  ;;  %1240 = vrot.lane.b32.xlu0 %v1171_v35, %s6490_s11 }
  0x63   : > { %634 = vrot.lane.b32.xlu1 %v569_v36, %s6491_s12  ;;  %632 = vrot.lane.b32.xlu0 %v5984_v33, %s6491_s12  ;;  %v575_v33 = vld [vmem:[%s6607_s30 + $0x59] sm:$0x7f] }
  0x67   : > { %838 = vrot.lane.b32.xlu1 %v6627_v6, %s6488_s9  ;;  %1450 = vrot.lane.b32.xlu0 %v6627_v6, %s6492_s13 }
  0x6b   : > { %1452 = vrot.lane.b32.xlu1 %v5927_v38, %s6492_s13  ;;  %840 = vrot.lane.b32.xlu0 %v769_v39, %s6488_s9  ;;  %v6897_v39 = vld [vmem:[%s6607_s30 + $0xa0] sm:$0xff] }
  0x6f   : > { %1032 = vrot.lane.b32.xlu1 %v6627_v6, %s6487_s8  ;;  %1634 = vrot.lane.b32.xlu0 %v6627_v6, %s6493_s18 }
  0x73   : > { %1636 = vrot.lane.b32.xlu1 %v5957_v41, %s6493_s18  ;;  %1034 = vrot.lane.b32.xlu0 %v5957_v41, %s6487_s8 }
  0x77   : > { %436 = vrot.lane.b32.xlu1 %v6627_v6, %s6489_s10  ;;  %1834 = vrot.lane.b32.xlu0 %v5986_v42, %s6494_s23 }
  0x7b   : > { %1242 = vrot.lane.b32.xlu1 %v5986_v42, %s6490_s11  ;;  %438 = vrot.lane.b32.xlu0 %v5957_v41, %s6489_s10  ;;  %v775_v41 = vld [vmem:[%s6607_s30 + $0x68] sm:$0x7f] }
  0x7f   : > { %1836 = vrot.lane.b32.xlu1 %v5987_v43, %s6494_s23  ;;  %1244 = vrot.lane.b32.xlu0 %v1173_v44, %s6490_s11  ;;  %v312_v44 = vld [vmem:[%s6607_s30 + $0x68] sm:$0x7f] }
  0x80   : > { %344 = vst.msk [vmem:[#allocation2 + $0x79] sm:$0x7f] %vm331_vm6, %v312_v44 }
  0x83   : > { %638 = vrot.lane.b32.xlu1 %v571_v45, %s6491_s12  ;;  %636 = vrot.lane.b32.xlu0 %v5986_v42, %s6491_s12 }
  0x85   : > { %v1021_v46 = vpop.permute.xlu1 %1020  ;;  %v827_v47 = vpop.permute.xlu0 %826 }
  0x86   : > { %923 = vst.msk [vmem:[#allocation2 + $0x1] sm:$0xff] %vm10670_vm8, %v827_v47  ;;  %v5963_v47 = vld [vmem:[%s6607_s30 + $0x68] sm:$0xff] }
  0x87   : > { %842 = vrot.lane.b32.xlu1 %v6636_v9, %s6488_s9  ;;  %1454 = vrot.lane.b32.xlu0 %v6636_v9, %s6492_s13  ;;  %1117 = vst.msk [vmem:[#allocation2] sm:$0xff] %vm1116_vm9, %v1021_v46 }
  0x89   : > { %v1023_v51 = vpop.permute.xlu1 %1022  ;;  %v829_v52 = vpop.permute.xlu0 %828 }
  0x8a   : > { %925 = vst.msk [vmem:[#allocation2 + $0x9] sm:$0x7f] %vm10671_vm10, %v829_v52  ;;  %v5992_v52 = vld [vmem:[%s6607_s30 + $0x61] sm:$0xff] }
  0x8b   : > { %1456 = vrot.lane.b32.xlu1 %v5929_v49, %s6492_s13  ;;  %844 = vrot.lane.b32.xlu0 %v771_v50, %s6488_s9  ;;  %1118 = vst.msk [vmem:[#allocation2 + $0x8] sm:$0xff] %vm1116_vm9, %v1023_v51 }
  0x8c   : > { %1150 = vst.msk [vmem:[#allocation2 + $0xf] sm:$0x1] %vm1149_vm11, %v10682_v0 }
  0x8d   : > { %v427_v54 = vpop.permute.xlu1 %426  ;;  %v425_v55 = vpop.permute.xlu0 %424 }
  0x8e   : > { %515 = vst.msk [vmem:[#allocation2 + $0x18] sm:$0xff] %vm361_vm2, %v427_v54  ;;  %514 = vst.msk [vmem:[#allocation2 + $0x10] sm:$0xff] %vm361_vm2, %v425_v55 }
  0x8f   : > { %549 = vst.msk [vmem:[#allocation2 + $0x1f] sm:$0x1] %vm10676_vm4, %v10682_v0  ;;  %1036 = vrot.lane.b32.xlu1 %v6636_v9, %s6487_s8  ;;  %1638 = vrot.lane.b32.xlu0 %v6636_v9, %s6493_s18 }
  0x91   : > { %v1233_v57 = vpop.permute.xlu1 %1232  ;;  %v1231_v58 = vpop.permute.xlu0 %1230 }
  0x92   : > { %1329 = vst.msk [vmem:[#allocation2 + $0x8] sm:$0x7f] %vm1328_vm12, %v1233_v57 }
  0x93   : > { %1327 = vst.msk [vmem:[#allocation2] sm:$0xff] %vm10675_vm13, %v1231_v58  ;;  %1640 = vrot.lane.b32.xlu1 %v5959_v56, %s6493_s18  ;;  %1038 = vrot.lane.b32.xlu0 %v5959_v56, %s6487_s8  ;;  %v5993_v58 = vld [vmem:[%s6607_s30 + $0x69] sm:$0x7f] }
  0x94   : > { %1365 = vst.msk [vmem:[#allocation2] sm:$0x1] %vm10677_vm14, %v10682_v0 }
  0x95   : > { %v627_v60 = vpop.permute.xlu1 %626  ;;  %v625_v61 = vpop.permute.xlu0 %624 }
  0x96   : > { %716 = vst.msk [vmem:[#allocation2 + $0x18] sm:$0x7f] %vm715_vm15, %v627_v60 }
  0x97   : > { %714 = vst.msk [vmem:[#allocation2 + $0x10] sm:$0xff] %vm544_vm3, %v625_v61  ;;  %440 = vrot.lane.b32.xlu1 %v6636_v9, %s6489_s10  ;;  %1838 = vrot.lane.b32.xlu0 %v5988_v59, %s6494_s23  ;;  %v577_v61 = vld [vmem:[%s6607_s30 + $0x69] sm:$0x7f] }
  0x98   : > { %747 = vst.msk [vmem:[#allocation2 + $0x10] sm:$0x1] %vm10679_vm5, %v10682_v0 }
  0x99   : > { %v831_v62 = vpop.permute.xlu1 %830  ;;  %v1443_v63 = vpop.permute.xlu0 %1442 }
  0x9a   : > { %926 = vst.msk [vmem:[#allocation2 + $0x11] sm:$0xff] %vm10670_vm8, %v831_v62  ;;  %vm1563_vm8 = vcmask 261344  }
  0x9b   : > { %1532 = vst.msk [vmem:[#allocation2 + $0x1] sm:$0xff] %vm1361_vm1, %v1443_v63  ;;  %1246 = vrot.lane.b32.xlu1 %v5988_v59, %s6490_s11  ;;  %442 = vrot.lane.b32.xlu0 %v5959_v56, %s6489_s10 }
  0x9d   : > { %v1445_v3 = vpop.permute.xlu1 %1444  ;;  %v833_v4 = vpop.permute.xlu0 %832 }
  0x9e   : > { %1534 = vst.msk [vmem:[#allocation2 + $0x9] sm:$0x7f] %vm10672_vm7, %v1445_v3  ;;  %vm10673_vm7 = vcmask 294144   ;;  %v6962_v3 = vld [vmem:[%s6607_s30 + $0xb0] sm:$0xff] }
  0x9f   : > { %927 = vst.msk [vmem:[#allocation2 + $0x19] sm:$0x7f] %vm10671_vm10, %v833_v4  ;;  %1840 = vrot.lane.b32.xlu1 %v5989_v1, %s6494_s23  ;;  %1248 = vrot.lane.b32.xlu0 %v1175_v2, %s6490_s11  ;;  %vm1749_vm10 = vcmask 286976   ;;  %v5935_v4 = vld [vmem:[%s6607_s30 + $0x78] sm:$0x7f] }
  0xa1   : > { %v1025_v6 = vpop.permute.xlu1 %1024  ;;  %v1627_v7 = vpop.permute.xlu0 %1626 }
  0xa2   : > { %1119 = vst.msk [vmem:[#allocation2 + $0x10] sm:$0xff] %vm1116_vm9, %v1025_v6 }
  0xa3   : > { %1716 = vst.msk [vmem:[#allocation2] sm:$0xff] %vm1563_vm8, %v1627_v7  ;;  %642 = vrot.lane.b32.xlu1 %v573_v5, %s6491_s12  ;;  %640 = vrot.lane.b32.xlu0 %v5988_v59, %s6491_s12  ;;  %v1179_v59 = vld [vmem:[%s6607_s30 + $0x69] sm:$0x7f]  ;;  %v777_v5 = vld [vmem:[%s6607_s30 + $0x78] sm:$0x7f] }
  0xa5   : > { %v1629_v8 = vpop.permute.xlu1 %1628  ;;  %v1027_v9 = vpop.permute.xlu0 %1026 }
  0xa6   : > { %1717 = vst.msk [vmem:[#allocation2 + $0x8] sm:$0xff] %vm1563_vm8, %v1629_v8  ;;  %v314_v8 = vld [vmem:[%s6607_s30 + $0x78] sm:$0x7f] }
  0xa7   : > { %1120 = vst.msk [vmem:[#allocation2 + $0x18] sm:$0xff] %vm1116_vm9, %v1027_v9  ;;  %846 = vrot.lane.b32.xlu1 %v6648_v12, %s6488_s9  ;;  %1458 = vrot.lane.b32.xlu0 %v6648_v12, %s6492_s13 }
  0xa8   : > { %1750 = vst.msk [vmem:[#allocation2 + $0xf] sm:$0x1] %vm1749_vm10, %v10682_v0 }
  0xa9   : > { %1151 = vst.msk [vmem:[#allocation2 + $0x1f] sm:$0x1] %vm1149_vm11, %v10682_v0  ;;  %v429_v14 = vpop.permute.xlu1 %428  ;;  %v1827_v15 = vpop.permute.xlu0 %1826 }
  0xaa   : > { %516 = vst.msk [vmem:[#allocation2 + $0x20] sm:$0xff] %vm361_vm2, %v429_v14 }
  0xab   : > { %1916 = vst.msk [vmem:[#allocation2] sm:$0xff] %vm10673_vm7, %v1827_v15  ;;  %1460 = vrot.lane.b32.xlu1 %v5931_v11, %s6492_s13  ;;  %848 = vrot.lane.b32.xlu0 %v773_v13, %s6488_s9  ;;  %vm1917_vm7 = vcmask 293120   ;;  %v5965_v13 = vld [vmem:[%s6607_s30 + $0x78] sm:$0xff] }
  0xac   : > { %346 = vst.msk [vmem:[#allocation2 + $0x89] sm:$0x7f] %vm331_vm6, %v314_v8 }
  0xad   : > { %v1235_v17 = vpop.permute.xlu1 %1234  ;;  %v431_v18 = vpop.permute.xlu0 %430 }
  0xae   : > { %1330 = vst.msk [vmem:[#allocation2 + $0x10] sm:$0xff] %vm10675_vm13, %v1235_v17  ;;  %vm10681_vm13 = vcmask 64512   ;;  %v5994_v17 = vld [vmem:[%s6607_s30 + $0x71] sm:$0xff] }
  0xaf   : > { %517 = vst.msk [vmem:[#allocation2 + $0x28] sm:$0xff] %vm361_vm2, %v431_v18  ;;  %1040 = vrot.lane.b32.xlu1 %v6648_v12, %s6487_s8  ;;  %1642 = vrot.lane.b32.xlu0 %v6648_v12, %s6493_s18 }
  0xb0   : > { %1366 = vst.msk [vmem:[#allocation2 + $0x10] sm:$0x1] %vm10677_vm14, %v10682_v0  ;;  %vm10680_vm14 = vcmask 130112  }
  0xb1   : > { %550 = vst.msk [vmem:[#allocation2 + $0x2f] sm:$0x1] %vm10676_vm4, %v10682_v0  ;;  %v1829_v20 = vpop.permute.xlu1 %1828  ;;  %v1237_v21 = vpop.permute.xlu0 %1236  ;;  %vm10678_vm4 = vcmask 57344  }
  0xb2   : > { %v1947_v22 = vld [vmem:[#allocation2] sm:$0xff]  ;;  %1918 = vst.msk [vmem:[#allocation2 + $0x8] sm:$0x7f] %vm1917_vm7, %v1829_v20 }
  0xb3   : > { %1331 = vst.msk [vmem:[#allocation2 + $0x18] sm:$0x7f] %vm1328_vm12, %v1237_v21  ;;  %6169 = vmatprep.mubr.msk.f32.mxu0 %vm1984_vm0, %v1947_v22  ;;  %1644 = vrot.lane.b32.xlu1 %v5961_v19, %s6493_s18 }
  0xb4   : > { %3503 = vst.msk [vmem:[#allocation2] sm:$0xff] %vm10681_vm13, %v10682_v0  ;;  %1042 = vrot.lane.b32.xlu0 %v5961_v19, %s6487_s8 }
  0xb5   : > { %3506 = vst.msk [vmem:[#allocation2] sm:$0x1] %vm10678_vm4, %v10682_v0  ;;  %v631_v24 = vpop.permute.xlu1 %630  ;;  %v629_v25 = vpop.permute.xlu0 %628  ;;  %vm10823_vm4 = vcmask 130144  }
  0xb6   : > { %3584 = vst.msk [vmem:[#allocation2] sm:$0xff] %vm10680_vm14, %v10682_v0 }
  0xb7   : > { %718 = vst.msk [vmem:[#allocation2 + $0x28] sm:$0x7f] %vm715_vm15, %v631_v24  ;;  %444 = vrot.lane.b32.xlu1 %v6648_v12, %s6489_s10  ;;  %v5991_v12 = vld [vmem:[%s6607_s30 + $0x59] sm:$0x7f] }
  0xb8   : > { %717 = vst.msk [vmem:[#allocation2 + $0x20] sm:$0xff] %vm544_vm3, %v629_v25  ;;  %1842 = vrot.lane.b32.xlu0 %v5990_v23, %s6494_s23  ;;  %v1181_v24 = vld [vmem:[%s6607_s30 + $0x79] sm:$0x7f] }
  0xb9   : > { %748 = vst.msk [vmem:[#allocation2 + $0x20] sm:$0x1] %vm10679_vm5, %v10682_v0  ;;  %v835_v26 = vpop.permute.xlu1 %834  ;;  %v1447_v27 = vpop.permute.xlu0 %1446  ;;  %v1948_v29 = vld [vmem:[#allocation2 + $0x8] sm:$0xff]  ;;  %vm10824_vm5 = vcmask 227520  }
  0xba   : > { %928 = vst.msk [vmem:[#allocation2 + $0x21] sm:$0xff] %vm10823_vm4, %v835_v26  ;;  %6170 = vmatmul.mubr.msk.f32.vlgmr.msra.gmra.mrb[0].mxu0 %vm1984_vm0, %v1948_v29  ;;  %vm10825_vm4 = vcmask 129120   ;;  %v579_v26 = vld [vmem:[%s6607_s30 + $0x79] sm:$0x7f] }
  0xbb   : > { %1535 = vst.msk [vmem:[#allocation2 + $0x11] sm:$0xff] %vm1361_vm1, %v1447_v27  ;;  %1250 = vrot.lane.b32.xlu1 %v5990_v23, %s6490_s11 }
  0xbc   : > { %3504 = vst.msk [vmem:[#allocation2 + $0x8] sm:$0xff] %vm10681_vm13, %v10682_v0  ;;  %446 = vrot.lane.b32.xlu0 %v5961_v19, %s6489_s10  ;;  %vm10830_vm13 = vcmask 90176  }
  0xbd   : > { %3585 = vst.msk [vmem:[#allocation2 + $0x8] sm:$0xff] %vm10680_vm14, %v10682_v0  ;;  %v1449_v31 = vpop.permute.xlu1 %1448  ;;  %v837_v32 = vpop.permute.xlu0 %836  ;;  %vm10828_vm14 = vcmask 195744  }
  0xbe   : > { %1536 = vst.msk [vmem:[#allocation2 + $0x19] sm:$0x7f] %vm10824_vm5, %v1449_v31  ;;  %vm10826_vm5 = vcmask 31744   ;;  %v7027_v31 = vld [vmem:[%s6607_s30 + $0xc0] sm:$0xff] }
  0xbf   : > { %929 = vst.msk [vmem:[#allocation2 + $0x29] sm:$0x7f] %vm10825_vm4, %v837_v32  ;;  %1844 = vrot.lane.b32.xlu1 %v5991_v12, %s6494_s23  ;;  %vm10827_vm4 = vcmask 294144   ;;  %v5937_v32 = vld [vmem:[%s6607_s30 + $0x88] sm:$0x7f] }
  0xc0   : > { %1252 = vrot.lane.b32.xlu0 %v1177_v30, %s6490_s11  ;;  %351 = vst.msk [vmem:[#allocation2 + $0xb1] sm:$0xff] %vm10826_vm5, %v6897_v39  ;;  %vm10829_vm5 = vcmask 221376  }
  0xc1   : > { %v1029_v34 = vpop.permute.xlu1 %1028  ;;  %v1631_v35 = vpop.permute.xlu0 %1630 }
  0xc2   : > { %1121 = vst.msk [vmem:[#allocation2 + $0x20] sm:$0xff] %vm1116_vm9, %v1029_v34 }
  0xc3   : > { %1718 = vst.msk [vmem:[#allocation2 + $0x10] sm:$0xff] %vm1563_vm8, %v1631_v35  ;;  %646 = vrot.lane.b32.xlu1 %v575_v33, %s6491_s12  ;;  %v779_v33 = vld [vmem:[%s6607_s30 + $0x88] sm:$0x7f] }
  0xc4   : > { %644 = vrot.lane.b32.xlu0 %v5990_v23, %s6491_s12  ;;  %v5995_v23 = vld [vmem:[%s6607_s30 + $0x79] sm:$0x7f] }
  0xc5   : > { %v1633_v36 = vpop.permute.xlu1 %1632  ;;  %v1031_v38 = vpop.permute.xlu0 %1030 }
  0xc6   : > { %1719 = vst.msk [vmem:[#allocation2 + $0x18] sm:$0xff] %vm1563_vm8, %v1633_v36 }
  0xc7   : > { %1122 = vst.msk [vmem:[#allocation2 + $0x28] sm:$0xff] %vm1116_vm9, %v1031_v38  ;;  %850 = vrot.lane.b32.xlu1 %v6693_v28, %s6488_s9 }
  0xc8   : > { %1751 = vst.msk [vmem:[#allocation2 + $0x1f] sm:$0x1] %vm1749_vm10, %v10682_v0  ;;  %1462 = vrot.lane.b32.xlu0 %v6693_v28, %s6492_s13 }
  0xc9   : > { %1152 = vst.msk [vmem:[#allocation2 + $0x2f] sm:$0x1] %vm1149_vm11, %v10682_v0  ;;  %v433_v42 = vpop.permute.xlu1 %432  ;;  %v1831_v43 = vpop.permute.xlu0 %1830 }
  0xca   : > { %518 = vst.msk [vmem:[#allocation2 + $0x30] sm:$0xff] %vm361_vm2, %v433_v42 }
  0xcb   : > { %1919 = vst.msk [vmem:[#allocation2 + $0x10] sm:$0xff] %vm10827_vm4, %v1831_v43  ;;  %1464 = vrot.lane.b32.xlu1 %v5933_v40, %s6492_s13  ;;  %vm10833_vm4 = vcmask 130144   ;;  %v316_v40 = vld [vmem:[%s6607_s30 + $0x88] sm:$0x7f] }
  0xcc   : > { %852 = vrot.lane.b32.xlu0 %v775_v41, %s6488_s9  ;;  %348 = vst.msk [vmem:[#allocation2 + $0x99] sm:$0x7f] %vm331_vm6, %v316_v40  ;;  %v5967_v41 = vld [vmem:[%s6607_s30 + $0x88] sm:$0xff] }
  0xcd   : > { %v1239_v45 = vpop.permute.xlu1 %1238  ;;  %v435_v46 = vpop.permute.xlu0 %434 }
  0xce   : > { %1332 = vst.msk [vmem:[#allocation2 + $0x20] sm:$0xff] %vm10828_vm14, %v1239_v45  ;;  %vm10831_vm14 = vcmask 57344   ;;  %v5996_v45 = vld [vmem:[%s6607_s30 + $0x81] sm:$0xff] }
  0xcf   : > { %519 = vst.msk [vmem:[#allocation2 + $0x38] sm:$0xff] %vm361_vm2, %v435_v46  ;;  %1044 = vrot.lane.b32.xlu1 %v6693_v28, %s6487_s8 }
  0xd0   : > { %1367 = vst.msk [vmem:[#allocation2 + $0x20] sm:$0x1] %vm10829_vm5, %v10682_v0  ;;  %1646 = vrot.lane.b32.xlu0 %v6693_v28, %s6493_s18  ;;  %vm10834_vm5 = vcmask 227520  }
  0xd1   : > { %551 = vst.msk [vmem:[#allocation2 + $0x3f] sm:$0x1] %vm10830_vm13, %v10682_v0  ;;  %v1833_v49 = vpop.permute.xlu1 %1832  ;;  %v1241_v50 = vpop.permute.xlu0 %1240  ;;  %vm10832_vm13 = vcmask 122976  }
  0xd2   : > { %v1949_v51 = vld [vmem:[#allocation2 + $0x10] sm:$0xff]  ;;  %1920 = vst.msk [vmem:[#allocation2 + $0x18] sm:$0x7f] %vm1917_vm7, %v1833_v49 }
  0xd3   : > { %1333 = vst.msk [vmem:[#allocation2 + $0x28] sm:$0x7f] %vm1328_vm12, %v1241_v50  ;;  %6172 = vmatprep.mubr.msk.f32.mxu0 %vm1984_vm0, %v1949_v51  ;;  %1648 = vrot.lane.b32.xlu1 %v5963_v47, %s6493_s18 }
  0xd4   : > { %3507 = vst.msk [vmem:[#allocation2 + $0x10] sm:$0x1] %vm10831_vm14, %v10682_v0  ;;  %1046 = vrot.lane.b32.xlu0 %v5963_v47, %s6487_s8  ;;  %vm10835_vm14 = vcmask 129120  }
  0xd5   : > { %v635_v53 = vpop.permute.xlu1 %634  ;;  %v633_v54 = vpop.permute.xlu0 %632 }
  0xd6   : > { %720 = vst.msk [vmem:[#allocation2 + $0x38] sm:$0x7f] %vm715_vm15, %v635_v53  ;;  %v1183_v53 = vld [vmem:[%s6607_s30 + $0x89] sm:$0x7f] }
  0xd7   : > { %719 = vst.msk [vmem:[#allocation2 + $0x30] sm:$0xff] %vm544_vm3, %v633_v54  ;;  %448 = vrot.lane.b32.xlu1 %v6693_v28, %s6489_s10 }
  0xd8   : > { %749 = vst.msk [vmem:[#allocation2 + $0x30] sm:$0x1] %vm10832_vm13, %v10682_v0  ;;  %1846 = vrot.lane.b32.xlu0 %v5992_v52, %s6494_s23  ;;  %vm10836_vm13 = vcmask 31744  }
  0xd9   : > { %v839_v55 = vpop.permute.xlu1 %838  ;;  %v1451_v56 = vpop.permute.xlu0 %1450  ;;  %v1950_v57 = vld [vmem:[#allocation2 + $0x18] sm:$0xff]  ;;  %353 = vst.msk [vmem:[#allocation2 + $0xc1] sm:$0xff] %vm10836_vm13, %v6962_v3  ;;  %vm10840_vm13 = vcmask 90176  }
  0xda   : > { %930 = vst.msk [vmem:[#allocation2 + $0x31] sm:$0xff] %vm10833_vm4, %v839_v55  ;;  %6173 = vmatmul.mubr.msk.f32.gmra.mrb[2].mxu0 %vm1984_vm0, %v1950_v57  ;;  %vm10837_vm4 = vcmask 294144   ;;  %v581_v55 = vld [vmem:[%s6607_s30 + $0x89] sm:$0x7f] }
  0xdb   : > { %1537 = vst.msk [vmem:[#allocation2 + $0x21] sm:$0xff] %vm1361_vm1, %v1451_v56  ;;  %1254 = vrot.lane.b32.xlu1 %v5992_v52, %s6490_s11 }
  0xdc   : > { %450 = vrot.lane.b32.xlu0 %v5963_v47, %s6489_s10 }
  0xdd   : > { %v1453_v60 = vpop.permute.xlu1 %1452  ;;  %v841_v28 = vpop.permute.xlu0 %840 }
  0xde   : > { %1538 = vst.msk [vmem:[#allocation2 + $0x29] sm:$0x7f] %vm10834_vm5, %v1453_v60  ;;  %vm10838_vm5 = vcmask 195744   ;;  %v7100_v60 = vld [vmem:[%s6607_s30 + $0xd0] sm:$0xff] }
  0xdf   : > { %931 = vst.msk [vmem:[#allocation2 + $0x39] sm:$0x7f] %vm10835_vm14, %v841_v28  ;;  %1848 = vrot.lane.b32.xlu1 %v5993_v58, %s6494_s23  ;;  %vm10839_vm14 = vcmask 221376   ;;  %v5939_v28 = vld [vmem:[%s6607_s30 + $0x98] sm:$0x7f] }
  0xe0   : > { %1256 = vrot.lane.b32.xlu0 %v1179_v59, %s6490_s11 }
  0xe1   : > { %v1033_v62 = vpop.permute.xlu1 %1032  ;;  %v1635_v63 = vpop.permute.xlu0 %1634 }
  0xe2   : > { %1123 = vst.msk [vmem:[#allocation2 + $0x30] sm:$0xff] %vm1116_vm9, %v1033_v62 }
  0xe3   : > { %1720 = vst.msk [vmem:[#allocation2 + $0x20] sm:$0xff] %vm1563_vm8, %v1635_v63  ;;  %650 = vrot.lane.b32.xlu1 %v577_v61, %s6491_s12  ;;  %v781_v61 = vld [vmem:[%s6607_s30 + $0x98] sm:$0x7f] }
  0xe4   : > { %648 = vrot.lane.b32.xlu0 %v5992_v52, %s6491_s12  ;;  %v5997_v52 = vld [vmem:[%s6607_s30 + $0x89] sm:$0x7f] }
  0xe5   : > { %v1637_v1 = vpop.permute.xlu1 %1636  ;;  %v1035_v2 = vpop.permute.xlu0 %1034 }
  0xe6   : > { %1721 = vst.msk [vmem:[#allocation2 + $0x28] sm:$0xff] %vm1563_vm8, %v1637_v1 }
  0xe7   : > { %1124 = vst.msk [vmem:[#allocation2 + $0x38] sm:$0xff] %vm1116_vm9, %v1035_v2  ;;  %854 = vrot.lane.b32.xlu1 %v6728_v37, %s6488_s9 }
  0xe8   : > { %1752 = vst.msk [vmem:[#allocation2 + $0x2f] sm:$0x1] %vm1749_vm10, %v10682_v0  ;;  %1466 = vrot.lane.b32.xlu0 %v6728_v37, %s6492_s13 }
  0xe9   : > { %1153 = vst.msk [vmem:[#allocation2 + $0x3f] sm:$0x1] %vm1149_vm11, %v10682_v0  ;;  %v437_v6 = vpop.permute.xlu1 %436  ;;  %v1835_v7 = vpop.permute.xlu0 %1834 }
  0xea   : > { %520 = vst.msk [vmem:[#allocation2 + $0x40] sm:$0xff] %vm361_vm2, %v437_v6 }
  0xeb   : > { %1921 = vst.msk [vmem:[#allocation2 + $0x20] sm:$0xff] %vm10837_vm4, %v1835_v7  ;;  %1468 = vrot.lane.b32.xlu1 %v5935_v4, %s6492_s13  ;;  %vm10841_vm4 = vcmask 57344   ;;  %v318_v4 = vld [vmem:[%s6607_s30 + $0x98] sm:$0x7f] }
  0xec   : > { %856 = vrot.lane.b32.xlu0 %v777_v5, %s6488_s9  ;;  %350 = vst.msk [vmem:[#allocation2 + $0xa9] sm:$0x7f] %vm331_vm6, %v318_v4  ;;  %v5969_v5 = vld [vmem:[%s6607_s30 + $0x98] sm:$0xff] }
  0xed   : > { %v1243_v9 = vpop.permute.xlu1 %1242  ;;  %v439_v11 = vpop.permute.xlu0 %438 }
  0xee   : > { %1334 = vst.msk [vmem:[#allocation2 + $0x30] sm:$0xff] %vm10838_vm5, %v1243_v9  ;;  %vm10842_vm5 = vcmask 122976   ;;  %v5998_v9 = vld [vmem:[%s6607_s30 + $0x91] sm:$0xff] }
  0xef   : > { %521 = vst.msk [vmem:[#allocation2 + $0x48] sm:$0xff] %vm361_vm2, %v439_v11  ;;  %1048 = vrot.lane.b32.xlu1 %v6728_v37, %s6487_s8 }
  0xf0   : > { %1368 = vst.msk [vmem:[#allocation2 + $0x30] sm:$0x1] %vm10839_vm14, %v10682_v0  ;;  %1650 = vrot.lane.b32.xlu0 %v6728_v37, %s6493_s18  ;;  %vm10843_vm14 = vcmask 130144  }
  0xf1   : > { %552 = vst.msk [vmem:[#allocation2 + $0x4f] sm:$0x1] %vm10840_vm13, %v10682_v0  ;;  %v1837_v14 = vpop.permute.xlu1 %1836  ;;  %v1245_v15 = vpop.permute.xlu0 %1244  ;;  %vm10844_vm13 = vcmask 227520  }
  0xf2   : > { %v1951_v16 = vld [vmem:[#allocation2 + $0x20] sm:$0xff]  ;;  %1922 = vst.msk [vmem:[#allocation2 + $0x28] sm:$0x7f] %vm1917_vm7, %v1837_v14 }
  0xf3   : > { %1335 = vst.msk [vmem:[#allocation2 + $0x38] sm:$0x7f] %vm1328_vm12, %v1245_v15  ;;  %6175 = vmatprep.mubr.msk.f32.mxu0 %vm1984_vm0, %v1951_v16  ;;  %1652 = vrot.lane.b32.xlu1 %v5965_v13, %s6493_s18 }
  0xf4   : > { %3508 = vst.msk [vmem:[#allocation2 + $0x20] sm:$0x1] %vm10841_vm4, %v10682_v0  ;;  %1050 = vrot.lane.b32.xlu0 %v5965_v13, %s6487_s8  ;;  %vm10845_vm4 = vcmask 129120  }
  0xf5   : > { %v639_v18 = vpop.permute.xlu1 %638  ;;  %v637_v19 = vpop.permute.xlu0 %636 }
  0xf6   : > { %722 = vst.msk [vmem:[#allocation2 + $0x48] sm:$0x7f] %vm715_vm15, %v639_v18  ;;  %v1185_v18 = vld [vmem:[%s6607_s30 + $0x99] sm:$0x7f] }
  0xf7   : > { %721 = vst.msk [vmem:[#allocation2 + $0x40] sm:$0xff] %vm544_vm3, %v637_v19  ;;  %452 = vrot.lane.b32.xlu1 %v6728_v37, %s6489_s10 }
  0xf8   : > { %750 = vst.msk [vmem:[#allocation2 + $0x40] sm:$0x1] %vm10842_vm5, %v10682_v0  ;;  %1850 = vrot.lane.b32.xlu0 %v5994_v17, %s6494_s23  ;;  %vm10846_vm5 = vcmask 31744  }
  0xf9   : > { %v843_v20 = vpop.permute.xlu1 %842  ;;  %v1455_v21 = vpop.permute.xlu0 %1454  ;;  %v1952_v22 = vld [vmem:[#allocation2 + $0x28] sm:$0xff]  ;;  %355 = vst.msk [vmem:[#allocation2 + $0xd1] sm:$0xff] %vm10846_vm5, %v7027_v31  ;;  %vm10850_vm5 = vcmask 90176  }
  0xfa   : > { %932 = vst.msk [vmem:[#allocation2 + $0x41] sm:$0xff] %vm10843_vm14, %v843_v20  ;;  %6176 = vmatmul.mubr.msk.f32.gmra.mrb[4].mxu0 %vm1984_vm0, %v1952_v22  ;;  %vm10847_vm14 = vcmask 294144   ;;  %v583_v20 = vld [vmem:[%s6607_s30 + $0x99] sm:$0x7f] }
  0xfb   : > { %1539 = vst.msk [vmem:[#allocation2 + $0x31] sm:$0xff] %vm1361_vm1, %v1455_v21  ;;  %1258 = vrot.lane.b32.xlu1 %v5994_v17, %s6490_s11 }
  0xfc   : > { %454 = vrot.lane.b32.xlu0 %v5965_v13, %s6489_s10 }
  0xfd   : > { %v1457_v25 = vpop.permute.xlu1 %1456  ;;  %v845_v37 = vpop.permute.xlu0 %844 }
  0xfe   : > { %1540 = vst.msk [vmem:[#allocation2 + $0x39] sm:$0x7f] %vm10844_vm13, %v1457_v25  ;;  %vm10848_vm13 = vcmask 195744   ;;  %v7165_v25 = vld [vmem:[%s6607_s30 + $0xe0] sm:$0xff] }
  0xff   : > { %933 = vst.msk [vmem:[#allocation2 + $0x49] sm:$0x7f] %vm10845_vm4, %v845_v37  ;;  %1852 = vrot.lane.b32.xlu1 %v5995_v23, %s6494_s23  ;;  %vm10849_vm4 = vcmask 221376   ;;  %v5941_v37 = vld [vmem:[%s6607_s30 + $0xa8] sm:$0x7f] }
 0x100   : > { %1260 = vrot.lane.b32.xlu0 %v1181_v24, %s6490_s11 }
 0x101   : > { %v1037_v27 = vpop.permute.xlu1 %1036  ;;  %v1639_v29 = vpop.permute.xlu0 %1638 }
 0x102   : > { %1125 = vst.msk [vmem:[#allocation2 + $0x40] sm:$0xff] %vm1116_vm9, %v1037_v27 }
 0x103   : > { %1722 = vst.msk [vmem:[#allocation2 + $0x30] sm:$0xff] %vm1563_vm8, %v1639_v29  ;;  %654 = vrot.lane.b32.xlu1 %v579_v26, %s6491_s12  ;;  %v783_v26 = vld [vmem:[%s6607_s30 + $0xa8] sm:$0x7f] }
 0x104   : > { %652 = vrot.lane.b32.xlu0 %v5994_v17, %s6491_s12  ;;  %v5999_v17 = vld [vmem:[%s6607_s30 + $0x99] sm:$0x7f] }
 0x105   : > { %v1641_v12 = vpop.permute.xlu1 %1640  ;;  %v1039_v30 = vpop.permute.xlu0 %1038 }
 0x106   : > { %1723 = vst.msk [vmem:[#allocation2 + $0x38] sm:$0xff] %vm1563_vm8, %v1641_v12 }
 0x107   : > { %1126 = vst.msk [vmem:[#allocation2 + $0x48] sm:$0xff] %vm1116_vm9, %v1039_v30  ;;  %858 = vrot.lane.b32.xlu1 %v6764_v48, %s6488_s9 }
 0x108   : > { %1753 = vst.msk [vmem:[#allocation2 + $0x3f] sm:$0x1] %vm1749_vm10, %v10682_v0  ;;  %1470 = vrot.lane.b32.xlu0 %v6764_v48, %s6492_s13 }
 0x109   : > { %1154 = vst.msk [vmem:[#allocation2 + $0x4f] sm:$0x1] %vm1149_vm11, %v10682_v0  ;;  %v441_v34 = vpop.permute.xlu1 %440  ;;  %v1839_v35 = vpop.permute.xlu0 %1838 }
 0x10a   : > { %522 = vst.msk [vmem:[#allocation2 + $0x50] sm:$0xff] %vm361_vm2, %v441_v34 }
 0x10b   : > { %1923 = vst.msk [vmem:[#allocation2 + $0x30] sm:$0xff] %vm10847_vm14, %v1839_v35  ;;  %1472 = vrot.lane.b32.xlu1 %v5937_v32, %s6492_s13  ;;  %vm10851_vm14 = vcmask 57344   ;;  %v320_v32 = vld [vmem:[%s6607_s30 + $0xa8] sm:$0x7f] }
 0x10c   : > { %860 = vrot.lane.b32.xlu0 %v779_v33, %s6488_s9  ;;  %352 = vst.msk [vmem:[#allocation2 + $0xb9] sm:$0x7f] %vm331_vm6, %v320_v32  ;;  %v5971_v33 = vld [vmem:[%s6607_s30 + $0xa8] sm:$0xff] }
 0x10d   : > { %v1247_v36 = vpop.permute.xlu1 %1246  ;;  %v443_v38 = vpop.permute.xlu0 %442 }
 0x10e   : > { %1336 = vst.msk [vmem:[#allocation2 + $0x40] sm:$0xff] %vm10848_vm13, %v1247_v36  ;;  %vm10852_vm13 = vcmask 122976  }
 0x10f   : > { %523 = vst.msk [vmem:[#allocation2 + $0x58] sm:$0xff] %vm361_vm2, %v443_v38  ;;  %1052 = vrot.lane.b32.xlu1 %v6764_v48, %s6487_s8  ;;  %v6000_v38 = vld [vmem:[%s6607_s30 + $0xa1] sm:$0xff] }
 0x110   : > { %1369 = vst.msk [vmem:[#allocation2 + $0x40] sm:$0x1] %vm10849_vm4, %v10682_v0  ;;  %1654 = vrot.lane.b32.xlu0 %v6764_v48, %s6493_s18  ;;  %vm10853_vm4 = vcmask 130144  }
 0x111   : > { %553 = vst.msk [vmem:[#allocation2 + $0x5f] sm:$0x1] %vm10850_vm5, %v10682_v0  ;;  %v1841_v42 = vpop.permute.xlu1 %1840  ;;  %v1249_v43 = vpop.permute.xlu0 %1248  ;;  %vm10854_vm5 = vcmask 227520  }
 0x112   : > { %v1953_v44 = vld [vmem:[#allocation2 + $0x30] sm:$0xff]  ;;  %1924 = vst.msk [vmem:[#allocation2 + $0x38] sm:$0x7f] %vm1917_vm7, %v1841_v42 }
 0x113   : > { %1337 = vst.msk [vmem:[#allocation2 + $0x48] sm:$0x7f] %vm1328_vm12, %v1249_v43  ;;  %6178 = vmatprep.mubr.msk.f32.mxu0 %vm1984_vm0, %v1953_v44  ;;  %1656 = vrot.lane.b32.xlu1 %v5967_v41, %s6493_s18 }
 0x114   : > { %3509 = vst.msk [vmem:[#allocation2 + $0x30] sm:$0x1] %vm10851_vm14, %v10682_v0  ;;  %1054 = vrot.lane.b32.xlu0 %v5967_v41, %s6487_s8  ;;  %vm10855_vm14 = vcmask 129120  }
 0x115   : > { %v643_v46 = vpop.permute.xlu1 %642  ;;  %v641_v47 = vpop.permute.xlu0 %640 }
 0x116   : > { %724 = vst.msk [vmem:[#allocation2 + $0x58] sm:$0x7f] %vm715_vm15, %v643_v46  ;;  %v1187_v46 = vld [vmem:[%s6607_s30 + $0xa9] sm:$0x7f] }
 0x117   : > { %723 = vst.msk [vmem:[#allocation2 + $0x50] sm:$0xff] %vm544_vm3, %v641_v47  ;;  %456 = vrot.lane.b32.xlu1 %v6764_v48, %s6489_s10 }
 0x118   : > { %751 = vst.msk [vmem:[#allocation2 + $0x50] sm:$0x1] %vm10852_vm13, %v10682_v0  ;;  %1854 = vrot.lane.b32.xlu0 %v5996_v45, %s6494_s23  ;;  %vm10856_vm13 = vcmask 31744  }
 0x119   : > { %v847_v49 = vpop.permute.xlu1 %846  ;;  %v1459_v50 = vpop.permute.xlu0 %1458  ;;  %v1954_v51 = vld [vmem:[#allocation2 + $0x38] sm:$0xff]  ;;  %357 = vst.msk [vmem:[#allocation2 + $0xe1] sm:$0xff] %vm10856_vm13, %v7100_v60  ;;  %vm10860_vm13 = vcmask 90176  }
 0x11a   : > { %934 = vst.msk [vmem:[#allocation2 + $0x51] sm:$0xff] %vm10853_vm4, %v847_v49  ;;  %6179 = vmatmul.mubr.msk.f32.gmra.mrb[6].mxu0 %vm1984_vm0, %v1954_v51  ;;  %vm10857_vm4 = vcmask 294144   ;;  %v585_v49 = vld [vmem:[%s6607_s30 + $0xa9] sm:$0x7f] }
 0x11b   : > { %1541 = vst.msk [vmem:[#allocation2 + $0x41] sm:$0xff] %vm1361_vm1, %v1459_v50  ;;  %1262 = vrot.lane.b32.xlu1 %v5996_v45, %s6490_s11 }
 0x11c   : > { %458 = vrot.lane.b32.xlu0 %v5967_v41, %s6489_s10 }
 0x11d   : > { %v1461_v54 = vpop.permute.xlu1 %1460  ;;  %v849_v48 = vpop.permute.xlu0 %848 }
 0x11e   : > { %1542 = vst.msk [vmem:[#allocation2 + $0x49] sm:$0x7f] %vm10854_vm5, %v1461_v54  ;;  %vm10858_vm5 = vcmask 195744   ;;  %v5943_v54 = vld [vmem:[%s6607_s30 + $0xb8] sm:$0x7f] }
 0x11f   : > { %935 = vst.msk [vmem:[#allocation2 + $0x59] sm:$0x7f] %vm10855_vm14, %v849_v48  ;;  %1856 = vrot.lane.b32.xlu1 %v5997_v52, %s6494_s23  ;;  %vm10859_vm14 = vcmask 221376   ;;  %v785_v48 = vld [vmem:[%s6607_s30 + $0xb8] sm:$0x7f] }
 0x120   : > { %1264 = vrot.lane.b32.xlu0 %v1183_v53, %s6490_s11 }
 0x121   : > { %v1041_v56 = vpop.permute.xlu1 %1040  ;;  %v1643_v57 = vpop.permute.xlu0 %1642 }
 0x122   : > { %1127 = vst.msk [vmem:[#allocation2 + $0x50] sm:$0xff] %vm1116_vm9, %v1041_v56 }
 0x123   : > { %1724 = vst.msk [vmem:[#allocation2 + $0x40] sm:$0xff] %vm1563_vm8, %v1643_v57  ;;  %658 = vrot.lane.b32.xlu1 %v581_v55, %s6491_s12 }
 0x124   : > { %656 = vrot.lane.b32.xlu0 %v5996_v45, %s6491_s12  ;;  %v6001_v45 = vld [vmem:[%s6607_s30 + $0xa9] sm:$0x7f] }
 0x125   : > { %v1645_v58 = vpop.permute.xlu1 %1644 }
 0x126   : > { %v1043_v59 = vpop.permute.xlu0 %1042  ;;  %1725 = vst.msk [vmem:[#allocation2 + $0x48] sm:$0xff] %vm1563_vm8, %v1645_v58 }
 0x127   : > { %1128 = vst.msk [vmem:[#allocation2 + $0x58] sm:$0xff] %vm1116_vm9, %v1043_v59  ;;  %862 = vrot.lane.b32.xlu1 %v6824_v10, %s6488_s9  ;;  %v322_v59 = vld [vmem:[%s6607_s30 + $0xb8] sm:$0x7f] }
 0x128   : > { %1754 = vst.msk [vmem:[#allocation2 + $0x4f] sm:$0x1] %vm1749_vm10, %v10682_v0  ;;  %1474 = vrot.lane.b32.xlu0 %v6824_v10, %s6492_s13 }
 0x129   : > { %1155 = vst.msk [vmem:[#allocation2 + $0x5f] sm:$0x1] %vm1149_vm11, %v10682_v0  ;;  %v445_v62 = vpop.permute.xlu1 %444 }
 0x12a   : > { %v1843_v63 = vpop.permute.xlu0 %1842  ;;  %524 = vst.msk [vmem:[#allocation2 + $0x60] sm:$0xff] %vm361_vm2, %v445_v62 }
 0x12b   : > { %1925 = vst.msk [vmem:[#allocation2 + $0x40] sm:$0xff] %vm10857_vm4, %v1843_v63  ;;  %1476 = vrot.lane.b32.xlu1 %v5939_v28, %s6492_s13  ;;  %vm10861_vm4 = vcmask 57344   ;;  %v5973_v28 = vld [vmem:[%s6607_s30 + $0xb8] sm:$0xff] }
 0x12c   : > { %864 = vrot.lane.b32.xlu0 %v781_v61, %s6488_s9  ;;  %354 = vst.msk [vmem:[#allocation2 + $0xc9] sm:$0x7f] %vm331_vm6, %v322_v59 }
 0x12d   : > { %v1251_v1 = vpop.permute.xlu1 %1250 }
 0x12e   : > { %v447_v2 = vpop.permute.xlu0 %446  ;;  %1338 = vst.msk [vmem:[#allocation2 + $0x50] sm:$0xff] %vm10858_vm5, %v1251_v1  ;;  %vm10862_vm5 = vcmask 122976   ;;  %v6002_v1 = vld [vmem:[%s6607_s30 + $0xb1] sm:$0xff] }
 0x12f   : > { %525 = vst.msk [vmem:[#allocation2 + $0x68] sm:$0xff] %vm361_vm2, %v447_v2  ;;  %1056 = vrot.lane.b32.xlu1 %v6824_v10, %s6487_s8 }
 0x130   : > { %1370 = vst.msk [vmem:[#allocation2 + $0x50] sm:$0x1] %vm10859_vm14, %v10682_v0  ;;  %1658 = vrot.lane.b32.xlu0 %v6824_v10, %s6493_s18  ;;  %vm10863_vm14 = vcmask 130144  }
 0x131   : > { %554 = vst.msk [vmem:[#allocation2 + $0x6f] sm:$0x1] %vm10860_vm13, %v10682_v0  ;;  %v1845_v6 = vpop.permute.xlu1 %1844  ;;  %vm10864_vm13 = vcmask 227520  }
 0x132   : > { %v1253_v7 = vpop.permute.xlu0 %1252  ;;  %v1955_v8 = vld [vmem:[#allocation2 + $0x40] sm:$0xff]  ;;  %1926 = vst.msk [vmem:[#allocation2 + $0x48] sm:$0x7f] %vm1917_vm7, %v1845_v6 }
 0x133   : > { %1339 = vst.msk [vmem:[#allocation2 + $0x58] sm:$0x7f] %vm1328_vm12, %v1253_v7  ;;  %6181 = vmatprep.mubr.msk.f32.mxu0 %vm1984_vm0, %v1955_v8  ;;  %1660 = vrot.lane.b32.xlu1 %v5969_v5, %s6493_s18  ;;  %v6003_v8 = vld [vmem:[%s6607_s30 + $0xb9] sm:$0x7f] }
 0x134   : > { %3510 = vst.msk [vmem:[#allocation2 + $0x40] sm:$0x1] %vm10861_vm4, %v10682_v0  ;;  %1058 = vrot.lane.b32.xlu0 %v5969_v5, %s6487_s8  ;;  %vm10865_vm4 = vcmask 129120  }
 0x135   : > { %v647_v11 = vpop.permute.xlu1 %646 }
 0x136   : > { %v645_v13 = vpop.permute.xlu0 %644  ;;  %726 = vst.msk [vmem:[#allocation2 + $0x68] sm:$0x7f] %vm715_vm15, %v647_v11 }
 0x137   : > { %725 = vst.msk [vmem:[#allocation2 + $0x60] sm:$0xff] %vm544_vm3, %v645_v13  ;;  %460 = vrot.lane.b32.xlu1 %v6824_v10, %s6489_s10  ;;  %v587_v13 = vld [vmem:[%s6607_s30 + $0xb9] sm:$0x7f] }
 0x138   : > { %752 = vst.msk [vmem:[#allocation2 + $0x60] sm:$0x1] %vm10862_vm5, %v10682_v0  ;;  %1858 = vrot.lane.b32.xlu0 %v5998_v9, %s6494_s23  ;;  %vm10866_vm5 = vcmask 31744  }
 0x139   : > { %v851_v14 = vpop.permute.xlu1 %850  ;;  %v1956_v16 = vld [vmem:[#allocation2 + $0x48] sm:$0xff]  ;;  %359 = vst.msk [vmem:[#allocation2 + $0xf1] sm:$0xff] %vm10866_vm5, %v7165_v25  ;;  %vm10870_vm5 = vcmask 90176  }
 0x13a   : > { %v1463_v15 = vpop.permute.xlu0 %1462  ;;  %936 = vst.msk [vmem:[#allocation2 + $0x61] sm:$0xff] %vm10863_vm14, %v851_v14  ;;  %6182 = vmatmul.mubr.msk.f32.gmra.mrb[8].mxu0 %vm1984_vm0, %v1956_v16  ;;  %vm10867_vm14 = vcmask 294144  }
 0x13b   : > { %1543 = vst.msk [vmem:[#allocation2 + $0x51] sm:$0xff] %vm1361_vm1, %v1463_v15  ;;  %1266 = vrot.lane.b32.xlu1 %v5998_v9, %s6490_s11 }
 0x13c   : > { %462 = vrot.lane.b32.xlu0 %v5969_v5, %s6489_s10 }
 0x13d   : > { %v1465_v19 = vpop.permute.xlu1 %1464 }
 0x13e   : > { %v853_v10 = vpop.permute.xlu0 %852  ;;  %1544 = vst.msk [vmem:[#allocation2 + $0x59] sm:$0x7f] %vm10864_vm13, %v1465_v19  ;;  %vm10868_vm13 = vcmask 195744   ;;  %v787_v19 = vld [vmem:[%s6607_s30 + $0xc8] sm:$0x7f] }
 0x13f   : > { %937 = vst.msk [vmem:[#allocation2 + $0x69] sm:$0x7f] %vm10865_vm4, %v853_v10  ;;  %1860 = vrot.lane.b32.xlu1 %v5999_v17, %s6494_s23  ;;  %vm10869_vm4 = vcmask 221376  }
 0x140   : > { %1268 = vrot.lane.b32.xlu0 %v1185_v18, %s6490_s11  ;;  %v5945_v18 = vld [vmem:[%s6607_s30 + $0xc8] sm:$0x7f] }
 0x141   : > { %v1045_v21 = vpop.permute.xlu1 %1044 }
 0x142   : > { %v1647_v22 = vpop.permute.xlu0 %1646  ;;  %1129 = vst.msk [vmem:[#allocation2 + $0x60] sm:$0xff] %vm1116_vm9, %v1045_v21 }
 0x143   : > { %1726 = vst.msk [vmem:[#allocation2 + $0x50] sm:$0xff] %vm1563_vm8, %v1647_v22  ;;  %662 = vrot.lane.b32.xlu1 %v583_v20, %s6491_s12 }
 0x144   : > { %660 = vrot.lane.b32.xlu0 %v5998_v9, %s6491_s12  ;;  %v1189_v9 = vld [vmem:[%s6607_s30 + $0xb9] sm:$0x7f] }
 0x145   : > { %v1649_v23 = vpop.permute.xlu1 %1648 }
 0x146   : > { %v1047_v24 = vpop.permute.xlu0 %1046  ;;  %1727 = vst.msk [vmem:[#allocation2 + $0x58] sm:$0xff] %vm1563_vm8, %v1649_v23  ;;  %v324_v23 = vld [vmem:[%s6607_s30 + $0xc8] sm:$0x7f] }
 0x147   : > { %1130 = vst.msk [vmem:[#allocation2 + $0x68] sm:$0xff] %vm1116_vm9, %v1047_v24  ;;  %866 = vrot.lane.b32.xlu1 %v6897_v39, %s6488_s9 }
 0x148   : > { %1755 = vst.msk [vmem:[#allocation2 + $0x5f] sm:$0x1] %vm1749_vm10, %v10682_v0  ;;  %1478 = vrot.lane.b32.xlu0 %v6897_v39, %s6492_s13 }
 0x149   : > { %1156 = vst.msk [vmem:[#allocation2 + $0x6f] sm:$0x1] %vm1149_vm11, %v10682_v0  ;;  %v449_v27 = vpop.permute.xlu1 %448 }
 0x14a   : > { %v1847_v29 = vpop.permute.xlu0 %1846  ;;  %526 = vst.msk [vmem:[#allocation2 + $0x70] sm:$0xff] %vm361_vm2, %v449_v27 }
 0x14b   : > { %1927 = vst.msk [vmem:[#allocation2 + $0x50] sm:$0xff] %vm10867_vm14, %v1847_v29  ;;  %1480 = vrot.lane.b32.xlu1 %v5941_v37, %s6492_s13  ;;  %vm10871_vm14 = vcmask 57344  }
 0x14c   : > { %868 = vrot.lane.b32.xlu0 %v783_v26, %s6488_s9  ;;  %356 = vst.msk [vmem:[#allocation2 + $0xd9] sm:$0x7f] %vm331_vm6, %v324_v23 }
 0x14d   : > { %v1255_v12 = vpop.permute.xlu1 %1254 }
 0x14e   : > { %v451_v30 = vpop.permute.xlu0 %450  ;;  %1340 = vst.msk [vmem:[#allocation2 + $0x60] sm:$0xff] %vm10868_vm13, %v1255_v12  ;;  %vm10872_vm13 = vcmask 122976   ;;  %v5975_v12 = vld [vmem:[%s6607_s30 + $0xc8] sm:$0xff] }
 0x14f   : > { %527 = vst.msk [vmem:[#allocation2 + $0x78] sm:$0xff] %vm361_vm2, %v451_v30  ;;  %1060 = vrot.lane.b32.xlu1 %v6897_v39, %s6487_s8 }
 0x150   : > { %1371 = vst.msk [vmem:[#allocation2 + $0x60] sm:$0x1] %vm10869_vm4, %v10682_v0  ;;  %1662 = vrot.lane.b32.xlu0 %v6897_v39, %s6493_s18  ;;  %vm10873_vm4 = vcmask 130144  }
 0x151   : > { %555 = vst.msk [vmem:[#allocation2 + $0x7f] sm:$0x1] %vm10870_vm5, %v10682_v0  ;;  %v1849_v34 = vpop.permute.xlu1 %1848  ;;  %vm10874_vm5 = vcmask 227520  }
 0x152   : > { %v1257_v35 = vpop.permute.xlu0 %1256  ;;  %v1957_v36 = vld [vmem:[#allocation2 + $0x50] sm:$0xff]  ;;  %1928 = vst.msk [vmem:[#allocation2 + $0x58] sm:$0x7f] %vm1917_vm7, %v1849_v34  ;;  %v6004_v34 = vld [vmem:[%s6607_s30 + $0xc1] sm:$0xff] }
 0x153   : > { %1341 = vst.msk [vmem:[#allocation2 + $0x68] sm:$0x7f] %vm1328_vm12, %v1257_v35  ;;  %6184 = vmatprep.mubr.msk.f32.mxu0 %vm1984_vm0, %v1957_v36  ;;  %1664 = vrot.lane.b32.xlu1 %v5971_v33, %s6493_s18 }
 0x154   : > { %3511 = vst.msk [vmem:[#allocation2 + $0x50] sm:$0x1] %vm10871_vm14, %v10682_v0  ;;  %1062 = vrot.lane.b32.xlu0 %v5971_v33, %s6487_s8  ;;  %vm10875_vm14 = vcmask 129120  }
 0x155   : > { %v651_v40 = vpop.permute.xlu1 %650 }
 0x156   : > { %v649_v41 = vpop.permute.xlu0 %648  ;;  %728 = vst.msk [vmem:[#allocation2 + $0x78] sm:$0x7f] %vm715_vm15, %v651_v40 }
 0x157   : > { %727 = vst.msk [vmem:[#allocation2 + $0x70] sm:$0xff] %vm544_vm3, %v649_v41  ;;  %464 = vrot.lane.b32.xlu1 %v6897_v39, %s6489_s10 }
 0x158   : > { %753 = vst.msk [vmem:[#allocation2 + $0x70] sm:$0x1] %vm10872_vm13, %v10682_v0  ;;  %1862 = vrot.lane.b32.xlu0 %v6000_v38, %s6494_s23  ;;  %vm10876_vm13 = vcmask 294144  }
 0x159   : > { %v855_v42 = vpop.permute.xlu1 %854  ;;  %v1958_v44 = vld [vmem:[#allocation2 + $0x58] sm:$0xff] }
 0x15a   : > { %v1467_v43 = vpop.permute.xlu0 %1466  ;;  %938 = vst.msk [vmem:[#allocation2 + $0x71] sm:$0xff] %vm10873_vm4, %v855_v42  ;;  %6185 = vmatmul.mubr.msk.f32.gmra.mrb[10].mxu0 %vm1984_vm0, %v1958_v44  ;;  %vm10877_vm4 = vcmask 195744   ;;  %v1191_v42 = vld [vmem:[%s6607_s30 + $0xc9] sm:$0x7f] }
 0x15b   : > { %1545 = vst.msk [vmem:[#allocation2 + $0x61] sm:$0xff] %vm1361_vm1, %v1467_v43  ;;  %1270 = vrot.lane.b32.xlu1 %v6000_v38, %s6490_s11 }
 0x15c   : > { %466 = vrot.lane.b32.xlu0 %v5971_v33, %s6489_s10 }
 0x15d   : > { %v1469_v47 = vpop.permute.xlu1 %1468 }
 0x15e   : > { %v857_v39 = vpop.permute.xlu0 %856  ;;  %1546 = vst.msk [vmem:[#allocation2 + $0x69] sm:$0x7f] %vm10874_vm5, %v1469_v47  ;;  %vm10878_vm5 = vcmask 221376  }
 0x15f   : > { %939 = vst.msk [vmem:[#allocation2 + $0x79] sm:$0x7f] %vm10875_vm14, %v857_v39  ;;  %1864 = vrot.lane.b32.xlu1 %v6001_v45, %s6494_s23  ;;  %vm10879_vm14 = vcmask 90176   ;;  %v589_v45 = vld [vmem:[%s6607_s30 + $0xc9] sm:$0x7f] }
 0x160   : > { %1272 = vrot.lane.b32.xlu0 %v1187_v46, %s6490_s11 }
 0x161   : > { %v1049_v50 = vpop.permute.xlu1 %1048 }
 0x162   : > { %v1651_v51 = vpop.permute.xlu0 %1650  ;;  %1131 = vst.msk [vmem:[#allocation2 + $0x70] sm:$0xff] %vm1116_vm9, %v1049_v50  ;;  %v5947_v50 = vld [vmem:[%s6607_s30 + $0xd8] sm:$0x7f] }
 0x163   : > { %1728 = vst.msk [vmem:[#allocation2 + $0x60] sm:$0xff] %vm1563_vm8, %v1651_v51  ;;  %666 = vrot.lane.b32.xlu1 %v585_v49, %s6491_s12  ;;  %v789_v51 = vld [vmem:[%s6607_s30 + $0xd8] sm:$0x7f] }
 0x164   : > { %664 = vrot.lane.b32.xlu0 %v6000_v38, %s6491_s12 }
 0x165   : > { %v1653_v52 = vpop.permute.xlu1 %1652 }
 0x166   : > { %v1051_v53 = vpop.permute.xlu0 %1050  ;;  %1729 = vst.msk [vmem:[#allocation2 + $0x68] sm:$0xff] %vm1563_vm8, %v1653_v52 }
 0x167   : > { %1132 = vst.msk [vmem:[#allocation2 + $0x78] sm:$0xff] %vm1116_vm9, %v1051_v53  ;;  %870 = vrot.lane.b32.xlu1 %v6962_v3, %s6488_s9 }
 0x168   : > { %1756 = vst.msk [vmem:[#allocation2 + $0x6f] sm:$0x1] %vm1749_vm10, %v10682_v0  ;;  %1482 = vrot.lane.b32.xlu0 %v6962_v3, %s6492_s13 }
 0x169   : > { %1157 = vst.msk [vmem:[#allocation2 + $0x7f] sm:$0x1] %vm1149_vm11, %v10682_v0  ;;  %v453_v55 = vpop.permute.xlu1 %452 }
 0x16a   : > { %v1851_v56 = vpop.permute.xlu0 %1850  ;;  %528 = vst.msk [vmem:[#allocation2 + $0x80] sm:$0xff] %vm361_vm2, %v453_v55  ;;  %v326_v55 = vld [vmem:[%s6607_s30 + $0xd8] sm:$0x7f] }
 0x16b   : > { %1929 = vst.msk [vmem:[#allocation2 + $0x60] sm:$0xff] %vm10876_vm13, %v1851_v56  ;;  %1484 = vrot.lane.b32.xlu1 %v5943_v54, %s6492_s13  ;;  %vm10880_vm13 = vcmask 57344  }
 0x16c   : > { %872 = vrot.lane.b32.xlu0 %v785_v48, %s6488_s9  ;;  %358 = vst.msk [vmem:[#allocation2 + $0xe9] sm:$0x7f] %vm331_vm6, %v326_v55  ;;  %v793_v55 = vld [vmem:[%s6607_s30 + $0xf8] sm:$0x7f] }
 0x16d   : > { %v1259_v57 = vpop.permute.xlu1 %1258 }
 0x16e   : > { %v455_v58 = vpop.permute.xlu0 %454  ;;  %1342 = vst.msk [vmem:[#allocation2 + $0x70] sm:$0xff] %vm10877_vm4, %v1259_v57  ;;  %vm10881_vm4 = vcmask 122976  }
 0x16f   : > { %529 = vst.msk [vmem:[#allocation2 + $0x88] sm:$0xff] %vm361_vm2, %v455_v58  ;;  %1064 = vrot.lane.b32.xlu1 %v6962_v3, %s6487_s8 }
 0x170   : > { %1372 = vst.msk [vmem:[#allocation2 + $0x70] sm:$0x1] %vm10878_vm5, %v10682_v0  ;;  %1666 = vrot.lane.b32.xlu0 %v6962_v3, %s6493_s18  ;;  %vm10882_vm5 = vcmask 130144  }
 0x171   : > { %556 = vst.msk [vmem:[#allocation2 + $0x8f] sm:$0x1] %vm10879_vm14, %v10682_v0  ;;  %v1853_v61 = vpop.permute.xlu1 %1852  ;;  %vm10883_vm14 = vcmask 227520  }
 0x172   : > { %v1261_v62 = vpop.permute.xlu0 %1260  ;;  %v1959_v63 = vld [vmem:[#allocation2 + $0x60] sm:$0xff]  ;;  %1930 = vst.msk [vmem:[#allocation2 + $0x68] sm:$0x7f] %vm1917_vm7, %v1853_v61 }
 0x173   : > { %1343 = vst.msk [vmem:[#allocation2 + $0x78] sm:$0x7f] %vm1328_vm12, %v1261_v62  ;;  %6187 = vmatprep.mubr.msk.f32.mxu0 %vm1984_vm0, %v1959_v63  ;;  %1668 = vrot.lane.b32.xlu1 %v5973_v28, %s6493_s18 }
 0x174   : > { %3512 = vst.msk [vmem:[#allocation2 + $0x60] sm:$0x1] %vm10880_vm13, %v10682_v0  ;;  %1066 = vrot.lane.b32.xlu0 %v5973_v28, %s6487_s8  ;;  %vm10884_vm13 = vcmask 129120  }
 0x175   : > { %v655_v2 = vpop.permute.xlu1 %654 }
 0x176   : > { %v653_v4 = vpop.permute.xlu0 %652  ;;  %730 = vst.msk [vmem:[#allocation2 + $0x88] sm:$0x7f] %vm715_vm15, %v655_v2 }
 0x177   : > { %729 = vst.msk [vmem:[#allocation2 + $0x80] sm:$0xff] %vm544_vm3, %v653_v4  ;;  %468 = vrot.lane.b32.xlu1 %v6962_v3, %s6489_s10 }
 0x178   : > { %754 = vst.msk [vmem:[#allocation2 + $0x80] sm:$0x1] %vm10881_vm4, %v10682_v0  ;;  %1866 = vrot.lane.b32.xlu0 %v6002_v1, %s6494_s23  ;;  %vm10885_vm4 = vcmask 294144  }
 0x179   : > { %v859_v5 = vpop.permute.xlu1 %858  ;;  %v1960_v7 = vld [vmem:[#allocation2 + $0x68] sm:$0xff] }
 0x17a   : > { %v1471_v6 = vpop.permute.xlu0 %1470  ;;  %940 = vst.msk [vmem:[#allocation2 + $0x81] sm:$0xff] %vm10882_vm5, %v859_v5  ;;  %6188 = vmatmul.mubr.msk.f32.gmra.mrb[12].mxu0 %vm1984_vm0, %v1960_v7  ;;  %vm10886_vm5 = vcmask 195744   ;;  %v6006_v5 = vld [vmem:[%s6607_s30 + $0xd1] sm:$0xff] }
 0x17b   : > { %1547 = vst.msk [vmem:[#allocation2 + $0x71] sm:$0xff] %vm1361_vm1, %v1471_v6  ;;  %1274 = vrot.lane.b32.xlu1 %v6002_v1, %s6490_s11 }
 0x17c   : > { %470 = vrot.lane.b32.xlu0 %v5973_v28, %s6489_s10  ;;  %v5977_v28 = vld [vmem:[%s6607_s30 + $0xd8] sm:$0xff] }
 0x17d   : > { %v1473_v11 = vpop.permute.xlu1 %1472 }
 0x17e   : > { %v861_v3 = vpop.permute.xlu0 %860  ;;  %1548 = vst.msk [vmem:[#allocation2 + $0x79] sm:$0x7f] %vm10883_vm14, %v1473_v11  ;;  %vm10887_vm14 = vcmask 64512  }
 0x17f   : > { %941 = vst.msk [vmem:[#allocation2 + $0x89] sm:$0x7f] %vm10884_vm13, %v861_v3  ;;  %1868 = vrot.lane.b32.xlu1 %v6003_v8, %s6494_s23  ;;  %vm10888_vm13 = vcmask 221376   ;;  %v1193_v3 = vld [vmem:[%s6607_s30 + $0xd9] sm:$0x7f] }
 0x180   : > { %1276 = vrot.lane.b32.xlu0 %v1189_v9, %s6490_s11 }
 0x181   : > { %v1053_v14 = vpop.permute.xlu1 %1052 }
 0x182   : > { %v1655_v15 = vpop.permute.xlu0 %1654  ;;  %1133 = vst.msk [vmem:[#allocation2 + $0x80] sm:$0xff] %vm1116_vm9, %v1053_v14  ;;  %v591_v14 = vld [vmem:[%s6607_s30 + $0xd9] sm:$0x7f] }
 0x183   : > { %1730 = vst.msk [vmem:[#allocation2 + $0x70] sm:$0xff] %vm1563_vm8, %v1655_v15  ;;  %670 = vrot.lane.b32.xlu1 %v587_v13, %s6491_s12 }
 0x184   : > { %668 = vrot.lane.b32.xlu0 %v6002_v1, %s6491_s12 }
 0x185   : > { %v1657_v16 = vpop.permute.xlu1 %1656 }
 0x186   : > { %v1055_v17 = vpop.permute.xlu0 %1054  ;;  %1731 = vst.msk [vmem:[#allocation2 + $0x78] sm:$0xff] %vm1563_vm8, %v1657_v16 }
 0x187   : > { %1134 = vst.msk [vmem:[#allocation2 + $0x88] sm:$0xff] %vm1116_vm9, %v1055_v17  ;;  %874 = vrot.lane.b32.xlu1 %v7027_v31, %s6488_s9 }
 0x188   : > { %1757 = vst.msk [vmem:[#allocation2 + $0x7f] sm:$0x1] %vm1749_vm10, %v10682_v0  ;;  %1486 = vrot.lane.b32.xlu0 %v7027_v31, %s6492_s13 }
 0x189   : > { %1158 = vst.msk [vmem:[#allocation2 + $0x8f] sm:$0x1] %vm1149_vm11, %v10682_v0  ;;  %v457_v10 = vpop.permute.xlu1 %456 }
 0x18a   : > { %v1855_v20 = vpop.permute.xlu0 %1854  ;;  %530 = vst.msk [vmem:[#allocation2 + $0x90] sm:$0xff] %vm361_vm2, %v457_v10  ;;  %v5949_v10 = vld [vmem:[%s6607_s30 + $0xe8] sm:$0x7f] }
 0x18b   : > { %1931 = vst.msk [vmem:[#allocation2 + $0x70] sm:$0xff] %vm10885_vm4, %v1855_v20  ;;  %1488 = vrot.lane.b32.xlu1 %v5945_v18, %s6492_s13  ;;  %vm10889_vm4 = vmmov %vm10887_vm14  ;;  %v328_v18 = vld [vmem:[%s6607_s30 + $0xe8] sm:$0x7f] }
 0x18c   : > { %876 = vrot.lane.b32.xlu0 %v787_v19, %s6488_s9  ;;  %360 = vst.msk [vmem:[#allocation2 + $0xf9] sm:$0x7f] %vm331_vm6, %v328_v18  ;;  %vm10907_vm6 = vcmask 294144  }
 0x18d   : > { %v1263_v21 = vpop.permute.xlu1 %1262  ;;  %v7295_v22 = vpop.f32.mrb[0].mxu0 }
 0x18e   : > { %1344 = vst.msk [vmem:[#allocation2 + $0x80] sm:$0xff] %vm10886_vm5, %v1263_v21  ;;  %v2312_v24 = vsel %vm10887_vm14, %v7295_v22, 0.0  ;;  %v459_v37 = vpop.permute.xlu0 %458  ;;  %v7301_v26 = vpop.f32.mrb[1].mxu0  ;;  %vm10890_vm5 = vcmask 90176   ;;  %vm10891_vm14 = vcmask 57344  }
 0x18f   : > { %1373 = vst.msk [vmem:[#allocation2 + $0x80] sm:$0x1] %vm10888_vm13, %v10682_v0  ;;  %v2311_v27 = vsel %vm10889_vm4, %v7301_v26, 0.0  ;;  %1068 = vrot.lane.b32.xlu1 %v7027_v31, %s6487_s8  ;;  %vm10892_vm13 = vcmask 122976   ;;  %vm10893_vm4 = vcmask 130144  }
 0x190   : > { %531 = vst.msk [vmem:[#allocation2 + $0x98] sm:$0xff] %vm361_vm2, %v459_v37  ;;  %1670 = vrot.lane.b32.xlu0 %v7027_v31, %s6493_s18  ;;  %v7315_v29 = vadd.f32 %v2312_v24, %v2311_v27  ;;  %v791_v21 = vld [vmem:[%s6607_s30 + $0xe8] sm:$0x7f] }
 0x191   : > { %557 = vst.msk [vmem:[#allocation2 + $0x9f] sm:$0x1] %vm10890_vm5, %v10682_v0  ;;  %v1857_v30 = vpop.permute.xlu1 %1856  ;;  %vm10894_vm5 = vcmask 227520  }
 0x192   : > { %v1961_v32 = vld [vmem:[#allocation2 + $0x70] sm:$0xff]  ;;  %1932 = vst.msk [vmem:[#allocation2 + $0x78] sm:$0x7f] %vm1917_vm7, %v1857_v30  ;;  %v1265_v33 = vpop.permute.xlu0 %1264 }
 0x193   : > { %6190 = vmatprep.mubr.msk.f32.mxu0 %vm1984_vm0, %v1961_v32  ;;  %3513 = vst.msk [vmem:[#allocation2 + $0x70] sm:$0x1] %vm10891_vm14, %v10682_v0  ;;  %1672 = vrot.lane.b32.xlu1 %v5975_v12, %s6493_s18  ;;  %vm10895_vm14 = vcmask 129120  }
 0x194   : > { %1345 = vst.msk [vmem:[#allocation2 + $0x88] sm:$0x7f] %vm1328_vm12, %v1265_v33  ;;  %1070 = vrot.lane.b32.xlu0 %v5975_v12, %s6487_s8 }
 0x195   : > { %v659_v35 = vpop.permute.xlu1 %658 }
 0x196   : > { %732 = vst.msk [vmem:[#allocation2 + $0x98] sm:$0x7f] %vm715_vm15, %v659_v35  ;;  %v657_v36 = vpop.permute.xlu0 %656 }
 0x197   : > { %731 = vst.msk [vmem:[#allocation2 + $0x90] sm:$0xff] %vm544_vm3, %v657_v36  ;;  %472 = vrot.lane.b32.xlu1 %v7027_v31, %s6489_s10  ;;  %v6005_v31 = vld [vmem:[%s6607_s30 + $0xc9] sm:$0x7f] }
 0x198   : > { %1870 = vrot.lane.b32.xlu0 %v6004_v34, %s6494_s23  ;;  %755 = vst.msk [vmem:[#allocation2 + $0x90] sm:$0x1] %vm10892_vm13, %v10682_v0  ;;  %vm10896_vm13 = vcmask 294144  }
 0x199   : > { %v863_v38 = vpop.permute.xlu1 %862  ;;  %v1962_v40 = vld [vmem:[#allocation2 + $0x78] sm:$0xff] }
 0x19a   : > { %942 = vst.msk [vmem:[#allocation2 + $0x91] sm:$0xff] %vm10893_vm4, %v863_v38  ;;  %v1475_v41 = vpop.permute.xlu0 %1474  ;;  %6191 = vmatmul.mubr.msk.f32.gmra.mrb[14].mxu0 %vm1984_vm0, %v1962_v40  ;;  %vm10897_vm4 = vcmask 195744  }
 0x19b   : > { %1549 = vst.msk [vmem:[#allocation2 + $0x81] sm:$0xff] %vm1361_vm1, %v1475_v41  ;;  %1278 = vrot.lane.b32.xlu1 %v6004_v34, %s6490_s11 }
 0x19c   : > { %474 = vrot.lane.b32.xlu0 %v5975_v12, %s6489_s10 }
 0x19d   : > { %v1477_v43 = vpop.permute.xlu1 %1476 }
 0x19e   : > { %1550 = vst.msk [vmem:[#allocation2 + $0x89] sm:$0x7f] %vm10894_vm5, %v1477_v43  ;;  %v865_v44 = vpop.permute.xlu0 %864  ;;  %vm10898_vm5 = vcmask 221376  }
 0x19f   : > { %943 = vst.msk [vmem:[#allocation2 + $0x99] sm:$0x7f] %vm10895_vm14, %v865_v44  ;;  %1872 = vrot.lane.b32.xlu1 %v6005_v31, %s6494_s23  ;;  %vm10899_vm14 = vcmask 64512   ;;  %v592_v31 = vld [vmem:[%s6607_s30 + $0xe1] sm:$0xff] }
 0x1a0   : > { %1280 = vrot.lane.b32.xlu0 %v1191_v42, %s6490_s11 }
 0x1a1   : > { %v1057_v46 = vpop.permute.xlu1 %1056 }
 0x1a2   : > { %1135 = vst.msk [vmem:[#allocation2 + $0x90] sm:$0xff] %vm1116_vm9, %v1057_v46  ;;  %v1659_v47 = vpop.permute.xlu0 %1658 }
 0x1a3   : > { %1732 = vst.msk [vmem:[#allocation2 + $0x80] sm:$0xff] %vm1563_vm8, %v1659_v47  ;;  %674 = vrot.lane.b32.xlu1 %v589_v45, %s6491_s12  ;;  %v593_v45 = vld [vmem:[%s6607_s30 + $0xe9] sm:$0x7f] }
 0x1a4   : > { %672 = vrot.lane.b32.xlu0 %v6004_v34, %s6491_s12  ;;  %v393_v34 = vld [vmem:[%s6607_s30 + $0xe8] sm:$0xff] }
 0x1a5   : > { %v1661_v39 = vpop.permute.xlu1 %1660  ;;  %v6009_v47 = vld [vmem:[%s6607_s30 + $0xe9] sm:$0x7f] }
 0x1a6   : > { %1733 = vst.msk [vmem:[#allocation2 + $0x88] sm:$0xff] %vm1563_vm8, %v1661_v39  ;;  %v1059_v49 = vpop.permute.xlu0 %1058 }
 0x1a7   : > { %1758 = vst.msk [vmem:[#allocation2 + $0x8f] sm:$0x1] %vm1749_vm10, %v10682_v0  ;;  %878 = vrot.lane.b32.xlu1 %v7100_v60, %s6488_s9 }
 0x1a8   : > { %1136 = vst.msk [vmem:[#allocation2 + $0x98] sm:$0xff] %vm1116_vm9, %v1059_v49  ;;  %1490 = vrot.lane.b32.xlu0 %v7100_v60, %s6492_s13  ;;  %v1195_v49 = vld [vmem:[%s6607_s30 + $0xe9] sm:$0x7f] }
 0x1a9   : > { %1159 = vst.msk [vmem:[#allocation2 + $0x9f] sm:$0x1] %vm1149_vm11, %v10682_v0  ;;  %v461_v52 = vpop.permute.xlu1 %460 }
 0x1aa   : > { %532 = vst.msk [vmem:[#allocation2 + $0xa0] sm:$0xff] %vm361_vm2, %v461_v52  ;;  %v1859_v53 = vpop.permute.xlu0 %1858 }
 0x1ab   : > { %1933 = vst.msk [vmem:[#allocation2 + $0x80] sm:$0xff] %vm10896_vm13, %v1859_v53  ;;  %1492 = vrot.lane.b32.xlu1 %v5947_v50, %s6492_s13  ;;  %vm10900_vm13 = vcmask 90176  }
 0x1ac   : > { %880 = vrot.lane.b32.xlu0 %v789_v51, %s6488_s9  ;;  %v5950_v51 = vld [vmem:[%s6607_s30 + $0xf0] sm:$0xff] }
 0x1ad   : > { %v1267_v54 = vpop.permute.xlu1 %1266  ;;  %v7365_v48 = vpop.f32.mrb[2].mxu0 }
 0x1ae   : > { %1346 = vst.msk [vmem:[#allocation2 + $0x90] sm:$0xff] %vm10897_vm4, %v1267_v54  ;;  %v463_v56 = vpop.permute.xlu0 %462  ;;  %v7369_v57 = vpop.f32.mrb[3].mxu0  ;;  %vm10901_vm4 = vmmov %vm10899_vm14 }
 0x1af   : > { %1374 = vst.msk [vmem:[#allocation2 + $0x90] sm:$0x1] %vm10898_vm5, %v10682_v0  ;;  %v2314_v58 = vsel %vm10899_vm14, %v7369_v57, 0.0  ;;  %1072 = vrot.lane.b32.xlu1 %v7100_v60, %s6487_s8  ;;  %v2316_v61 = vsel %vm10901_vm4, %v7365_v48, 0.0  ;;  %vm10902_vm5 = vcmask 57344   ;;  %vm10903_vm14 = vcmask 122976  }
 0x1b0   : > { %533 = vst.msk [vmem:[#allocation2 + $0xa8] sm:$0xff] %vm361_vm2, %v463_v56  ;;  %1674 = vrot.lane.b32.xlu0 %v7100_v60, %s6493_s18  ;;  %v2315_v59 = vadd.f32 %v2314_v58, %v7315_v29  ;;  %vm10905_vm4 = vcmask 227520  }
 0x1b1   : > { %558 = vst.msk [vmem:[#allocation2 + $0xaf] sm:$0x1] %vm10900_vm13, %v10682_v0  ;;  %v1861_v62 = vpop.permute.xlu1 %1860  ;;  %vm10904_vm13 = vcmask 130144  }
 0x1b2   : > { %1934 = vst.msk [vmem:[#allocation2 + $0x88] sm:$0x7f] %vm1917_vm7, %v1861_v62  ;;  %v1269_v63 = vpop.permute.xlu0 %1268  ;;  %v1963_v1 = vld [vmem:[#allocation2 + $0x80] sm:$0xff]  ;;  %v7388_v2 = vadd.f32 %v2316_v61, %v2315_v59 }
 0x1b3   : > { %1347 = vst.msk [vmem:[#allocation2 + $0x98] sm:$0x7f] %vm1328_vm12, %v1269_v63  ;;  %6193 = vmatprep.mubr.msk.f32.mxu0 %vm1984_vm0, %v1963_v1  ;;  %1676 = vrot.lane.b32.xlu1 %v5977_v28, %s6493_s18 }
 0x1b4   : > { %3514 = vst.msk [vmem:[#allocation2 + $0x80] sm:$0x1] %vm10902_vm5, %v10682_v0  ;;  %1074 = vrot.lane.b32.xlu0 %v5977_v28, %s6487_s8  ;;  %vm10906_vm5 = vcmask 129120  }
 0x1b5   : > { %v663_v4 = vpop.permute.xlu1 %662 }
 0x1b6   : > { %734 = vst.msk [vmem:[#allocation2 + $0xa8] sm:$0x7f] %vm715_vm15, %v663_v4  ;;  %v661_v6 = vpop.permute.xlu0 %660 }
 0x1b7   : > { %733 = vst.msk [vmem:[#allocation2 + $0xa0] sm:$0xff] %vm544_vm3, %v661_v6  ;;  %476 = vrot.lane.b32.xlu1 %v7100_v60, %s6489_s10  ;;  %v6007_v60 = vld [vmem:[%s6607_s30 + $0xd9] sm:$0x7f] }
 0x1b8   : > { %756 = vst.msk [vmem:[#allocation2 + $0xa0] sm:$0x1] %vm10903_vm14, %v10682_v0  ;;  %1874 = vrot.lane.b32.xlu0 %v6006_v5, %s6494_s23  ;;  %vm10908_vm14 = vcmask 195744   ;;  %v987_v6 = vld [vmem:[%s6607_s30 + $0xf8] sm:$0xff] }
 0x1b9   : > { %v867_v7 = vpop.permute.xlu1 %866  ;;  %v1964_v8 = vld [vmem:[#allocation2 + $0x88] sm:$0xff] }
 0x1ba   : > { %944 = vst.msk [vmem:[#allocation2 + $0xa1] sm:$0xff] %vm10904_vm13, %v867_v7  ;;  %v1479_v9 = vpop.permute.xlu0 %1478  ;;  %6194 = vmatmul.mubr.msk.f32.gmra.mrb[16].mxu0 %vm1984_vm0, %v1964_v8  ;;  %vm10909_vm13 = vcmask 221376  }
 0x1bb   : > { %1551 = vst.msk [vmem:[#allocation2 + $0x91] sm:$0xff] %vm1361_vm1, %v1479_v9  ;;  %1282 = vrot.lane.b32.xlu1 %v6006_v5, %s6490_s11 }
 0x1bc   : > { %478 = vrot.lane.b32.xlu0 %v5977_v28, %s6489_s10  ;;  %v5951_v28 = vld [vmem:[%s6607_s30 + $0xf8] sm:$0x7f] }
 0x1bd   : > { %v1481_v11 = vpop.permute.xlu1 %1480 }
 0x1be   : > { %1552 = vst.msk [vmem:[#allocation2 + $0x99] sm:$0x7f] %vm10905_vm4, %v1481_v11  ;;  %v869_v13 = vpop.permute.xlu0 %868  ;;  %vm10910_vm4 = vcmask 64512  }
 0x1bf   : > { %945 = vst.msk [vmem:[#allocation2 + $0xa9] sm:$0x7f] %vm10906_vm5, %v869_v13  ;;  %1876 = vrot.lane.b32.xlu1 %v6007_v60, %s6494_s23  ;;  %vm10911_vm5 = vcmask 90176  }
 0x1c0   : > { %1284 = vrot.lane.b32.xlu0 %v1193_v3, %s6490_s11  ;;  %v6011_v3 = vld [vmem:[%s6607_s30 + $0xf9] sm:$0x7f] }
 0x1c1   : > { %v1061_v15 = vpop.permute.xlu1 %1060 }
 0x1c2   : > { %1137 = vst.msk [vmem:[#allocation2 + $0xa0] sm:$0xff] %vm1116_vm9, %v1061_v15  ;;  %v1663_v16 = vpop.permute.xlu0 %1662  ;;  %v1197_v15 = vld [vmem:[%s6607_s30 + $0xf9] sm:$0x7f] }
 0x1c3   : > { %1734 = vst.msk [vmem:[#allocation2 + $0x90] sm:$0xff] %vm1563_vm8, %v1663_v16  ;;  %678 = vrot.lane.b32.xlu1 %v591_v14, %s6491_s12 }
 0x1c4   : > { %676 = vrot.lane.b32.xlu0 %v6006_v5, %s6491_s12 }
 0x1c5   : > { %v1665_v17 = vpop.permute.xlu1 %1664 }
 0x1c6   : > { %1735 = vst.msk [vmem:[#allocation2 + $0x98] sm:$0xff] %vm1563_vm8, %v1665_v17  ;;  %v1063_v19 = vpop.permute.xlu0 %1062 }
 0x1c7   : > { %1759 = vst.msk [vmem:[#allocation2 + $0x9f] sm:$0x1] %vm1749_vm10, %v10682_v0  ;;  %882 = vrot.lane.b32.xlu1 %v7165_v25, %s6488_s9 }
 0x1c8   : > { %1138 = vst.msk [vmem:[#allocation2 + $0xa8] sm:$0xff] %vm1116_vm9, %v1063_v19  ;;  %1494 = vrot.lane.b32.xlu0 %v7165_v25, %s6492_s13 }
 0x1c9   : > { %1160 = vst.msk [vmem:[#allocation2 + $0xaf] sm:$0x1] %vm1149_vm11, %v10682_v0  ;;  %v465_v20 = vpop.permute.xlu1 %464 }
 0x1ca   : > { %534 = vst.msk [vmem:[#allocation2 + $0xb0] sm:$0xff] %vm361_vm2, %v465_v20  ;;  %v1863_v23 = vpop.permute.xlu0 %1862 }
 0x1cb   : > { %1935 = vst.msk [vmem:[#allocation2 + $0x90] sm:$0xff] %vm10907_vm6, %v1863_v23  ;;  %1496 = vrot.lane.b32.xlu1 %v5949_v10, %s6492_s13  ;;  %vm10912_vm6 = vmmov %vm10910_vm4 }
 0x1cc   : > { %884 = vrot.lane.b32.xlu0 %v791_v21, %s6488_s9 }
 0x1cd   : > { %v1271_v24 = vpop.permute.xlu1 %1270  ;;  %v7438_v37 = vpop.f32.mrb[4].mxu0 }
 0x1ce   : > { %1348 = vst.msk [vmem:[#allocation2 + $0xa0] sm:$0xff] %vm10908_vm14, %v1271_v24  ;;  %v467_v27 = vpop.permute.xlu0 %466  ;;  %v7441_v29 = vpop.f32.mrb[5].mxu0  ;;  %v2320_v32 = vsel %vm10912_vm6, %v7438_v37, 0.0  ;;  %vm10913_vm14 = vcmask 57344   ;;  %vm10917_vm6 = vcmask 129120  }
 0x1cf   : > { %1375 = vst.msk [vmem:[#allocation2 + $0xa0] sm:$0x1] %vm10909_vm13, %v10682_v0  ;;  %v2318_v12 = vsel %vm10910_vm4, %v7441_v29, 0.0  ;;  %480 = vrot.lane.b32.xlu1 %v7165_v25, %s6489_s10  ;;  %vm10914_vm13 = vcmask 122976   ;;  %vm10915_vm4 = vcmask 130144  }
 0x1d0   : > { %535 = vst.msk [vmem:[#allocation2 + $0xb8] sm:$0xff] %vm361_vm2, %v467_v27  ;;  %v2319_v30 = vadd.f32 %v2318_v12, %v7388_v2  ;;  %1678 = vrot.lane.b32.xlu0 %v7165_v25, %s6493_s18  ;;  %v1196_v2 = vld [vmem:[%s6607_s30 + $0xf1] sm:$0xff] }
 0x1d1   : > { %559 = vst.msk [vmem:[#allocation2 + $0xbf] sm:$0x1] %vm10911_vm5, %v10682_v0  ;;  %v1865_v33 = vpop.permute.xlu1 %1864  ;;  %vm10916_vm5 = vcmask 227520  }
 0x1d2   : > { %1936 = vst.msk [vmem:[#allocation2 + $0x98] sm:$0x7f] %vm1917_vm7, %v1865_v33  ;;  %v1273_v35 = vpop.permute.xlu0 %1272  ;;  %v1965_v36 = vld [vmem:[#allocation2 + $0x90] sm:$0xff]  ;;  %v7459_v38 = vadd.f32 %v2320_v32, %v2319_v30 }
 0x1d3   : > { %1349 = vst.msk [vmem:[#allocation2 + $0xa8] sm:$0x7f] %vm1328_vm12, %v1273_v35  ;;  %6196 = vmatprep.mubr.msk.f32.mxu0 %vm1984_vm0, %v1965_v36  ;;  %1076 = vrot.lane.b32.xlu1 %v7165_v25, %s6487_s8 }
 0x1d4   : > { %3515 = vst.msk [vmem:[#allocation2 + $0x90] sm:$0x1] %vm10913_vm14, %v10682_v0  ;;  %482 = vrot.lane.b32.xlu0 %v393_v34, %s6489_s10  ;;  %vm10918_vm14 = vcmask 294144  }
 0x1d5   : > { %v667_v40 = vpop.permute.xlu1 %666 }
 0x1d6   : > { %736 = vst.msk [vmem:[#allocation2 + $0xb8] sm:$0x7f] %vm715_vm15, %v667_v40  ;;  %v665_v41 = vpop.permute.xlu0 %664 }
 0x1d7   : > { %735 = vst.msk [vmem:[#allocation2 + $0xb0] sm:$0xff] %vm544_vm3, %v665_v41  ;;  %1680 = vrot.lane.b32.xlu1 %v393_v34, %s6493_s18 }
 0x1d8   : > { %757 = vst.msk [vmem:[#allocation2 + $0xb0] sm:$0x1] %vm10914_vm13, %v10682_v0  ;;  %1078 = vrot.lane.b32.xlu0 %v393_v34, %s6487_s8  ;;  %vm10919_vm13 = vcmask 195744  }
 0x1d9   : > { %v871_v42 = vpop.permute.xlu1 %870  ;;  %v1966_v25 = vld [vmem:[#allocation2 + $0x98] sm:$0xff] }
 0x1da   : > { %946 = vst.msk [vmem:[#allocation2 + $0xb1] sm:$0xff] %vm10915_vm4, %v871_v42  ;;  %v1483_v43 = vpop.permute.xlu0 %1482  ;;  %6197 = vmatmul.mubr.msk.f32.gmra.mrb[18].mxu0 %vm1984_vm0, %v1966_v25  ;;  %vm10920_vm4 = vcmask 221376  }
 0x1db   : > { %1553 = vst.msk [vmem:[#allocation2 + $0xa1] sm:$0xff] %vm1361_vm1, %v1483_v43  ;;  %680 = vrot.lane.b32.xlu1 %v592_v31, %s6491_s12 }
 0x1dc   : > { %1878 = vrot.lane.b32.xlu0 %v592_v31, %s6494_s23 }
 0x1dd   : > { %v1485_v44 = vpop.permute.xlu1 %1484 }
 0x1de   : > { %1554 = vst.msk [vmem:[#allocation2 + $0xa9] sm:$0x7f] %vm10916_vm5, %v1485_v44  ;;  %v873_v46 = vpop.permute.xlu0 %872  ;;  %vm10921_vm5 = vcmask 64512  }
 0x1df   : > { %947 = vst.msk [vmem:[#allocation2 + $0xb9] sm:$0x7f] %vm10917_vm6, %v873_v46  ;;  %1286 = vrot.lane.b32.xlu1 %v592_v31, %s6490_s11  ;;  %vm10922_vm6 = vcmask 90176  }
 0x1e0   : > { %682 = vrot.lane.b32.xlu0 %v593_v45, %s6491_s12 }
 0x1e1   : > { %v1065_v39 = vpop.permute.xlu1 %1064 }
 0x1e2   : > { %1139 = vst.msk [vmem:[#allocation2 + $0xb0] sm:$0xff] %vm1116_vm9, %v1065_v39  ;;  %v1667_v50 = vpop.permute.xlu0 %1666 }
 0x1e3   : > { %1736 = vst.msk [vmem:[#allocation2 + $0xa0] sm:$0xff] %vm1563_vm8, %v1667_v50  ;;  %1880 = vrot.lane.b32.xlu1 %v6009_v47, %s6494_s23 }
 0x1e4   : > { %1288 = vrot.lane.b32.xlu0 %v1195_v49, %s6490_s11 }
 0x1e5   : > { %v1669_v52 = vpop.permute.xlu1 %1668 }
 0x1e6   : > { %1737 = vst.msk [vmem:[#allocation2 + $0xa8] sm:$0xff] %vm1563_vm8, %v1669_v52  ;;  %v1067_v53 = vpop.permute.xlu0 %1066 }
 0x1e7   : > { %1760 = vst.msk [vmem:[#allocation2 + $0xaf] sm:$0x1] %vm1749_vm10, %v10682_v0  ;;  %1498 = vrot.lane.b32.xlu1 %v5950_v51, %s6492_s13 }
 0x1e8   : > { %1140 = vst.msk [vmem:[#allocation2 + $0xb8] sm:$0xff] %vm1116_vm9, %v1067_v53  ;;  %886 = vrot.lane.b32.xlu0 %v5950_v51, %s6488_s9 }
 0x1e9   : > { %1161 = vst.msk [vmem:[#allocation2 + $0xbf] sm:$0x1] %vm1149_vm11, %v10682_v0  ;;  %v469_v54 = vpop.permute.xlu1 %468 }
 0x1ea   : > { %536 = vst.msk [vmem:[#allocation2 + $0xc0] sm:$0xff] %vm361_vm2, %v469_v54  ;;  %v1867_v56 = vpop.permute.xlu0 %1866 }
 0x1eb   : > { %1937 = vst.msk [vmem:[#allocation2 + $0xa0] sm:$0xff] %vm10918_vm14, %v1867_v56  ;;  %1080 = vrot.lane.b32.xlu1 %v5950_v51, %s6487_s8  ;;  %vm10923_vm14 = vmmov %vm10921_vm5 }
 0x1ec   : > { %888 = vrot.lane.b32.xlu0 %v793_v55, %s6488_s9 }
 0x1ed   : > { %v1275_v58 = vpop.permute.xlu1 %1274  ;;  %v7505_v59 = vpop.f32.mrb[6].mxu0 }
 0x1ee   : > { %1350 = vst.msk [vmem:[#allocation2 + $0xb0] sm:$0xff] %vm10919_vm13, %v1275_v58  ;;  %v471_v61 = vpop.permute.xlu0 %470  ;;  %v7509_v62 = vpop.f32.mrb[7].mxu0  ;;  %v2324_v4 = vsel %vm10923_vm14, %v7505_v59, 0.0  ;;  %vm10924_vm13 = vcmask 57344   ;;  %vm10928_vm14 = vcmask 129120  }
 0x1ef   : > { %1376 = vst.msk [vmem:[#allocation2 + $0xb0] sm:$0x1] %vm10920_vm4, %v10682_v0  ;;  %v2322_v63 = vsel %vm10921_vm5, %v7509_v62, 0.0  ;;  %1682 = vrot.lane.b32.xlu1 %v5950_v51, %s6493_s18  ;;  %vm10925_vm4 = vcmask 122976   ;;  %vm10926_vm5 = vcmask 130144  }
 0x1f0   : > { %537 = vst.msk [vmem:[#allocation2 + $0xc8] sm:$0xff] %vm361_vm2, %v471_v61  ;;  %v2323_v1 = vadd.f32 %v2322_v63, %v7459_v38  ;;  %1500 = vrot.lane.b32.xlu0 %v5951_v28, %s6492_s13 }
 0x1f1   : > { %560 = vst.msk [vmem:[#allocation2 + $0xcf] sm:$0x1] %vm10922_vm6, %v10682_v0  ;;  %v1869_v5 = vpop.permute.xlu1 %1868  ;;  %vm10927_vm6 = vcmask 227520  }
 0x1f2   : > { %1938 = vst.msk [vmem:[#allocation2 + $0xa8] sm:$0x7f] %vm1917_vm7, %v1869_v5  ;;  %v1277_v7 = vpop.permute.xlu0 %1276  ;;  %v1967_v8 = vld [vmem:[#allocation2 + $0xa0] sm:$0xff]  ;;  %v2325_v9 = vadd.f32 %v2324_v4, %v2323_v1 }
 0x1f3   : > { %1351 = vst.msk [vmem:[#allocation2 + $0xb8] sm:$0x7f] %vm1328_vm12, %v1277_v7  ;;  %6199 = vmatprep.mubr.msk.f32.mxu0 %vm1984_vm0, %v1967_v8  ;;  %1290 = vrot.lane.b32.xlu1 %v1196_v2, %s6490_s11 }
 0x1f4   : > { %3516 = vst.msk [vmem:[#allocation2 + $0xa0] sm:$0x1] %vm10924_vm13, %v10682_v0  ;;  %1082 = vrot.lane.b32.xlu0 %v987_v6, %s6487_s8  ;;  %vm10929_vm13 = vcmask 294144  }
 0x1f5   : > { %v671_v60 = vpop.permute.xlu1 %670 }
 0x1f6   : > { %738 = vst.msk [vmem:[#allocation2 + $0xc8] sm:$0x7f] %vm715_vm15, %v671_v60  ;;  %v669_v11 = vpop.permute.xlu0 %668 }
 0x1f7   : > { %737 = vst.msk [vmem:[#allocation2 + $0xc0] sm:$0xff] %vm544_vm3, %v669_v11  ;;  %1882 = vrot.lane.b32.xlu1 %v1196_v2, %s6494_s23 }
 0x1f8   : > { %758 = vst.msk [vmem:[#allocation2 + $0xc0] sm:$0x1] %vm10925_vm4, %v10682_v0  ;;  %1684 = vrot.lane.b32.xlu0 %v987_v6, %s6493_s18  ;;  %vm10930_vm4 = vcmask 195744  }
 0x1f9   : > { %v875_v13 = vpop.permute.xlu1 %874  ;;  %v1968_v14 = vld [vmem:[#allocation2 + $0xa8] sm:$0xff] }
 0x1fa   : > { %948 = vst.msk [vmem:[#allocation2 + $0xc1] sm:$0xff] %vm10926_vm5, %v875_v13  ;;  %v1487_v16 = vpop.permute.xlu0 %1486  ;;  %6200 = vmatmul.mubr.msk.f32.gmra.mrb[20].mxu0 %vm1984_vm0, %v1968_v14  ;;  %vm10931_vm5 = vcmask 221376  }
 0x1fb   : > { %1555 = vst.msk [vmem:[#allocation2 + $0xb1] sm:$0xff] %vm1361_vm1, %v1487_v16  ;;  %1884 = vrot.lane.b32.xlu1 %v6011_v3, %s6494_s23 }
 0x1fc   : > { %1292 = vrot.lane.b32.xlu0 %v1197_v15, %s6490_s11 }
 0x1fd   : > { %v1489_v17 = vpop.permute.xlu1 %1488 }
 0x1fe   : > { %1556 = vst.msk [vmem:[#allocation2 + $0xb9] sm:$0x7f] %vm10927_vm6, %v1489_v17  ;;  %v877_v18 = vpop.permute.xlu0 %876  ;;  %vm10932_vm6 = vcmask 64512  }
 0x1ff   : > { %949 = vst.msk [vmem:[#allocation2 + $0xc9] sm:$0x7f] %vm10928_vm14, %v877_v18  ;;  %vm10933_vm14 = vcmask 90176  }
 0x201   : > { %v1069_v19 = vpop.permute.xlu1 %1068 }
 0x202   : > { %1141 = vst.msk [vmem:[#allocation2 + $0xc0] sm:$0xff] %vm1116_vm9, %v1069_v19  ;;  %v1671_v10 = vpop.permute.xlu0 %1670 }
 0x203   : > { %1738 = vst.msk [vmem:[#allocation2 + $0xb0] sm:$0xff] %vm1563_vm8, %v1671_v10 }
 0x205   : > { %v1673_v20 = vpop.permute.xlu1 %1672 }
 0x206   : > { %1739 = vst.msk [vmem:[#allocation2 + $0xb8] sm:$0xff] %vm1563_vm8, %v1673_v20  ;;  %v1071_v21 = vpop.permute.xlu0 %1070 }
 0x207   : > { %1761 = vst.msk [vmem:[#allocation2 + $0xbf] sm:$0x1] %vm1749_vm10, %v10682_v0 }
 0x208   : > { %1142 = vst.msk [vmem:[#allocation2 + $0xc8] sm:$0xff] %vm1116_vm9, %v1071_v21 }
 0x209   : > { %1162 = vst.msk [vmem:[#allocation2 + $0xcf] sm:$0x1] %vm1149_vm11, %v10682_v0  ;;  %v473_v23 = vpop.permute.xlu1 %472 }
 0x20a   : > { %538 = vst.msk [vmem:[#allocation2 + $0xd0] sm:$0xff] %vm361_vm2, %v473_v23  ;;  %v1871_v24 = vpop.permute.xlu0 %1870 }
 0x20b   : > { %1939 = vst.msk [vmem:[#allocation2 + $0xb0] sm:$0xff] %vm10929_vm13, %v1871_v24  ;;  %vm10934_vm13 = vmmov %vm10932_vm6 }
 0x20d   : > { %v1279_v27 = vpop.permute.xlu1 %1278  ;;  %v7557_v12 = vpop.f32.mrb[8].mxu0 }
 0x20e   : > { %1352 = vst.msk [vmem:[#allocation2 + $0xc0] sm:$0xff] %vm10930_vm4, %v1279_v27  ;;  %v475_v30 = vpop.permute.xlu0 %474  ;;  %v7560_v32 = vpop.f32.mrb[9].mxu0  ;;  %v2328_v35 = vsel %vm10934_vm13, %v7557_v12, 0.0  ;;  %vm10935_vm4 = vcmask 57344   ;;  %vm10939_vm13 = vcmask 129120  }
 0x20f   : > { %1377 = vst.msk [vmem:[#allocation2 + $0xc0] sm:$0x1] %vm10931_vm5, %v10682_v0  ;;  %v2326_v33 = vsel %vm10932_vm6, %v7560_v32, 0.0  ;;  %vm10936_vm5 = vcmask 122976   ;;  %vm10937_vm6 = vcmask 130144  }
 0x210   : > { %539 = vst.msk [vmem:[#allocation2 + $0xd8] sm:$0xff] %vm361_vm2, %v475_v30  ;;  %v2327_v34 = vadd.f32 %v2326_v33, %v2325_v9 }
 0x211   : > { %561 = vst.msk [vmem:[#allocation2 + $0xdf] sm:$0x1] %vm10933_vm14, %v10682_v0  ;;  %v1873_v36 = vpop.permute.xlu1 %1872  ;;  %vm10938_vm14 = vcmask 227520  }
 0x212   : > { %1940 = vst.msk [vmem:[#allocation2 + $0xb8] sm:$0x7f] %vm1917_vm7, %v1873_v36  ;;  %v1281_v38 = vpop.permute.xlu0 %1280  ;;  %v1969_v40 = vld [vmem:[#allocation2 + $0xb0] sm:$0xff]  ;;  %v2329_v41 = vadd.f32 %v2328_v35, %v2327_v34 }
 0x213   : > { %1353 = vst.msk [vmem:[#allocation2 + $0xc8] sm:$0x7f] %vm1328_vm12, %v1281_v38  ;;  %6202 = vmatprep.mubr.msk.f32.mxu0 %vm1984_vm0, %v1969_v40 }
 0x214   : > { %3517 = vst.msk [vmem:[#allocation2 + $0xb0] sm:$0x1] %vm10935_vm4, %v10682_v0  ;;  %vm10940_vm4 = vcmask 294144  }
 0x215   : > { %v675_v31 = vpop.permute.xlu1 %674 }
 0x216   : > { %740 = vst.msk [vmem:[#allocation2 + $0xd8] sm:$0x7f] %vm715_vm15, %v675_v31  ;;  %v673_v42 = vpop.permute.xlu0 %672 }
 0x217   : > { %739 = vst.msk [vmem:[#allocation2 + $0xd0] sm:$0xff] %vm544_vm3, %v673_v42 }
 0x218   : > { %759 = vst.msk [vmem:[#allocation2 + $0xd0] sm:$0x1] %vm10936_vm5, %v10682_v0  ;;  %vm10941_vm5 = vcmask 195744  }
 0x219   : > { %v879_v25 = vpop.permute.xlu1 %878  ;;  %v1970_v43 = vld [vmem:[#allocation2 + $0xb8] sm:$0xff] }
 0x21a   : > { %950 = vst.msk [vmem:[#allocation2 + $0xd1] sm:$0xff] %vm10937_vm6, %v879_v25  ;;  %v1491_v44 = vpop.permute.xlu0 %1490  ;;  %6203 = vmatmul.mubr.msk.f32.gmra.mrb[22].mxu0 %vm1984_vm0, %v1970_v43  ;;  %vm10942_vm6 = vcmask 221376  }
 0x21b   : > { %1557 = vst.msk [vmem:[#allocation2 + $0xc1] sm:$0xff] %vm1361_vm1, %v1491_v44 }
 0x21d   : > { %v1493_v45 = vpop.permute.xlu1 %1492 }
 0x21e   : > { %1558 = vst.msk [vmem:[#allocation2 + $0xc9] sm:$0x7f] %vm10938_vm14, %v1493_v45  ;;  %v881_v46 = vpop.permute.xlu0 %880  ;;  %vm10943_vm14 = vcmask 64512  }
 0x21f   : > { %951 = vst.msk [vmem:[#allocation2 + $0xd9] sm:$0x7f] %vm10939_vm13, %v881_v46  ;;  %vm10944_vm13 = vcmask 90176  }
 0x221   : > { %v1073_v47 = vpop.permute.xlu1 %1072 }
 0x222   : > { %1143 = vst.msk [vmem:[#allocation2 + $0xd0] sm:$0xff] %vm1116_vm9, %v1073_v47  ;;  %v1675_v39 = vpop.permute.xlu0 %1674 }
 0x223   : > { %1740 = vst.msk [vmem:[#allocation2 + $0xc0] sm:$0xff] %vm1563_vm8, %v1675_v39 }
 0x225   : > { %v1677_v49 = vpop.permute.xlu1 %1676 }
 0x226   : > { %1741 = vst.msk [vmem:[#allocation2 + $0xc8] sm:$0xff] %vm1563_vm8, %v1677_v49  ;;  %v1075_v50 = vpop.permute.xlu0 %1074 }
 0x227   : > { %1762 = vst.msk [vmem:[#allocation2 + $0xcf] sm:$0x1] %vm1749_vm10, %v10682_v0 }
 0x228   : > { %1144 = vst.msk [vmem:[#allocation2 + $0xd8] sm:$0xff] %vm1116_vm9, %v1075_v50 }
 0x229   : > { %1163 = vst.msk [vmem:[#allocation2 + $0xdf] sm:$0x1] %vm1149_vm11, %v10682_v0  ;;  %v477_v51 = vpop.permute.xlu1 %476 }
 0x22a   : > { %540 = vst.msk [vmem:[#allocation2 + $0xe0] sm:$0xff] %vm361_vm2, %v477_v51  ;;  %v1875_v52 = vpop.permute.xlu0 %1874 }
 0x22b   : > { %1941 = vst.msk [vmem:[#allocation2 + $0xc0] sm:$0xff] %vm10940_vm4, %v1875_v52  ;;  %vm10945_vm4 = vmmov %vm10943_vm14 }
 0x22d   : > { %v1283_v53 = vpop.permute.xlu1 %1282  ;;  %v7595_v54 = vpop.f32.mrb[10].mxu0 }
 0x22e   : > { %1354 = vst.msk [vmem:[#allocation2 + $0xd0] sm:$0xff] %vm10941_vm5, %v1283_v53  ;;  %v479_v55 = vpop.permute.xlu0 %478  ;;  %v7598_v56 = vpop.f32.mrb[11].mxu0  ;;  %v2332_v61 = vsel %vm10945_vm4, %v7595_v54, 0.0  ;;  %vm10946_vm5 = vcmask 57344   ;;  %vm10950_vm4 = vcmask 129120  }
 0x22f   : > { %1378 = vst.msk [vmem:[#allocation2 + $0xd0] sm:$0x1] %vm10942_vm6, %v10682_v0  ;;  %v2330_v58 = vsel %vm10943_vm14, %v7598_v56, 0.0  ;;  %vm10947_vm6 = vcmask 122976   ;;  %vm10948_vm14 = vcmask 130144  }
 0x230   : > { %541 = vst.msk [vmem:[#allocation2 + $0xe8] sm:$0xff] %vm361_vm2, %v479_v55  ;;  %v2331_v28 = vadd.f32 %v2330_v58, %v2329_v41 }
 0x231   : > { %562 = vst.msk [vmem:[#allocation2 + $0xef] sm:$0x1] %vm10944_vm13, %v10682_v0  ;;  %v1877_v63 = vpop.permute.xlu1 %1876  ;;  %vm10949_vm13 = vcmask 227520  }
 0x232   : > { %1942 = vst.msk [vmem:[#allocation2 + $0xc8] sm:$0x7f] %vm1917_vm7, %v1877_v63  ;;  %v1285_v1 = vpop.permute.xlu0 %1284  ;;  %v1971_v2 = vld [vmem:[#allocation2 + $0xc0] sm:$0xff]  ;;  %v2333_v4 = vadd.f32 %v2332_v61, %v2331_v28 }
 0x233   : > { %1355 = vst.msk [vmem:[#allocation2 + $0xd8] sm:$0x7f] %vm1328_vm12, %v1285_v1  ;;  %6205 = vmatprep.mubr.msk.f32.mxu0 %vm1984_vm0, %v1971_v2 }
 0x234   : > { %3518 = vst.msk [vmem:[#allocation2 + $0xc0] sm:$0x1] %vm10946_vm5, %v10682_v0  ;;  %vm10951_vm5 = vcmask 90176  }
 0x235   : > { %v679_v5 = vpop.permute.xlu1 %678 }
 0x236   : > { %742 = vst.msk [vmem:[#allocation2 + $0xe8] sm:$0x7f] %vm715_vm15, %v679_v5  ;;  %v677_v6 = vpop.permute.xlu0 %676 }
 0x237   : > { %741 = vst.msk [vmem:[#allocation2 + $0xe0] sm:$0xff] %vm544_vm3, %v677_v6 }
 0x238   : > { %760 = vst.msk [vmem:[#allocation2 + $0xe0] sm:$0x1] %vm10947_vm6, %v10682_v0 }
 0x239   : > { %v883_v7 = vpop.permute.xlu1 %882  ;;  %v1972_v8 = vld [vmem:[#allocation2 + $0xc8] sm:$0xff] }
 0x23a   : > { %952 = vst.msk [vmem:[#allocation2 + $0xe1] sm:$0xff] %vm10948_vm14, %v883_v7  ;;  %v1495_v9 = vpop.permute.xlu0 %1494  ;;  %6206 = vmatmul.mubr.msk.f32.gmra.mrb[24].mxu0 %vm1984_vm0, %v1972_v8  ;;  %vm10954_vm14 = vcmask 64512  }
 0x23b   : > { %1559 = vst.msk [vmem:[#allocation2 + $0xd1] sm:$0xff] %vm1361_vm1, %v1495_v9 }
 0x23d   : > { %v1497_v60 = vpop.permute.xlu1 %1496 }
 0x23e   : > { %1560 = vst.msk [vmem:[#allocation2 + $0xd9] sm:$0x7f] %vm10949_vm13, %v1497_v60  ;;  %v885_v11 = vpop.permute.xlu0 %884  ;;  %vm10955_vm13 = vmmov %vm10954_vm14 }
 0x23f   : > { %953 = vst.msk [vmem:[#allocation2 + $0xe9] sm:$0x7f] %vm10950_vm4, %v885_v11  ;;  %vm10956_vm4 = vcmask 195744  }
 0x241   : > { %v481_v3 = vpop.permute.xlu1 %480 }
 0x242   : > { %542 = vst.msk [vmem:[#allocation2 + $0xf0] sm:$0xff] %vm361_vm2, %v481_v3  ;;  %v1679_v13 = vpop.permute.xlu0 %1678 }
 0x243   : > { %1742 = vst.msk [vmem:[#allocation2 + $0xd0] sm:$0xff] %vm1563_vm8, %v1679_v13 }
 0x245   : > { %v1077_v14 = vpop.permute.xlu1 %1076 }
 0x246   : > { %1145 = vst.msk [vmem:[#allocation2 + $0xe0] sm:$0xff] %vm1116_vm9, %v1077_v14  ;;  %v483_v15 = vpop.permute.xlu0 %482 }
 0x247   : > { %543 = vst.msk [vmem:[#allocation2 + $0xf8] sm:$0xff] %vm361_vm2, %v483_v15  ;;  %vm10952_vm2 = vmmov %vm10947_vm6  ;;  %vm10953_vm6 = vcmask 294144  }
 0x248   : > { %563 = vst.msk [vmem:[#allocation2 + $0xff] sm:$0x1] %vm10951_vm5, %v10682_v0  ;;  %vm10958_vm5 = vcmask 57344  }
 0x249   : > { %v1681_v16 = vpop.permute.xlu1 %1680 }
 0x24a   : > { %1743 = vst.msk [vmem:[#allocation2 + $0xd8] sm:$0xff] %vm1563_vm8, %v1681_v16  ;;  %v1079_v17 = vpop.permute.xlu0 %1078 }
 0x24b   : > { %1763 = vst.msk [vmem:[#allocation2 + $0xdf] sm:$0x1] %vm1749_vm10, %v10682_v0 }
 0x24c   : > { %1146 = vst.msk [vmem:[#allocation2 + $0xe8] sm:$0xff] %vm1116_vm9, %v1079_v17 }
 0x24d   : > { %1164 = vst.msk [vmem:[#allocation2 + $0xef] sm:$0x1] %vm1149_vm11, %v10682_v0  ;;  %v681_v18 = vpop.permute.xlu1 %680  ;;  %v7635_v19 = vpop.f32.mrb[12].mxu0 }
 0x24e   : > { %743 = vst.msk [vmem:[#allocation2 + $0xf0] sm:$0xff] %vm544_vm3, %v681_v18  ;;  %v1879_v10 = vpop.permute.xlu0 %1878  ;;  %v7638_v20 = vpop.f32.mrb[13].mxu0  ;;  %v2336_v24 = vsel %vm10955_vm13, %v7635_v19, 0.0  ;;  %vm10957_vm3 = vcmask 221376  }
 0x24f   : > { %761 = vst.msk [vmem:[#allocation2 + $0xf0] sm:$0x1] %vm10952_vm2, %v10682_v0  ;;  %v2334_v21 = vsel %vm10954_vm14, %v7638_v20, 0.0  ;;  %vm10959_vm2 = vcmask 130144   ;;  %vm10962_vm14 = vmmov %vm10956_vm4 }
 0x250   : > { %1943 = vst.msk [vmem:[#allocation2 + $0xd0] sm:$0xff] %vm10953_vm6, %v1879_v10  ;;  %v2335_v23 = vadd.f32 %v2334_v21, %v2333_v4  ;;  %vm10961_vm6 = vcmask 227520   ;;  %vm10963_vm13 = vmmov %vm10957_vm3 }
 0x251   : > { %v1287_v27 = vpop.permute.xlu1 %1286 }
 0x252   : > { %1356 = vst.msk [vmem:[#allocation2 + $0xe0] sm:$0xff] %vm10956_vm4, %v1287_v27  ;;  %v683_v30 = vpop.permute.xlu0 %682  ;;  %v2337_v33 = vadd.f32 %v2336_v24, %v2335_v23  ;;  %vm10964_vm4 = vcmask 294144  }
 0x253   : > { %1379 = vst.msk [vmem:[#allocation2 + $0xe0] sm:$0x1] %vm10957_vm3, %v10682_v0  ;;  %vm10965_vm3 = vmmov %vm10964_vm4 }
 0x254   : > { %744 = vst.msk [vmem:[#allocation2 + $0xf8] sm:$0x7f] %vm715_vm15, %v683_v30  ;;  %vm10960_vm15 = vcmask 129120  }
 0x255   : > { %v1881_v34 = vpop.permute.xlu1 %1880 }
 0x256   : > { %1944 = vst.msk [vmem:[#allocation2 + $0xd8] sm:$0x7f] %vm1917_vm7, %v1881_v34  ;;  %v1289_v35 = vpop.permute.xlu0 %1288 }
 0x257   : > { %v1973_v36 = vld [vmem:[#allocation2 + $0xd0] sm:$0xff]  ;;  %1357 = vst.msk [vmem:[#allocation2 + $0xe8] sm:$0x7f] %vm1328_vm12, %v1289_v35 }
 0x258   : > { %6208 = vmatprep.mubr.msk.f32.mxu0 %vm1984_vm0, %v1973_v36  ;;  %3519 = vst.msk [vmem:[#allocation2 + $0xd0] sm:$0x1] %vm10958_vm5, %v10682_v0 }
 0x259   : > { %v1499_v38 = vpop.permute.xlu1 %1498 }
 0x25a   : > { %1561 = vst.msk [vmem:[#allocation2 + $0xe1] sm:$0xff] %vm1361_vm1, %v1499_v38  ;;  %v887_v40 = vpop.permute.xlu0 %886 }
 0x25b   : > { %954 = vst.msk [vmem:[#allocation2 + $0xf1] sm:$0xff] %vm10959_vm2, %v887_v40 }
 0x25d   : > { %v1081_v41 = vpop.permute.xlu1 %1080  ;;  %v1974_v31 = vld [vmem:[#allocation2 + $0xd8] sm:$0xff] }
 0x25e   : > { %1147 = vst.msk [vmem:[#allocation2 + $0xf0] sm:$0xff] %vm1116_vm9, %v1081_v41  ;;  %v889_v42 = vpop.permute.xlu0 %888  ;;  %6209 = vmatmul.mubr.msk.f32.gmra.mrb[26].mxu0 %vm1984_vm0, %v1974_v31 }
 0x25f   : > { %955 = vst.msk [vmem:[#allocation2 + $0xf9] sm:$0x7f] %vm10960_vm15, %v889_v42 }
 0x261   : > { %v1683_v25 = vpop.permute.xlu1 %1682 }
 0x262   : > { %1744 = vst.msk [vmem:[#allocation2 + $0xe0] sm:$0xff] %vm1563_vm8, %v1683_v25  ;;  %v1501_v43 = vpop.permute.xlu0 %1500 }
 0x263   : > { %1562 = vst.msk [vmem:[#allocation2 + $0xe9] sm:$0x7f] %vm10961_vm6, %v1501_v43 }
 0x265   : > { %v1291_v44 = vpop.permute.xlu1 %1290 }
 0x266   : > { %1358 = vst.msk [vmem:[#allocation2 + $0xf0] sm:$0xff] %vm10962_vm14, %v1291_v44  ;;  %v1083_v45 = vpop.permute.xlu0 %1082 }
 0x267   : > { %1362 = vst.msk [vmem:[#allocation2 + $0xf0] sm:$0xff] %vm1361_vm1, %v10682_v0 }
 0x268   : > { %1148 = vst.msk [vmem:[#allocation2 + $0xf8] sm:$0xff] %vm1116_vm9, %v1083_v45  ;;  %vm10966_vm9 = vcmask 64512  }
 0x269   : > { %1380 = vst.msk [vmem:[#allocation2 + $0xf0] sm:$0x1] %vm10963_vm13, %v10682_v0  ;;  %v1883_v46 = vpop.permute.xlu1 %1882 }
 0x26a   : > { %1165 = vst.msk [vmem:[#allocation2 + $0xff] sm:$0x1] %vm1149_vm11, %v10682_v0  ;;  %v1685_v47 = vpop.permute.xlu0 %1684  ;;  %vm10967_vm11 = vmmov %vm10966_vm9 }
 0x26b   : > { %1564 = vst.msk [vmem:[#allocation2 + $0xf0] sm:$0xff] %vm1563_vm8, %v10682_v0  ;;  %1745 = vst.msk [vmem:[#allocation2 + $0xe8] sm:$0xff] %vm1563_vm8, %v1685_v47 }
 0x26c   : > { %1747 = vst.msk [vmem:[#allocation2 + $0xf0] sm:$0xff] %vm10964_vm4, %v10682_v0 }
 0x26d   : > { %1945 = vst.msk [vmem:[#allocation2 + $0xe0] sm:$0xff] %vm10965_vm3, %v1883_v46  ;;  %v1885_v39 = vpop.permute.xlu1 %1884  ;;  %v7679_v49 = vpop.f32.mrb[14].mxu0 }
 0x26e   : > { %1764 = vst.msk [vmem:[#allocation2 + $0xef] sm:$0x1] %vm1749_vm10, %v10682_v0  ;;  %v1293_v50 = vpop.permute.xlu0 %1292  ;;  %v7682_v51 = vpop.f32.mrb[15].mxu0  ;;  %v2340_v55 = vsel %vm10967_vm11, %v7679_v49, 0.0 }
 0x26f   : > { %1946 = vst.msk [vmem:[#allocation2 + $0xe8] sm:$0x7f] %vm1917_vm7, %v1885_v39  ;;  %v2338_v52 = vsel %vm10966_vm9, %v7682_v51, 0.0  ;;  %vm10968_vm7 = vmmov %vm10965_vm3 }
 0x270   : > { %1359 = vst.msk [vmem:[#allocation2 + $0xf8] sm:$0x7f] %vm1328_vm12, %v1293_v50  ;;  %v2339_v53 = vadd.f32 %v2338_v52, %v2337_v33  ;;  %vm10969_vm12 = vmmov %vm10958_vm5 }
 0x271   : > { %1363 = vst.msk [vmem:[#allocation2 + $0xf8] sm:$0xff] %vm1361_vm1, %v10682_v0 }
 0x272   : > { %1565 = vst.msk [vmem:[#allocation2 + $0xf8] sm:$0xff] %vm1563_vm8, %v10682_v0  ;;  %v2341_v61 = vadd.f32 %v2340_v55, %v2339_v53  ;;  %vm10970_vm8 = vmmov %vm10966_vm9 }
 0x273   : > { %v1977_v28 = vld [vmem:[#allocation2 + $0xf0] sm:$0xff]  ;;  %1748 = vst.msk [vmem:[#allocation2 + $0xf8] sm:$0xff] %vm10968_vm7, %v10682_v0  ;;  %vm10971_vm1 = vmmov %vm10970_vm8 }
 0x274   : > { %v1975_v58 = vld [vmem:[#allocation2 + $0xe0] sm:$0xff]  ;;  %3521 = vst.msk [vmem:[#allocation2 + $0xf0] sm:$0x1] %vm10958_vm5, %v10682_v0 }
 0x275   : > { %6211 = vmatprep.mubr.msk.f32.mxu0 %vm1984_vm0, %v1975_v58  ;;  %3520 = vst.msk [vmem:[#allocation2 + $0xe0] sm:$0x1] %vm10969_vm12, %v10682_v0 }
 0x276   : > { %1765 = vst.msk [vmem:[#allocation2 + $0xff] sm:$0x1] %vm1749_vm10, %v10682_v0  ;;  %v1976_v63 = vld [vmem:[#allocation2 + $0xe8] sm:$0xff]  ;;  %vm10972_vm10 = vmmov %vm10971_vm1 }
 0x277   : > { %6212 = vmatmul.mubr.msk.f32.gmra.mrb[28].mxu0 %vm1984_vm0, %v1976_v63 }
 0x278   : > { %6214 = vmatprep.mubr.msk.f32.mxu0 %vm1984_vm0, %v1977_v28 }
 0x27d   : > { %v1978_v1 = vld [vmem:[#allocation2 + $0xf8] sm:$0xff] }
 0x27e   : > { %6215 = vmatmul.mubr.msk.f32.gmra.mrb[30].mxu0 %vm1984_vm0, %v1978_v1  ;;  %vm10973_vm0 = vmmov %vm10971_vm1 }
 0x27f   : > { %vm10974_vm2 = vmmov %vm10973_vm0 }
 0x280   : > { %vm10975_vm15 = vmmov %vm10973_vm0 }
 0x281   : > { %vm10976_vm6 = vmmov %vm10973_vm0 }
 0x282   : > { %vm10977_vm14 = vmmov %vm10973_vm0 }
 0x283   : > { %vm10978_vm13 = vmmov %vm10973_vm0 }
 0x284   : > { %vm10979_vm4 = vmmov %vm10973_vm0 }
 0x285   : > { %vm10980_vm3 = vmmov %vm10973_vm0 }
 0x286   : > { %vm10981_vm9 = vmmov %vm10973_vm0 }
 0x287   : > { %vm10982_vm11 = vmmov %vm10973_vm0 }
 0x288   : > { %vm10983_vm7 = vmmov %vm10973_vm0 }
 0x289   : > { %vm10984_vm12 = vmmov %vm10973_vm0 }
 0x28a   : > { %vm10985_vm5 = vmmov %vm10973_vm0 }
 0x28d   : > { %v7705_v2 = vpop.f32.mrb[16].mxu0 }
 0x28e   : > { %v7707_v4 = vpop.f32.mrb[17].mxu0  ;;  %v2344_v7 = vsel %vm10971_vm1, %v7705_v2, 0.0  ;;  %vm10987_vm1 = vmmov %vm10973_vm0 }
 0x28f   : > { %v2342_v5 = vsel %vm10970_vm8, %v7707_v4, 0.0  ;;  %vm10986_vm8 = vmmov %vm10973_vm0 }
 0x290   : > { %v2343_v6 = vadd.f32 %v2342_v5, %v2341_v61 }
 0x292   : > { %v2345_v8 = vadd.f32 %v2344_v7, %v2343_v6 }
 0x2ad   : > { %v7713_v9 = vpop.f32.mrb[18].mxu0 }
 0x2ae   : > { %v7715_v60 = vpop.f32.mrb[19].mxu0  ;;  %v2348_v13 = vsel %vm10973_vm0, %v7713_v9, 0.0 }
 0x2af   : > { %v2346_v11 = vsel %vm10972_vm10, %v7715_v60, 0.0  ;;  %vm10988_vm10 = vmmov %vm10973_vm0 }
 0x2b0   : > { %v2347_v3 = vadd.f32 %v2346_v11, %v2345_v8 }
 0x2b2   : > { %v2349_v14 = vadd.f32 %v2348_v13, %v2347_v3 }
 0x2cd   : > { %v7721_v15 = vpop.f32.mrb[20].mxu0 }
 0x2ce   : > { %v7723_v16 = vpop.f32.mrb[21].mxu0  ;;  %v2352_v10 = vsel %vm10975_vm15, %v7721_v15, 0.0  ;;  %vm10990_vm15 = vmmov %vm10973_vm0 }
 0x2cf   : > { %v2350_v17 = vsel %vm10974_vm2, %v7723_v16, 0.0  ;;  %vm10989_vm2 = vmmov %vm10973_vm0 }
 0x2d0   : > { %v2351_v18 = vadd.f32 %v2350_v17, %v2349_v14 }
 0x2d2   : > { %v2353_v21 = vadd.f32 %v2352_v10, %v2351_v18 }
 0x2ed   : > { %v7729_v23 = vpop.f32.mrb[22].mxu0 }
 0x2ee   : > { %v7731_v24 = vpop.f32.mrb[23].mxu0  ;;  %v2356_v33 = vsel %vm10977_vm14, %v7729_v23, 0.0  ;;  %vm10992_vm14 = vmmov %vm10973_vm0 }
 0x2ef   : > { %v2354_v27 = vsel %vm10976_vm6, %v7731_v24, 0.0  ;;  %vm10991_vm6 = vmmov %vm10973_vm0 }
 0x2f0   : > { %v2355_v30 = vadd.f32 %v2354_v27, %v2353_v21 }
 0x2f2   : > { %v2357_v34 = vadd.f32 %v2356_v33, %v2355_v30 }
 0x30d   : > { %v7737_v35 = vpop.f32.mrb[24].mxu0 }
 0x30e   : > { %v7739_v36 = vpop.f32.mrb[25].mxu0  ;;  %v2360_v41 = vsel %vm10979_vm4, %v7737_v35, 0.0  ;;  %vm10994_vm4 = vmmov %vm10973_vm0 }
 0x30f   : > { %v2358_v38 = vsel %vm10978_vm13, %v7739_v36, 0.0  ;;  %vm10993_vm13 = vmmov %vm10973_vm0 }
 0x310   : > { %v2359_v40 = vadd.f32 %v2358_v38, %v2357_v34 }
 0x312   : > { %v2361_v31 = vadd.f32 %v2360_v41, %v2359_v40 }
 0x331   : > { %v7745_v42 = vpop.f32.mrb[26].mxu0 }
 0x332   : > { %v7747_v25 = vpop.f32.mrb[27].mxu0  ;;  %v2364_v45 = vsel %vm10981_vm9, %v7745_v42, 0.0  ;;  %vm10996_vm9 = vmmov %vm10973_vm0 }
 0x333   : > { %v2362_v43 = vsel %vm10980_vm3, %v7747_v25, 0.0  ;;  %vm10995_vm3 = vmmov %vm10973_vm0 }
 0x334   : > { %v2363_v44 = vadd.f32 %v2362_v43, %v2361_v31 }
 0x336   : > { %v2365_v46 = vadd.f32 %v2364_v45, %v2363_v44 }
 0x34a   : > { %v7753_v47 = vpop.f32.mrb[28].mxu0 }
 0x34b   : > { %v7755_v39 = vpop.f32.mrb[29].mxu0  ;;  %v2368_v53 = vsel %vm10983_vm7, %v7753_v47, 0.0  ;;  %vm10998_vm7 = vmmov %vm10973_vm0 }
 0x34c   : > { %v2366_v50 = vsel %vm10982_vm11, %v7755_v39, 0.0  ;;  %vm10997_vm11 = vmmov %vm10973_vm0 }
 0x34d   : > { %v2367_v52 = vadd.f32 %v2366_v50, %v2365_v46 }
 0x34f   : > { %v2369_v58 = vadd.f32 %v2368_v53, %v2367_v52 }
 0x351   : > { %v7761_v55 = vpop.f32.mrb[30].mxu0 }
 0x352   : > { %v7763_v28 = vpop.f32.mrb[31].mxu0  ;;  %v2372_v1 = vsel %vm10985_vm5, %v7761_v55, 0.0  ;;  %vm11000_vm5 = vmmov %vm10973_vm0 }
 0x353   : > { %v2370_v61 = vsel %vm10984_vm12, %v7763_v28, 0.0  ;;  %vm10999_vm12 = vmmov %vm10973_vm0 }
 0x354   : > { %v2371_v63 = vadd.f32 %v2370_v61, %v2369_v58 }
 0x356   : > { %v2373_v5 = vadd.f32 %v2372_v1, %v2371_v63 }
 0x358   : > { %2374 = vadd.xlane.f32.xlu0 %v2373_v5 }
 0x3e5   : > { %v2375_v6 = vpop.xlane.xlu0 %2374 }
 0x3e6   : > { %v2376_v7 = vrot.slane %v2375_v6, 4 }
 0x3e8   : > { %v2377_v8 = vadd.f32 %v2376_v7, %v2375_v6 }
 0x3ea   : > { %v2378_v11 = vrot.slane %v2377_v8, 2 }
 0x3ec   : > { %v2379_v3 = vadd.f32 %v2378_v11, %v2377_v8 }
 0x3ee   : > { %v2380_v13 = vrot.slane %v2379_v3, 1 }
 0x3f0   : > { %v2381_v14 = vadd.f32 %v2380_v13, %v2379_v3 }
 0x3f2   : > { %6317 = vpush %v2381_v14 }
 0x423   : > { %s6318_s29 = spop %6317 }
 0x424   : > { %v2383_v17 = vstv %s6318_s29  ;;  %s10589_s29 = scalar_lea.vmem %s10669_s7, %s6079_s27 }
 0x425   : > { %v7769_v18 = vmul.f32 0.00048828125, %v2383_v17 }
 0x427   : > { %v2386_v10 = vsub.f32 %v7301_v26, %v7769_v18  ;;  %v2387_v21 = vsub.f32 %v7295_v22, %v7769_v18  ;;  %v2388_v27 = vsub.f32 %v7369_v57, %v7769_v18  ;;  %v2389_v30 = vsub.f32 %v7365_v48, %v7769_v18 }
 0x428   : > { %v2390_v38 = vsub.f32 %v7441_v29, %v7769_v18  ;;  %v2391_v41 = vsub.f32 %v7438_v37, %v7769_v18  ;;  %v2392_v46 = vsub.f32 %v7509_v62, %v7769_v18  ;;  %v2393_v58 = vsub.f32 %v7505_v59, %v7769_v18 }
 0x429   : > { %v2418_v33 = vmul.f32 %v2386_v10, %v2386_v10  ;;  %v2419_v34 = vmul.f32 %v2387_v21, %v2387_v21  ;;  %v2420_v40 = vmul.f32 %v2388_v27, %v2388_v27  ;;  %v2421_v31 = vmul.f32 %v2389_v30, %v2389_v30 }
 0x42a   : > { %v2422_v50 = vmul.f32 %v2390_v38, %v2390_v38  ;;  %v2423_v61 = vmul.f32 %v2391_v41, %v2391_v41  ;;  %v2394_v5 = vsub.f32 %v7560_v32, %v7769_v18  ;;  %v2424_v6 = vmul.f32 %v2392_v46, %v2392_v46 }
 0x42b   : > { %v2450_v43 = vsel %vm10986_vm8, %v2418_v33, 0.0  ;;  %v2451_v44 = vsel %vm10987_vm1, %v2419_v34, 0.0  ;;  %v2453_v52 = vsel %vm10988_vm10, %v2420_v40, 0.0  ;;  %v2455_v63 = vsel %vm10973_vm0, %v2421_v31, 0.0  ;;  %vm11001_vm8 = vmmov %vm10973_vm0 }
 0x42c   : > { %v2452_v45 = vadd.f32 %v2451_v44, %v2450_v43  ;;  %v2457_v7 = vsel %vm10989_vm2, %v2422_v50, 0.0  ;;  %v2395_v11 = vsub.f32 %v7557_v12, %v7769_v18  ;;  %v2425_v3 = vmul.f32 %v2393_v58, %v2393_v58  ;;  %vm11002_vm1 = vmmov %vm10973_vm0 }
 0x42d   : > { %v2459_v13 = vsel %vm10990_vm15, %v2423_v61, 0.0  ;;  %v2396_v17 = vsub.f32 %v7598_v56, %v7769_v18  ;;  %v2426_v10 = vmul.f32 %v2394_v5, %v2394_v5  ;;  %v2461_v21 = vsel %vm10991_vm6, %v2424_v6, 0.0  ;;  %vm11003_vm10 = vmmov %vm10973_vm0 }
 0x42e   : > { %v2454_v53 = vadd.f32 %v2453_v52, %v2452_v45  ;;  %v2397_v30 = vsub.f32 %v7595_v54, %v7769_v18  ;;  %v2427_v33 = vmul.f32 %v2395_v11, %v2395_v11  ;;  %v2463_v34 = vsel %vm10992_vm14, %v2425_v3, 0.0  ;;  %vm11004_vm2 = vmmov %vm10973_vm0 }
 0x42f   : > { %v2398_v40 = vsub.f32 %v7638_v20, %v7769_v18  ;;  %v2428_v41 = vmul.f32 %v2396_v17, %v2396_v17  ;;  %v2465_v31 = vsel %vm10993_vm13, %v2426_v10, 0.0  ;;  %v2399_v44 = vsub.f32 %v7635_v19, %v7769_v18  ;;  %vm11005_vm15 = vmmov %vm10973_vm0 }
 0x430   : > { %v2456_v1 = vadd.f32 %v2455_v63, %v2454_v53  ;;  %v2429_v45 = vmul.f32 %v2397_v30, %v2397_v30  ;;  %v2467_v46 = vsel %vm10994_vm4, %v2427_v33, 0.0  ;;  %v2400_v52 = vsub.f32 %v7682_v51, %v7769_v18  ;;  %vm11006_vm6 = vmmov %vm10973_vm0 }
 0x431   : > { %v2430_v53 = vmul.f32 %v2398_v40, %v2398_v40  ;;  %v2469_v58 = vsel %vm10995_vm3, %v2428_v41, 0.0  ;;  %v2401_v63 = vsub.f32 %v7679_v49, %v7769_v18  ;;  %vm11007_vm14 = vmmov %vm10973_vm0 }
 0x432   : > { %v2458_v8 = vadd.f32 %v2457_v7, %v2456_v1  ;;  %v2431_v1 = vmul.f32 %v2399_v44, %v2399_v44  ;;  %v2471_v5 = vsel %vm10996_vm9, %v2429_v45, 0.0  ;;  %v2402_v7 = vsub.f32 %v7707_v4, %v7769_v18  ;;  %vm11008_vm13 = vmmov %vm10973_vm0 }
 0x433   : > { %v2473_v11 = vsel %vm10997_vm11, %v2430_v53, 0.0  ;;  %vm11009_vm4 = vmmov %vm10973_vm0 }
 0x434   : > { %v2460_v14 = vadd.f32 %v2459_v13, %v2458_v8  ;;  %v2432_v8 = vmul.f32 %v2400_v52, %v2400_v52  ;;  %v2403_v13 = vsub.f32 %v7705_v2, %v7769_v18  ;;  %v2475_v17 = vsel %vm10998_vm7, %v2431_v1, 0.0  ;;  %vm11010_vm3 = vmmov %vm10973_vm0 }
 0x435   : > { %vm11011_vm9 = vmmov %vm10973_vm0 }
 0x436   : > { %v2462_v27 = vadd.f32 %v2461_v21, %v2460_v14  ;;  %v2433_v14 = vmul.f32 %v2401_v63, %v2401_v63  ;;  %v2404_v21 = vsub.f32 %v7715_v60, %v7769_v18  ;;  %v2477_v30 = vsel %vm10999_vm12, %v2432_v8, 0.0  ;;  %vm11012_vm11 = vmmov %vm10973_vm0 }
 0x437   : > { %vm11013_vm7 = vmmov %vm10973_vm0 }
 0x438   : > { %v2464_v38 = vadd.f32 %v2463_v34, %v2462_v27  ;;  %v2434_v27 = vmul.f32 %v2402_v7, %v2402_v7  ;;  %v2405_v34 = vsub.f32 %v7713_v9, %v7769_v18  ;;  %v2479_v40 = vsel %vm11000_vm5, %v2433_v14, 0.0  ;;  %vm11014_vm12 = vmmov %vm10973_vm0 }
 0x439   : > { %vm11015_vm5 = vmmov %vm10973_vm0 }
 0x43a   : > { %v2466_v43 = vadd.f32 %v2465_v31, %v2464_v38  ;;  %v2435_v38 = vmul.f32 %v2403_v13, %v2403_v13  ;;  %v2406_v31 = vsub.f32 %v7723_v16, %v7769_v18  ;;  %v2481_v44 = vsel %vm11001_vm8, %v2434_v27, 0.0 }
 0x43c   : > { %v2468_v50 = vadd.f32 %v2467_v46, %v2466_v43  ;;  %v2436_v43 = vmul.f32 %v2404_v21, %v2404_v21  ;;  %v2407_v46 = vsub.f32 %v7721_v15, %v7769_v18  ;;  %v2483_v52 = vsel %vm11002_vm1, %v2435_v38, 0.0 }
 0x43e   : > { %v2470_v61 = vadd.f32 %v2469_v58, %v2468_v50  ;;  %v2437_v50 = vmul.f32 %v2405_v34, %v2405_v34  ;;  %v2408_v58 = vsub.f32 %v7731_v24, %v7769_v18  ;;  %v2485_v63 = vsel %vm11003_vm10, %v2436_v43, 0.0  ;;  %vm11076_vm10 = vmmov %vm10973_vm0 }
 0x440   : > { %v2472_v6 = vadd.f32 %v2471_v5, %v2470_v61  ;;  %v2438_v61 = vmul.f32 %v2406_v31, %v2406_v31  ;;  %v2409_v5 = vsub.f32 %v7729_v23, %v7769_v18  ;;  %v2487_v7 = vsel %vm10973_vm0, %v2437_v50, 0.0 }
 0x442   : > { %v2474_v3 = vadd.f32 %v2473_v11, %v2472_v6  ;;  %v2439_v6 = vmul.f32 %v2407_v46, %v2407_v46  ;;  %v2410_v11 = vsub.f32 %v7739_v36, %v7769_v18  ;;  %v2489_v13 = vsel %vm11004_vm2, %v2438_v61, 0.0  ;;  %vm11164_vm2 = vmmov %vm10973_vm0 }
 0x444   : > { %v2476_v10 = vadd.f32 %v2475_v17, %v2474_v3  ;;  %v2440_v3 = vmul.f32 %v2408_v58, %v2408_v58  ;;  %v2411_v17 = vsub.f32 %v7737_v35, %v7769_v18  ;;  %v2491_v21 = vsel %vm11005_vm15, %v2439_v6, 0.0 }
 0x446   : > { %v2478_v33 = vadd.f32 %v2477_v30, %v2476_v10  ;;  %v2441_v10 = vmul.f32 %v2409_v5, %v2409_v5  ;;  %v2412_v30 = vsub.f32 %v7747_v25, %v7769_v18  ;;  %v2493_v34 = vsel %vm11006_vm6, %v2440_v3, 0.0  ;;  %vm11204_vm6 = vmmov %vm10973_vm0 }
 0x448   : > { %v2480_v41 = vadd.f32 %v2479_v40, %v2478_v33  ;;  %v2442_v33 = vmul.f32 %v2410_v11, %v2410_v11  ;;  %v2413_v40 = vsub.f32 %v7745_v42, %v7769_v18  ;;  %v2495_v31 = vsel %vm11007_vm14, %v2441_v10, 0.0 }
 0x44a   : > { %v2482_v45 = vadd.f32 %v2481_v44, %v2480_v41  ;;  %v2443_v41 = vmul.f32 %v2411_v17, %v2411_v17  ;;  %v2414_v44 = vsub.f32 %v7755_v39, %v7769_v18  ;;  %v2497_v46 = vsel %vm11008_vm13, %v2442_v33, 0.0  ;;  %vm11247_vm13 = vmmov %vm10973_vm0 }
 0x44c   : > { %v2484_v53 = vadd.f32 %v2483_v52, %v2482_v45  ;;  %v2444_v45 = vmul.f32 %v2412_v30, %v2412_v30  ;;  %v2415_v52 = vsub.f32 %v7753_v47, %v7769_v18  ;;  %v2499_v58 = vsel %vm11009_vm4, %v2443_v41, 0.0  ;;  %vm11255_vm4 = vmmov %vm10973_vm0 }
 0x44e   : > { %v2486_v1 = vadd.f32 %v2485_v63, %v2484_v53  ;;  %v2445_v53 = vmul.f32 %v2413_v40, %v2413_v40  ;;  %v2416_v63 = vsub.f32 %v7763_v28, %v7769_v18  ;;  %v2501_v5 = vsel %vm11010_vm3, %v2444_v45, 0.0 }
 0x44f   : > { %vm11280_vm3 = vcmask 130112  }
 0x450   : > { %v2488_v8 = vadd.f32 %v2487_v7, %v2486_v1  ;;  %v2446_v1 = vmul.f32 %v2414_v44, %v2414_v44  ;;  %v2417_v7 = vsub.f32 %v7761_v55, %v7769_v18  ;;  %v2503_v11 = vsel %vm11011_vm9, %v2445_v53, 0.0 }
 0x452   : > { %v2490_v14 = vadd.f32 %v2489_v13, %v2488_v8  ;;  %v2447_v8 = vmul.f32 %v2415_v52, %v2415_v52  ;;  %v2448_v13 = vmul.f32 %v2416_v63, %v2416_v63  ;;  %v2449_v10 = vmul.f32 %v2417_v7, %v2417_v7  ;;  %v2526_v63 = vld [vmem:[%s10664_s2] sm:$0x1] }
 0x453   : > { %v2528_v7 = vld [vmem:[%s10665_s3] sm:$0x1] }
 0x454   : > { %v2492_v27 = vadd.f32 %v2491_v21, %v2490_v14  ;;  %v2505_v14 = vsel %vm11012_vm11, %v2446_v1, 0.0  ;;  %v2507_v21 = vsel %vm11013_vm7, %v2447_v8, 0.0  ;;  %v2509_v30 = vsel %vm11014_vm12, %v2448_v13, 0.0 }
 0x456   : > { %v2494_v38 = vadd.f32 %v2493_v34, %v2492_v27  ;;  %v2511_v34 = vsel %vm11015_vm5, %v2449_v10, 0.0 }
 0x458   : > { %v2496_v43 = vadd.f32 %v2495_v31, %v2494_v38 }
 0x45a   : > { %v2498_v50 = vadd.f32 %v2497_v46, %v2496_v43 }
 0x45c   : > { %v2500_v61 = vadd.f32 %v2499_v58, %v2498_v50  ;;  %v2532_v58 = vlaneseq }
 0x45e   : > { %v2502_v6 = vadd.f32 %v2501_v5, %v2500_v61  ;;  %v2533_v61 = vshrl.u32 %v2532_v58, 7 }
 0x460   : > { %v2504_v3 = vadd.f32 %v2503_v11, %v2502_v6  ;;  %v7870_v1 = vsub.s32 0, %v2533_v61 }
 0x462   : > { %v2506_v17 = vadd.f32 %v2505_v14, %v2504_v3  ;;  %11016 = vst [vmem:[#allocation4_spill] sm:$0xff] %v7870_v1 }
 0x464   : > { %v2508_v27 = vadd.f32 %v2507_v21, %v2506_v17 }
 0x466   : > { %v2510_v33 = vadd.f32 %v2509_v30, %v2508_v27 }
 0x468   : > { %v2512_v38 = vadd.f32 %v2511_v34, %v2510_v33 }
 0x46a   : > { %2513 = vadd.xlane.f32.xlu1 %v2512_v38 }
 0x4f7   : > { %v2514_v40 = vpop.xlane.xlu1 %2513 }
 0x4f8   : > { %v2515_v41 = vrot.slane %v2514_v40, 4 }
 0x4fa   : > { %v2516_v31 = vadd.f32 %v2515_v41, %v2514_v40 }
 0x4fc   : > { %v2517_v43 = vrot.slane %v2516_v31, 2 }
 0x4fe   : > { %v2518_v44 = vadd.f32 %v2517_v43, %v2516_v31 }
 0x500   : > { %v2519_v45 = vrot.slane %v2518_v44, 1 }
 0x502   : > { %v2520_v46 = vadd.f32 %v2519_v45, %v2518_v44 }
 0x504   : > { %6319 = vpush %v2520_v46 }
 0x535   : > { %s6320_s30 = spop %6319 }
 0x536   : > { %v2522_v50 = vstv %s6320_s30  ;;  %s6498_s30 = smov 64  }
 0x537   : > { %v2523_v52 = vmul.f32 0.00048828125, %v2522_v50 }
 0x539   : > { %v2524_v53 = vadd.f32 1e-05, %v2523_v52 }
 0x53b   : > { %6346 = vrsqrt.f32 %v2524_v53 }
 0x545   : > { %v6347_v5 = vpop.eup %6346 }
 0x546   : > { %v2527_v6 = vmul.f32 %v6347_v5, %v2526_v63 }
 0x548   : > { %v2529_v8 = vmul.f32 %v2527_v6, %v7769_v18  ;;  %v2535_v11 = vrot.slane %v2527_v6, %v7870_v1 }
 0x54a   : > { %v2530_v3 = vsub.f32 %v2528_v7, %v2529_v8  ;;  %v2538_v13 = vmul.f32 %v7295_v22, %v2535_v11  ;;  %v2539_v14 = vmul.f32 %v2535_v11, %v7369_v57  ;;  %v2540_v17 = vmul.f32 %v7365_v48, %v2535_v11 }
 0x54b   : > { %v2541_v10 = vmul.f32 %v2535_v11, %v7441_v29  ;;  %v2542_v21 = vmul.f32 %v7438_v37, %v2535_v11  ;;  %v2543_v27 = vmul.f32 %v2535_v11, %v7509_v62  ;;  %v2544_v18 = vmul.f32 %v7505_v59, %v2535_v11 }
 0x54c   : > { %v7884_v30 = vrot.slane %v2530_v3, %v7870_v1  ;;  %v2545_v33 = vmul.f32 %v2535_v11, %v7560_v32  ;;  %v2546_v34 = vmul.f32 %v7557_v12, %v2535_v11  ;;  %v2547_v22 = vmul.f32 %v2535_v11, %v7598_v56 }
 0x54d   : > { %v2548_v57 = vmul.f32 %v7595_v54, %v2535_v11  ;;  %v2549_v48 = vmul.f32 %v2535_v11, %v7638_v20  ;;  %v2550_v29 = vmul.f32 %v7635_v19, %v2535_v11  ;;  %v2551_v37 = vmul.f32 %v2535_v11, %v7682_v51 }
 0x54e   : > { %v2552_v62 = vmul.f32 %v7679_v49, %v2535_v11  ;;  %v2553_v38 = vmul.f32 %v2535_v11, %v7707_v4  ;;  %v2554_v59 = vmul.f32 %v7705_v2, %v2535_v11  ;;  %v2555_v32 = vmul.f32 %v2535_v11, %v7715_v60 }
 0x54f   : > { %v2556_v12 = vmul.f32 %v7713_v9, %v2535_v11  ;;  %v2557_v56 = vmul.f32 %v2535_v11, %v7723_v16  ;;  %v2558_v54 = vmul.f32 %v7721_v15, %v2535_v11  ;;  %v2559_v20 = vmul.f32 %v2535_v11, %v7731_v24 }
 0x550   : > { %v2560_v19 = vmul.f32 %v7729_v23, %v2535_v11  ;;  %v2561_v51 = vmul.f32 %v2535_v11, %v7739_v36  ;;  %v2562_v49 = vmul.f32 %v7737_v35, %v2535_v11  ;;  %v2563_v4 = vmul.f32 %v2535_v11, %v7747_v25 }
 0x551   : > { %v2564_v2 = vmul.f32 %v7745_v42, %v2535_v11  ;;  %v2565_v60 = vmul.f32 %v2535_v11, %v7755_v39  ;;  %v2566_v9 = vmul.f32 %v7753_v47, %v2535_v11  ;;  %v2567_v16 = vmul.f32 %v2535_v11, %v7763_v28 }
 0x552   : > { %v2568_v15 = vmul.f32 %v7761_v55, %v2535_v11  ;;  %v2576_v24 = vadd.f32 %v7884_v30, %v2538_v13  ;;  %v2577_v23 = vadd.f32 %v7884_v30, %v2539_v14  ;;  %v2578_v36 = vadd.f32 %v7884_v30, %v2540_v17 }
 0x553   : > { %v2579_v35 = vadd.f32 %v7884_v30, %v2541_v10  ;;  %v7916_v25 = vadd.f32 %v7884_v30, %v2542_v21  ;;  %v7921_v39 = vadd.f32 %v7884_v30, %v2543_v27  ;;  %v7924_v47 = vadd.f32 %v7884_v30, %v2544_v18 }
 0x554   : > { %v7918_v42 = vmul.f32 0.70710677, %v2576_v24  ;;  %v7927_v55 = vadd.f32 %v7884_v30, %v2545_v33  ;;  %v7930_v28 = vadd.f32 %v7884_v30, %v2546_v34  ;;  %v7933_v40 = vadd.f32 %v7884_v30, %v2547_v22 }
 0x555   : > { %v7936_v41 = vadd.f32 %v7884_v30, %v2548_v57  ;;  %v2537_v31 = vmul.f32 %v2535_v11, %v7301_v26  ;;  %v7941_v44 = vadd.f32 %v7884_v30, %v2549_v48  ;;  %v7944_v45 = vadd.f32 %v7884_v30, %v2550_v29 }
 0x556   : > { %v2640_v43 = vand.u32 2147483647, %v7918_v42  ;;  %v7947_v46 = vadd.f32 %v7884_v30, %v2551_v37  ;;  %v7950_v50 = vadd.f32 %v7884_v30, %v2552_v62  ;;  %v7953_v52 = vadd.f32 %v7884_v30, %v2553_v38 }
 0x557   : > { %v7956_v53 = vadd.f32 %v7884_v30, %v2554_v59  ;;  %v2575_v58 = vadd.f32 %v7884_v30, %v2537_v31  ;;  %v7960_v61 = vadd.f32 %v7884_v30, %v2555_v32  ;;  %v7963_v63 = vadd.f32 %v7884_v30, %v2556_v12 }
 0x558   : > { %v2672_v26 = vmul.f32 0.3275911, %v2640_v43  ;;  %v7966_v5 = vadd.f32 %v7884_v30, %v2557_v56  ;;  %v7969_v6 = vadd.f32 %v7884_v30, %v2558_v54  ;;  %v7972_v7 = vadd.f32 %v7884_v30, %v2559_v20 }
 0x559   : > { %v7975_v8 = vadd.f32 %v7884_v30, %v2560_v19  ;;  %v7978_v3 = vadd.f32 %v7884_v30, %v2561_v51  ;;  %v7981_v13 = vadd.f32 %v7884_v30, %v2562_v49  ;;  %v7984_v14 = vadd.f32 %v7884_v30, %v2563_v4 }
 0x55a   : > { %v2704_v11 = vadd.f32 1.0, %v2672_v26  ;;  %v7987_v17 = vadd.f32 %v7884_v30, %v2564_v2  ;;  %v7990_v10 = vadd.f32 %v7884_v30, %v2565_v60  ;;  %v7993_v21 = vadd.f32 %v7884_v30, %v2566_v9 }
 0x55b   : > { %v7996_v27 = vadd.f32 %v7884_v30, %v2567_v16  ;;  %v7999_v18 = vadd.f32 %v7884_v30, %v2568_v15  ;;  %v8001_v33 = vmul.f32 0.70710677, %v2575_v58  ;;  %v3088_v22 = vsub.f32 0.0, %v2640_v43 }
 0x55c   : > { %6348 = vrcp.f32 %v2704_v11  ;;  %v8004_v32 = vmul.f32 0.5, %v2576_v24  ;;  %v8006_v12 = vmul.f32 0.70710677, %v2577_v23  ;;  %v8008_v30 = vmul.f32 0.5, %v2575_v58 }
 0x55d   : > { %11017 = vst [vmem:[#allocation5_spill] sm:$0xff] %v7996_v27  ;;  %11018 = vst [vmem:[#allocation6_spill] sm:$0xff] %v7999_v18  ;;  %v2639_v34 = vand.u32 2147483647, %v8001_v33  ;;  %v3120_v29 = vmul.f32 %v3088_v22, %v2640_v43  ;;  %v8010_v54 = vmul.f32 0.70710677, %v2578_v36 }
 0x55e   : > { %11019 = vst [vmem:[#allocation7_spill] sm:$0xff] %v8006_v12  ;;  %11020 = vst [vmem:[#allocation8_spill] sm:$0xff] %v8008_v30  ;;  %v8012_v20 = vmul.f32 0.5, %v2577_v23  ;;  %v8014_v51 = vmul.f32 0.70710677, %v2579_v35  ;;  %v8037_v23 = vmul.f32 0.5, %v2578_v36 }
 0x55f   : > { %v2671_v57 = vmul.f32 0.3275911, %v2639_v34  ;;  %v3087_v62 = vsub.f32 0.0, %v2639_v34  ;;  %v3153_v59 = vmul.f32 1.442695, %v3120_v29  ;;  %11021 = vst [vmem:[#allocation9_spill] sm:$0xff] %v8010_v54 }
 0x560   : > { %11022 = vst [vmem:[#allocation10_spill] sm:$0xff] %v8012_v20  ;;  %11023 = vst [vmem:[#allocation11_spill] sm:$0xff] %v8014_v51  ;;  %v8017_v49 = vmul.f32 0.70710677, %v7916_v25  ;;  %v8020_v4 = vmul.f32 0.70710677, %v7921_v39 }
 0x561   : > { %v2703_v48 = vadd.f32 1.0, %v2671_v57  ;;  %v3119_v19 = vmul.f32 %v3087_v62, %v2639_v34  ;;  %v8023_v60 = vmul.f32 0.70710677, %v7924_v47  ;;  %v8026_v9 = vmul.f32 0.70710677, %v7927_v55  ;;  %11031 = vst [vmem:[#allocation19_spill] sm:$0xff] %v8037_v23 }
 0x562   : > { %11024 = vst [vmem:[#allocation12_spill] sm:$0xff] %v8017_v49  ;;  %11025 = vst [vmem:[#allocation13_spill] sm:$0xff] %v8020_v4  ;;  %v8029_v16 = vmul.f32 0.70710677, %v7930_v28  ;;  %v8032_v15 = vmul.f32 0.70710677, %v7933_v40 }
 0x563   : > { %6350 = vrcp.f32 %v2703_v48  ;;  %11026 = vst [vmem:[#allocation14_spill] sm:$0xff] %v8023_v60  ;;  %11027 = vst [vmem:[#allocation15_spill] sm:$0xff] %v8026_v9  ;;  %v8035_v24 = vmul.f32 0.70710677, %v7936_v41  ;;  %v8039_v31 = vmul.f32 0.5, %v2579_v35  ;;  %vm3280_vm8 = vcmp.ge.f32.partialorder %v7918_v42, 0.0 }
 0x564   : > { %11028 = vst [vmem:[#allocation16_spill] sm:$0xff] %v8029_v16  ;;  %11029 = vst [vmem:[#allocation17_spill] sm:$0xff] %v8032_v15  ;;  %v8042_v26 = vmul.f32 0.70710677, %v7941_v44  ;;  %v8045_v58 = vmul.f32 0.70710677, %v7944_v45  ;;  %6352 = vpow2.f32 %v3153_v59 }
 0x565   : > { %11030 = vst [vmem:[#allocation18_spill] sm:$0xff] %v8035_v24  ;;  %11032 = vst [vmem:[#allocation20_spill] sm:$0xff] %v8039_v31  ;;  %v3151_v11 = vmul.f32 1.442695, %v3119_v19  ;;  %v8048_v34 = vmul.f32 0.70710677, %v7947_v46 }
 0x566   : > { %v6349_v37 = vpop.eup %6348  ;;  %11033 = vst [vmem:[#allocation21_spill] sm:$0xff] %v8042_v26  ;;  %11034 = vst [vmem:[#allocation22_spill] sm:$0xff] %v8045_v58  ;;  %v8051_v22 = vmul.f32 0.70710677, %v7950_v50  ;;  %v8056_v35 = vmul.f32 0.70710677, %v7953_v52 }
 0x567   : > { %v2800_v38 = vmul.f32 1.0614054, %v6349_v37  ;;  %11035 = vst [vmem:[#allocation23_spill] sm:$0xff] %v8048_v34  ;;  %v8059_v48 = vmul.f32 0.70710677, %v7956_v53  ;;  %6354 = vpow2.f32 %v3151_v11  ;;  %vm3279_vm1 = vcmp.ge.f32.partialorder %v8001_v33, 0.0 }
 0x568   : > { %11036 = vst [vmem:[#allocation24_spill] sm:$0xff] %v8051_v22  ;;  %11037 = vst [vmem:[#allocation25_spill] sm:$0xff] %v8056_v35  ;;  %v8062_v29 = vmul.f32 0.70710677, %v7960_v61  ;;  %v8069_v59 = vmul.f32 0.70710677, %v7966_v5 }
 0x569   : > { %v2832_v56 = vadd.f32 -1.4531521, %v2800_v38  ;;  %11038 = vst [vmem:[#allocation26_spill] sm:$0xff] %v8059_v48  ;;  %v8066_v38 = vmul.f32 0.70710677, %v7963_v63 }
 0x56a   : > { %11039 = vst [vmem:[#allocation27_spill] sm:$0xff] %v8062_v29  ;;  %11041 = vst [vmem:[#allocation29_spill] sm:$0xff] %v8069_v59  ;;  %v8072_v19 = vmul.f32 0.70710677, %v7969_v6  ;;  %v8078_v0 = vmul.f32 0.70710677, %v7975_v8 }
 0x56b   : > { %v2864_v2 = vmul.f32 %v6349_v37, %v2832_v56  ;;  %11040 = vst [vmem:[#allocation28_spill] sm:$0xff] %v8066_v38  ;;  %v8081_v1 = vmul.f32 0.70710677, %v7978_v3  ;;  %v8084_v20 = vmul.f32 0.70710677, %v7981_v13 }
 0x56c   : > { %11042 = vst [vmem:[#allocation30_spill] sm:$0xff] %v8072_v19  ;;  %11044 = vst [vmem:[#allocation32_spill] sm:$0xff] %v8078_v0  ;;  %v8090_v23 = vmul.f32 0.70710677, %v7987_v17  ;;  %v8094_v11 = vmul.f32 0.70710677, %v7990_v10 }
 0x56d   : > { %v2896_v43 = vadd.f32 1.4214138, %v2864_v2  ;;  %v8053_v57 = vpop.eup %6350  ;;  %v8075_v2 = vmul.f32 0.70710677, %v7972_v7  ;;  %11045 = vst [vmem:[#allocation33_spill] sm:$0xff] %v8081_v1  ;;  %11046 = vst [vmem:[#allocation34_spill] sm:$0xff] %v8084_v20 }
 0x56e   : > { %v2799_v62 = vmul.f32 1.0614054, %v8053_v57  ;;  %11048 = vst [vmem:[#allocation36_spill] sm:$0xff] %v8090_v23  ;;  %11049 = vst [vmem:[#allocation37_spill] sm:$0xff] %v8094_v11  ;;  %v8100_v1 = vmul.f32 0.70710677, %v7996_v27 }
 0x56f   : > { %v2928_v36 = vmul.f32 %v6349_v37, %v2896_v43  ;;  %11043 = vst [vmem:[#allocation31_spill] sm:$0xff] %v8075_v2  ;;  %v8103_v20 = vmul.f32 0.70710677, %v7999_v18  ;;  %v8109_v23 = vmul.f32 0.5, %v7921_v39  ;;  %v8113_v11 = vmul.f32 0.5, %v7924_v47 }
 0x570   : > { %v2831_v43 = vadd.f32 -1.4531521, %v2799_v62  ;;  %v8097_v62 = vmul.f32 0.70710677, %v7993_v21  ;;  %11051 = vst [vmem:[#allocation39_spill] sm:$0xff] %v8100_v1  ;;  %v8122_v27 = vmul.f32 0.5, %v7933_v40 }
 0x571   : > { %v2960_v56 = vadd.f32 -0.28449672, %v2928_v36  ;;  %v8087_v36 = vmul.f32 0.70710677, %v7984_v14  ;;  %11052 = vst [vmem:[#allocation40_spill] sm:$0xff] %v8103_v20  ;;  %11054 = vst [vmem:[#allocation42_spill] sm:$0xff] %v8109_v23 }
 0x572   : > { %v2863_v30 = vmul.f32 %v8053_v57, %v2831_v43  ;;  %11050 = vst [vmem:[#allocation38_spill] sm:$0xff] %v8097_v62  ;;  %11055 = vst [vmem:[#allocation43_spill] sm:$0xff] %v8113_v11  ;;  %v8116_v62 = vmul.f32 0.5, %v7927_v55  ;;  %v8128_v39 = vmul.f32 0.5, %v7941_v44  ;;  %v8132_v11 = vmul.f32 0.5, %v7944_v45 }
 0x573   : > { %v2992_v31 = vmul.f32 %v6349_v37, %v2960_v56  ;;  %11047 = vst [vmem:[#allocation35_spill] sm:$0xff] %v8087_v36  ;;  %v8106_v36 = vmul.f32 0.5, %v7916_v25  ;;  %11058 = vst [vmem:[#allocation46_spill] sm:$0xff] %v8122_v27  ;;  %v8125_v25 = vmul.f32 0.5, %v7936_v41  ;;  %v8135_v55 = vmul.f32 0.5, %v7947_v46 }
 0x574   : > { %v2895_v43 = vadd.f32 1.4214138, %v2863_v30  ;;  %11056 = vst [vmem:[#allocation44_spill] sm:$0xff] %v8116_v62  ;;  %11060 = vst [vmem:[#allocation48_spill] sm:$0xff] %v8128_v39  ;;  %v6353_v30 = vpop.eup %6352  ;;  %v8144_v41 = vmul.f32 0.5, %v7956_v53  ;;  %v8147_v44 = vmul.f32 0.5, %v7960_v61 }
 0x575   : > { %v3024_v56 = vadd.f32 0.2548296, %v2992_v31  ;;  %11053 = vst [vmem:[#allocation41_spill] sm:$0xff] %v8106_v36  ;;  %v8119_v31 = vmul.f32 0.5, %v7930_v28  ;;  %11059 = vst [vmem:[#allocation47_spill] sm:$0xff] %v8125_v25  ;;  %v8138_v28 = vmul.f32 0.5, %v7950_v50 }
 0x576   : > { %v2927_v47 = vmul.f32 %v8053_v57, %v2895_v43  ;;  %11061 = vst [vmem:[#allocation49_spill] sm:$0xff] %v8132_v11  ;;  %11062 = vst [vmem:[#allocation50_spill] sm:$0xff] %v8135_v55  ;;  %v8150_v45 = vmul.f32 0.5, %v7963_v63  ;;  %v8153_v46 = vmul.f32 0.5, %v7966_v5  ;;  %v8156_v50 = vmul.f32 0.5, %v7969_v6  ;;  %v6355_v43 = vpop.eup %6354  ;;  %v11085_v39 = vld [vmem:[#allocation36_spill] sm:$0xff] }
 0x577   : > { %11057 = vst [vmem:[#allocation45_spill] sm:$0xff] %v8119_v31  ;;  %v3056_v18 = vmul.f32 %v6349_v37, %v3024_v56  ;;  %11063 = vst [vmem:[#allocation51_spill] sm:$0xff] %v8138_v28  ;;  %v8141_v37 = vmul.f32 0.5, %v7953_v52  ;;  %v8159_v52 = vmul.f32 0.5, %v7972_v7  ;;  %v8162_v53 = vmul.f32 0.5, %v7975_v8  ;;  %v11086_v27 = vld [vmem:[#allocation37_spill] sm:$0xff] }
 0x578   : > { %11065 = vst [vmem:[#allocation53_spill] sm:$0xff] %v8144_v41  ;;  %11066 = vst [vmem:[#allocation54_spill] sm:$0xff] %v8147_v44  ;;  %v2959_v56 = vadd.f32 -0.28449672, %v2927_v47  ;;  %v8165_v61 = vmul.f32 0.5, %v7978_v3  ;;  %v8172_v5 = vmul.f32 0.5, %v7984_v14 }
 0x579   : > { %v3216_v40 = vmul.f32 %v6353_v30, %v3056_v18  ;;  %11064 = vst [vmem:[#allocation52_spill] sm:$0xff] %v8141_v37  ;;  %11067 = vst [vmem:[#allocation55_spill] sm:$0xff] %v8150_v45  ;;  %v8169_v30 = vmul.f32 0.5, %v7981_v13  ;;  %v8175_v6 = vand.u32 2147483647, %v8006_v12  ;;  %v8178_v47 = vmul.f32 0.5, %v7987_v17 }
 0x57a   : > { %11068 = vst [vmem:[#allocation56_spill] sm:$0xff] %v8153_v46  ;;  %11069 = vst [vmem:[#allocation57_spill] sm:$0xff] %v8156_v50  ;;  %v2991_v63 = vmul.f32 %v8053_v57, %v2959_v56  ;;  %v8181_v8 = vand.u32 2147483647, %v8010_v54  ;;  %v8184_v3 = vand.u32 2147483647, %v8014_v51 }
 0x57b   : > { %v3248_v18 = vsub.f32 1.0, %v3216_v40  ;;  %11070 = vst [vmem:[#allocation58_spill] sm:$0xff] %v8159_v52  ;;  %11071 = vst [vmem:[#allocation59_spill] sm:$0xff] %v8162_v53  ;;  %v8187_v13 = vand.u32 2147483647, %v8017_v49  ;;  %v11078_v37 = vld [vmem:[#allocation33_spill] sm:$0xff] }
 0x57c   : > { %11072 = vst [vmem:[#allocation60_spill] sm:$0xff] %v8165_v61  ;;  %11073 = vst [vmem:[#allocation61_spill] sm:$0xff] %v8169_v30  ;;  %v3023_v40 = vadd.f32 0.2548296, %v2991_v63  ;;  %v8190_v14 = vand.u32 2147483647, %v8020_v4 }
 0x57d   : > { %11074 = vst [vmem:[#allocation62_spill] sm:$0xff] %v8172_v5  ;;  %v3312_v7 = vsub.f32 0.0, %v3248_v18  ;;  %11075 = vst [vmem:[#allocation63_spill] sm:$0xff] %v8178_v47  ;;  %v8196_v17 = vand.u32 2147483647, %v8023_v60  ;;  %v11083_v55 = vld [vmem:[#allocation35_spill] sm:$0xff] }
 0x57e   : > { %v8199_v47 = vand.u32 2147483647, %v8026_v9  ;;  %v8202_v5 = vand.u32 2147483647, %v8029_v16  ;;  %v3055_v30 = vmul.f32 %v8053_v57, %v3023_v40  ;;  %v8206_v61 = vand.u32 2147483647, %v8032_v15 }
 0x57f   : > { %v3344_v56 = vsel %vm3280_vm8, %v3248_v18, %v3312_v7  ;;  %v8209_v42 = vand.u32 2147483647, %v8035_v24  ;;  %v8212_v18 = vand.u32 2147483647, %v8042_v26  ;;  %v8215_v7 = vand.u32 2147483647, %v8045_v58 }
 0x580   : > { %v3408_v63 = vadd.f32 1.0, %v3344_v56  ;;  %v8218_v53 = vand.u32 2147483647, %v8048_v34  ;;  %v3215_v56 = vmul.f32 %v6355_v43, %v3055_v30  ;;  %v8222_v57 = vand.u32 2147483647, %v8051_v22  ;;  %v11087_v62 = vld [vmem:[#allocation38_spill] sm:$0xff] }
 0x581   : > { %v8225_v40 = vand.u32 2147483647, %v8056_v35  ;;  %v8228_v50 = vand.u32 2147483647, %v8059_v48  ;;  %v8231_v46 = vand.u32 2147483647, %v8062_v29 }
 0x582   : > { %v3440_v52 = vmul.f32 %v3408_v63, %v8004_v32  ;;  %v8234_v45 = vand.u32 2147483647, %v8066_v38  ;;  %v3247_v44 = vsub.f32 1.0, %v3215_v56  ;;  %v8238_v32 = vmul.f32 0.5, %v7990_v10  ;;  %v11081_v10 = vld [vmem:[#allocation34_spill] sm:$0xff] }
 0x583   : > { %v8241_v43 = vand.u32 2147483647, %v8069_v59  ;;  %v8244_v30 = vand.u32 2147483647, %v8072_v19  ;;  %v8247_v63 = vand.u32 2147483647, %v8075_v2 }
 0x584   : > { %3472 = vst.msk [vmem:[#allocation3 + $0x8] sm:$0xff] %vm11076_vm10, %v3440_v52  ;;  %11077 = vst [vmem:[#allocation64_spill] sm:$0xff] %v8238_v32  ;;  %v8250_v41 = vand.u32 2147483647, %v8078_v0  ;;  %v8253_v28 = vand.u32 2147483647, %v11078_v37 }
 0x585   : > { %v3311_v52 = vsub.f32 0.0, %v3247_v44  ;;  %v8256_v56 = vmul.f32 0.5, %v7993_v21  ;;  %v8259_v32 = vand.u32 2147483647, %v11081_v10  ;;  %v8262_v11 = vand.u32 2147483647, %v11083_v55 }
 0x586   : > { %11079 = vst [vmem:[#allocation65_spill] sm:$0xff] %v8253_v28  ;;  %v8265_v25 = vand.u32 2147483647, %v11085_v39  ;;  %v8268_v31 = vand.u32 2147483647, %v11086_v27  ;;  %v11088_v10 = vld [vmem:[#allocation5_spill] sm:$0xff] }
 0x587   : > { %11080 = vst [vmem:[#allocation66_spill] sm:$0xff] %v8256_v56  ;;  %11082 = vst [vmem:[#allocation67_spill] sm:$0xff] %v8259_v32  ;;  %v8271_v23 = vand.u32 2147483647, %v11087_v62  ;;  %v3343_v36 = vsel %vm3279_vm1, %v3247_v44, %v3311_v52  ;;  %v8276_v21 = vand.u32 2147483647, %v8100_v1 }
 0x588   : > { %11084 = vst [vmem:[#allocation68_spill] sm:$0xff] %v8262_v11  ;;  %v8279_v56 = vand.u32 2147483647, %v8103_v20  ;;  %v8282_v55 = vmul.f32 0.3275911, %v8175_v6  ;;  %v3407_v39 = vadd.f32 1.0, %v3343_v36 }
 0x589   : > { %v8285_v37 = vmul.f32 0.5, %v11088_v10  ;;  %v8288_v27 = vmul.f32 0.3275911, %v8181_v8  ;;  %v8291_v62 = vmul.f32 0.3275911, %v8184_v3  ;;  %v11090_v36 = vld [vmem:[#allocation8_spill] sm:$0xff] }
 0x58a   : > { %v8294_v33 = vmul.f32 0.3275911, %v8187_v13  ;;  %v8297_v44 = vmul.f32 0.3275911, %v8190_v14  ;;  %v8300_v52 = vmul.f32 0.3275911, %v8196_v17  ;;  %v3439_v1 = vmul.f32 %v3407_v39, %v11090_v36 }
 0x58b   : > { %11089 = vst [vmem:[#allocation5_spill] sm:$0xff] %v8285_v37  ;;  %v3587_v20 = vld [vmem:[#allocation3 + $0x8] sm:$0xff]  ;;  %v11091_v10 = vld [vmem:[#allocation6_spill] sm:$0xff]  ;;  %v8307_v0 = vmul.f32 0.3275911, %v8199_v47 }
 0x58c   : > { %v8304_v37 = vmul.f32 0.5, %v11091_v10  ;;  %v8310_v2 = vmul.f32 0.3275911, %v8202_v5  ;;  %3648 = vrot.lane.b32.xlu1 %v3587_v20, %s6491_s12  ;;  %v8314_v19 = vmul.f32 0.3275911, %v8206_v61  ;;  %3471 = vst.msk [vmem:[#allocation3] sm:$0xff] %vm10973_vm0, %v3439_v1 }
 0x58d   : > { %v8317_v59 = vmul.f32 0.3275911, %v8209_v42  ;;  %v8320_v38 = vmul.f32 0.3275911, %v8212_v18  ;;  %v3985_v39 = vld [vmem:[#allocation3 + $0x8] sm:$0x7f] }
 0x58e   : > { %11092 = vst [vmem:[#allocation8_spill] sm:$0xff] %v8304_v37  ;;  %v8324_v36 = vmul.f32 0.3275911, %v8215_v7  ;;  %v3089_v10 = vsub.f32 0.0, %v8175_v6  ;;  %v3090_v37 = vsub.f32 0.0, %v8181_v8 }
 0x58f   : > { %v8329_v29 = vmul.f32 0.3275911, %v8218_v53  ;;  %v8332_v48 = vmul.f32 0.3275911, %v8222_v57  ;;  %v8335_v35 = vmul.f32 0.3275911, %v8225_v40 }
 0x590   : > { %v8338_v22 = vmul.f32 0.3275911, %v8228_v50  ;;  %v8341_v1 = vmul.f32 0.3275911, %v8231_v46  ;;  %v8344_v34 = vmul.f32 0.3275911, %v8234_v45  ;;  %4050 = vrot.lane.b32.xlu1 %v3985_v39, %s6492_s13  ;;  %v8381_v54 = vmul.f32 %v3089_v10, %v8175_v6 }
 0x591   : > { %v8348_v58 = vmul.f32 0.3275911, %v8241_v43  ;;  %v8351_v26 = vmul.f32 0.3275911, %v8244_v30  ;;  %v8354_v24 = vmul.f32 0.3275911, %v8247_v63 }
 0x592   : > { %v8357_v15 = vmul.f32 0.3275911, %v8250_v41  ;;  %v8360_v16 = vmul.f32 0.3275911, %v8253_v28  ;;  %v8363_v9 = vmul.f32 0.3275911, %v8259_v32 }
 0x593   : > { %v8366_v39 = vmul.f32 0.3275911, %v8262_v11  ;;  %v8369_v60 = vmul.f32 0.3275911, %v8265_v25  ;;  %v8372_v4 = vmul.f32 0.3275911, %v8268_v31 }
 0x594   : > { %11093 = vst [vmem:[#allocation6_spill] sm:$0xff] %v8360_v16  ;;  %11094 = vst [vmem:[#allocation69_spill] sm:$0xff] %v8363_v9  ;;  %v8375_v49 = vmul.f32 0.3275911, %v8271_v23  ;;  %v8378_v51 = vmul.f32 0.3275911, %v8276_v21  ;;  %v8384_v9 = vmul.f32 %v3090_v37, %v8181_v8 }
 0x595   : > { %11095 = vst [vmem:[#allocation70_spill] sm:$0xff] %v8366_v39  ;;  %11096 = vst [vmem:[#allocation71_spill] sm:$0xff] %v8369_v60  ;;  %v3787_v12 = vld [vmem:[#allocation3 + $0x9] sm:$0x7f]  ;;  %v3586_v39 = vld [vmem:[#allocation3] sm:$0xff]  ;;  %v3112_v6 = vsub.f32 0.0, %v8259_v32 }
 0x596   : > { %11097 = vst [vmem:[#allocation72_spill] sm:$0xff] %v8372_v4  ;;  %11098 = vst [vmem:[#allocation73_spill] sm:$0xff] %v8375_v49  ;;  %v8387_v16 = vmul.f32 0.3275911, %v8279_v56  ;;  %3848 = vrot.lane.b32.xlu1 %v3787_v12, %s6487_s8  ;;  %3646 = vrot.lane.b32.xlu0 %v3586_v39, %s6491_s12  ;;  %v3110_v12 = vsub.f32 0.0, %v8250_v41  ;;  %v3113_v10 = vsub.f32 0.0, %v8262_v11 }
 0x597   : > { %11099 = vst [vmem:[#allocation74_spill] sm:$0xff] %v8381_v54  ;;  %11100 = vst [vmem:[#allocation75_spill] sm:$0xff] %v8384_v9  ;;  %v3111_v54 = vsub.f32 0.0, %v8253_v28  ;;  %v2705_v49 = vadd.f32 1.0, %v8282_v55  ;;  %v2706_v4 = vadd.f32 1.0, %v8288_v27  ;;  %v2707_v28 = vadd.f32 1.0, %v8291_v62 }
 0x598   : > { %v2708_v32 = vadd.f32 1.0, %v8294_v33  ;;  %v2709_v11 = vadd.f32 1.0, %v8297_v44  ;;  %v8427_v37 = vadd.f32 1.0, %v8300_v52  ;;  %v8430_v8 = vadd.f32 1.0, %v8307_v0  ;;  %v8432_v9 = vld [vmem:[#allocation3 + $0x1] sm:$0xff] }
 0x599   : > { %11101 = vst [vmem:[#allocation76_spill] sm:$0xff] %v8432_v9  ;;  %v8438_v55 = vadd.f32 1.0, %v8314_v19  ;;  %v8441_v27 = vadd.f32 1.0, %v8317_v59  ;;  %v8444_v62 = vadd.f32 1.0, %v8320_v38  ;;  %v8449_v0 = vadd.f32 1.0, %v8324_v36 }
 0x59a   : > { %4244 = vrot.lane.b32.xlu1 %v3587_v20, %s6494_s23  ;;  %4048 = vrot.lane.b32.xlu0 %v3586_v39, %s6492_s13  ;;  %v8435_v20 = vadd.f32 1.0, %v8310_v2  ;;  %v8452_v33 = vadd.f32 1.0, %v8329_v29  ;;  %v8455_v2 = vadd.f32 1.0, %v8332_v48  ;;  %v8458_v19 = vadd.f32 1.0, %v8335_v35 }
 0x59b   : > { %v8461_v59 = vadd.f32 1.0, %v8338_v22  ;;  %v8464_v38 = vadd.f32 1.0, %v8341_v1  ;;  %v8467_v44 = vadd.f32 1.0, %v8344_v34  ;;  %v8470_v52 = vadd.f32 1.0, %v8348_v58  ;;  %v11104_v22 = vld [vmem:[#allocation6_spill] sm:$0xff]  ;;  %v11105_v1 = vld [vmem:[#allocation69_spill] sm:$0xff] }
 0x59c   : > { %v8473_v29 = vadd.f32 1.0, %v8351_v26  ;;  %v8476_v48 = vadd.f32 1.0, %v8354_v24  ;;  %v8479_v35 = vadd.f32 1.0, %v8357_v15  ;;  %v8482_v36 = vadd.f32 1.0, %v11104_v22  ;;  %v11106_v34 = vld [vmem:[#allocation70_spill] sm:$0xff]  ;;  %v11108_v58 = vld [vmem:[#allocation71_spill] sm:$0xff] }
 0x59d   : > { %11102 = vst [vmem:[#allocation77_spill] sm:$0xff] %v8470_v52  ;;  %v8485_v60 = vadd.f32 1.0, %v11105_v1  ;;  %v8491_v52 = vadd.f32 1.0, %v11108_v58  ;;  %v11110_v26 = vld [vmem:[#allocation72_spill] sm:$0xff]  ;;  %v11112_v24 = vld [vmem:[#allocation73_spill] sm:$0xff]  ;;  %v8501_v22 = vadd.f32 1.0, %v8378_v51  ;;  %6356 = vrcp.f32 %v2705_v49 }
 0x59e   : > { %3846 = vrot.lane.b32.xlu0 %v8432_v9, %s6487_s8  ;;  %11103 = vst [vmem:[#allocation78_spill] sm:$0xff] %v8473_v29  ;;  %v8488_v9 = vadd.f32 1.0, %v11106_v34  ;;  %v8494_v29 = vadd.f32 1.0, %v11110_v26  ;;  %v8498_v15 = vadd.f32 1.0, %v11112_v24  ;;  %v8504_v1 = vadd.f32 1.0, %v8387_v16 }
 0x59f   : > { %11109 = vst [vmem:[#allocation69_spill] sm:$0xff] %v8491_v52  ;;  %11114 = vst [vmem:[#allocation72_spill] sm:$0xff] %v8501_v22  ;;  %v11116_v34 = vsub.f32 0.0, %v8184_v3  ;;  %v11117_v58 = vsub.f32 0.0, %v8187_v13  ;;  %v11119_v24 = vsub.f32 0.0, %v8196_v17  ;;  %v11120_v16 = vsub.f32 0.0, %v8199_v47 }
 0x5a0   : > { %11107 = vst [vmem:[#allocation6_spill] sm:$0xff] %v8488_v9  ;;  %11111 = vst [vmem:[#allocation70_spill] sm:$0xff] %v8494_v29  ;;  %v11121_v22 = vsub.f32 0.0, %v8202_v5  ;;  %6358 = vrcp.f32 %v2706_v4  ;;  %v11142_v4 = vsub.f32 0.0, %v8279_v56 }
 0x5a1   : > { %11113 = vst [vmem:[#allocation71_spill] sm:$0xff] %v8498_v15  ;;  %11115 = vst [vmem:[#allocation73_spill] sm:$0xff] %v8504_v1  ;;  %v3123_v9 = vmul.f32 %v11116_v34, %v8184_v3  ;;  %v3124_v26 = vmul.f32 %v11117_v58, %v8187_v13  ;;  %v3126_v51 = vmul.f32 %v11119_v24, %v8196_v17  ;;  %v11122_v34 = vsub.f32 0.0, %v8206_v61  ;;  %v11136_v15 = vld [vmem:[#allocation67_spill] sm:$0xff] }
 0x5a2   : > { %4242 = vrot.lane.b32.xlu0 %v3586_v39, %s6494_s23  ;;  %v11118_v39 = vsub.f32 0.0, %v8190_v14  ;;  %v3127_v1 = vmul.f32 %v11120_v16, %v8199_v47  ;;  %v3128_v3 = vmul.f32 %v11121_v22, %v8202_v5  ;;  %v11123_v58 = vsub.f32 0.0, %v8209_v42 }
 0x5a3   : > { %v3129_v13 = vmul.f32 %v11122_v34, %v8206_v61  ;;  %v11125_v24 = vsub.f32 0.0, %v8215_v7  ;;  %v11126_v16 = vsub.f32 0.0, %v8218_v53  ;;  %v11127_v22 = vsub.f32 0.0, %v8222_v57 }
 0x5a4   : > { %v3125_v29 = vmul.f32 %v11118_v39, %v8190_v14  ;;  %v3130_v14 = vmul.f32 %v11123_v58, %v8209_v42  ;;  %v11124_v39 = vsub.f32 0.0, %v8212_v18  ;;  %v11128_v34 = vsub.f32 0.0, %v8225_v40 }
 0x5a5   : > { %v3132_v47 = vmul.f32 %v11125_v24, %v8215_v7  ;;  %v3133_v5 = vmul.f32 %v11126_v16, %v8218_v53  ;;  %v3134_v61 = vmul.f32 %v11127_v22, %v8222_v57  ;;  %v11129_v58 = vsub.f32 0.0, %v8228_v50 }
 0x5a6   : > { %v3131_v17 = vmul.f32 %v11124_v39, %v8212_v18  ;;  %v3135_v42 = vmul.f32 %v11128_v34, %v8225_v40  ;;  %v11130_v39 = vsub.f32 0.0, %v8231_v46  ;;  %v11131_v24 = vsub.f32 0.0, %v8234_v45 }
 0x5a7   : > { %v3136_v18 = vmul.f32 %v11129_v58, %v8228_v50  ;;  %v11132_v16 = vsub.f32 0.0, %v8241_v43  ;;  %v11133_v22 = vsub.f32 0.0, %v8244_v30  ;;  %v11134_v34 = vsub.f32 0.0, %v8247_v63 }
 0x5a8   : > { %v3137_v7 = vmul.f32 %v11130_v39, %v8231_v46  ;;  %v3138_v53 = vmul.f32 %v11131_v24, %v8234_v45  ;;  %v3142_v58 = vmul.f32 %v3110_v12, %v8250_v41  ;;  %v11135_v46 = vld [vmem:[#allocation65_spill] sm:$0xff]  ;;  %v3144_v52 = vmul.f32 %v3112_v6, %v11136_v15  ;;  %v11137_v45 = vld [vmem:[#allocation68_spill] sm:$0xff]  ;;  %v11144_v12 = vld [vmem:[#allocation75_spill] sm:$0xff] }
 0x5a9   : > { %v3139_v57 = vmul.f32 %v11132_v16, %v8241_v43  ;;  %v3140_v40 = vmul.f32 %v11133_v22, %v8244_v30  ;;  %v3141_v50 = vmul.f32 %v11134_v34, %v8247_v63  ;;  %v3143_v39 = vmul.f32 %v3111_v54, %v11135_v46 }
 0x5aa   : > { %v3145_v24 = vmul.f32 %v3113_v10, %v11137_v45  ;;  %v11138_v43 = vsub.f32 0.0, %v8265_v25  ;;  %v11139_v30 = vsub.f32 0.0, %v8268_v31  ;;  %v11140_v63 = vsub.f32 0.0, %v8271_v23  ;;  %v11143_v10 = vld [vmem:[#allocation74_spill] sm:$0xff] }
 0x5ab   : > { %6360 = vrcp.f32 %v2707_v28  ;;  %v11141_v54 = vsub.f32 0.0, %v8276_v21  ;;  %v3150_v6 = vmul.f32 %v11142_v4, %v8279_v56  ;;  %v8588_v15 = vmul.f32 1.442695, %v3123_v9 }
 0x5ac   : > { %v3146_v16 = vmul.f32 %v11138_v43, %v8265_v25  ;;  %v3147_v22 = vmul.f32 %v11139_v30, %v8268_v31  ;;  %v3148_v41 = vmul.f32 %v11140_v63, %v8271_v23  ;;  %6362 = vrcp.f32 %v2708_v32 }
 0x5ad   : > { %v3149_v49 = vmul.f32 %v11141_v54, %v8276_v21  ;;  %v8583_v25 = vmul.f32 1.442695, %v11143_v10  ;;  %6364 = vrcp.f32 %v2709_v11  ;;  %v8586_v31 = vmul.f32 1.442695, %v11144_v12  ;;  %v11160_v54 = vld [vmem:[#allocation77_spill] sm:$0xff]  ;;  %v11162_v10 = vld [vmem:[#allocation78_spill] sm:$0xff] }
 0x5ae   : > { %v8590_v23 = vmul.f32 1.442695, %v3124_v26  ;;  %6366 = vrcp.f32 %v8427_v37  ;;  %v8593_v28 = vmul.f32 1.442695, %v3125_v29  ;;  %v8595_v21 = vmul.f32 1.442695, %v3126_v51 }
 0x5af   : > { %v8597_v34 = vmul.f32 1.442695, %v3127_v1  ;;  %6368 = vrcp.f32 %v8430_v8  ;;  %v8600_v32 = vmul.f32 1.442695, %v3128_v3  ;;  %v8602_v11 = vmul.f32 1.442695, %v3129_v13  ;;  %v8627_v13 = vpop.eup %6356 }
 0x5b0   : > { %v8604_v56 = vmul.f32 1.442695, %v3130_v14  ;;  %6370 = vrcp.f32 %v8435_v20  ;;  %v8607_v9 = vmul.f32 1.442695, %v3131_v17  ;;  %v8609_v26 = vmul.f32 1.442695, %v3132_v47  ;;  %v8636_v47 = vpop.eup %6358 }
 0x5b1   : > { %v8611_v37 = vmul.f32 1.442695, %v3133_v5  ;;  %6372 = vrcp.f32 %v8438_v55  ;;  %v8614_v29 = vmul.f32 1.442695, %v3134_v61  ;;  %v8616_v1 = vmul.f32 1.442695, %v3135_v42 }
 0x5b2   : > { %v8618_v8 = vmul.f32 1.442695, %v3136_v18  ;;  %6374 = vrcp.f32 %v8441_v27  ;;  %v8621_v51 = vmul.f32 1.442695, %v3137_v7  ;;  %v8623_v3 = vmul.f32 1.442695, %v3138_v53 }
 0x5b3   : > { %v8625_v20 = vmul.f32 1.442695, %v3139_v57  ;;  %6376 = vrcp.f32 %v8444_v62  ;;  %v8630_v14 = vmul.f32 1.442695, %v3140_v40  ;;  %v8632_v55 = vmul.f32 1.442695, %v3141_v50 }
 0x5b4   : > { %v8634_v17 = vmul.f32 1.442695, %v3142_v58  ;;  %6378 = vrcp.f32 %v8449_v0  ;;  %v8639_v27 = vmul.f32 1.442695, %v3143_v39  ;;  %v8641_v5 = vmul.f32 1.442695, %v3144_v52 }
 0x5b5   : > { %v2801_v61 = vmul.f32 1.0614054, %v8627_v13  ;;  %v8644_v42 = vpop.eup %6360  ;;  %6380 = vrcp.f32 %v8452_v33  ;;  %v8647_v62 = vmul.f32 1.442695, %v3145_v24  ;;  %v8649_v18 = vmul.f32 1.442695, %v3146_v16 }
 0x5b6   : > { %11145 = vst [vmem:[#allocation65_spill] sm:$0xff] %v8639_v27  ;;  %11146 = vst [vmem:[#allocation67_spill] sm:$0xff] %v8641_v5  ;;  %v2802_v7 = vmul.f32 1.0614054, %v8636_v47  ;;  %v8652_v53 = vpop.eup %6362  ;;  %6382 = vrcp.f32 %v8455_v2  ;;  %v8655_v0 = vmul.f32 1.442695, %v3147_v22 }
 0x5b7   : > { %11147 = vst [vmem:[#allocation68_spill] sm:$0xff] %v8644_v42  ;;  %11148 = vst [vmem:[#allocation74_spill] sm:$0xff] %v8647_v62  ;;  %v2803_v52 = vmul.f32 1.0614054, %v8644_v42  ;;  %v2833_v57 = vadd.f32 -1.4531521, %v2801_v61  ;;  %v8658_v40 = vpop.eup %6364  ;;  %6384 = vrcp.f32 %v8458_v19 }
 0x5b8   : > { %11149 = vst [vmem:[#allocation75_spill] sm:$0xff] %v8649_v18  ;;  %11150 = vst [vmem:[#allocation79_spill] sm:$0xff] %v8652_v53  ;;  %v8661_v33 = vmul.f32 1.442695, %v3148_v41  ;;  %v2804_v50 = vmul.f32 1.0614054, %v8652_v53  ;;  %v8664_v46 = vpop.eup %6366  ;;  %6386 = vrcp.f32 %v8461_v59 }
 0x5b9   : > { %11151 = vst [vmem:[#allocation80_spill] sm:$0xff] %v8655_v0  ;;  %11152 = vst [vmem:[#allocation81_spill] sm:$0xff] %v8658_v40  ;;  %v2834_v58 = vadd.f32 -1.4531521, %v2802_v7  ;;  %v8667_v39 = vmul.f32 1.442695, %v3149_v49  ;;  %v8670_v24 = vpop.eup %6368  ;;  %6388 = vrcp.f32 %v8464_v38  ;;  %v8682_v63 = vmul.f32 %v8627_v13, %v2833_v57 }
 0x5ba   : > { %11153 = vst [vmem:[#allocation82_spill] sm:$0xff] %v8661_v33  ;;  %11154 = vst [vmem:[#allocation83_spill] sm:$0xff] %v8664_v46  ;;  %v2805_v2 = vmul.f32 1.0614054, %v8658_v40  ;;  %v2835_v45 = vadd.f32 -1.4531521, %v2803_v52  ;;  %v8677_v30 = vpop.eup %6370  ;;  %6390 = vrcp.f32 %v8467_v44 }
 0x5bb   : > { %11155 = vst [vmem:[#allocation84_spill] sm:$0xff] %v8667_v39  ;;  %11156 = vst [vmem:[#allocation85_spill] sm:$0xff] %v8670_v24  ;;  %v8673_v43 = vmul.f32 1.442695, %v3150_v6  ;;  %v2806_v19 = vmul.f32 1.0614054, %v8664_v46  ;;  %v2866_v16 = vmul.f32 %v8636_v47, %v2834_v58  ;;  %v8684_v41 = vpop.eup %6372  ;;  %6392 = vrcp.f32 %v11160_v54 }
 0x5bc   : > { %11158 = vst [vmem:[#allocation87_spill] sm:$0xff] %v8677_v30  ;;  %v2807_v59 = vmul.f32 1.0614054, %v8670_v24  ;;  %v2836_v22 = vadd.f32 -1.4531521, %v2804_v50  ;;  %11159 = vst [vmem:[#allocation88_spill] sm:$0xff] %v8684_v41  ;;  %v8688_v6 = vpop.eup %6374  ;;  %6394 = vrcp.f32 %v11162_v10  ;;  %v8693_v61 = vmul.f32 %v8644_v42, %v2835_v45 }
 0x5bd   : > { %11157 = vst [vmem:[#allocation86_spill] sm:$0xff] %v8673_v43  ;;  %v2808_v38 = vmul.f32 1.0614054, %v8677_v30  ;;  %v2837_v49 = vadd.f32 -1.4531521, %v2805_v2  ;;  %11161 = vst [vmem:[#allocation77_spill] sm:$0xff] %v8688_v6  ;;  %v8695_v52 = vpop.eup %6376  ;;  %6396 = vrcp.f32 %v8476_v48 }
 0x5be   : > { %v2898_v4 = vadd.f32 1.4214138, %v2866_v16  ;;  %v2809_v44 = vmul.f32 1.0614054, %v8684_v41  ;;  %v2838_v12 = vadd.f32 -1.4531521, %v2806_v19  ;;  %v8701_v2 = vpop.eup %6378  ;;  %6398 = vrcp.f32 %v8479_v35 }
 0x5bf   : > { %v3522_v7 = vld [vmem:[#allocation3] sm:$0xff]  ;;  %11163 = vst [vmem:[#allocation78_spill] sm:$0xff] %v8695_v52  ;;  %v2810_v57 = vmul.f32 1.0614054, %v8688_v6  ;;  %v2839_v50 = vadd.f32 -1.4531521, %v2807_v59  ;;  %v8706_v16 = vmul.f32 %v8652_v53, %v2836_v22  ;;  %v8708_v54 = vpop.eup %6380  ;;  %6400 = vrcp.f32 %v8482_v36 }
 0x5c0   : > { %v2930_v58 = vmul.f32 %v8636_v47, %v2898_v4  ;;  %3552 = vst.msk [vmem:[#allocation2 + $0x11] sm:$0xff] %vm11164_vm2, %v3522_v7  ;;  %11165 = vst [vmem:[#allocation89_spill] sm:$0xff] %v8701_v2  ;;  %v2811_v19 = vmul.f32 1.0614054, %v8695_v52  ;;  %v2840_v45 = vadd.f32 -1.4531521, %v2808_v38  ;;  %v8712_v10 = vpop.eup %6382  ;;  %6402 = vrcp.f32 %v8485_v60 }
 0x5c1   : > { %11166 = vst [vmem:[#allocation90_spill] sm:$0xff] %v8708_v54  ;;  %v2812_v48 = vmul.f32 1.0614054, %v8701_v2  ;;  %v2841_v59 = vadd.f32 -1.4531521, %v2809_v44  ;;  %11167 = vst [vmem:[#allocation91_spill] sm:$0xff] %v8712_v10  ;;  %v8717_v38 = vmul.f32 %v8658_v40, %v2837_v49  ;;  %v8719_v22 = vpop.eup %6384 }
 0x5c2   : > { %v2962_v4 = vadd.f32 -0.28449672, %v2930_v58  ;;  %v2813_v35 = vmul.f32 1.0614054, %v8708_v54  ;;  %v2842_v7 = vadd.f32 -1.4531521, %v2810_v57  ;;  %v8724_v58 = vpop.eup %6386  ;;  %v8729_v57 = vmul.f32 %v8664_v46, %v2838_v12 }
 0x5c3   : > { %11168 = vst [vmem:[#allocation92_spill] sm:$0xff] %v8719_v22  ;;  %v11169_v53 = vld [vmem:[#allocation6_spill] sm:$0xff]  ;;  %v2814_v36 = vmul.f32 1.0614054, %v8712_v10  ;;  %v2843_v42 = vadd.f32 -1.4531521, %v2811_v19  ;;  %v8731_v49 = vpop.eup %6388 }
 0x5c4   : > { %6404 = vrcp.f32 %v11169_v53  ;;  %v2994_v44 = vmul.f32 %v8636_v47, %v2962_v4  ;;  %11170 = vst [vmem:[#allocation6_spill] sm:$0xff] %v8724_v58  ;;  %v11171_v43 = vld [vmem:[#allocation69_spill] sm:$0xff]  ;;  %v2815_v60 = vmul.f32 1.0614054, %v8719_v22  ;;  %v2844_v39 = vadd.f32 -1.4531521, %v2812_v48  ;;  %v8735_v0 = vpop.eup %6390 }
 0x5c5   : > { %6406 = vrcp.f32 %v11171_v43  ;;  %11172 = vst [vmem:[#allocation69_spill] sm:$0xff] %v8731_v49  ;;  %v11173_v40 = vld [vmem:[#allocation70_spill] sm:$0xff]  ;;  %v2816_v53 = vmul.f32 1.0614054, %v8724_v58  ;;  %v2845_v33 = vadd.f32 -1.4531521, %v2813_v35  ;;  %v8740_v48 = vmul.f32 %v8670_v24, %v2839_v50  ;;  %v8742_v12 = vpop.eup %6392 }
 0x5c6   : > { %6408 = vrcp.f32 %v11173_v40  ;;  %v3026_v19 = vadd.f32 0.2548296, %v2994_v44  ;;  %11174 = vst [vmem:[#allocation70_spill] sm:$0xff] %v8735_v0  ;;  %v11175_v4 = vld [vmem:[#allocation71_spill] sm:$0xff]  ;;  %v2817_v43 = vmul.f32 1.0614054, %v8731_v49  ;;  %v8747_v35 = vmul.f32 %v8677_v30, %v2840_v45  ;;  %v8749_v44 = vpop.eup %6394 }
 0x5c7   : > { %6410 = vrcp.f32 %v11175_v4  ;;  %v2846_v18 = vadd.f32 -1.4531521, %v2814_v36  ;;  %v11176_v46 = vld [vmem:[#allocation72_spill] sm:$0xff]  ;;  %v2818_v40 = vmul.f32 1.0614054, %v8735_v0  ;;  %v11177_v5 = vld [vmem:[#allocation73_spill] sm:$0xff]  ;;  %v8756_v24 = vpop.eup %6396  ;;  %v8761_v45 = vmul.f32 %v8684_v41, %v2841_v59 }
 0x5c8   : > { %6412 = vrcp.f32 %v11176_v46  ;;  %v2847_v62 = vadd.f32 -1.4531521, %v2815_v60  ;;  %v2819_v4 = vmul.f32 1.0614054, %v8742_v12  ;;  %v2848_v36 = vadd.f32 -1.4531521, %v2816_v53  ;;  %v8763_v30 = vpop.eup %6398 }
 0x5c9   : > { %6414 = vrcp.f32 %v11177_v5  ;;  %v8754_v50 = vmul.f32 %v8636_v47, %v3026_v19  ;;  %v2820_v46 = vmul.f32 1.0614054, %v8749_v44  ;;  %v2849_v60 = vadd.f32 -1.4531521, %v2817_v43  ;;  %11178 = vst [vmem:[#allocation71_spill] sm:$0xff] %v8763_v30  ;;  %v8770_v19 = vpop.eup %6400 }
 0x5ca   : > { %6416 = vpow2.f32 %v8583_v25  ;;  %v2821_v5 = vmul.f32 1.0614054, %v8756_v24  ;;  %v2850_v53 = vadd.f32 -1.4531521, %v2818_v40  ;;  %v8768_v47 = vmul.f32 %v8688_v6, %v2842_v7  ;;  %v8777_v43 = vpop.eup %6402 }
 0x5cb   : > { %6418 = vpow2.f32 %v8586_v31  ;;  %v2822_v27 = vmul.f32 1.0614054, %v8763_v30  ;;  %v2851_v25 = vadd.f32 -1.4531521, %v2819_v4  ;;  %v8775_v59 = vmul.f32 %v8695_v52, %v2843_v42  ;;  %11179 = vst [vmem:[#allocation72_spill] sm:$0xff] %v8777_v43 }
 0x5cc   : > { %6420 = vpow2.f32 %v8588_v15  ;;  %v2823_v41 = vmul.f32 1.0614054, %v8770_v19  ;;  %v2852_v31 = vadd.f32 -1.4531521, %v2820_v46  ;;  %v8782_v7 = vmul.f32 %v8701_v2, %v2844_v39 }
 0x5cd   : > { %6422 = vpow2.f32 %v8590_v23  ;;  %v2824_v6 = vmul.f32 1.0614054, %v8777_v43  ;;  %v2853_v15 = vadd.f32 -1.4531521, %v2821_v5  ;;  %v8789_v42 = vmul.f32 %v8708_v54, %v2845_v33 }
 0x5ce   : > { %v8784_v40 = vpop.eup %6404  ;;  %6424 = vpow2.f32 %v8593_v28  ;;  %v2854_v23 = vadd.f32 -1.4531521, %v2822_v27  ;;  %v8796_v39 = vmul.f32 %v8712_v10, %v2846_v18  ;;  %v2855_v28 = vadd.f32 -1.4531521, %v2823_v41 }
 0x5cf   : > { %11180 = vst [vmem:[#allocation73_spill] sm:$0xff] %v8784_v40  ;;  %v8791_v4 = vpop.eup %6406  ;;  %v2825_v52 = vmul.f32 1.0614054, %v8784_v40  ;;  %6426 = vpow2.f32 %v8595_v21  ;;  %v8803_v33 = vmul.f32 %v8719_v22, %v2847_v62  ;;  %v2856_v21 = vadd.f32 -1.4531521, %v2824_v6  ;;  %v11188_v22 = vld [vmem:[#allocation9_spill] sm:$0xff] }
 0x5d0   : > { %11181 = vst [vmem:[#allocation93_spill] sm:$0xff] %v8791_v4  ;;  %v8798_v46 = vpop.eup %6408  ;;  %v2826_v2 = vmul.f32 1.0614054, %v8791_v4  ;;  %6428 = vpow2.f32 %v8597_v34  ;;  %v8810_v27 = vmul.f32 %v8724_v58, %v2848_v36  ;;  %v8817_v62 = vmul.f32 %v8731_v49, %v2849_v60 }
 0x5d1   : > { %11182 = vst [vmem:[#allocation94_spill] sm:$0xff] %v8798_v46  ;;  %v8805_v5 = vpop.eup %6410  ;;  %v2827_v54 = vmul.f32 1.0614054, %v8798_v46  ;;  %6430 = vpow2.f32 %v8600_v32  ;;  %v2857_v34 = vadd.f32 -1.4531521, %v2825_v52  ;;  %vm3282_vm15 = vcmp.ge.f32.partialorder %v11188_v22, 0.0 }
 0x5d2   : > { %11183 = vst [vmem:[#allocation95_spill] sm:$0xff] %v8805_v5  ;;  %11184 = vst [vmem:[#allocation96_spill] sm:$0xff] %v8810_v27  ;;  %v8812_v18 = vpop.eup %6412  ;;  %v2828_v10 = vmul.f32 1.0614054, %v8805_v5  ;;  %6432 = vpow2.f32 %v8602_v11  ;;  %v2858_v6 = vadd.f32 -1.4531521, %v2826_v2  ;;  %v8825_v36 = vmul.f32 %v8735_v0, %v2850_v53 }
 0x5d3   : > { %11185 = vst [vmem:[#allocation97_spill] sm:$0xff] %v8812_v18  ;;  %11186 = vst [vmem:[#allocation98_spill] sm:$0xff] %v8817_v62  ;;  %v8819_v41 = vpop.eup %6414  ;;  %v2829_v32 = vmul.f32 1.0614054, %v8812_v18  ;;  %6434 = vpow2.f32 %v8604_v56  ;;  %v2859_v52 = vadd.f32 -1.4531521, %v2827_v54  ;;  %v8832_v60 = vmul.f32 %v8742_v12, %v2851_v25 }
 0x5d4   : > { %11187 = vst [vmem:[#allocation99_spill] sm:$0xff] %v8819_v41  ;;  %v8827_v58 = vpop.eup %6416  ;;  %v2830_v11 = vmul.f32 1.0614054, %v8819_v41  ;;  %6436 = vpow2.f32 %v8607_v9  ;;  %v2860_v62 = vadd.f32 -1.4531521, %v2828_v10  ;;  %v8836_v56 = vmul.f32 %v8749_v44, %v2852_v31 }
 0x5d5   : > { %v6419_v49 = vpop.eup %6418  ;;  %6438 = vpow2.f32 %v8609_v26  ;;  %v2861_v27 = vadd.f32 -1.4531521, %v2829_v32  ;;  %v8843_v9 = vmul.f32 %v8756_v24, %v2853_v15  ;;  %v8849_v26 = vmul.f32 %v8763_v30, %v2854_v23 }
 0x5d6   : > { %v8838_v2 = vpop.eup %6420  ;;  %6440 = vpow2.f32 %v8611_v37  ;;  %v2862_v53 = vadd.f32 -1.4531521, %v2830_v11  ;;  %v3218_v0 = vmul.f32 %v6419_v49, %v8754_v50  ;;  %v8852_v10 = vmul.f32 %v8770_v19, %v2855_v28 }
 0x5d7   : > { %11189 = vst [vmem:[#allocation9_spill] sm:$0xff] %v8838_v2  ;;  %v8845_v54 = vpop.eup %6422  ;;  %6442 = vpow2.f32 %v8614_v29  ;;  %v8855_v25 = vmul.f32 %v8777_v43, %v2856_v21  ;;  %v8861_v50 = vmul.f32 %v8784_v40, %v2857_v34  ;;  %v8864_v31 = vmul.f32 %v8791_v4, %v2858_v6 }
 0x5d8   : > { %11190 = vst [vmem:[#allocation100_spill] sm:$0xff] %v8845_v54  ;;  %v8857_v37 = vpop.eup %6424  ;;  %6444 = vpow2.f32 %v8616_v1  ;;  %v3250_v49 = vsub.f32 1.0, %v3218_v0  ;;  %v8870_v15 = vmul.f32 %v8798_v46, %v2859_v52  ;;  %v8873_v23 = vmul.f32 %v8805_v5, %v2860_v62 }
 0x5d9   : > { %11191 = vst [vmem:[#allocation101_spill] sm:$0xff] %v8857_v37  ;;  %v8866_v29 = vpop.eup %6426  ;;  %6446 = vpow2.f32 %v8618_v8  ;;  %v2897_v28 = vadd.f32 1.4214138, %v8682_v63  ;;  %v2893_v21 = vmul.f32 %v8812_v18, %v2861_v27  ;;  %v8881_v34 = vmul.f32 %v8819_v41, %v2862_v53 }
 0x5da   : > { %11192 = vst [vmem:[#allocation102_spill] sm:$0xff] %v8866_v29  ;;  %v8876_v1 = vpop.eup %6428  ;;  %6448 = vpow2.f32 %v8621_v51  ;;  %v3314_v0 = vsub.f32 0.0, %v3250_v49  ;;  %v8888_v62 = vadd.f32 1.4214138, %v8693_v61  ;;  %v8891_v63 = vadd.f32 1.4214138, %v8706_v16 }
 0x5db   : > { %11193 = vst [vmem:[#allocation103_spill] sm:$0xff] %v8876_v1  ;;  %v8883_v32 = vpop.eup %6430  ;;  %6450 = vpow2.f32 %v8623_v3  ;;  %v2929_v8 = vmul.f32 %v8627_v13, %v2897_v28  ;;  %v2901_v27 = vadd.f32 1.4214138, %v8717_v38  ;;  %v2902_v11 = vadd.f32 1.4214138, %v8729_v57  ;;  %v11199_v57 = vld [vmem:[#allocation19_spill] sm:$0xff] }
 0x5dc   : > { %11194 = vst [vmem:[#allocation104_spill] sm:$0xff] %v8883_v32  ;;  %v8893_v6 = vpop.eup %6432  ;;  %6452 = vpow2.f32 %v8625_v20  ;;  %v3346_v51 = vsel %vm3282_vm15, %v3250_v49, %v3314_v0  ;;  %v2903_v16 = vadd.f32 1.4214138, %v8740_v48  ;;  %v2904_v20 = vadd.f32 1.4214138, %v8747_v35 }
 0x5dd   : > { %11195 = vst [vmem:[#allocation105_spill] sm:$0xff] %v8893_v6  ;;  %v8900_v3 = vpop.eup %6434  ;;  %6454 = vpow2.f32 %v8630_v14  ;;  %v3410_v61 = vadd.f32 1.0, %v3346_v51  ;;  %v2961_v52 = vadd.f32 -0.28449672, %v2929_v8  ;;  %v2905_v22 = vadd.f32 1.4214138, %v8761_v45 }
 0x5de   : > { %11196 = vst [vmem:[#allocation106_spill] sm:$0xff] %v8900_v3  ;;  %v8904_v53 = vpop.eup %6436  ;;  %6456 = vpow2.f32 %v8632_v55  ;;  %v2906_v38 = vadd.f32 1.4214138, %v8768_v47  ;;  %v2907_v48 = vadd.f32 1.4214138, %v8775_v59  ;;  %v11201_v8 = vld [vmem:[#allocation65_spill] sm:$0xff] }
 0x5df   : > { %11197 = vst [vmem:[#allocation107_spill] sm:$0xff] %v8904_v53  ;;  %v8910_v49 = vpop.eup %6438  ;;  %6458 = vpow2.f32 %v8634_v17  ;;  %v3442_v14 = vmul.f32 %v3410_v61, %v11199_v57  ;;  %v2993_v28 = vmul.f32 %v8627_v13, %v2961_v52  ;;  %v2908_v55 = vadd.f32 1.4214138, %v8782_v7  ;;  %v11203_v51 = vld [vmem:[#allocation67_spill] sm:$0xff]  ;;  %v11205_v59 = vld [vmem:[#allocation96_spill] sm:$0xff]  ;;  %v11208_v7 = vld [vmem:[#allocation74_spill] sm:$0xff] }
 0x5e0   : > { %11198 = vst [vmem:[#allocation108_spill] sm:$0xff] %v8910_v49  ;;  %v8916_v0 = vpop.eup %6440  ;;  %6460 = vpow2.f32 %v11201_v8  ;;  %v2909_v35 = vadd.f32 1.4214138, %v8789_v42  ;;  %v2910_v45 = vadd.f32 1.4214138, %v8796_v39  ;;  %v11207_v8 = vld [vmem:[#allocation7_spill] sm:$0xff] }
 0x5e1   : > { %11200 = vst [vmem:[#allocation19_spill] sm:$0xff] %v8916_v0  ;;  %v8922_v47 = vpop.eup %6442  ;;  %6462 = vpow2.f32 %v11203_v51  ;;  %3474 = vst.msk [vmem:[#allocation3 + $0x18] sm:$0xff] %vm11204_vm6, %v3442_v14  ;;  %v3025_v17 = vadd.f32 0.2548296, %v2993_v28  ;;  %v2911_v61 = vadd.f32 1.4214138, %v8803_v33 }
 0x5e2   : > { %11202 = vst [vmem:[#allocation65_spill] sm:$0xff] %v8922_v47  ;;  %v2912_v52 = vadd.f32 1.4214138, %v11205_v59  ;;  %v8928_v57 = vpop.eup %6444  ;;  %vm3281_vm14 = vcmp.ge.f32.partialorder %v11207_v8, 0.0  ;;  %6464 = vpow2.f32 %v11208_v7  ;;  %v11209_v42 = vld [vmem:[#allocation98_spill] sm:$0xff]  ;;  %v11211_v14 = vld [vmem:[#allocation75_spill] sm:$0xff] }
 0x5e3   : > { %11206 = vst [vmem:[#allocation67_spill] sm:$0xff] %v8928_v57  ;;  %v2913_v0 = vadd.f32 1.4214138, %v11209_v42  ;;  %v2914_v39 = vadd.f32 1.4214138, %v8825_v36  ;;  %v8935_v51 = vpop.eup %6446  ;;  %6466 = vpow2.f32 %v11211_v14  ;;  %v3057_v33 = vmul.f32 %v8627_v13, %v3025_v17  ;;  %v11213_v49 = vld [vmem:[#allocation80_spill] sm:$0xff] }
 0x5e4   : > { %v2915_v47 = vadd.f32 1.4214138, %v8832_v60  ;;  %11210 = vst [vmem:[#allocation96_spill] sm:$0xff] %v8935_v51  ;;  %v2916_v28 = vadd.f32 1.4214138, %v8836_v56  ;;  %v8941_v57 = vpop.eup %6448  ;;  %6468 = vpow2.f32 %v11213_v49  ;;  %v11215_v51 = vld [vmem:[#allocation82_spill] sm:$0xff] }
 0x5e5   : > { %v2917_v59 = vadd.f32 1.4214138, %v8843_v9  ;;  %11212 = vst [vmem:[#allocation7_spill] sm:$0xff] %v8941_v57  ;;  %v2918_v7 = vadd.f32 1.4214138, %v8849_v26  ;;  %v8947_v42 = vpop.eup %6450  ;;  %6470 = vpow2.f32 %v11215_v51  ;;  %v3217_v13 = vmul.f32 %v8827_v58, %v3057_v33  ;;  %v11217_v14 = vld [vmem:[#allocation84_spill] sm:$0xff] }
 0x5e6   : > { %v2919_v36 = vadd.f32 1.4214138, %v8852_v10  ;;  %v2920_v60 = vadd.f32 1.4214138, %v8855_v25  ;;  %11214 = vst [vmem:[#allocation74_spill] sm:$0xff] %v8947_v42  ;;  %v8953_v17 = vpop.eup %6452  ;;  %6472 = vpow2.f32 %v11217_v14  ;;  %v11219_v42 = vld [vmem:[#allocation86_spill] sm:$0xff] }
 0x5e7   : > { %v2921_v56 = vadd.f32 1.4214138, %v8861_v50  ;;  %v2922_v9 = vadd.f32 1.4214138, %v8864_v31  ;;  %11216 = vst [vmem:[#allocation98_spill] sm:$0xff] %v8953_v17  ;;  %v8958_v25 = vpop.eup %6454  ;;  %6474 = vpow2.f32 %v11219_v42  ;;  %v3249_v51 = vsub.f32 1.0, %v3217_v13 }
 0x5e8   : > { %v2923_v26 = vadd.f32 1.4214138, %v8870_v15  ;;  %v2924_v10 = vadd.f32 1.4214138, %v8873_v23  ;;  %v2925_v49 = vadd.f32 1.4214138, %v2893_v21  ;;  %v8964_v31 = vpop.eup %6456  ;;  %v2952_v8 = vmul.f32 %v8777_v43, %v2920_v60 }
 0x5e9   : > { %11218 = vst [vmem:[#allocation75_spill] sm:$0xff] %v8958_v25  ;;  %v2926_v58 = vadd.f32 1.4214138, %v8881_v34  ;;  %v11220_v50 = vld [vmem:[#allocation68_spill] sm:$0xff]  ;;  %11221 = vst [vmem:[#allocation80_spill] sm:$0xff] %v8964_v31  ;;  %v11222_v14 = vld [vmem:[#allocation79_spill] sm:$0xff]  ;;  %v8971_v6 = vpop.eup %6458 }
 0x5ea   : > { %v2931_v33 = vmul.f32 %v11220_v50, %v8888_v62  ;;  %v3987_v17 = vld [vmem:[#allocation3 + $0x18] sm:$0x7f]  ;;  %v2932_v57 = vmul.f32 %v11222_v14, %v8891_v63  ;;  %v11223_v15 = vld [vmem:[#allocation81_spill] sm:$0xff]  ;;  %11226 = vst [vmem:[#allocation82_spill] sm:$0xff] %v8971_v6  ;;  %v3313_v34 = vsub.f32 0.0, %v3249_v51  ;;  %v11228_v62 = vld [vmem:[#allocation88_spill] sm:$0xff]  ;;  %v8977_v29 = vpop.eup %6460 }
 0x5eb   : > { %v2933_v53 = vmul.f32 %v11223_v15, %v2901_v27  ;;  %v11224_v23 = vld [vmem:[#allocation83_spill] sm:$0xff]  ;;  %v11225_v3 = vld [vmem:[#allocation85_spill] sm:$0xff]  ;;  %4054 = vrot.lane.b32.xlu1 %v3987_v17, %s6492_s13  ;;  %v2937_v32 = vmul.f32 %v11228_v62, %v2905_v22  ;;  %11230 = vst [vmem:[#allocation84_spill] sm:$0xff] %v8977_v29  ;;  %v11231_v63 = vld [vmem:[#allocation78_spill] sm:$0xff]  ;;  %v8983_v6 = vpop.eup %6462 }
 0x5ec   : > { %v2934_v21 = vmul.f32 %v11224_v23, %v2902_v11  ;;  %v2935_v25 = vmul.f32 %v11225_v3, %v2903_v16  ;;  %v11227_v42 = vld [vmem:[#allocation87_spill] sm:$0xff]  ;;  %v11229_v31 = vld [vmem:[#allocation77_spill] sm:$0xff]  ;;  %v2939_v37 = vmul.f32 %v11231_v63, %v2907_v48  ;;  %v11233_v11 = vld [vmem:[#allocation90_spill] sm:$0xff]  ;;  %11235 = vst [vmem:[#allocation86_spill] sm:$0xff] %v8983_v6  ;;  %v3345_v17 = vsel %vm3281_vm14, %v3249_v51, %v3313_v34  ;;  %v8990_v29 = vpop.eup %6464 }
 0x5ed   : > { %v2936_v13 = vmul.f32 %v11227_v42, %v2904_v20  ;;  %v2938_v1 = vmul.f32 %v11229_v31, %v2906_v38  ;;  %v11232_v27 = vld [vmem:[#allocation89_spill] sm:$0xff]  ;;  %v2941_v2 = vmul.f32 %v11233_v11, %v2909_v35  ;;  %v11234_v16 = vld [vmem:[#allocation91_spill] sm:$0xff]  ;;  %v11236_v20 = vld [vmem:[#allocation92_spill] sm:$0xff]  ;;  %11239 = vst [vmem:[#allocation68_spill] sm:$0xff] %v8990_v29  ;;  %v3409_v48 = vadd.f32 1.0, %v3345_v17  ;;  %v8995_v6 = vpop.eup %6466 }
 0x5ee   : > { %v2940_v54 = vmul.f32 %v11232_v27, %v2908_v55  ;;  %v2942_v3 = vmul.f32 %v11234_v16, %v2910_v45  ;;  %v2943_v42 = vmul.f32 %v11236_v20, %v2911_v61  ;;  %v11237_v22 = vld [vmem:[#allocation6_spill] sm:$0xff]  ;;  %v11238_v38 = vld [vmem:[#allocation69_spill] sm:$0xff]  ;;  %v2947_v35 = vmul.f32 %v8742_v12, %v2915_v47  ;;  %11241 = vst [vmem:[#allocation79_spill] sm:$0xff] %v8995_v6  ;;  %v9002_v51 = vpop.eup %6468  ;;  %v9008_v6 = vld [vmem:[#allocation3 + $0x18] sm:$0xff] }
 0x5ef   : > { %v2944_v62 = vmul.f32 %v11237_v22, %v2912_v52  ;;  %v2945_v31 = vmul.f32 %v11238_v38, %v2913_v0  ;;  %v4389_v63 = vld [vmem:[#allocation3 + $0x9] sm:$0x7f]  ;;  %v11240_v55 = vld [vmem:[#allocation70_spill] sm:$0xff]  ;;  %v2948_v45 = vmul.f32 %v8749_v44, %v2916_v28  ;;  %v2949_v61 = vmul.f32 %v8756_v24, %v2917_v59  ;;  %11242 = vst [vmem:[#allocation81_spill] sm:$0xff] %v9002_v51 }
 0x5f0   : > { %v2946_v27 = vmul.f32 %v11240_v55, %v2914_v39  ;;  %4454 = vrot.lane.b32.xlu1 %v4389_v63, %s6495_s15  ;;  %v2950_v52 = vmul.f32 %v8763_v30, %v2918_v7  ;;  %v2951_v0 = vmul.f32 %v8770_v19, %v2919_v36  ;;  %v11243_v39 = vld [vmem:[#allocation10_spill] sm:$0xff]  ;;  %v2953_v47 = vmul.f32 %v8784_v40, %v2921_v56  ;;  %v9010_v63 = vpop.eup %6470 }
 0x5f1   : > { %v3441_v34 = vmul.f32 %v3409_v48, %v11243_v39  ;;  %v2954_v28 = vmul.f32 %v8791_v4, %v2922_v9  ;;  %v2955_v17 = vmul.f32 %v8798_v46, %v2923_v26  ;;  %11244 = vst [vmem:[#allocation83_spill] sm:$0xff] %v9008_v6  ;;  %11245 = vst [vmem:[#allocation90_spill] sm:$0xff] %v9010_v63  ;;  %v2963_v7 = vadd.f32 -0.28449672, %v2931_v33  ;;  %v9013_v60 = vpop.eup %6472 }
 0x5f2   : > { %v2956_v59 = vmul.f32 %v8805_v5, %v2924_v10  ;;  %v2964_v36 = vadd.f32 -0.28449672, %v2932_v57  ;;  %v2965_v29 = vadd.f32 -0.28449672, %v2933_v53  ;;  %11246 = vst [vmem:[#allocation91_spill] sm:$0xff] %v9013_v60  ;;  %v2957_v48 = vmul.f32 %v8812_v18, %v2925_v49  ;;  %v9017_v51 = vpop.eup %6474 }
 0x5f3   : > { %3473 = vst.msk [vmem:[#allocation3 + $0x10] sm:$0xff] %vm11247_vm13, %v3441_v34  ;;  %v2966_v56 = vadd.f32 -0.28449672, %v2934_v21  ;;  %v2967_v39 = vadd.f32 -0.28449672, %v2935_v25  ;;  %11248 = vst [vmem:[#allocation92_spill] sm:$0xff] %v9017_v51  ;;  %v2958_v26 = vmul.f32 %v8819_v41, %v2926_v58  ;;  %v2995_v33 = vmul.f32 %v11220_v50, %v2963_v7 }
 0x5f4   : > { %v2968_v9 = vadd.f32 -0.28449672, %v2936_v13  ;;  %v2969_v46 = vadd.f32 -0.28449672, %v2937_v32  ;;  %v2970_v63 = vadd.f32 -0.28449672, %v2938_v1  ;;  %4248 = vrot.lane.b32.xlu1 %v9008_v6, %s6494_s23  ;;  %v2996_v25 = vmul.f32 %v11222_v14, %v2964_v36 }
 0x5f5   : > { %v2971_v4 = vadd.f32 -0.28449672, %v2939_v37  ;;  %v2972_v53 = vadd.f32 -0.28449672, %v2940_v54  ;;  %v2973_v57 = vadd.f32 -0.28449672, %v2941_v2  ;;  %v2997_v32 = vmul.f32 %v11223_v15, %v2965_v29 }
 0x5f6   : > { %v2974_v10 = vadd.f32 -0.28449672, %v2942_v3  ;;  %v2975_v34 = vadd.f32 -0.28449672, %v2943_v42  ;;  %v2976_v49 = vadd.f32 -0.28449672, %v2944_v62  ;;  %v2998_v6 = vmul.f32 %v11224_v23, %v2966_v56 }
 0x5f7   : > { %v2977_v21 = vadd.f32 -0.28449672, %v2945_v31  ;;  %v2978_v13 = vadd.f32 -0.28449672, %v2946_v27  ;;  %v2979_v51 = vadd.f32 -0.28449672, %v2947_v35 }
 0x5f8   : > { %v2980_v60 = vadd.f32 -0.28449672, %v2948_v45  ;;  %v2981_v1 = vadd.f32 -0.28449672, %v2949_v61  ;;  %v2982_v37 = vadd.f32 -0.28449672, %v2950_v52 }
 0x5f9   : > { %v2983_v58 = vadd.f32 -0.28449672, %v2951_v0  ;;  %v2984_v54 = vadd.f32 -0.28449672, %v2952_v8  ;;  %v2985_v2 = vadd.f32 -0.28449672, %v2953_v47 }
 0x5fa   : > { %v2986_v3 = vadd.f32 -0.28449672, %v2954_v28  ;;  %v11249_v41 = vld [vmem:[#allocation85_spill] sm:$0xff]  ;;  %v9027_v42 = vld [vmem:[#allocation3 + $0x10] sm:$0xff]  ;;  %v2987_v31 = vadd.f32 -0.28449672, %v2955_v17 }
 0x5fb   : > { %v2999_v7 = vmul.f32 %v11249_v41, %v2967_v39  ;;  %v2988_v62 = vadd.f32 -0.28449672, %v2956_v59  ;;  %v11250_v36 = vld [vmem:[#allocation87_spill] sm:$0xff]  ;;  %v11251_v35 = vld [vmem:[#allocation88_spill] sm:$0xff]  ;;  %4052 = vrot.lane.b32.xlu0 %v9027_v42, %s6492_s13  ;;  %v2989_v29 = vadd.f32 -0.28449672, %v2957_v48  ;;  %3650 = vrot.lane.b32.xlu1 %v9027_v42, %s6491_s12  ;;  %v3005_v59 = vmul.f32 %v11233_v11, %v2973_v57 }
 0x5fc   : > { %v3000_v27 = vmul.f32 %v11250_v36, %v2968_v9  ;;  %v3001_v45 = vmul.f32 %v11251_v35, %v2969_v46  ;;  %v2990_v61 = vadd.f32 -0.28449672, %v2958_v26  ;;  %v11252_v52 = vld [vmem:[#allocation77_spill] sm:$0xff]  ;;  %v11253_v8 = vld [vmem:[#allocation78_spill] sm:$0xff]  ;;  %v3006_v39 = vmul.f32 %v11234_v16, %v2974_v10 }
 0x5fd   : > { %v3002_v0 = vmul.f32 %v11252_v52, %v2970_v63  ;;  %v3003_v47 = vmul.f32 %v11253_v8, %v2971_v4  ;;  %v3524_v28 = vld [vmem:[#allocation3 + $0x10] sm:$0xff]  ;;  %v11254_v56 = vld [vmem:[#allocation89_spill] sm:$0xff]  ;;  %v3007_v46 = vmul.f32 %v11236_v20, %v2975_v34  ;;  %v3008_v48 = vmul.f32 %v11237_v22, %v2976_v49  ;;  %v11256_v34 = vld [vmem:[#allocation76_spill] sm:$0xff] }
 0x5fe   : > { %v3004_v17 = vmul.f32 %v11254_v56, %v2972_v53  ;;  %3555 = vst.msk [vmem:[#allocation2 + $0x21] sm:$0xff] %vm11255_vm4, %v3524_v28  ;;  %v3009_v63 = vmul.f32 %v11238_v38, %v2977_v21  ;;  %v3010_v4 = vmul.f32 %v11240_v55, %v2978_v13  ;;  %v3011_v9 = vmul.f32 %v8742_v12, %v2979_v51  ;;  %v11257_v21 = vld [vmem:[#allocation93_spill] sm:$0xff]  ;;  %v11258_v13 = vld [vmem:[#allocation94_spill] sm:$0xff] }
 0x5ff   : > { %v3012_v26 = vmul.f32 %v8749_v44, %v2980_v60  ;;  %v3013_v53 = vmul.f32 %v8756_v24, %v2981_v1  ;;  %v3014_v57 = vmul.f32 %v8763_v30, %v2982_v37  ;;  %v3015_v10 = vmul.f32 %v8770_v19, %v2983_v58  ;;  %4452 = vrot.lane.b32.xlu0 %v11256_v34, %s6495_s15  ;;  %v9056_v51 = vld [vmem:[#allocation3 + $0x11] sm:$0xff] }
 0x600   : > { %v3016_v28 = vmul.f32 %v8777_v43, %v2984_v54  ;;  %v3017_v49 = vmul.f32 %v8784_v40, %v2985_v2  ;;  %v3018_v38 = vmul.f32 %v11257_v21, %v2986_v3  ;;  %v3019_v55 = vmul.f32 %v11258_v13, %v2987_v31  ;;  %11259 = vst [vmem:[#allocation6_spill] sm:$0xff] %v9056_v51  ;;  %v11260_v58 = vld [vmem:[#allocation99_spill] sm:$0xff] }
 0x601   : > { %v3020_v60 = vmul.f32 %v8805_v5, %v2988_v62  ;;  %v3021_v1 = vmul.f32 %v8812_v18, %v2989_v29  ;;  %v3027_v37 = vadd.f32 0.2548296, %v2995_v33  ;;  %v3028_v30 = vadd.f32 0.2548296, %v2996_v25  ;;  %4456 = vrot.lane.b32.xlu1 %v9056_v51, %s6495_s15  ;;  %v4604_v40 = vld [vmem:[#allocation3 + $0x18] sm:$0x7f] }
 0x602   : > { %v3022_v34 = vmul.f32 %v11260_v58, %v2990_v61  ;;  %v3029_v54 = vadd.f32 0.2548296, %v2997_v32  ;;  %v3030_v43 = vadd.f32 0.2548296, %v2998_v6  ;;  %v3031_v2 = vadd.f32 0.2548296, %v2999_v7 }
 0x603   : > { %v3032_v3 = vadd.f32 0.2548296, %v3000_v27  ;;  %v3033_v21 = vadd.f32 0.2548296, %v3001_v45  ;;  %v3034_v31 = vadd.f32 0.2548296, %v3002_v0  ;;  %v3059_v13 = vmul.f32 %v11220_v50, %v3027_v37  ;;  %4246 = vrot.lane.b32.xlu0 %v9027_v42, %s6494_s23 }
 0x604   : > { %v3035_v62 = vadd.f32 0.2548296, %v3003_v47  ;;  %v3036_v33 = vadd.f32 0.2548296, %v3004_v17  ;;  %v3037_v25 = vadd.f32 0.2548296, %v3005_v59  ;;  %v3060_v29 = vmul.f32 %v11222_v14, %v3028_v30 }
 0x605   : > { %v3038_v18 = vadd.f32 0.2548296, %v3006_v39  ;;  %v3039_v5 = vadd.f32 0.2548296, %v3007_v46  ;;  %v3040_v61 = vadd.f32 0.2548296, %v3008_v48  ;;  %v3061_v6 = vmul.f32 %v11223_v15, %v3029_v54  ;;  %4665 = vrot.lane.b32.xlu1 %v4604_v40, %s6496_s16 }
 0x606   : > { %v3041_v32 = vadd.f32 0.2548296, %v3009_v63  ;;  %v3042_v7 = vadd.f32 0.2548296, %v3010_v4  ;;  %v3043_v27 = vadd.f32 0.2548296, %v3011_v9  ;;  %v3062_v50 = vmul.f32 %v11224_v23, %v3030_v43 }
 0x607   : > { %v3044_v45 = vadd.f32 0.2548296, %v3012_v26  ;;  %v3045_v0 = vadd.f32 0.2548296, %v3013_v53  ;;  %v3046_v47 = vadd.f32 0.2548296, %v3014_v57  ;;  %v3063_v17 = vmul.f32 %v11249_v41, %v3031_v2  ;;  %4663 = vrot.lane.b32.xlu0 %v9027_v42, %s6496_s16 }
 0x608   : > { %v3047_v59 = vadd.f32 0.2548296, %v3015_v10  ;;  %v3048_v30 = vadd.f32 0.2548296, %v3016_v28  ;;  %v3049_v14 = vadd.f32 0.2548296, %v3017_v49  ;;  %v3064_v39 = vmul.f32 %v11250_v36, %v3032_v3 }
 0x609   : > { %v3050_v15 = vadd.f32 0.2548296, %v3018_v38  ;;  %v3051_v40 = vadd.f32 0.2548296, %v3019_v55  ;;  %v3052_v46 = vadd.f32 0.2548296, %v3020_v60  ;;  %v3065_v48 = vmul.f32 %v11251_v35, %v3033_v21  ;;  %3850 = vrot.lane.b32.xlu1 %v9056_v51, %s6487_s8 }
 0x60a   : > { %v3053_v43 = vadd.f32 0.2548296, %v3021_v1  ;;  %v3054_v23 = vadd.f32 0.2548296, %v3022_v34  ;;  %v3066_v41 = vmul.f32 %v11252_v52, %v3034_v31  ;;  %v3067_v63 = vmul.f32 %v11253_v8, %v3035_v62  ;;  %v11261_v35 = vld [vmem:[#allocation69_spill] sm:$0xff]  ;;  %v11262_v53 = vld [vmem:[#allocation70_spill] sm:$0xff] }
 0x60b   : > { %v3068_v4 = vmul.f32 %v11254_v56, %v3036_v33  ;;  %v3069_v36 = vmul.f32 %v11233_v11, %v3037_v25  ;;  %v3070_v9 = vmul.f32 %v11234_v16, %v3038_v18  ;;  %v3071_v38 = vmul.f32 %v11236_v20, %v3039_v5  ;;  %v11263_v52 = vld [vmem:[#allocation83_spill] sm:$0xff]  ;;  %v11265_v5 = vld [vmem:[#allocation72_spill] sm:$0xff]  ;;  %v11266_v20 = vld [vmem:[#allocation73_spill] sm:$0xff] }
 0x60c   : > { %v3072_v55 = vmul.f32 %v11237_v22, %v3040_v61  ;;  %v3073_v26 = vmul.f32 %v11261_v35, %v3041_v32  ;;  %v3074_v57 = vmul.f32 %v11262_v53, %v3042_v7  ;;  %v3075_v10 = vmul.f32 %v8742_v12, %v3043_v27  ;;  %3652 = vrot.lane.b32.xlu0 %v11263_v52, %s6491_s12  ;;  %v11264_v11 = vld [vmem:[#allocation71_spill] sm:$0xff]  ;;  %v11267_v49 = vld [vmem:[#allocation93_spill] sm:$0xff]  ;;  %v11268_v60 = vld [vmem:[#allocation94_spill] sm:$0xff]  ;;  %v3647_v27 = vpop.permute.xlu0 %3646 }
 0x60d   : > { %v3076_v8 = vmul.f32 %v8749_v44, %v3044_v45  ;;  %v3077_v56 = vmul.f32 %v8756_v24, %v3045_v0  ;;  %v3078_v28 = vmul.f32 %v11264_v11, %v3046_v47  ;;  %v3079_v18 = vmul.f32 %v8770_v19, %v3047_v59  ;;  %v11269_v12 = vld [vmem:[#allocation95_spill] sm:$0xff]  ;;  %v11270_v34 = vld [vmem:[#allocation97_spill] sm:$0xff]  ;;  %v11272_v31 = vld [vmem:[#allocation100_spill] sm:$0xff]  ;;  %3736 = vst.msk [vmem:[#allocation2 + $0x10] sm:$0xff] %vm11280_vm3, %v3647_v27 }
 0x60e   : > { %v3080_v16 = vmul.f32 %v11265_v5, %v3048_v30  ;;  %v3081_v22 = vmul.f32 %v11266_v20, %v3049_v14  ;;  %v3082_v21 = vmul.f32 %v11267_v49, %v3050_v15  ;;  %v3083_v1 = vmul.f32 %v11268_v60, %v3051_v40  ;;  %v11271_v2 = vld [vmem:[#allocation9_spill] sm:$0xff]  ;;  %v4391_v3 = vld [vmem:[#allocation3 + $0x19] sm:$0x7f]  ;;  %v11274_v25 = vld [vmem:[#allocation102_spill] sm:$0xff] }
 0x60f   : > { %v3084_v37 = vmul.f32 %v11269_v12, %v3052_v46  ;;  %v3085_v54 = vmul.f32 %v11270_v34, %v3053_v43  ;;  %v3086_v44 = vmul.f32 %v11260_v58, %v3054_v23  ;;  %v9101_v24 = vmul.f32 %v11271_v2, %v3059_v13  ;;  %v11273_v62 = vld [vmem:[#allocation101_spill] sm:$0xff]  ;;  %v11275_v32 = vld [vmem:[#allocation103_spill] sm:$0xff]  ;;  %v11276_v58 = vld [vmem:[#allocation104_spill] sm:$0xff] }
 0x610   : > { %v9104_v19 = vmul.f32 %v11272_v31, %v3060_v29  ;;  %v9107_v33 = vmul.f32 %v11273_v62, %v3061_v6  ;;  %v9110_v61 = vmul.f32 %v11274_v25, %v3062_v50  ;;  %v9113_v7 = vmul.f32 %v11275_v32, %v3063_v17  ;;  %4458 = vrot.lane.b32.xlu0 %v4391_v3, %s6495_s15  ;;  %v11277_v13 = vld [vmem:[#allocation105_spill] sm:$0xff]  ;;  %v11278_v29 = vld [vmem:[#allocation106_spill] sm:$0xff]  ;;  %v11279_v6 = vld [vmem:[#allocation107_spill] sm:$0xff] }
 0x611   : > { %v9117_v45 = vmul.f32 %v11276_v58, %v3064_v39  ;;  %v9120_v0 = vmul.f32 %v11277_v13, %v3065_v48  ;;  %v9123_v47 = vmul.f32 %v11278_v29, %v3066_v41  ;;  %v9126_v59 = vmul.f32 %v11279_v6, %v3067_v63  ;;  %v11281_v50 = vld [vmem:[#allocation108_spill] sm:$0xff]  ;;  %v11282_v30 = vld [vmem:[#allocation19_spill] sm:$0xff]  ;;  %v11283_v15 = vld [vmem:[#allocation65_spill] sm:$0xff] }
 0x612   : > { %v9130_v17 = vmul.f32 %v11281_v50, %v3068_v4  ;;  %v9133_v14 = vmul.f32 %v11282_v30, %v3069_v36  ;;  %v9136_v39 = vmul.f32 %v11283_v15, %v3070_v9  ;;  %v11285_v40 = vld [vmem:[#allocation67_spill] sm:$0xff]  ;;  %v11287_v48 = vld [vmem:[#allocation96_spill] sm:$0xff]  ;;  %v11291_v63 = vld [vmem:[#allocation74_spill] sm:$0xff]  ;;  %v10795_v62 = vsub.f32 1.0, %v9107_v33 }
 0x613   : > { %v9139_v46 = vmul.f32 %v11285_v40, %v3071_v38  ;;  %v9142_v43 = vmul.f32 %v11287_v48, %v3072_v55  ;;  %v11289_v23 = vld [vmem:[#allocation7_spill] sm:$0xff]  ;;  %v9148_v35 = vmul.f32 %v11291_v63, %v3074_v57  ;;  %v11293_v4 = vld [vmem:[#allocation98_spill] sm:$0xff]  ;;  %v11297_v9 = vld [vmem:[#allocation80_spill] sm:$0xff]  ;;  %v10800_v32 = vsub.f32 1.0, %v9120_v0 }
 0x614   : > { %11284 = vst [vmem:[#allocation10_spill] sm:$0xff] %v9136_v39  ;;  %v9145_v41 = vmul.f32 %v11289_v23, %v3073_v26  ;;  %v9151_v53 = vmul.f32 %v11293_v4, %v3075_v10  ;;  %v11295_v36 = vld [vmem:[#allocation75_spill] sm:$0xff]  ;;  %v9157_v5 = vmul.f32 %v11297_v9, %v3077_v56  ;;  %v11299_v38 = vld [vmem:[#allocation82_spill] sm:$0xff]  ;;  %v11301_v55 = vld [vmem:[#allocation84_spill] sm:$0xff]  ;;  %4847 = vrot.lane.b32.xlu0 %v9027_v42, %s6497_s17  ;;  %v10803_v27 = vsub.f32 1.0, %v9130_v17 }
 0x615   : > { %11286 = vst [vmem:[#allocation85_spill] sm:$0xff] %v9139_v46  ;;  %11288 = vst [vmem:[#allocation87_spill] sm:$0xff] %v9142_v43  ;;  %v9154_v11 = vmul.f32 %v11295_v36, %v3076_v8  ;;  %v9160_v20 = vmul.f32 %v11299_v38, %v3078_v28  ;;  %v9163_v49 = vmul.f32 %v11301_v55, %v3079_v18  ;;  %v11303_v26 = vld [vmem:[#allocation86_spill] sm:$0xff]  ;;  %v11304_v10 = vld [vmem:[#allocation68_spill] sm:$0xff]  ;;  %v3317_v4 = vsub.f32 0.0, %v10795_v62 }
 0x616   : > { %11290 = vst [vmem:[#allocation88_spill] sm:$0xff] %v9145_v41  ;;  %11292 = vst [vmem:[#allocation77_spill] sm:$0xff] %v9148_v35  ;;  %v9168_v57 = vmul.f32 %v11303_v26, %v3080_v16  ;;  %v9171_v60 = vmul.f32 %v11304_v10, %v3081_v22  ;;  %v11305_v8 = vld [vmem:[#allocation79_spill] sm:$0xff]  ;;  %v11307_v56 = vld [vmem:[#allocation81_spill] sm:$0xff]  ;;  %v10793_v16 = vsub.f32 1.0, %v9101_v24  ;;  %v10794_v22 = vsub.f32 1.0, %v9104_v19 }
 0x617   : > { %11294 = vst [vmem:[#allocation78_spill] sm:$0xff] %v9151_v53  ;;  %11296 = vst [vmem:[#allocation89_spill] sm:$0xff] %v9154_v11  ;;  %v9174_v12 = vmul.f32 %v11305_v8, %v3082_v21  ;;  %v9177_v34 = vmul.f32 %v11307_v56, %v3083_v1  ;;  %v11308_v28 = vld [vmem:[#allocation90_spill] sm:$0xff]  ;;  %v11309_v18 = vld [vmem:[#allocation91_spill] sm:$0xff]  ;;  %v10796_v21 = vsub.f32 1.0, %v9110_v61  ;;  %v10797_v1 = vsub.f32 1.0, %v9113_v7 }
 0x618   : > { %11298 = vst [vmem:[#allocation76_spill] sm:$0xff] %v9157_v5  ;;  %11300 = vst [vmem:[#allocation99_spill] sm:$0xff] %v9160_v20  ;;  %v9180_v2 = vmul.f32 %v11308_v28, %v3084_v37  ;;  %v9183_v3 = vmul.f32 %v11309_v18, %v3085_v54  ;;  %v11310_v31 = vld [vmem:[#allocation92_spill] sm:$0xff]  ;;  %v3789_v25 = vld [vmem:[#allocation3 + $0x19] sm:$0x7f]  ;;  %v10798_v37 = vsub.f32 1.0, %v9117_v45 }
 0x619   : > { %11302 = vst [vmem:[#allocation69_spill] sm:$0xff] %v9163_v49  ;;  %11306 = vst [vmem:[#allocation70_spill] sm:$0xff] %v9174_v12  ;;  %v9186_v42 = vmul.f32 %v11310_v31, %v3086_v44  ;;  %v10801_v54 = vsub.f32 1.0, %v9123_v47  ;;  %v10802_v44 = vsub.f32 1.0, %v9126_v59  ;;  %3852 = vrot.lane.b32.xlu0 %v3789_v25, %s6487_s8  ;;  %v11311_v40 = vld [vmem:[#allocation11_spill] sm:$0xff]  ;;  %v11312_v36 = vld [vmem:[#allocation12_spill] sm:$0xff] }
 0x61a   : > { %vm3283_vm9 = vcmp.ge.f32.partialorder %v11311_v40, 0.0  ;;  %vm3284_vm11 = vcmp.ge.f32.partialorder %v11312_v36, 0.0  ;;  %v11313_v9 = vld [vmem:[#allocation13_spill] sm:$0xff]  ;;  %v11314_v38 = vld [vmem:[#allocation14_spill] sm:$0xff]  ;;  %v11315_v55 = vld [vmem:[#allocation15_spill] sm:$0xff]  ;;  %v3315_v56 = vsub.f32 0.0, %v10793_v16 }
 0x61b   : > { %vm3285_vm7 = vcmp.ge.f32.partialorder %v11313_v9, 0.0  ;;  %vm3286_vm12 = vcmp.ge.f32.partialorder %v11314_v38, 0.0  ;;  %vm3287_vm5 = vcmp.ge.f32.partialorder %v11315_v55, 0.0  ;;  %v11316_v28 = vld [vmem:[#allocation16_spill] sm:$0xff]  ;;  %v11317_v18 = vld [vmem:[#allocation17_spill] sm:$0xff]  ;;  %v11318_v31 = vld [vmem:[#allocation18_spill] sm:$0xff] }
 0x61c   : > { %vm3288_vm8 = vcmp.ge.f32.partialorder %v11316_v28, 0.0  ;;  %vm3289_vm1 = vcmp.ge.f32.partialorder %v11317_v18, 0.0  ;;  %vm3290_vm10 = vcmp.ge.f32.partialorder %v11318_v31, 0.0  ;;  %v11319_v25 = vld [vmem:[#allocation21_spill] sm:$0xff]  ;;  %v11320_v8 = vld [vmem:[#allocation22_spill] sm:$0xff]  ;;  %v11322_v63 = vld [vmem:[#allocation24_spill] sm:$0xff] }
 0x61d   : > { %4849 = vrot.lane.b32.xlu0 %v11263_v52, %s6497_s17  ;;  %vm3291_vm0 = vcmp.ge.f32.partialorder %v11319_v25, 0.0  ;;  %vm3292_vm2 = vcmp.ge.f32.partialorder %v11320_v8, 0.0  ;;  %v11321_v52 = vld [vmem:[#allocation23_spill] sm:$0xff]  ;;  %vm3294_vm6 = vcmp.ge.f32.partialorder %v11322_v63, 0.0  ;;  %v3316_v48 = vsub.f32 0.0, %v10794_v22  ;;  %v11338_v13 = vld [vmem:[#allocation37_spill] sm:$0xff] }
 0x61e   : > { %vm3293_vm15 = vcmp.ge.f32.partialorder %v11321_v52, 0.0  ;;  %v3318_v10 = vsub.f32 0.0, %v10796_v21  ;;  %v3319_v16 = vsub.f32 0.0, %v10797_v1  ;;  %v3320_v22 = vsub.f32 0.0, %v10798_v37  ;;  %v11343_v63 = vld [vmem:[#allocation38_spill] sm:$0xff]  ;;  %v11344_v15 = vld [vmem:[#allocation39_spill] sm:$0xff] }
 0x61f   : > { %v3321_v62 = vsub.f32 0.0, %v10800_v32  ;;  %v3322_v21 = vsub.f32 0.0, %v10801_v54  ;;  %v3323_v1 = vsub.f32 0.0, %v10802_v44  ;;  %v3324_v37 = vsub.f32 0.0, %v10803_v27  ;;  %v11345_v6 = vld [vmem:[#allocation40_spill] sm:$0xff]  ;;  %v11368_v36 = vld [vmem:[#allocation10_spill] sm:$0xff] }
 0x620   : > { %v11332_v51 = vsub.f32 1.0, %v9133_v14  ;;  %v11333_v50 = vsub.f32 1.0, %v9136_v39  ;;  %v11334_v30 = vsub.f32 1.0, %v9139_v46  ;;  %vm3307_vm14 = vcmp.ge.f32.partialorder %v11338_v13, 0.0  ;;  %v11371_v38 = vld [vmem:[#allocation85_spill] sm:$0xff]  ;;  %v11379_v8 = vld [vmem:[#allocation88_spill] sm:$0xff] }
 0x621   : > { %v11339_v58 = vsub.f32 1.0, %v9142_v43  ;;  %v11340_v26 = vsub.f32 1.0, %v9145_v41  ;;  %v11341_v23 = vsub.f32 1.0, %v9148_v35  ;;  %v11342_v46 = vsub.f32 1.0, %v9151_v53  ;;  %v11373_v55 = vld [vmem:[#allocation25_spill] sm:$0xff]  ;;  %v11381_v28 = vld [vmem:[#allocation27_spill] sm:$0xff] }
 0x622   : > { %v3325_v32 = vsub.f32 0.0, %v11332_v51  ;;  %v3326_v54 = vsub.f32 0.0, %v11333_v50  ;;  %v3327_v44 = vsub.f32 0.0, %v11334_v30  ;;  %vm3308_vm13 = vcmp.ge.f32.partialorder %v11343_v63, 0.0  ;;  %v11383_v18 = vld [vmem:[#allocation77_spill] sm:$0xff]  ;;  %v11385_v25 = vld [vmem:[#allocation28_spill] sm:$0xff] }
 0x623   : > { %v3328_v27 = vsub.f32 0.0, %v11339_v58  ;;  %v3329_v51 = vsub.f32 0.0, %v11340_v26  ;;  %v3330_v50 = vsub.f32 0.0, %v11341_v23  ;;  %v3331_v30 = vsub.f32 0.0, %v11342_v46  ;;  %v11387_v52 = vld [vmem:[#allocation78_spill] sm:$0xff]  ;;  %v11403_v9 = vld [vmem:[#allocation69_spill] sm:$0xff] }
 0x624   : > { %vm3309_vm4 = vcmp.ge.f32.partialorder %v11344_v15, 0.0  ;;  %vm3310_vm3 = vcmp.ge.f32.partialorder %v11345_v6, 0.0  ;;  %v11346_v13 = vsub.f32 1.0, %v9154_v11  ;;  %v11347_v58 = vsub.f32 1.0, %v9157_v5 }
 0x625   : > { %v11348_v26 = vsub.f32 1.0, %v9160_v20  ;;  %v11349_v23 = vsub.f32 1.0, %v9163_v49  ;;  %v11350_v46 = vsub.f32 1.0, %v9168_v57  ;;  %v11351_v63 = vsub.f32 1.0, %v9171_v60 }
 0x626   : > { %v3332_v29 = vsub.f32 0.0, %v11346_v13  ;;  %v3333_v43 = vsub.f32 0.0, %v11347_v58  ;;  %v11352_v6 = vsub.f32 1.0, %v9174_v12  ;;  %v11353_v13 = vsub.f32 1.0, %v9177_v34 }
 0x627   : > { %v3334_v41 = vsub.f32 0.0, %v11348_v26  ;;  %v3335_v35 = vsub.f32 0.0, %v11349_v23  ;;  %v3336_v53 = vsub.f32 0.0, %v11350_v46  ;;  %v3337_v15 = vsub.f32 0.0, %v11351_v63 }
 0x628   : > { %v3338_v39 = vsub.f32 0.0, %v11352_v6  ;;  %v3339_v11 = vsub.f32 0.0, %v11353_v13  ;;  %v11354_v58 = vsub.f32 1.0, %v9180_v2  ;;  %v11355_v26 = vsub.f32 1.0, %v9183_v3 }
 0x629   : > { %v11356_v23 = vsub.f32 1.0, %v9186_v42  ;;  %v11357_v46 = vsub.f32 1.0, %v9101_v24  ;;  %v11358_v12 = vsub.f32 1.0, %v9104_v19  ;;  %v11359_v13 = vsub.f32 1.0, %v9107_v33 }
 0x62a   : > { %v3340_v5 = vsub.f32 0.0, %v11354_v58  ;;  %v3341_v20 = vsub.f32 0.0, %v11355_v26  ;;  %v11360_v26 = vsub.f32 1.0, %v9110_v61  ;;  %v11361_v24 = vsub.f32 1.0, %v9113_v7 }
 0x62b   : > { %v3342_v49 = vsub.f32 0.0, %v11356_v23  ;;  %v3347_v63 = vsel %vm3283_vm9, %v11357_v46, %v3315_v56  ;;  %v3348_v6 = vsel %vm3284_vm11, %v11358_v12, %v3316_v48  ;;  %v3349_v58 = vsel %vm3285_vm7, %v11359_v13, %v3317_v4  ;;  %v11377_v56 = vld [vmem:[#allocation26_spill] sm:$0xff]  ;;  %v11389_v13 = vld [vmem:[#allocation29_spill] sm:$0xff] }
 0x62c   : > { %v3350_v23 = vsel %vm3286_vm12, %v11360_v26, %v3318_v10  ;;  %v3351_v40 = vsel %vm3287_vm5, %v11361_v24, %v3319_v16  ;;  %v11362_v19 = vsub.f32 1.0, %v9117_v45  ;;  %v11363_v33 = vsub.f32 1.0, %v9120_v0  ;;  %v11375_v10 = vld [vmem:[#allocation87_spill] sm:$0xff]  ;;  %v9371_v26 = vpop.permute.xlu1 %3648  ;;  %v11391_v24 = vld [vmem:[#allocation89_spill] sm:$0xff] }
 0x62d   : > { %v11364_v61 = vsub.f32 1.0, %v9123_v47  ;;  %v11365_v7 = vsub.f32 1.0, %v9126_v59  ;;  %v11366_v45 = vsub.f32 1.0, %v9130_v17  ;;  %v11367_v0 = vsub.f32 1.0, %v9133_v14 }
 0x62e   : > { %v3352_v12 = vsel %vm3288_vm8, %v11362_v19, %v3320_v22  ;;  %v3353_v48 = vsel %vm3289_vm1, %v11363_v33, %v3321_v62  ;;  %v11369_v47 = vsub.f32 1.0, %v11368_v36  ;;  %v11372_v59 = vsub.f32 1.0, %v11371_v38 }
 0x62f   : > { %v3354_v4 = vsel %vm3290_vm10, %v11364_v61, %v3322_v21  ;;  %v3355_v16 = vsel %vm3291_vm0, %v11365_v7, %v3323_v1  ;;  %v3356_v22 = vsel %vm3292_vm2, %v11366_v45, %v3324_v37  ;;  %v3357_v62 = vsel %vm3293_vm15, %v11367_v0, %v3325_v32  ;;  %v11395_v61 = vld [vmem:[#allocation76_spill] sm:$0xff]  ;;  %v11399_v0 = vld [vmem:[#allocation99_spill] sm:$0xff] }
 0x630   : > { %v3358_v21 = vsel %vm3294_vm6, %v11369_v47, %v3326_v54  ;;  %vm11374_vm9 = vcmp.ge.f32.partialorder %v11373_v55, 0.0  ;;  %v11376_v17 = vsub.f32 1.0, %v11375_v10  ;;  %vm11378_vm11 = vcmp.ge.f32.partialorder %v11377_v56, 0.0  ;;  %v11408_v10 = vld [vmem:[#allocation34_spill] sm:$0xff]  ;;  %v11411_v56 = vld [vmem:[#allocation35_spill] sm:$0xff] }
 0x631   : > { %v3359_v1 = vsel %vm11374_vm9, %v11372_v59, %v3327_v44  ;;  %v11380_v14 = vsub.f32 1.0, %v11379_v8  ;;  %vm11382_vm7 = vcmp.ge.f32.partialorder %v11381_v28, 0.0  ;;  %v11384_v31 = vsub.f32 1.0, %v11383_v18  ;;  %v11413_v8 = vld [vmem:[#allocation70_spill] sm:$0xff]  ;;  %v11415_v28 = vld [vmem:[#allocation36_spill] sm:$0xff] }
 0x632   : > { %v3360_v37 = vsel %vm11378_vm11, %v11376_v17, %v3328_v27  ;;  %vm11386_vm12 = vcmp.ge.f32.partialorder %v11385_v25, 0.0  ;;  %v11388_v46 = vsub.f32 1.0, %v11387_v52  ;;  %vm11390_vm5 = vcmp.ge.f32.partialorder %v11389_v13, 0.0  ;;  %v11393_v27 = vld [vmem:[#allocation30_spill] sm:$0xff]  ;;  %v11443_v52 = vld [vmem:[#allocation53_spill] sm:$0xff] }
 0x633   : > { %v3361_v32 = vsel %vm11382_vm7, %v11380_v14, %v3329_v51  ;;  %v3362_v54 = vsel %vm11386_vm12, %v11384_v31, %v3330_v50  ;;  %v11392_v19 = vsub.f32 1.0, %v11391_v24  ;;  %vm11394_vm8 = vcmp.ge.f32.partialorder %v11393_v27, 0.0  ;;  %v11397_v51 = vld [vmem:[#allocation31_spill] sm:$0xff]  ;;  %v11401_v50 = vld [vmem:[#allocation32_spill] sm:$0xff]  ;;  %v11436_v31 = vld [vmem:[#allocation50_spill] sm:$0xff] }
 0x634   : > { %v3363_v44 = vsel %vm11390_vm5, %v11388_v46, %v3331_v30  ;;  %v11396_v7 = vsub.f32 1.0, %v11395_v61  ;;  %vm11398_vm1 = vcmp.ge.f32.partialorder %v11397_v51, 0.0  ;;  %v11400_v36 = vsub.f32 1.0, %v11399_v0  ;;  %v11405_v30 = vld [vmem:[#allocation33_spill] sm:$0xff] }
 0x635   : > { %v3364_v33 = vsel %vm11394_vm8, %v11392_v19, %v3332_v29  ;;  %vm11402_vm10 = vcmp.ge.f32.partialorder %v11401_v50, 0.0  ;;  %v11404_v38 = vsub.f32 1.0, %v11403_v9  ;;  %vm11406_vm0 = vcmp.ge.f32.partialorder %v11405_v30, 0.0  ;;  %v9417_v50 = vpop.permute.xlu1 %4050  ;;  %v11426_v30 = vld [vmem:[#allocation41_spill] sm:$0xff] }
 0x636   : > { %v3365_v45 = vsel %vm11398_vm1, %v11396_v7, %v3333_v43  ;;  %v3366_v47 = vsel %vm11402_vm10, %v11400_v36, %v3334_v41  ;;  %v11407_v55 = vsub.f32 1.0, %v9168_v57  ;;  %vm11409_vm2 = vcmp.ge.f32.partialorder %v11408_v10, 0.0  ;;  %v11427_v10 = vld [vmem:[#allocation42_spill] sm:$0xff] }
 0x637   : > { %v3367_v59 = vsel %vm11406_vm0, %v11404_v38, %v3335_v35  ;;  %v11410_v17 = vsub.f32 1.0, %v9171_v60  ;;  %vm11412_vm15 = vcmp.ge.f32.partialorder %v11411_v56, 0.0  ;;  %v11414_v14 = vsub.f32 1.0, %v11413_v8 }
 0x638   : > { %v3368_v29 = vsel %vm11409_vm2, %v11407_v55, %v3336_v53  ;;  %vm11416_vm6 = vcmp.ge.f32.partialorder %v11415_v28, 0.0  ;;  %v11417_v18 = vsub.f32 1.0, %v9177_v34  ;;  %v11419_v57 = vsub.f32 1.0, %v9180_v2 }
 0x639   : > { %v3369_v43 = vsel %vm11412_vm15, %v11410_v17, %v3337_v15  ;;  %v3370_v41 = vsel %vm11416_vm6, %v11414_v14, %v3338_v39  ;;  %v11421_v60 = vsub.f32 1.0, %v9183_v3  ;;  %v11423_v46 = vsub.f32 1.0, %v9186_v42  ;;  %v11432_v17 = vld [vmem:[#allocation47_spill] sm:$0xff]  ;;  %v9431_v14 = vpop.permute.xlu1 %3848 }
 0x63a   : > { %v3371_v35 = vsel %vm3307_vm14, %v11417_v18, %v3339_v11  ;;  %v3372_v53 = vsel %vm3308_vm13, %v11419_v57, %v3340_v5  ;;  %v3411_v24 = vadd.f32 1.0, %v3347_v63  ;;  %v3412_v34 = vadd.f32 1.0, %v3348_v6  ;;  %v11437_v57 = vld [vmem:[#allocation51_spill] sm:$0xff] }
 0x63b   : > { %v3373_v15 = vsel %vm3309_vm4, %v11421_v60, %v3341_v20  ;;  %v3374_v39 = vsel %vm3310_vm3, %v11423_v46, %v3342_v49  ;;  %v3413_v19 = vadd.f32 1.0, %v3349_v58  ;;  %v3414_v27 = vadd.f32 1.0, %v3350_v23  ;;  %v9419_v20 = vpop.permute.xlu0 %4048  ;;  %v11444_v46 = vld [vmem:[#allocation54_spill] sm:$0xff] }
 0x63c   : > { %v3415_v11 = vadd.f32 1.0, %v3351_v40  ;;  %v3416_v61 = vadd.f32 1.0, %v3352_v12  ;;  %v3417_v2 = vadd.f32 1.0, %v3353_v48  ;;  %v3418_v7 = vadd.f32 1.0, %v3354_v4 }
 0x63d   : > { %v3419_v51 = vadd.f32 1.0, %v3355_v16  ;;  %v3420_v5 = vadd.f32 1.0, %v3356_v22  ;;  %v3421_v0 = vadd.f32 1.0, %v3357_v62  ;;  %v3422_v3 = vadd.f32 1.0, %v3358_v21 }
 0x63e   : > { %v3423_v36 = vadd.f32 1.0, %v3359_v1  ;;  %v3424_v42 = vadd.f32 1.0, %v3360_v37  ;;  %v3425_v9 = vadd.f32 1.0, %v3361_v32  ;;  %v3426_v49 = vadd.f32 1.0, %v3362_v54  ;;  %v11425_v1 = vld [vmem:[#allocation20_spill] sm:$0xff]  ;;  %v11428_v32 = vld [vmem:[#allocation43_spill] sm:$0xff] }
 0x63f   : > { %v3427_v63 = vadd.f32 1.0, %v3363_v44  ;;  %v3428_v6 = vadd.f32 1.0, %v3364_v33  ;;  %v3429_v58 = vadd.f32 1.0, %v3365_v45  ;;  %v3430_v23 = vadd.f32 1.0, %v3366_v47  ;;  %v11429_v44 = vld [vmem:[#allocation44_spill] sm:$0xff]  ;;  %v11430_v45 = vld [vmem:[#allocation45_spill] sm:$0xff]  ;;  %v3847_v28 = vpop.permute.xlu0 %3846 }
 0x640   : > { %v3431_v40 = vadd.f32 1.0, %v3367_v59  ;;  %v3432_v12 = vadd.f32 1.0, %v3368_v29  ;;  %v3433_v48 = vadd.f32 1.0, %v3369_v43  ;;  %v3434_v4 = vadd.f32 1.0, %v3370_v41  ;;  %v11431_v59 = vld [vmem:[#allocation46_spill] sm:$0xff]  ;;  %v11433_v43 = vld [vmem:[#allocation48_spill] sm:$0xff] }
 0x641   : > { %v3435_v16 = vadd.f32 1.0, %v3371_v35  ;;  %v3436_v22 = vadd.f32 1.0, %v3372_v53  ;;  %v3437_v62 = vadd.f32 1.0, %v3373_v15  ;;  %v3438_v21 = vadd.f32 1.0, %v3374_v39  ;;  %v11435_v41 = vld [vmem:[#allocation49_spill] sm:$0xff]  ;;  %v11438_v53 = vld [vmem:[#allocation52_spill] sm:$0xff] }
 0x642   : > { %v3443_v38 = vmul.f32 %v3411_v24, %v11425_v1  ;;  %v3444_v55 = vmul.f32 %v3412_v34, %v11426_v30  ;;  %v3445_v37 = vmul.f32 %v3413_v19, %v11427_v10  ;;  %v3446_v54 = vmul.f32 %v3414_v27, %v11428_v32  ;;  %v11445_v39 = vld [vmem:[#allocation55_spill] sm:$0xff]  ;;  %v11446_v34 = vld [vmem:[#allocation56_spill] sm:$0xff]  ;;  %v11451_v27 = vld [vmem:[#allocation57_spill] sm:$0xff] }
 0x643   : > { %v3447_v33 = vmul.f32 %v3415_v11, %v11429_v44  ;;  %v3448_v47 = vmul.f32 %v3416_v61, %v11430_v45  ;;  %v3449_v29 = vmul.f32 %v3417_v2, %v11431_v59  ;;  %v3450_v56 = vmul.f32 %v3418_v7, %v11432_v17  ;;  %v11452_v61 = vld [vmem:[#allocation58_spill] sm:$0xff]  ;;  %v11453_v7 = vld [vmem:[#allocation59_spill] sm:$0xff]  ;;  %v11468_v30 = vld [vmem:[#allocation5_spill] sm:$0xff] }
 0x644   : > { %v3451_v8 = vmul.f32 %v3419_v51, %v11433_v43  ;;  %vm11434_vm14 = vcmask 64512   ;;  %v3452_v18 = vmul.f32 %v3420_v5, %v11435_v41  ;;  %v3453_v35 = vmul.f32 %v3421_v0, %v11436_v31  ;;  %v11454_v5 = vld [vmem:[#allocation60_spill] sm:$0xff]  ;;  %v11467_v1 = vld [vmem:[#allocation66_spill] sm:$0xff] }
 0x645   : > { %3475 = vst.msk [vmem:[#allocation3 + $0x20] sm:$0xff] %vm11434_vm14, %v3443_v38  ;;  %v3454_v25 = vmul.f32 %v3422_v3, %v11437_v57  ;;  %v3455_v60 = vmul.f32 %v3423_v36, %v11438_v53  ;;  %vm11439_vm13 = vmmov %vm11434_vm14  ;;  %v3456_v15 = vmul.f32 %v3424_v42, %v11443_v52  ;;  %v3457_v13 = vmul.f32 %v3425_v9, %v11444_v46  ;;  %v11459_v3 = vld [vmem:[#allocation61_spill] sm:$0xff]  ;;  %v11460_v42 = vld [vmem:[#allocation62_spill] sm:$0xff] }
 0x646   : > { %3476 = vst.msk [vmem:[#allocation3 + $0x28] sm:$0xff] %vm11439_vm13, %v3444_v55  ;;  %vm11440_vm4 = vmmov %vm11439_vm13  ;;  %v3458_v24 = vmul.f32 %v3426_v49, %v11445_v39  ;;  %v3459_v19 = vmul.f32 %v3427_v63, %v11446_v34  ;;  %v3460_v11 = vmul.f32 %v3428_v6, %v11451_v27  ;;  %v3461_v2 = vmul.f32 %v3429_v58, %v11452_v61  ;;  %v11461_v49 = vld [vmem:[#allocation63_spill] sm:$0xff]  ;;  %v11462_v6 = vld [vmem:[#allocation64_spill] sm:$0xff] }
 0x647   : > { %3477 = vst.msk [vmem:[#allocation3 + $0x30] sm:$0xff] %vm11440_vm4, %v3445_v37  ;;  %vm11441_vm3 = vmmov %vm11440_vm4  ;;  %v3462_v51 = vmul.f32 %v3430_v23, %v11453_v7  ;;  %v3463_v0 = vmul.f32 %v3431_v40, %v11454_v5  ;;  %v3464_v36 = vmul.f32 %v3432_v12, %v11459_v3  ;;  %v3465_v9 = vmul.f32 %v3433_v48, %v11460_v42  ;;  %v3523_v23 = vld [vmem:[#allocation3 + $0x8] sm:$0x7f]  ;;  %v3525_v40 = vld [vmem:[#allocation3 + $0x18] sm:$0x7f] }
 0x648   : > { %3478 = vst.msk [vmem:[#allocation3 + $0x38] sm:$0xff] %vm11441_vm3, %v3446_v54  ;;  %vm11442_vm9 = vmmov %vm11441_vm3  ;;  %v3466_v63 = vmul.f32 %v3434_v4, %v11461_v49  ;;  %v3467_v58 = vmul.f32 %v3435_v16, %v11462_v6  ;;  %v3468_v38 = vmul.f32 %v3436_v22, %v11467_v1  ;;  %v3469_v12 = vmul.f32 %v3437_v62, %v11468_v30  ;;  %v11469_v55 = vld [vmem:[#allocation8_spill] sm:$0xff]  ;;  %v5201_v16 = vld [vmem:[%s10666_s4 + $0x8] sm:$0xff]  ;;  %v4245_v62 = vpop.permute.xlu1 %4244 }
 0x649   : > { %3479 = vst.msk [vmem:[#allocation3 + $0x40] sm:$0xff] %vm11442_vm9, %v3447_v33  ;;  %vm11447_vm11 = vmmov %vm11441_vm3  ;;  %v3470_v48 = vmul.f32 %v3438_v21, %v11469_v55  ;;  %v5200_v4 = vld [vmem:[%s10666_s4] sm:$0xff]  ;;  %v11478_v22 = vmov 0.0   ;;  %v4243_v21 = vpop.permute.xlu0 %4242  ;;  %v5202_v10 = vld [vmem:[%s10666_s4 + $0x10] sm:$0xff] }
 0x64a   : > { %3480 = vst.msk [vmem:[#allocation3 + $0x48] sm:$0xff] %vm11447_vm11, %v3448_v47  ;;  %vm11448_vm7 = vmmov %vm11441_vm3  ;;  %vm10819_vm11 = vcmask 195712   ;;  %v5203_v37 = vld [vmem:[%s10666_s4 + $0x18] sm:$0xff]  ;;  %v11484_v44 = vld [vmem:[#allocation6_spill] sm:$0xff] }
 0x64b   : > { %3481 = vst.msk [vmem:[#allocation3 + $0x50] sm:$0xff] %vm11448_vm7, %v3449_v29  ;;  %vm11449_vm12 = vmmov %vm11441_vm3  ;;  %v4988_v47 = vld [vmem:[#allocation3 + $0x19] sm:$0x7f]  ;;  %v5204_v17 = vld [vmem:[%s10666_s4 + $0x20] sm:$0xff] }
 0x64c   : > { %3482 = vst.msk [vmem:[#allocation3 + $0x58] sm:$0xff] %vm11449_vm12, %v3450_v56  ;;  %vm11450_vm5 = vmmov %vm11441_vm3  ;;  %v9496_v32 = vld [vmem:[#allocation3 + $0x20] sm:$0xff]  ;;  %v5205_v56 = vld [vmem:[%s10666_s4 + $0x28] sm:$0xff] }
 0x64d   : > { %3483 = vst.msk [vmem:[#allocation3 + $0x60] sm:$0xff] %vm11450_vm5, %v3451_v8  ;;  %vm11455_vm8 = vmmov %vm11441_vm3  ;;  %4667 = vrot.lane.b32.xlu1 %v9496_v32, %s6496_s16  ;;  %4056 = vrot.lane.b32.xlu0 %v9496_v32, %s6492_s13  ;;  %v4606_v54 = vld [vmem:[#allocation3 + $0x28] sm:$0x7f]  ;;  %v6299_v43 = vpack.c.bf16 %v5205_v56, %v5204_v17  ;;  %v5206_v8 = vld [vmem:[%s10666_s4 + $0x30] sm:$0xff] }
 0x64e   : > { %3484 = vst.msk [vmem:[#allocation3 + $0x68] sm:$0xff] %vm11455_vm8, %v3452_v18  ;;  %vm11456_vm1 = vmmov %vm11441_vm3  ;;  %v3989_v45 = vld [vmem:[#allocation3 + $0x28] sm:$0x7f]  ;;  %v5208_v57 = vld [vmem:[%s10666_s4 + $0x40] sm:$0xff] }
 0x64f   : > { %3485 = vst.msk [vmem:[#allocation3 + $0x70] sm:$0xff] %vm11456_vm1, %v3453_v35  ;;  %vm11457_vm10 = vmmov %vm11456_vm1  ;;  %v4790_v29 = vld [vmem:[#allocation3 + $0x28] sm:$0xff]  ;;  %v4608_v6 = vld [vmem:[#allocation3 + $0x38] sm:$0x7f] }
 0x650   : > { %3486 = vst.msk [vmem:[#allocation3 + $0x78] sm:$0xff] %vm11457_vm10, %v3454_v25  ;;  %vm11458_vm0 = vmmov %vm11456_vm1  ;;  %vm3769_vm1 = vcmask 188544   ;;  %vm4146_vm10 = vcmask 260288   ;;  %v9533_v33 = vld [vmem:[#allocation3 + $0x40] sm:$0xff]  ;;  %v3527_v18 = vld [vmem:[#allocation3 + $0x28] sm:$0x7f] }
 0x651   : > { %3487 = vst.msk [vmem:[#allocation3 + $0x80] sm:$0xff] %vm11458_vm0, %v3455_v60  ;;  %vm11463_vm2 = vmmov %vm11458_vm0  ;;  %5047 = vrot.lane.b32.xlu1 %v11484_v44, %s6498_s30  ;;  %4669 = vrot.lane.b32.xlu0 %v4606_v54, %s6496_s16  ;;  %v4989_v31 = vld [vmem:[#allocation3 + $0x21] sm:$0xff]  ;;  %v3529_v25 = vld [vmem:[#allocation3 + $0x38] sm:$0x7f] }
 0x652   : > { %3488 = vst.msk [vmem:[#allocation3 + $0x88] sm:$0xff] %vm11463_vm2, %v3456_v15  ;;  %vm11464_vm15 = vmmov %vm11458_vm0  ;;  %vm3553_vm2 = vcmask 63488   ;;  %v9537_v59 = vld [vmem:[#allocation3 + $0x50] sm:$0xff]  ;;  %v3531_v60 = vld [vmem:[#allocation3 + $0x48] sm:$0x7f] }
 0x653   : > { %3489 = vst.msk [vmem:[#allocation3 + $0x90] sm:$0xff] %vm11464_vm15, %v3457_v13  ;;  %vm11465_vm6 = vmmov %vm11458_vm0  ;;  %v3533_v15 = vld [vmem:[#allocation3 + $0x58] sm:$0x7f]  ;;  %v4393_v46 = vld [vmem:[#allocation3 + $0x29] sm:$0x7f] }
 0x654   : > { %3490 = vst.msk [vmem:[#allocation3 + $0x98] sm:$0xff] %vm11465_vm6, %v3458_v24  ;;  %vm11466_vm14 = vmmov %vm11458_vm0  ;;  %v4990_v27 = vld [vmem:[#allocation3 + $0x29] sm:$0x7f] }
 0x655   : > { %3491 = vst.msk [vmem:[#allocation3 + $0xa0] sm:$0xff] %vm11466_vm14, %v3459_v19  ;;  %vm11470_vm13 = vmmov %vm11458_vm0  ;;  %4058 = vrot.lane.b32.xlu1 %v3989_v45, %s6492_s13  ;;  %5049 = vrot.lane.b32.xlu0 %v4988_v47, %s6498_s30  ;;  %v3535_v39 = vld [vmem:[#allocation3 + $0x68] sm:$0x7f] }
 0x656   : > { %3492 = vst.msk [vmem:[#allocation3 + $0xa8] sm:$0xff] %vm11470_vm13, %v3460_v11  ;;  %vm11471_vm4 = vmmov %vm11458_vm0  ;;  %vm10815_vm13 = vcmask 194688   ;;  %v9563_v35 = vld [vmem:[#allocation3 + $0x70] sm:$0xff]  ;;  %v3791_v7 = vld [vmem:[#allocation3 + $0x29] sm:$0x7f] }
 0x657   : > { %3493 = vst.msk [vmem:[#allocation3 + $0xb0] sm:$0xff] %vm11471_vm4, %v3461_v2  ;;  %vm11472_vm3 = vmmov %vm11458_vm0  ;;  %vm3967_vm4 = vcmask 254144   ;;  %v3537_v34 = vld [vmem:[#allocation3 + $0x78] sm:$0x7f]  ;;  %v4794_v54 = vld [vmem:[#allocation3 + $0x48] sm:$0xff] }
 0x658   : > { %3494 = vst.msk [vmem:[#allocation3 + $0xb8] sm:$0xff] %vm11472_vm3, %v3462_v51  ;;  %vm11473_vm9 = vmmov %vm11458_vm0  ;;  %v9574_v53 = vld [vmem:[#allocation3 + $0x80] sm:$0xff]  ;;  %v3991_v51 = vld [vmem:[#allocation3 + $0x38] sm:$0x7f] }
 0x659   : > { %3495 = vst.msk [vmem:[#allocation3 + $0xc0] sm:$0xff] %vm11473_vm9, %v3463_v0  ;;  %vm11474_vm7 = vmmov %vm11458_vm0  ;;  %vm10817_vm9 = vcmask 385344   ;;  %4851 = vrot.lane.b32.xlu1 %v9496_v32, %s6497_s17  ;;  %4252 = vrot.lane.b32.xlu0 %v4790_v29, %s6494_s23  ;;  %v3539_v11 = vld [vmem:[#allocation3 + $0x88] sm:$0x7f] }
 0x65a   : > { %3496 = vst.msk [vmem:[#allocation3 + $0xc8] sm:$0xff] %vm11474_vm7, %v3464_v36  ;;  %vm11475_vm12 = vmmov %vm11458_vm0  ;;  %vm11482_vm7 = vcmask 130112   ;;  %v9581_v52 = vld [vmem:[#allocation3 + $0x90] sm:$0xff]  ;;  %v4993_v45 = vld [vmem:[#allocation3 + $0x41] sm:$0xff] }
 0x65b   : > { %3497 = vst.msk [vmem:[#allocation3 + $0xd0] sm:$0xff] %vm11475_vm12, %v3465_v9  ;;  %vm11476_vm5 = vmmov %vm11458_vm0  ;;  %v3541_v2 = vld [vmem:[#allocation3 + $0x98] sm:$0x7f]  ;;  %v4994_v17 = vld [vmem:[#allocation3 + $0x49] sm:$0x7f] }
 0x65c   : > { %3498 = vst.msk [vmem:[#allocation3 + $0xd8] sm:$0xff] %vm11476_vm5, %v3466_v63  ;;  %vm11477_vm8 = vmmov %vm11458_vm0  ;;  %vm10816_vm0 = vcmask 261312   ;;  %v9589_v13 = vld [vmem:[#allocation3 + $0xa0] sm:$0xff]  ;;  %v3795_v56 = vld [vmem:[#allocation3 + $0x49] sm:$0x7f] }
 0x65d   : > { %3499 = vst.msk [vmem:[#allocation3 + $0xe0] sm:$0xff] %vm11477_vm8, %v3467_v58  ;;  %vm11479_vm15 = vmmov %vm11472_vm3  ;;  %4250 = vrot.lane.b32.xlu1 %v9496_v32, %s6494_s23  ;;  %5051 = vrot.lane.b32.xlu0 %v4989_v31, %s6498_s30  ;;  %v4055_v5 = vpop.permute.xlu1 %4054  ;;  %v3543_v3 = vld [vmem:[#allocation3 + $0xa8] sm:$0x7f]  ;;  %v4792_v58 = vld [vmem:[#allocation3 + $0x38] sm:$0xff] }
 0x65e   : > { %3768 = vst.msk [vmem:[#allocation2 + $0x8] sm:$0xff] %vm10819_vm11, %v11478_v22  ;;  %3767 = vst.msk [vmem:[#allocation2] sm:$0xff] %vm10819_vm11, %v11478_v22  ;;  %v9594_v24 = vld [vmem:[#allocation3 + $0xb0] sm:$0xff] }
 0x65f   : > { %3936 = vst.msk [vmem:[#allocation2 + $0x10] sm:$0xff] %vm10819_vm11, %v3847_v28  ;;  %vm11480_vm6 = vmmov %vm11472_vm3  ;;  %v9555_v28 = vld [vmem:[#allocation3 + $0x60] sm:$0xff]  ;;  %v3545_v42 = vld [vmem:[#allocation3 + $0xb8] sm:$0x7f] }
 0x660   : > { %3500 = vst.msk [vmem:[#allocation3 + $0xe8] sm:$0xff] %vm11479_vm15, %v3468_v38  ;;  %vm11481_vm14 = vmmov %vm11472_vm3  ;;  %vm4338_vm3 = vcmask 326912   ;;  %v9601_v19 = vld [vmem:[#allocation3 + $0xc0] sm:$0xff] }
 0x661   : > { %3501 = vst.msk [vmem:[#allocation3 + $0xf0] sm:$0xff] %vm11480_vm6, %v3469_v12  ;;  %vm11483_vm12 = vmmov %vm11476_vm5  ;;  %4853 = vrot.lane.b32.xlu1 %v4790_v29, %s6497_s17  ;;  %3656 = vrot.lane.b32.xlu0 %v4790_v29, %s6491_s12  ;;  %v3547_v9 = vld [vmem:[#allocation3 + $0xc8] sm:$0x7f]  ;;  %v4395_v12 = vld [vmem:[#allocation3 + $0x39] sm:$0x7f] }
 0x662   : > { %3502 = vst.msk [vmem:[#allocation3 + $0xf8] sm:$0xff] %vm11481_vm14, %v3470_v48  ;;  %vm11485_vm8 = vmmov %vm11476_vm5  ;;  %v9609_v61 = vld [vmem:[#allocation3 + $0xd0] sm:$0xff]  ;;  %v4455_v36 = vpop.permute.xlu1 %4454  ;;  %v4397_v29 = vld [vmem:[#allocation3 + $0x49] sm:$0x7f] }
 0x663   : > { %3770 = vst.msk [vmem:[#allocation2 + $0xf] sm:$0x1] %vm3769_vm1, %v11478_v22  ;;  %vm11486_vm15 = vmmov %vm11476_vm5  ;;  %v3549_v49 = vld [vmem:[#allocation3 + $0xd8] sm:$0x7f] }
 0x664   : > { %4145 = vst.msk [vmem:[#allocation2 + $0x1] sm:$0xff] %vm10816_vm0, %v9419_v20  ;;  %v6291_v20 = vpack.c.bf16 %v5201_v16, %v5200_v4  ;;  %vm11487_vm6 = vmmov %vm11476_vm5  ;;  %v9617_v0 = vld [vmem:[#allocation3 + $0xe0] sm:$0xff] }
 0x665   : > { %3554 = vst.msk [vmem:[#allocation2 + $0x19] sm:$0x7f] %vm3553_vm2, %v3523_v23  ;;  %3556 = vst.msk [vmem:[#allocation2 + $0x29] sm:$0x7f] %vm3553_vm2, %v3525_v40  ;;  %3654 = vrot.lane.b32.xlu1 %v9496_v32, %s6491_s12  ;;  %4462 = vrot.lane.b32.xlu0 %v4393_v46, %s6495_s15  ;;  %v4991_v40 = vld [vmem:[#allocation3 + $0x31] sm:$0xff] }
 0x666   : > { %4147 = vst.msk [vmem:[#allocation2 + $0x9] sm:$0x7f] %vm4146_vm10, %v9417_v50  ;;  %v9524_v50 = vld [vmem:[#allocation3 + $0x30] sm:$0xff]  ;;  %6292 = vmatprep.subr.bf16.mxu0 %v6291_v20  ;;  %6307 = vmatprep.subr.bf16.mxu1 %v6291_v20  ;;  %vm11488_vm14 = vmmov %vm11476_vm5  ;;  %v4249_v23 = vpop.permute.xlu1 %4248 }
 0x667   : > { %3737 = vst.msk [vmem:[#allocation2 + $0x18] sm:$0xff] %vm11482_vm7, %v9371_v26  ;;  %v6295_v26 = vpack.c.bf16 %v5203_v37, %v5202_v10  ;;  %6294 = vmatpush3.bf16.msra.mxu0 %v6291_v20  ;;  %6312 = vmatpush3.bf16.msra.mxu1 %v6291_v20  ;;  %vm11489_vm7 = vmmov %vm11476_vm5  ;;  %v3551_v63 = vld [vmem:[#allocation3 + $0xe8] sm:$0x7f]  ;;  %v3793_v37 = vld [vmem:[#allocation3 + $0x39] sm:$0x7f] }
 0x668   : > { %3969 = vst.msk [vmem:[#allocation2 + $0x10] sm:$0x1] %vm3967_vm4, %v11478_v22  ;;  %3968 = vst.msk [vmem:[#allocation2] sm:$0x1] %vm3967_vm4, %v11478_v22 }
 0x669   : > { %3557 = vst.msk [vmem:[#allocation2 + $0x31] sm:$0xff] %vm11483_vm12, %v9496_v32  ;;  %6296 = vmatprep.subr.bf16.mxu0 %v6295_v26  ;;  %6308 = vmatprep.subr.bf16.mxu1 %v6295_v26  ;;  %vm11490_vm12 = vmmov %vm11476_vm5  ;;  %v3993_v32 = vld [vmem:[#allocation3 + $0x48] sm:$0x7f] }
 0x66a   : > { %3771 = vst.msk [vmem:[#allocation2 + $0x1f] sm:$0x1] %vm3769_vm1, %v11478_v22  ;;  %4460 = vrot.lane.b32.xlu1 %v4989_v31, %s6495_s15  ;;  %3854 = vrot.lane.b32.xlu0 %v4989_v31, %s6487_s8 }
 0x66b   : > { %3938 = vst.msk [vmem:[#allocation2 + $0x18] sm:$0x7f] %vm10815_vm13, %v9431_v14  ;;  %6298 = vmatpush3.bf16.msra.mxu0 %v6295_v26  ;;  %6313 = vmatpush3.bf16.msra.mxu1 %v6295_v26  ;;  %v5207_v14 = vld [vmem:[%s10666_s4 + $0x38] sm:$0xff] }
 0x66c   : > { %4340 = vst.msk [vmem:[#allocation2 + $0x8] sm:$0xff] %vm4338_vm3, %v4245_v62  ;;  %4339 = vst.msk [vmem:[#allocation2] sm:$0xff] %vm4338_vm3, %v4243_v21  ;;  %v6303_v41 = vpack.c.bf16 %v5207_v14, %v5206_v8  ;;  %6300 = vmatprep.subr.bf16.mxu0 %v6299_v43  ;;  %6309 = vmatprep.subr.bf16.mxu1 %v6299_v43  ;;  %v4992_v62 = vld [vmem:[#allocation3 + $0x39] sm:$0x7f]  ;;  %v4995_v14 = vld [vmem:[#allocation3 + $0x51] sm:$0xff] }
 0x66d   : > { %4372 = vst.msk [vmem:[#allocation2 + $0xf] sm:$0x1] %vm10817_vm9, %v11478_v22  ;;  %v4053_v1 = vpop.permute.xlu0 %4052  ;;  %v3651_v38 = vpop.permute.xlu1 %3650  ;;  %v4796_v8 = vld [vmem:[#allocation3 + $0x58] sm:$0xff] }
 0x66e   : > { %3559 = vst.msk [vmem:[#allocation2 + $0x41] sm:$0xff] %vm11476_vm5, %v9524_v50  ;;  %3573 = vst.msk [vmem:[#allocation2 + $0xb1] sm:$0xff] %vm11476_vm5, %v9589_v13  ;;  %5053 = vrot.lane.b32.xlu1 %v4990_v27, %s6498_s30  ;;  %4671 = vrot.lane.b32.xlu0 %v9524_v50, %s6496_s16 }
 0x66f   : > { %3561 = vst.msk [vmem:[#allocation2 + $0x51] sm:$0xff] %vm11485_vm8, %v9533_v33  ;;  %6302 = vmatpush3.bf16.msra.mxu0 %v6299_v43  ;;  %6314 = vmatpush3.bf16.msra.mxu1 %v6299_v43  ;;  %vm11491_vm8 = vmmov %vm11476_vm5  ;;  %v3995_v43 = vld [vmem:[#allocation3 + $0x58] sm:$0x7f] }
 0x670   : > { %3563 = vst.msk [vmem:[#allocation2 + $0x61] sm:$0xff] %vm11486_vm15, %v9537_v59  ;;  %6304 = vmatprep.subr.bf16.mxu0 %v6303_v41  ;;  %6310 = vmatprep.subr.bf16.mxu1 %v6303_v41  ;;  %vm11492_vm15 = vmmov %vm11476_vm5 }
 0x671   : > { %3565 = vst.msk [vmem:[#allocation2 + $0x71] sm:$0xff] %vm11487_vm6, %v9555_v28  ;;  %vm11493_vm6 = vmmov %vm11476_vm5  ;;  %v4453_v30 = vpop.permute.xlu0 %4452 }
 0x672   : > { %3558 = vst.msk [vmem:[#allocation2 + $0x39] sm:$0x7f] %vm3553_vm2, %v3527_v18  ;;  %3560 = vst.msk [vmem:[#allocation2 + $0x49] sm:$0x7f] %vm3553_vm2, %v3529_v25  ;;  %3856 = vrot.lane.b32.xlu1 %v3791_v7, %s6487_s8  ;;  %4062 = vrot.lane.b32.xlu0 %v3991_v51, %s6492_s13  ;;  %v4399_v25 = vld [vmem:[#allocation3 + $0x59] sm:$0x7f] }
 0x673   : > { %3567 = vst.msk [vmem:[#allocation2 + $0x81] sm:$0xff] %vm11488_vm14, %v9563_v35  ;;  %6306 = vmatpush3.bf16.msra.mxu0 %v6303_v41  ;;  %6315 = vmatpush3.bf16.msra.mxu1 %v6303_v41  ;;  %vm4550_vm14 = vcmask 391488   ;;  %v4457_v55 = vpop.permute.xlu1 %4456  ;;  %v3797_v7 = vld [vmem:[#allocation3 + $0x59] sm:$0x7f]  ;;  %v3997_v51 = vld [vmem:[#allocation3 + $0x68] sm:$0x7f] }
 0x674   : > { %6233 = vmatprep.subr.mxu0 %v5208_v57  ;;  %6311 = vmatprep.subr.mxu1 %v5208_v57  ;;  %3569 = vst.msk [vmem:[#allocation2 + $0x91] sm:$0xff] %vm11489_vm7, %v9574_v53  ;;  %vm11494_vm7 = vmmov %vm11476_vm5  ;;  %vm10821_vm5 = vcmask 450944  }
 0x675   : > { %3562 = vst.msk [vmem:[#allocation2 + $0x59] sm:$0x7f] %vm3553_vm2, %v3531_v60  ;;  %3564 = vst.msk [vmem:[#allocation2 + $0x69] sm:$0x7f] %vm3553_vm2, %v3533_v15  ;;  %v4247_v48 = vpop.permute.xlu0 %4246 }
 0x676   : > { %3571 = vst.msk [vmem:[#allocation2 + $0xa1] sm:$0xff] %vm11490_vm12, %v9581_v52  ;;  %4060 = vrot.lane.b32.xlu1 %v9524_v50, %s6492_s13  ;;  %4855 = vrot.lane.b32.xlu0 %v9524_v50, %s6497_s17  ;;  %vm11495_vm12 = vcmask 130112  }
 0x677   : > { %6234 = vmatpush3.msra.mxu0 %v5208_v57  ;;  %6316 = vmatpush3.msra.mxu1 %v5208_v57  ;;  %3566 = vst.msk [vmem:[#allocation2 + $0x79] sm:$0x7f] %vm3553_vm2, %v3535_v39  ;;  %3568 = vst.msk [vmem:[#allocation2 + $0x89] sm:$0x7f] %vm3553_vm2, %v3537_v34  ;;  %v4666_v4 = vpop.permute.xlu1 %4665 }
 0x678   : > { %3575 = vst.msk [vmem:[#allocation2 + $0xc1] sm:$0xff] %vm11491_vm8, %v9594_v24  ;;  %vm4754_vm8 = vcmask 457088  }
 0x679   : > { %3577 = vst.msk [vmem:[#allocation2 + $0xd1] sm:$0xff] %vm11492_vm15, %v9601_v19  ;;  %vm10818_vm15 = vcmask 458112   ;;  %v4664_v16 = vpop.permute.xlu0 %4663 }
 0x67a   : > { %3570 = vst.msk [vmem:[#allocation2 + $0x99] sm:$0x7f] %vm3553_vm2, %v3539_v11  ;;  %3572 = vst.msk [vmem:[#allocation2 + $0xa9] sm:$0x7f] %vm3553_vm2, %v3541_v2  ;;  %4673 = vrot.lane.b32.xlu1 %v4608_v6, %s6496_s16  ;;  %4256 = vrot.lane.b32.xlu0 %v4792_v58, %s6494_s23 }
 0x67b   : > { %3579 = vst.msk [vmem:[#allocation2 + $0xe1] sm:$0xff] %vm11493_vm6, %v9609_v61  ;;  %v3851_v21 = vpop.permute.xlu1 %3850  ;;  %vm11496_vm6 = vmmov %vm11495_vm12 }
 0x67c   : > { %4149 = vst.msk [vmem:[#allocation2 + $0x19] sm:$0x7f] %vm4146_vm10, %v4055_v5 }
 0x67d   : > { %3581 = vst.msk [vmem:[#allocation2 + $0xf1] sm:$0xff] %vm11494_vm7, %v9617_v0  ;;  %vm4784_vm7 = vcmask 523712  }
 0x67e   : > { %3574 = vst.msk [vmem:[#allocation2 + $0xb9] sm:$0x7f] %vm3553_vm2, %v3543_v3  ;;  %3576 = vst.msk [vmem:[#allocation2 + $0xc9] sm:$0x7f] %vm3553_vm2, %v3545_v42  ;;  %4254 = vrot.lane.b32.xlu1 %v9524_v50, %s6494_s23  ;;  %5055 = vrot.lane.b32.xlu0 %v4991_v40, %s6498_s30  ;;  %v3653_v10 = vpop.permute.xlu0 %3652 }
 0x67f   : > { %4551 = vst.msk [vmem:[#allocation2 + $0x8] sm:$0x7f] %vm4550_vm14, %v4455_v36 }
 0x680   : > { %3578 = vst.msk [vmem:[#allocation2 + $0xd9] sm:$0x7f] %vm3553_vm2, %v3547_v9  ;;  %3580 = vst.msk [vmem:[#allocation2 + $0xe9] sm:$0x7f] %vm3553_vm2, %v3549_v49  ;;  %v4614_v49 = vld [vmem:[#allocation3 + $0x68] sm:$0x7f] }
 0x681   : > { %3582 = vst.msk [vmem:[#allocation2 + $0xf9] sm:$0x7f] %vm3553_vm2, %v3551_v63  ;;  %vm10820_vm2 = vcmask 392512   ;;  %v4798_v63 = vld [vmem:[#allocation3 + $0x68] sm:$0xff] }
 0x682   : > { %4148 = vst.msk [vmem:[#allocation2 + $0x11] sm:$0xff] %vm10816_vm0, %v4053_v1  ;;  %4857 = vrot.lane.b32.xlu1 %v4792_v58, %s6497_s17  ;;  %3660 = vrot.lane.b32.xlu0 %v4792_v58, %s6491_s12  ;;  %v4459_v20 = vpop.permute.xlu0 %4458 }
 0x683   : > { %3738 = vst.msk [vmem:[#allocation2 + $0x20] sm:$0xff] %vm11495_vm12, %v3651_v38  ;;  %vm4970_vm12 = vcmask 582144  }
 0x684   : > { %4342 = vst.msk [vmem:[#allocation2 + $0x18] sm:$0xff] %vm4338_vm3, %v4249_v23  ;;  %4341 = vst.msk [vmem:[#allocation2 + $0x10] sm:$0xff] %vm4338_vm3, %v4247_v48  ;;  %v4997_v23 = vld [vmem:[#allocation3 + $0x61] sm:$0xff] }
 0x685   : > { %4373 = vst.msk [vmem:[#allocation2 + $0x1f] sm:$0x1] %vm10817_vm9, %v11478_v22 }
 0x686   : > { %4549 = vst.msk [vmem:[#allocation2] sm:$0xff] %vm10820_vm2, %v4453_v30  ;;  %3658 = vrot.lane.b32.xlu1 %v9524_v50, %s6491_s12  ;;  %4466 = vrot.lane.b32.xlu0 %v4395_v12, %s6495_s15  ;;  %4552 = vst.msk [vmem:[#allocation2 + $0x10] sm:$0xff] %vm10820_vm2, %v4457_v55  ;;  %v4848_v26 = vpop.permute.xlu0 %4847  ;;  %v4610_v50 = vld [vmem:[#allocation3 + $0x48] sm:$0x7f] }
 0x687   : > { %4586 = vst.msk [vmem:[#allocation2] sm:$0x1] %vm10821_vm5, %v11478_v22  ;;  %4587 = vst.msk [vmem:[#allocation2 + $0x10] sm:$0x1] %vm10821_vm5, %v11478_v22  ;;  %v4401_v12 = vld [vmem:[#allocation3 + $0x69] sm:$0x7f] }
 0x688   : > { %4755 = vst.msk [vmem:[#allocation2 + $0x9] sm:$0x7f] %vm4754_vm8, %v4666_v4 }
 0x689   : > { %4753 = vst.msk [vmem:[#allocation2 + $0x1] sm:$0xff] %vm10818_vm15, %v4664_v16 }
 0x68a   : > { %4464 = vrot.lane.b32.xlu1 %v4991_v40, %s6495_s15  ;;  %3858 = vrot.lane.b32.xlu0 %v4991_v40, %s6487_s8  ;;  %3939 = vst.msk [vmem:[#allocation2 + $0x20] sm:$0xff] %vm10819_vm11, %v3851_v21 }
 0x68b   : > { %3970 = vst.msk [vmem:[#allocation2 + $0x20] sm:$0x1] %vm3967_vm4, %v11478_v22  ;;  %v3853_v44 = vpop.permute.xlu0 %3852 }
 0x68c   : > { %3739 = vst.msk [vmem:[#allocation2 + $0x28] sm:$0xff] %vm11496_vm6, %v3653_v10  ;;  %vm4967_vm6 = vcmask 589312  }
 0x68d   : > { %3772 = vst.msk [vmem:[#allocation2 + $0x2f] sm:$0x1] %vm3769_vm1, %v11478_v22 }
 0x68e   : > { %5057 = vrot.lane.b32.xlu1 %v4992_v62, %s6498_s30  ;;  %4675 = vrot.lane.b32.xlu0 %v9533_v33, %s6496_s16  ;;  %4553 = vst.msk [vmem:[#allocation2 + $0x18] sm:$0x7f] %vm4550_vm14, %v4459_v20 }
 0x68f   : > { %4937 = vst.msk [vmem:[#allocation2] sm:$0xff] %vm4784_vm7, %v4848_v26  ;;  %v4850_v47 = vpop.permute.xlu0 %4849 }
 0x690   : > { %3940 = vst.msk [vmem:[#allocation2 + $0x28] sm:$0x7f] %vm10815_vm13, %v3853_v44  ;;  %vm5138_vm13 = vcmask 588288  }
 0x691   : > { %4938 = vst.msk [vmem:[#allocation2 + $0x8] sm:$0xff] %vm4784_vm7, %v4850_v47  ;;  %v4800_v47 = vld [vmem:[#allocation3 + $0x78] sm:$0xff] }
 0x692   : > { %3860 = vrot.lane.b32.xlu1 %v3793_v37, %s6487_s8  ;;  %4066 = vrot.lane.b32.xlu0 %v3993_v32, %s6492_s13  ;;  %4971 = vst.msk [vmem:[#allocation2 + $0xf] sm:$0x1] %vm4970_vm12, %v11478_v22  ;;  %v3799_v37 = vld [vmem:[#allocation3 + $0x69] sm:$0x7f]  ;;  %v3999_v32 = vld [vmem:[#allocation3 + $0x78] sm:$0x7f] }
 0x696   : > { %4064 = vrot.lane.b32.xlu1 %v9533_v33, %s6492_s13  ;;  %4859 = vrot.lane.b32.xlu0 %v9533_v33, %s6497_s17 }
 0x69a   : > { %4677 = vrot.lane.b32.xlu1 %v4610_v50, %s6496_s16  ;;  %4260 = vrot.lane.b32.xlu0 %v4794_v54, %s6494_s23 }
 0x69e   : > { %4258 = vrot.lane.b32.xlu1 %v9533_v33, %s6494_s23  ;;  %5059 = vrot.lane.b32.xlu0 %v4993_v45, %s6498_s30 }
 0x6a2   : > { %4861 = vrot.lane.b32.xlu1 %v4794_v54, %s6497_s17  ;;  %3664 = vrot.lane.b32.xlu0 %v4794_v54, %s6491_s12 }
 0x6a6   : > { %3662 = vrot.lane.b32.xlu1 %v9533_v33, %s6491_s12  ;;  %4470 = vrot.lane.b32.xlu0 %v4397_v29, %s6495_s15  ;;  %v4612_v33 = vld [vmem:[#allocation3 + $0x58] sm:$0x7f] }
 0x6aa   : > { %4468 = vrot.lane.b32.xlu1 %v4993_v45, %s6495_s15  ;;  %3862 = vrot.lane.b32.xlu0 %v4993_v45, %s6487_s8  ;;  %v4616_v45 = vld [vmem:[#allocation3 + $0x78] sm:$0x7f] }
 0x6ae   : > { %5061 = vrot.lane.b32.xlu1 %v4994_v17, %s6498_s30  ;;  %4679 = vrot.lane.b32.xlu0 %v9537_v59, %s6496_s16 }
 0x6b2   : > { %3864 = vrot.lane.b32.xlu1 %v3795_v56, %s6487_s8  ;;  %4070 = vrot.lane.b32.xlu0 %v3995_v43, %s6492_s13  ;;  %v4999_v56 = vld [vmem:[#allocation3 + $0x71] sm:$0xff] }
 0x6b6   : > { %4068 = vrot.lane.b32.xlu1 %v9537_v59, %s6492_s13  ;;  %4863 = vrot.lane.b32.xlu0 %v9537_v59, %s6497_s17 }
 0x6ba   : > { %4681 = vrot.lane.b32.xlu1 %v4612_v33, %s6496_s16  ;;  %4264 = vrot.lane.b32.xlu0 %v4796_v8, %s6494_s23 }
 0x6be   : > { %4262 = vrot.lane.b32.xlu1 %v9537_v59, %s6494_s23  ;;  %5063 = vrot.lane.b32.xlu0 %v4995_v14, %s6498_s30 }
 0x6bf   : > { %v4668_v41 = vpop.permute.xlu1 %4667  ;;  %v4057_v18 = vpop.permute.xlu0 %4056 }
 0x6c0   : > { %4756 = vst.msk [vmem:[#allocation2 + $0x11] sm:$0xff] %vm10818_vm15, %v4668_v41  ;;  %v4403_v41 = vld [vmem:[#allocation3 + $0x79] sm:$0x7f] }
 0x6c1   : > { %4150 = vst.msk [vmem:[#allocation2 + $0x21] sm:$0xff] %vm10816_vm0, %v4057_v18  ;;  %vm5209_vm0 = vcmask 588800  }
 0x6c2   : > { %4865 = vrot.lane.b32.xlu1 %v4796_v8, %s6497_s17  ;;  %3668 = vrot.lane.b32.xlu0 %v4796_v8, %s6491_s12 }
 0x6c3   : > { %v5048_v31 = vpop.permute.xlu1 %5047  ;;  %v4670_v57 = vpop.permute.xlu0 %4669 }
 0x6c4   : > { %5137 = vst.msk [vmem:[#allocation2] sm:$0xff] %vm4967_vm6, %v5048_v31 }
 0x6c5   : > { %4757 = vst.msk [vmem:[#allocation2 + $0x19] sm:$0x7f] %vm4754_vm8, %v4670_v57 }
 0x6c6   : > { %3666 = vrot.lane.b32.xlu1 %v9537_v59, %s6491_s12  ;;  %4474 = vrot.lane.b32.xlu0 %v4399_v25, %s6495_s15  ;;  %v4996_v59 = vld [vmem:[#allocation3 + $0x59] sm:$0x7f] }
 0x6c7   : > { %v4059_v60 = vpop.permute.xlu1 %4058  ;;  %v5050_v15 = vpop.permute.xlu0 %5049 }
 0x6c8   : > { %4151 = vst.msk [vmem:[#allocation2 + $0x29] sm:$0x7f] %vm4146_vm10, %v4059_v60 }
 0x6c9   : > { %5139 = vst.msk [vmem:[#allocation2 + $0x8] sm:$0x7f] %vm5138_vm13, %v5050_v15 }
 0x6ca   : > { %4472 = vrot.lane.b32.xlu1 %v4995_v14, %s6495_s15  ;;  %3866 = vrot.lane.b32.xlu0 %v4995_v14, %s6487_s8 }
 0x6cb   : > { %v4852_v46 = vpop.permute.xlu1 %4851  ;;  %v5168_v39 = vld [vmem:[#allocation2] sm:$0xff]  ;;  %v4253_v34 = vpop.permute.xlu0 %4252 }
 0x6cc   : > { %4939 = vst.msk [vmem:[#allocation2 + $0x10] sm:$0xff] %vm4784_vm7, %v4852_v46  ;;  %6235 = vmatprep.mubr.msk.f32.mxu0 %vm5209_vm0, %v5168_v39  ;;  %v3801_v39 = vld [vmem:[#allocation3 + $0x79] sm:$0x7f] }
 0x6cd   : > { %4344 = vst.msk [vmem:[#allocation2 + $0x28] sm:$0xff] %vm4338_vm3, %v4253_v34  ;;  %v4001_v34 = vld [vmem:[#allocation3 + $0x88] sm:$0x7f] }
 0x6ce   : > { %5065 = vrot.lane.b32.xlu1 %v4996_v59, %s6498_s30  ;;  %4374 = vst.msk [vmem:[#allocation2 + $0x2f] sm:$0x1] %vm10817_vm9, %v11478_v22  ;;  %4683 = vrot.lane.b32.xlu0 %v9555_v28, %s6496_s16  ;;  %vm11497_vm9 = vcmask 130112  }
 0x6cf   : > { %v4251_v27 = vpop.permute.xlu1 %4250  ;;  %v5052_v11 = vpop.permute.xlu0 %5051 }
 0x6d0   : > { %v5169_v2 = vld [vmem:[#allocation2 + $0x8] sm:$0xff]  ;;  %4343 = vst.msk [vmem:[#allocation2 + $0x20] sm:$0xff] %vm4338_vm3, %v4251_v27 }
 0x6d1   : > { %5140 = vst.msk [vmem:[#allocation2 + $0x10] sm:$0xff] %vm4967_vm6, %v5052_v11  ;;  %6236 = vmatmul.mubr.msk.f32.vlgmr.msra.gmra.mrb[32].mxu0 %vm5209_vm0, %v5169_v2 }
 0x6d2   : > { %3868 = vrot.lane.b32.xlu1 %v3797_v7, %s6487_s8  ;;  %4074 = vrot.lane.b32.xlu0 %v3997_v51, %s6492_s13  ;;  %v4618_v51 = vld [vmem:[#allocation3 + $0x88] sm:$0x7f] }
 0x6d3   : > { %v4854_v5 = vpop.permute.xlu1 %4853  ;;  %v3657_v3 = vpop.permute.xlu0 %3656 }
 0x6d4   : > { %4940 = vst.msk [vmem:[#allocation2 + $0x18] sm:$0xff] %vm4784_vm7, %v4854_v5  ;;  %v4802_v5 = vld [vmem:[#allocation3 + $0x88] sm:$0xff] }
 0x6d5   : > { %3741 = vst.msk [vmem:[#allocation2 + $0x38] sm:$0xff] %vm11497_vm9, %v3657_v3 }
 0x6d6   : > { %4972 = vst.msk [vmem:[#allocation2 + $0x1f] sm:$0x1] %vm4970_vm12, %v11478_v22  ;;  %4072 = vrot.lane.b32.xlu1 %v9555_v28, %s6492_s13  ;;  %4867 = vrot.lane.b32.xlu0 %v9555_v28, %s6497_s17 }
 0x6d7   : > { %3773 = vst.msk [vmem:[#allocation2 + $0x3f] sm:$0x1] %vm3769_vm1, %v11478_v22  ;;  %v3655_v36 = vpop.permute.xlu1 %3654  ;;  %v4463_v42 = vpop.permute.xlu0 %4462 }
 0x6d8   : > { %v5170_v9 = vld [vmem:[#allocation2 + $0x10] sm:$0xff]  ;;  %4555 = vst.msk [vmem:[#allocation2 + $0x28] sm:$0x7f] %vm4550_vm14, %v4463_v42  ;;  %v5001_v42 = vld [vmem:[#allocation3 + $0x81] sm:$0xff] }
 0x6d9   : > { %6238 = vmatprep.mubr.msk.f32.mxu1 %vm5209_vm0, %v5170_v9  ;;  %3740 = vst.msk [vmem:[#allocation2 + $0x30] sm:$0xff] %vm11497_vm9, %v3655_v36  ;;  %vm11498_vm9 = vcmask 194688  }
 0x6da   : > { %4685 = vrot.lane.b32.xlu1 %v4614_v49, %s6496_s16  ;;  %4268 = vrot.lane.b32.xlu0 %v4798_v63, %s6494_s23 }
 0x6dc   : > { %v4461_v6 = vpop.permute.xlu1 %4460  ;;  %v3855_v58 = vpop.permute.xlu0 %3854 }
 0x6dd   : > { %4554 = vst.msk [vmem:[#allocation2 + $0x20] sm:$0xff] %vm10820_vm2, %v4461_v6 }
 0x6de   : > { %3941 = vst.msk [vmem:[#allocation2 + $0x30] sm:$0xff] %vm10819_vm11, %v3855_v58  ;;  %4266 = vrot.lane.b32.xlu1 %v9555_v28, %s6494_s23  ;;  %5067 = vrot.lane.b32.xlu0 %v4997_v23, %s6498_s30  ;;  %v4405_v58 = vld [vmem:[#allocation3 + $0x89] sm:$0x7f] }
 0x6df   : > { %4588 = vst.msk [vmem:[#allocation2 + $0x20] sm:$0x1] %vm10821_vm5, %v11478_v22 }
 0x6e0   : > { %3971 = vst.msk [vmem:[#allocation2 + $0x30] sm:$0x1] %vm3967_vm4, %v11478_v22  ;;  %v5054_v40 = vpop.permute.xlu1 %5053  ;;  %v4672_v1 = vpop.permute.xlu0 %4671 }
 0x6e1   : > { %5141 = vst.msk [vmem:[#allocation2 + $0x18] sm:$0x7f] %vm5138_vm13, %v5054_v40 }
 0x6e2   : > { %4758 = vst.msk [vmem:[#allocation2 + $0x21] sm:$0xff] %vm10818_vm15, %v4672_v1  ;;  %4869 = vrot.lane.b32.xlu1 %v4798_v63, %s6497_s17  ;;  %3672 = vrot.lane.b32.xlu0 %v4798_v63, %s6491_s12  ;;  %vm11499_vm15 = vcmask 261312  }
 0x6e4   : > { %v3857_v38 = vpop.permute.xlu1 %3856  ;;  %v4063_v30 = vpop.permute.xlu0 %4062 }
 0x6e5   : > { %3942 = vst.msk [vmem:[#allocation2 + $0x38] sm:$0x7f] %vm11498_vm9, %v3857_v38  ;;  %vm11500_vm9 = vcmask 385344  }
 0x6e6   : > { %3670 = vrot.lane.b32.xlu1 %v9555_v28, %s6491_s12  ;;  %4153 = vst.msk [vmem:[#allocation2 + $0x39] sm:$0x7f] %vm4146_vm10, %v4063_v30  ;;  %4478 = vrot.lane.b32.xlu0 %v4401_v12, %s6495_s15  ;;  %v4998_v28 = vld [vmem:[#allocation3 + $0x69] sm:$0x7f] }
 0x6e8   : > { %v4061_v55 = vpop.permute.xlu1 %4060  ;;  %v5171_v48 = vld [vmem:[#allocation2 + $0x18] sm:$0xff]  ;;  %v4856_v4 = vpop.permute.xlu0 %4855 }
 0x6e9   : > { %4152 = vst.msk [vmem:[#allocation2 + $0x31] sm:$0xff] %vm11499_vm15, %v4061_v55  ;;  %6239 = vmatmul.mubr.msk.f32.vlgmr.msra.gmra.mrb[0].mxu1 %vm5209_vm0, %v5171_v48  ;;  %vm11501_vm15 = vcmask 130112   ;;  %v3803_v48 = vld [vmem:[#allocation3 + $0x89] sm:$0x7f] }
 0x6ea   : > { %4941 = vst.msk [vmem:[#allocation2 + $0x20] sm:$0xff] %vm4784_vm7, %v4856_v4  ;;  %4476 = vrot.lane.b32.xlu1 %v4997_v23, %s6495_s15  ;;  %3870 = vrot.lane.b32.xlu0 %v4997_v23, %s6487_s8  ;;  %v4003_v4 = vld [vmem:[#allocation3 + $0x98] sm:$0x7f] }
 0x6ec   : > { %v4674_v16 = vpop.permute.xlu1 %4673  ;;  %v4257_v62 = vpop.permute.xlu0 %4256 }
 0x6ed   : > { %4759 = vst.msk [vmem:[#allocation2 + $0x29] sm:$0x7f] %vm4754_vm8, %v4674_v16 }
 0x6ee   : > { %4346 = vst.msk [vmem:[#allocation2 + $0x38] sm:$0xff] %vm4338_vm3, %v4257_v62  ;;  %5069 = vrot.lane.b32.xlu1 %v4998_v28, %s6498_s30  ;;  %4687 = vrot.lane.b32.xlu0 %v9563_v35, %s6496_s16 }
 0x6ef   : > { %4375 = vst.msk [vmem:[#allocation2 + $0x3f] sm:$0x1] %vm11500_vm9, %v11478_v22  ;;  %vm11502_vm9 = vmmov %vm11501_vm15 }
 0x6f0   : > { %v4255_v21 = vpop.permute.xlu1 %4254  ;;  %v5056_v10 = vpop.permute.xlu0 %5055 }
 0x6f1   : > { %4345 = vst.msk [vmem:[#allocation2 + $0x30] sm:$0xff] %vm4338_vm3, %v4255_v21 }
 0x6f2   : > { %5142 = vst.msk [vmem:[#allocation2 + $0x20] sm:$0xff] %vm4967_vm6, %v5056_v10  ;;  %3872 = vrot.lane.b32.xlu1 %v3799_v37, %s6487_s8  ;;  %4078 = vrot.lane.b32.xlu0 %v3999_v32, %s6492_s13  ;;  %v4620_v37 = vld [vmem:[#allocation3 + $0x98] sm:$0x7f] }
 0x6f3   : > { %v4804_v32 = vld [vmem:[#allocation3 + $0x98] sm:$0xff] }
 0x6f4   : > { %v4858_v20 = vpop.permute.xlu1 %4857  ;;  %v3661_v26 = vpop.permute.xlu0 %3660 }
 0x6f5   : > { %4942 = vst.msk [vmem:[#allocation2 + $0x28] sm:$0xff] %vm4784_vm7, %v4858_v20 }
 0x6f6   : > { %3743 = vst.msk [vmem:[#allocation2 + $0x48] sm:$0xff] %vm11501_vm15, %v3661_v26  ;;  %4076 = vrot.lane.b32.xlu1 %v9563_v35, %s6492_s13  ;;  %4871 = vrot.lane.b32.xlu0 %v9563_v35, %s6497_s17  ;;  %vm11503_vm15 = vcmask 458112  }
 0x6f7   : > { %4973 = vst.msk [vmem:[#allocation2 + $0x2f] sm:$0x1] %vm4970_vm12, %v11478_v22 }
 0x6f8   : > { %3774 = vst.msk [vmem:[#allocation2 + $0x4f] sm:$0x1] %vm3769_vm1, %v11478_v22  ;;  %v3659_v50 = vpop.permute.xlu1 %3658  ;;  %v4467_v54 = vpop.permute.xlu0 %4466 }
 0x6f9   : > { %v5172_v44 = vld [vmem:[#allocation2 + $0x20] sm:$0xff]  ;;  %4557 = vst.msk [vmem:[#allocation2 + $0x38] sm:$0x7f] %vm4550_vm14, %v4467_v54 }
 0x6fa   : > { %6241 = vmatprep.mubr.msk.f32.mxu1 %vm5209_vm0, %v5172_v44  ;;  %3742 = vst.msk [vmem:[#allocation2 + $0x40] sm:$0xff] %vm11502_vm9, %v3659_v50  ;;  %4689 = vrot.lane.b32.xlu1 %v4616_v45, %s6496_s16  ;;  %vm11504_vm9 = vcmask 194688   ;;  %v5003_v50 = vld [vmem:[#allocation3 + $0x91] sm:$0xff] }
 0x6fb   : > { %4272 = vrot.lane.b32.xlu0 %v4800_v47, %s6494_s23 }
 0x6fc   : > { %v4465_v29 = vpop.permute.xlu1 %4464  ;;  %v3859_v17 = vpop.permute.xlu0 %3858 }
 0x6fd   : > { %4556 = vst.msk [vmem:[#allocation2 + $0x30] sm:$0xff] %vm10820_vm2, %v4465_v29  ;;  %v4407_v29 = vld [vmem:[#allocation3 + $0x99] sm:$0x7f] }
 0x6fe   : > { %3943 = vst.msk [vmem:[#allocation2 + $0x40] sm:$0xff] %vm10819_vm11, %v3859_v17  ;;  %4270 = vrot.lane.b32.xlu1 %v9563_v35, %s6494_s23 }
 0x6ff   : > { %4589 = vst.msk [vmem:[#allocation2 + $0x30] sm:$0x1] %vm10821_vm5, %v11478_v22  ;;  %5071 = vrot.lane.b32.xlu0 %v4999_v56, %s6498_s30 }
 0x700   : > { %3972 = vst.msk [vmem:[#allocation2 + $0x40] sm:$0x1] %vm3967_vm4, %v11478_v22  ;;  %v5058_v43 = vpop.permute.xlu1 %5057  ;;  %v4676_v33 = vpop.permute.xlu0 %4675 }
 0x701   : > { %5143 = vst.msk [vmem:[#allocation2 + $0x28] sm:$0x7f] %vm5138_vm13, %v5058_v43 }
 0x702   : > { %4760 = vst.msk [vmem:[#allocation2 + $0x31] sm:$0xff] %vm11503_vm15, %v4676_v33  ;;  %4873 = vrot.lane.b32.xlu1 %v4800_v47, %s6497_s17  ;;  %vm11505_vm15 = vcmask 261312  }
 0x703   : > { %3676 = vrot.lane.b32.xlu0 %v4800_v47, %s6491_s12 }
 0x704   : > { %v3861_v8 = vpop.permute.xlu1 %3860  ;;  %v4067_v14 = vpop.permute.xlu0 %4066 }
 0x705   : > { %3944 = vst.msk [vmem:[#allocation2 + $0x48] sm:$0x7f] %vm11504_vm9, %v3861_v8  ;;  %vm11506_vm9 = vcmask 385344  }
 0x706   : > { %3674 = vrot.lane.b32.xlu1 %v9563_v35, %s6491_s12  ;;  %4155 = vst.msk [vmem:[#allocation2 + $0x49] sm:$0x7f] %vm4146_vm10, %v4067_v14  ;;  %v5000_v35 = vld [vmem:[#allocation3 + $0x79] sm:$0x7f] }
 0x707   : > { %4482 = vrot.lane.b32.xlu0 %v4403_v41, %s6495_s15 }
 0x708   : > { %v4065_v18 = vpop.permute.xlu1 %4064  ;;  %v5173_v31 = vld [vmem:[#allocation2 + $0x28] sm:$0xff]  ;;  %v4860_v57 = vpop.permute.xlu0 %4859 }
 0x709   : > { %4154 = vst.msk [vmem:[#allocation2 + $0x41] sm:$0xff] %vm11505_vm15, %v4065_v18  ;;  %6242 = vmatmul.mubr.msk.f32.gmra.mrb[2].mxu1 %vm5209_vm0, %v5173_v31  ;;  %vm11507_vm15 = vcmask 130112   ;;  %v3805_v18 = vld [vmem:[#allocation3 + $0x99] sm:$0x7f]  ;;  %v4005_v31 = vld [vmem:[#allocation3 + $0xa8] sm:$0x7f] }
 0x70a   : > { %4943 = vst.msk [vmem:[#allocation2 + $0x30] sm:$0xff] %vm4784_vm7, %v4860_v57  ;;  %4480 = vrot.lane.b32.xlu1 %v4999_v56, %s6495_s15 }
 0x70b   : > { %3874 = vrot.lane.b32.xlu0 %v4999_v56, %s6487_s8 }
 0x70c   : > { %v4678_v25 = vpop.permute.xlu1 %4677  ;;  %v4261_v60 = vpop.permute.xlu0 %4260 }
 0x70d   : > { %4761 = vst.msk [vmem:[#allocation2 + $0x39] sm:$0x7f] %vm4754_vm8, %v4678_v25 }
 0x70e   : > { %4348 = vst.msk [vmem:[#allocation2 + $0x48] sm:$0xff] %vm4338_vm3, %v4261_v60  ;;  %5073 = vrot.lane.b32.xlu1 %v5000_v35, %s6498_s30 }
 0x70f   : > { %4376 = vst.msk [vmem:[#allocation2 + $0x4f] sm:$0x1] %vm11506_vm9, %v11478_v22  ;;  %4691 = vrot.lane.b32.xlu0 %v9574_v53, %s6496_s16  ;;  %vm11508_vm9 = vmmov %vm11507_vm15 }
 0x710   : > { %v4259_v15 = vpop.permute.xlu1 %4258  ;;  %v5060_v46 = vpop.permute.xlu0 %5059 }
 0x711   : > { %4347 = vst.msk [vmem:[#allocation2 + $0x40] sm:$0xff] %vm4338_vm3, %v4259_v15 }
 0x712   : > { %5144 = vst.msk [vmem:[#allocation2 + $0x30] sm:$0xff] %vm4967_vm6, %v5060_v46  ;;  %3876 = vrot.lane.b32.xlu1 %v3801_v39, %s6487_s8  ;;  %v4622_v46 = vld [vmem:[#allocation3 + $0xa8] sm:$0x7f] }
 0x713   : > { %4082 = vrot.lane.b32.xlu0 %v4001_v34, %s6492_s13  ;;  %v4806_v39 = vld [vmem:[#allocation3 + $0xa8] sm:$0xff] }
 0x714   : > { %v4862_v59 = vpop.permute.xlu1 %4861  ;;  %v3665_v27 = vpop.permute.xlu0 %3664 }
 0x715   : > { %4944 = vst.msk [vmem:[#allocation2 + $0x38] sm:$0xff] %vm4784_vm7, %v4862_v59 }
 0x716   : > { %3745 = vst.msk [vmem:[#allocation2 + $0x58] sm:$0xff] %vm11507_vm15, %v3665_v27  ;;  %4080 = vrot.lane.b32.xlu1 %v9574_v53, %s6492_s13  ;;  %vm11509_vm15 = vcmask 458112   ;;  %v5005_v27 = vld [vmem:[#allocation3 + $0xa1] sm:$0xff] }
 0x717   : > { %4974 = vst.msk [vmem:[#allocation2 + $0x3f] sm:$0x1] %vm4970_vm12, %v11478_v22  ;;  %4875 = vrot.lane.b32.xlu0 %v9574_v53, %s6497_s17 }
 0x718   : > { %3775 = vst.msk [vmem:[#allocation2 + $0x5f] sm:$0x1] %vm3769_vm1, %v11478_v22  ;;  %v3663_v11 = vpop.permute.xlu1 %3662  ;;  %v4471_v2 = vpop.permute.xlu0 %4470 }
 0x719   : > { %v5174_v7 = vld [vmem:[#allocation2 + $0x30] sm:$0xff]  ;;  %4559 = vst.msk [vmem:[#allocation2 + $0x48] sm:$0x7f] %vm4550_vm14, %v4471_v2 }
 0x71a   : > { %6244 = vmatprep.mubr.msk.f32.mxu1 %vm5209_vm0, %v5174_v7  ;;  %3744 = vst.msk [vmem:[#allocation2 + $0x50] sm:$0xff] %vm11508_vm9, %v3663_v11  ;;  %4693 = vrot.lane.b32.xlu1 %v4618_v51, %s6496_s16  ;;  %vm11510_vm9 = vcmask 194688  }
 0x71b   : > { %4276 = vrot.lane.b32.xlu0 %v4802_v5, %s6494_s23 }
 0x71c   : > { %v4469_v3 = vpop.permute.xlu1 %4468  ;;  %v3863_v36 = vpop.permute.xlu0 %3862 }
 0x71d   : > { %4558 = vst.msk [vmem:[#allocation2 + $0x40] sm:$0xff] %vm10820_vm2, %v4469_v3 }
 0x71e   : > { %3945 = vst.msk [vmem:[#allocation2 + $0x50] sm:$0xff] %vm10819_vm11, %v3863_v36  ;;  %4274 = vrot.lane.b32.xlu1 %v9574_v53, %s6494_s23 }
 0x71f   : > { %4590 = vst.msk [vmem:[#allocation2 + $0x40] sm:$0x1] %vm10821_vm5, %v11478_v22  ;;  %5075 = vrot.lane.b32.xlu0 %v5001_v42, %s6498_s30 }
 0x720   : > { %3973 = vst.msk [vmem:[#allocation2 + $0x50] sm:$0x1] %vm3967_vm4, %v11478_v22  ;;  %v5062_v9 = vpop.permute.xlu1 %5061  ;;  %v4680_v49 = vpop.permute.xlu0 %4679 }
 0x721   : > { %5145 = vst.msk [vmem:[#allocation2 + $0x38] sm:$0x7f] %vm5138_vm13, %v5062_v9 }
 0x722   : > { %4762 = vst.msk [vmem:[#allocation2 + $0x41] sm:$0xff] %vm11509_vm15, %v4680_v49  ;;  %4877 = vrot.lane.b32.xlu1 %v4802_v5, %s6497_s17  ;;  %vm11511_vm15 = vcmask 261312  }
 0x723   : > { %3680 = vrot.lane.b32.xlu0 %v4802_v5, %s6491_s12  ;;  %v4409_v5 = vld [vmem:[#allocation3 + $0xa9] sm:$0x7f] }
 0x724   : > { %v3865_v63 = vpop.permute.xlu1 %3864  ;;  %v4071_v6 = vpop.permute.xlu0 %4070 }
 0x725   : > { %3946 = vst.msk [vmem:[#allocation2 + $0x58] sm:$0x7f] %vm11510_vm9, %v3865_v63  ;;  %vm11512_vm9 = vcmask 385344  }
 0x726   : > { %3678 = vrot.lane.b32.xlu1 %v9574_v53, %s6491_s12  ;;  %4157 = vst.msk [vmem:[#allocation2 + $0x59] sm:$0x7f] %vm4146_vm10, %v4071_v6  ;;  %v5002_v53 = vld [vmem:[#allocation3 + $0x89] sm:$0x7f] }
 0x727   : > { %4486 = vrot.lane.b32.xlu0 %v4405_v58, %s6495_s15  ;;  %v3807_v58 = vld [vmem:[#allocation3 + $0xa9] sm:$0x7f] }
 0x728   : > { %v4069_v23 = vpop.permute.xlu1 %4068  ;;  %v5175_v40 = vld [vmem:[#allocation2 + $0x38] sm:$0xff]  ;;  %v4864_v1 = vpop.permute.xlu0 %4863 }
 0x729   : > { %4156 = vst.msk [vmem:[#allocation2 + $0x51] sm:$0xff] %vm11511_vm15, %v4069_v23  ;;  %6245 = vmatmul.mubr.msk.f32.gmra.mrb[4].mxu1 %vm5209_vm0, %v5175_v40  ;;  %vm11513_vm15 = vcmask 130112   ;;  %v4007_v23 = vld [vmem:[#allocation3 + $0xb8] sm:$0x7f] }
 0x72a   : > { %4945 = vst.msk [vmem:[#allocation2 + $0x40] sm:$0xff] %vm4784_vm7, %v4864_v1  ;;  %4484 = vrot.lane.b32.xlu1 %v5001_v42, %s6495_s15 }
 0x72b   : > { %3878 = vrot.lane.b32.xlu0 %v5001_v42, %s6487_s8 }
 0x72c   : > { %v4682_v38 = vpop.permute.xlu1 %4681  ;;  %v4265_v30 = vpop.permute.xlu0 %4264 }
 0x72d   : > { %4763 = vst.msk [vmem:[#allocation2 + $0x49] sm:$0x7f] %vm4754_vm8, %v4682_v38 }
 0x72e   : > { %4350 = vst.msk [vmem:[#allocation2 + $0x58] sm:$0xff] %vm4338_vm3, %v4265_v30  ;;  %5077 = vrot.lane.b32.xlu1 %v5002_v53, %s6498_s30 }
 0x72f   : > { %4377 = vst.msk [vmem:[#allocation2 + $0x5f] sm:$0x1] %vm11512_vm9, %v11478_v22  ;;  %4695 = vrot.lane.b32.xlu0 %v9581_v52, %s6496_s16  ;;  %vm11514_vm9 = vmmov %vm11513_vm15 }
 0x730   : > { %v4263_v12 = vpop.permute.xlu1 %4262  ;;  %v5064_v55 = vpop.permute.xlu0 %5063 }
 0x731   : > { %4349 = vst.msk [vmem:[#allocation2 + $0x50] sm:$0xff] %vm4338_vm3, %v4263_v12  ;;  %v4624_v12 = vld [vmem:[#allocation3 + $0xb8] sm:$0x7f] }
 0x732   : > { %5146 = vst.msk [vmem:[#allocation2 + $0x40] sm:$0xff] %vm4967_vm6, %v5064_v55  ;;  %3880 = vrot.lane.b32.xlu1 %v3803_v48, %s6487_s8  ;;  %v4808_v55 = vld [vmem:[#allocation3 + $0xb8] sm:$0xff] }
 0x733   : > { %4086 = vrot.lane.b32.xlu0 %v4003_v4, %s6492_s13 }
 0x734   : > { %v4866_v16 = vpop.permute.xlu1 %4865  ;;  %v3669_v62 = vpop.permute.xlu0 %3668 }
 0x735   : > { %4946 = vst.msk [vmem:[#allocation2 + $0x48] sm:$0xff] %vm4784_vm7, %v4866_v16  ;;  %v5007_v16 = vld [vmem:[#allocation3 + $0xb1] sm:$0xff] }
 0x736   : > { %3747 = vst.msk [vmem:[#allocation2 + $0x68] sm:$0xff] %vm11513_vm15, %v3669_v62  ;;  %4084 = vrot.lane.b32.xlu1 %v9581_v52, %s6492_s13  ;;  %vm11515_vm15 = vcmask 458112  }
 0x737   : > { %4975 = vst.msk [vmem:[#allocation2 + $0x4f] sm:$0x1] %vm4970_vm12, %v11478_v22  ;;  %4879 = vrot.lane.b32.xlu0 %v9581_v52, %s6497_s17 }
 0x738   : > { %3776 = vst.msk [vmem:[#allocation2 + $0x6f] sm:$0x1] %vm3769_vm1, %v11478_v22  ;;  %v3667_v28 = vpop.permute.xlu1 %3666  ;;  %v4475_v21 = vpop.permute.xlu0 %4474 }
 0x739   : > { %v5176_v10 = vld [vmem:[#allocation2 + $0x40] sm:$0xff]  ;;  %4561 = vst.msk [vmem:[#allocation2 + $0x58] sm:$0x7f] %vm4550_vm14, %v4475_v21 }
 0x73a   : > { %6247 = vmatprep.mubr.msk.f32.mxu1 %vm5209_vm0, %v5176_v10  ;;  %3746 = vst.msk [vmem:[#allocation2 + $0x60] sm:$0xff] %vm11514_vm9, %v3667_v28  ;;  %4697 = vrot.lane.b32.xlu1 %v4620_v37, %s6496_s16  ;;  %vm11516_vm9 = vcmask 194688   ;;  %v4411_v37 = vld [vmem:[#allocation3 + $0xb9] sm:$0x7f] }
 0x73b   : > { %4280 = vrot.lane.b32.xlu0 %v4804_v32, %s6494_s23 }
 0x73c   : > { %v4473_v20 = vpop.permute.xlu1 %4472  ;;  %v3867_v26 = vpop.permute.xlu0 %3866 }
 0x73d   : > { %4560 = vst.msk [vmem:[#allocation2 + $0x50] sm:$0xff] %vm10820_vm2, %v4473_v20 }
 0x73e   : > { %3947 = vst.msk [vmem:[#allocation2 + $0x60] sm:$0xff] %vm10819_vm11, %v3867_v26  ;;  %4278 = vrot.lane.b32.xlu1 %v9581_v52, %s6494_s23 }
 0x73f   : > { %4591 = vst.msk [vmem:[#allocation2 + $0x50] sm:$0x1] %vm10821_vm5, %v11478_v22  ;;  %5079 = vrot.lane.b32.xlu0 %v5003_v50, %s6498_s30 }
 0x740   : > { %3974 = vst.msk [vmem:[#allocation2 + $0x60] sm:$0x1] %vm3967_vm4, %v11478_v22  ;;  %v5066_v54 = vpop.permute.xlu1 %5065  ;;  %v4684_v44 = vpop.permute.xlu0 %4683 }
 0x741   : > { %5147 = vst.msk [vmem:[#allocation2 + $0x48] sm:$0x7f] %vm5138_vm13, %v5066_v54 }
 0x742   : > { %4764 = vst.msk [vmem:[#allocation2 + $0x51] sm:$0xff] %vm11515_vm15, %v4684_v44  ;;  %4881 = vrot.lane.b32.xlu1 %v4804_v32, %s6497_s17  ;;  %vm11517_vm15 = vcmask 261312  }
 0x743   : > { %3684 = vrot.lane.b32.xlu0 %v4804_v32, %s6491_s12 }
 0x744   : > { %v3869_v45 = vpop.permute.xlu1 %3868  ;;  %v4075_v47 = vpop.permute.xlu0 %4074 }
 0x745   : > { %3948 = vst.msk [vmem:[#allocation2 + $0x68] sm:$0x7f] %vm11516_vm9, %v3869_v45  ;;  %vm11518_vm9 = vcmask 385344  }
 0x746   : > { %3682 = vrot.lane.b32.xlu1 %v9581_v52, %s6491_s12  ;;  %4159 = vst.msk [vmem:[#allocation2 + $0x69] sm:$0x7f] %vm4146_vm10, %v4075_v47  ;;  %v5004_v52 = vld [vmem:[#allocation3 + $0x99] sm:$0x7f] }
 0x747   : > { %4490 = vrot.lane.b32.xlu0 %v4407_v29, %s6495_s15  ;;  %v3809_v47 = vld [vmem:[#allocation3 + $0xb9] sm:$0x7f]  ;;  %v4009_v29 = vld [vmem:[#allocation3 + $0xc8] sm:$0x7f] }
 0x748   : > { %v4073_v17 = vpop.permute.xlu1 %4072  ;;  %v5177_v56 = vld [vmem:[#allocation2 + $0x48] sm:$0xff]  ;;  %v4868_v43 = vpop.permute.xlu0 %4867 }
 0x749   : > { %4158 = vst.msk [vmem:[#allocation2 + $0x61] sm:$0xff] %vm11517_vm15, %v4073_v17  ;;  %6248 = vmatmul.mubr.msk.f32.gmra.mrb[6].mxu1 %vm5209_vm0, %v5177_v56  ;;  %vm11519_vm15 = vcmask 130112  }
 0x74a   : > { %4947 = vst.msk [vmem:[#allocation2 + $0x50] sm:$0xff] %vm4784_vm7, %v4868_v43  ;;  %4488 = vrot.lane.b32.xlu1 %v5003_v50, %s6495_s15 }
 0x74b   : > { %3882 = vrot.lane.b32.xlu0 %v5003_v50, %s6487_s8 }
 0x74c   : > { %v4686_v33 = vpop.permute.xlu1 %4685  ;;  %v4269_v8 = vpop.permute.xlu0 %4268 }
 0x74d   : > { %4765 = vst.msk [vmem:[#allocation2 + $0x59] sm:$0x7f] %vm4754_vm8, %v4686_v33 }
 0x74e   : > { %4352 = vst.msk [vmem:[#allocation2 + $0x68] sm:$0xff] %vm4338_vm3, %v4269_v8  ;;  %5081 = vrot.lane.b32.xlu1 %v5004_v52, %s6498_s30  ;;  %v4626_v52 = vld [vmem:[#allocation3 + $0xc8] sm:$0x7f] }
 0x74f   : > { %4378 = vst.msk [vmem:[#allocation2 + $0x6f] sm:$0x1] %vm11518_vm9, %v11478_v22  ;;  %4699 = vrot.lane.b32.xlu0 %v9589_v13, %s6496_s16  ;;  %vm11520_vm9 = vmmov %vm11519_vm15 }
 0x750   : > { %v4267_v14 = vpop.permute.xlu1 %4266  ;;  %v5068_v41 = vpop.permute.xlu0 %5067 }
 0x751   : > { %4351 = vst.msk [vmem:[#allocation2 + $0x60] sm:$0xff] %vm4338_vm3, %v4267_v14  ;;  %v4810_v14 = vld [vmem:[#allocation3 + $0xc8] sm:$0xff] }
 0x752   : > { %5148 = vst.msk [vmem:[#allocation2 + $0x50] sm:$0xff] %vm4967_vm6, %v5068_v41  ;;  %3884 = vrot.lane.b32.xlu1 %v3805_v18, %s6487_s8 }
 0x753   : > { %4090 = vrot.lane.b32.xlu0 %v4005_v31, %s6492_s13  ;;  %v5009_v31 = vld [vmem:[#allocation3 + $0xc1] sm:$0xff] }
 0x754   : > { %v4870_v57 = vpop.permute.xlu1 %4869  ;;  %v3673_v25 = vpop.permute.xlu0 %3672 }
 0x755   : > { %4948 = vst.msk [vmem:[#allocation2 + $0x58] sm:$0xff] %vm4784_vm7, %v4870_v57 }
 0x756   : > { %3749 = vst.msk [vmem:[#allocation2 + $0x78] sm:$0xff] %vm11519_vm15, %v3673_v25  ;;  %4088 = vrot.lane.b32.xlu1 %v9589_v13, %s6492_s13  ;;  %vm11521_vm15 = vcmask 458112  }
 0x757   : > { %4976 = vst.msk [vmem:[#allocation2 + $0x5f] sm:$0x1] %vm4970_vm12, %v11478_v22  ;;  %4883 = vrot.lane.b32.xlu0 %v9589_v13, %s6497_s17 }
 0x758   : > { %3777 = vst.msk [vmem:[#allocation2 + $0x7f] sm:$0x1] %vm3769_vm1, %v11478_v22  ;;  %v3671_v60 = vpop.permute.xlu1 %3670  ;;  %v4479_v35 = vpop.permute.xlu0 %4478 }
 0x759   : > { %v5178_v15 = vld [vmem:[#allocation2 + $0x50] sm:$0xff]  ;;  %4563 = vst.msk [vmem:[#allocation2 + $0x68] sm:$0x7f] %vm4550_vm14, %v4479_v35 }
 0x75a   : > { %6250 = vmatprep.mubr.msk.f32.mxu1 %vm5209_vm0, %v5178_v15  ;;  %3748 = vst.msk [vmem:[#allocation2 + $0x70] sm:$0xff] %vm11520_vm9, %v3671_v60  ;;  %4701 = vrot.lane.b32.xlu1 %v4622_v46, %s6496_s16  ;;  %vm11522_vm9 = vcmask 194688  }
 0x75b   : > { %4284 = vrot.lane.b32.xlu0 %v4806_v39, %s6494_s23 }
 0x75c   : > { %v4477_v34 = vpop.permute.xlu1 %4476  ;;  %v3871_v59 = vpop.permute.xlu0 %3870 }
 0x75d   : > { %4562 = vst.msk [vmem:[#allocation2 + $0x60] sm:$0xff] %vm10820_vm2, %v4477_v34  ;;  %v4413_v34 = vld [vmem:[#allocation3 + $0xc9] sm:$0x7f] }
 0x75e   : > { %3949 = vst.msk [vmem:[#allocation2 + $0x70] sm:$0xff] %vm10819_vm11, %v3871_v59  ;;  %4282 = vrot.lane.b32.xlu1 %v9589_v13, %s6494_s23 }
 0x75f   : > { %4592 = vst.msk [vmem:[#allocation2 + $0x60] sm:$0x1] %vm10821_vm5, %v11478_v22  ;;  %5083 = vrot.lane.b32.xlu0 %v5005_v27, %s6498_s30 }
 0x760   : > { %3975 = vst.msk [vmem:[#allocation2 + $0x70] sm:$0x1] %vm3967_vm4, %v11478_v22  ;;  %v5070_v11 = vpop.permute.xlu1 %5069  ;;  %v4688_v2 = vpop.permute.xlu0 %4687 }
 0x761   : > { %5149 = vst.msk [vmem:[#allocation2 + $0x58] sm:$0x7f] %vm5138_vm13, %v5070_v11 }
 0x762   : > { %4766 = vst.msk [vmem:[#allocation2 + $0x61] sm:$0xff] %vm11521_vm15, %v4688_v2  ;;  %4885 = vrot.lane.b32.xlu1 %v4806_v39, %s6497_s17  ;;  %vm11523_vm15 = vcmask 261312  }
 0x763   : > { %3688 = vrot.lane.b32.xlu0 %v4806_v39, %s6491_s12 }
 0x764   : > { %v3873_v7 = vpop.permute.xlu1 %3872  ;;  %v4079_v51 = vpop.permute.xlu0 %4078 }
 0x765   : > { %3950 = vst.msk [vmem:[#allocation2 + $0x78] sm:$0x7f] %vm11522_vm9, %v3873_v7  ;;  %vm11524_vm9 = vcmask 385344  }
 0x766   : > { %3686 = vrot.lane.b32.xlu1 %v9589_v13, %s6491_s12  ;;  %4161 = vst.msk [vmem:[#allocation2 + $0x79] sm:$0x7f] %vm4146_vm10, %v4079_v51  ;;  %v5006_v13 = vld [vmem:[#allocation3 + $0xa9] sm:$0x7f] }
 0x767   : > { %4494 = vrot.lane.b32.xlu0 %v4409_v5, %s6495_s15  ;;  %v5010_v51 = vld [vmem:[#allocation3 + $0xc9] sm:$0x7f] }
 0x768   : > { %v4077_v3 = vpop.permute.xlu1 %4076  ;;  %v5179_v36 = vld [vmem:[#allocation2 + $0x58] sm:$0xff]  ;;  %v4872_v42 = vpop.permute.xlu0 %4871 }
 0x769   : > { %4160 = vst.msk [vmem:[#allocation2 + $0x71] sm:$0xff] %vm11523_vm15, %v4077_v3  ;;  %6251 = vmatmul.mubr.msk.f32.gmra.mrb[8].mxu1 %vm5209_vm0, %v5179_v36  ;;  %vm11525_vm15 = vcmask 130112   ;;  %v3811_v36 = vld [vmem:[#allocation3 + $0xc9] sm:$0x7f] }
 0x76a   : > { %4949 = vst.msk [vmem:[#allocation2 + $0x60] sm:$0xff] %vm4784_vm7, %v4872_v42  ;;  %4492 = vrot.lane.b32.xlu1 %v5005_v27, %s6495_s15 }
 0x76b   : > { %3886 = vrot.lane.b32.xlu0 %v5005_v27, %s6487_s8 }
 0x76c   : > { %v4690_v9 = vpop.permute.xlu1 %4689 }
 0x76d   : > { %v4273_v49 = vpop.permute.xlu0 %4272  ;;  %4767 = vst.msk [vmem:[#allocation2 + $0x69] sm:$0x7f] %vm4754_vm8, %v4690_v9  ;;  %v4011_v9 = vld [vmem:[#allocation3 + $0xd8] sm:$0x7f] }
 0x76e   : > { %4354 = vst.msk [vmem:[#allocation2 + $0x78] sm:$0xff] %vm4338_vm3, %v4273_v49  ;;  %5085 = vrot.lane.b32.xlu1 %v5006_v13, %s6498_s30 }
 0x76f   : > { %4379 = vst.msk [vmem:[#allocation2 + $0x7f] sm:$0x1] %vm11524_vm9, %v11478_v22  ;;  %4703 = vrot.lane.b32.xlu0 %v9594_v24, %s6496_s16  ;;  %vm11526_vm9 = vmmov %vm11525_vm15 }
 0x770   : > { %v4271_v63 = vpop.permute.xlu1 %4270 }
 0x771   : > { %v5072_v6 = vpop.permute.xlu0 %5071  ;;  %4353 = vst.msk [vmem:[#allocation2 + $0x70] sm:$0xff] %vm4338_vm3, %v4271_v63 }
 0x772   : > { %5150 = vst.msk [vmem:[#allocation2 + $0x60] sm:$0xff] %vm4967_vm6, %v5072_v6  ;;  %3888 = vrot.lane.b32.xlu1 %v3807_v58, %s6487_s8  ;;  %v4628_v6 = vld [vmem:[#allocation3 + $0xd8] sm:$0x7f] }
 0x773   : > { %4094 = vrot.lane.b32.xlu0 %v4007_v23, %s6492_s13 }
 0x774   : > { %v4874_v40 = vpop.permute.xlu1 %4873 }
 0x775   : > { %v3677_v1 = vpop.permute.xlu0 %3676  ;;  %4950 = vst.msk [vmem:[#allocation2 + $0x68] sm:$0xff] %vm4784_vm7, %v4874_v40  ;;  %v4812_v40 = vld [vmem:[#allocation3 + $0xd8] sm:$0xff] }
 0x776   : > { %3751 = vst.msk [vmem:[#allocation2 + $0x88] sm:$0xff] %vm11525_vm15, %v3677_v1  ;;  %4092 = vrot.lane.b32.xlu1 %v9594_v24, %s6492_s13  ;;  %vm11527_vm15 = vcmask 458112  }
 0x777   : > { %4977 = vst.msk [vmem:[#allocation2 + $0x6f] sm:$0x1] %vm4970_vm12, %v11478_v22  ;;  %4887 = vrot.lane.b32.xlu0 %v9594_v24, %s6497_s17 }
 0x778   : > { %3778 = vst.msk [vmem:[#allocation2 + $0x8f] sm:$0x1] %vm3769_vm1, %v11478_v22  ;;  %v3675_v38 = vpop.permute.xlu1 %3674 }
 0x779   : > { %v4483_v30 = vpop.permute.xlu0 %4482  ;;  %v5180_v53 = vld [vmem:[#allocation2 + $0x60] sm:$0xff]  ;;  %3750 = vst.msk [vmem:[#allocation2 + $0x80] sm:$0xff] %vm11526_vm9, %v3675_v38  ;;  %vm11528_vm9 = vcmask 194688  }
 0x77a   : > { %4565 = vst.msk [vmem:[#allocation2 + $0x78] sm:$0x7f] %vm4550_vm14, %v4483_v30  ;;  %6253 = vmatprep.mubr.msk.f32.mxu1 %vm5209_vm0, %v5180_v53  ;;  %4705 = vrot.lane.b32.xlu1 %v4624_v12, %s6496_s16 }
 0x77b   : > { %4288 = vrot.lane.b32.xlu0 %v4808_v55, %s6494_s23 }
 0x77c   : > { %v4481_v48 = vpop.permute.xlu1 %4480 }
 0x77d   : > { %v3875_v4 = vpop.permute.xlu0 %3874  ;;  %4564 = vst.msk [vmem:[#allocation2 + $0x70] sm:$0xff] %vm10820_vm2, %v4481_v48 }
 0x77e   : > { %3951 = vst.msk [vmem:[#allocation2 + $0x80] sm:$0xff] %vm10819_vm11, %v3875_v4  ;;  %4286 = vrot.lane.b32.xlu1 %v9594_v24, %s6494_s23 }
 0x77f   : > { %4593 = vst.msk [vmem:[#allocation2 + $0x70] sm:$0x1] %vm10821_vm5, %v11478_v22  ;;  %5087 = vrot.lane.b32.xlu0 %v5007_v16, %s6498_s30 }
 0x780   : > { %3976 = vst.msk [vmem:[#allocation2 + $0x80] sm:$0x1] %vm3967_vm4, %v11478_v22  ;;  %v5074_v62 = vpop.permute.xlu1 %5073 }
 0x781   : > { %v4692_v28 = vpop.permute.xlu0 %4691  ;;  %5151 = vst.msk [vmem:[#allocation2 + $0x68] sm:$0x7f] %vm5138_vm13, %v5074_v62 }
 0x782   : > { %4768 = vst.msk [vmem:[#allocation2 + $0x71] sm:$0xff] %vm11527_vm15, %v4692_v28  ;;  %4889 = vrot.lane.b32.xlu1 %v4808_v55, %s6497_s17  ;;  %vm11529_vm15 = vcmask 261312  }
 0x783   : > { %3692 = vrot.lane.b32.xlu0 %v4808_v55, %s6491_s12  ;;  %v5011_v55 = vld [vmem:[#allocation3 + $0xd1] sm:$0xff] }
 0x784   : > { %v3877_v21 = vpop.permute.xlu1 %3876 }
 0x785   : > { %v4083_v10 = vpop.permute.xlu0 %4082  ;;  %3952 = vst.msk [vmem:[#allocation2 + $0x88] sm:$0x7f] %vm11528_vm9, %v3877_v21  ;;  %vm11530_vm9 = vcmask 385344  }
 0x786   : > { %3690 = vrot.lane.b32.xlu1 %v9594_v24, %s6491_s12  ;;  %4163 = vst.msk [vmem:[#allocation2 + $0x89] sm:$0x7f] %vm4146_vm10, %v4083_v10  ;;  %v5008_v24 = vld [vmem:[#allocation3 + $0xb9] sm:$0x7f] }
 0x787   : > { %4498 = vrot.lane.b32.xlu0 %v4411_v37, %s6495_s15  ;;  %v4415_v37 = vld [vmem:[#allocation3 + $0xd9] sm:$0x7f] }
 0x788   : > { %v4081_v32 = vpop.permute.xlu1 %4080  ;;  %v5181_v20 = vld [vmem:[#allocation2 + $0x68] sm:$0xff] }
 0x789   : > { %v4876_v26 = vpop.permute.xlu0 %4875  ;;  %4162 = vst.msk [vmem:[#allocation2 + $0x81] sm:$0xff] %vm11529_vm15, %v4081_v32  ;;  %6254 = vmatmul.mubr.msk.f32.gmra.mrb[10].mxu1 %vm5209_vm0, %v5181_v20  ;;  %vm11531_vm15 = vcmask 130112  }
 0x78a   : > { %4951 = vst.msk [vmem:[#allocation2 + $0x70] sm:$0xff] %vm4784_vm7, %v4876_v26  ;;  %4496 = vrot.lane.b32.xlu1 %v5007_v16, %s6495_s15 }
 0x78b   : > { %3890 = vrot.lane.b32.xlu0 %v5007_v16, %s6487_s8 }
 0x78c   : > { %v4694_v50 = vpop.permute.xlu1 %4693 }
 0x78d   : > { %v4277_v54 = vpop.permute.xlu0 %4276  ;;  %4769 = vst.msk [vmem:[#allocation2 + $0x79] sm:$0x7f] %vm4754_vm8, %v4694_v50 }
 0x78e   : > { %4356 = vst.msk [vmem:[#allocation2 + $0x88] sm:$0xff] %vm4338_vm3, %v4277_v54  ;;  %5089 = vrot.lane.b32.xlu1 %v5008_v24, %s6498_s30 }
 0x78f   : > { %4380 = vst.msk [vmem:[#allocation2 + $0x8f] sm:$0x1] %vm11530_vm9, %v11478_v22  ;;  %4707 = vrot.lane.b32.xlu0 %v9601_v19, %s6496_s16  ;;  %vm11532_vm9 = vmmov %vm11531_vm15 }
 0x790   : > { %v4275_v44 = vpop.permute.xlu1 %4274 }
 0x791   : > { %v5076_v45 = vpop.permute.xlu0 %5075  ;;  %4355 = vst.msk [vmem:[#allocation2 + $0x80] sm:$0xff] %vm4338_vm3, %v4275_v44  ;;  %v3813_v44 = vld [vmem:[#allocation3 + $0xd9] sm:$0x7f] }
 0x792   : > { %5152 = vst.msk [vmem:[#allocation2 + $0x70] sm:$0xff] %vm4967_vm6, %v5076_v45  ;;  %3892 = vrot.lane.b32.xlu1 %v3809_v47, %s6487_s8  ;;  %v4013_v47 = vld [vmem:[#allocation3 + $0xe8] sm:$0x7f] }
 0x793   : > { %4098 = vrot.lane.b32.xlu0 %v4009_v29, %s6492_s13 }
 0x794   : > { %v4878_v17 = vpop.permute.xlu1 %4877 }
 0x795   : > { %v3681_v56 = vpop.permute.xlu0 %3680  ;;  %4952 = vst.msk [vmem:[#allocation2 + $0x78] sm:$0xff] %vm4784_vm7, %v4878_v17 }
 0x796   : > { %3753 = vst.msk [vmem:[#allocation2 + $0x98] sm:$0xff] %vm11531_vm15, %v3681_v56  ;;  %4096 = vrot.lane.b32.xlu1 %v9601_v19, %s6492_s13  ;;  %vm11533_vm15 = vcmask 458112  }
 0x797   : > { %4978 = vst.msk [vmem:[#allocation2 + $0x7f] sm:$0x1] %vm4970_vm12, %v11478_v22  ;;  %4891 = vrot.lane.b32.xlu0 %v9601_v19, %s6497_s17 }
 0x798   : > { %3779 = vst.msk [vmem:[#allocation2 + $0x9f] sm:$0x1] %vm3769_vm1, %v11478_v22  ;;  %v3679_v43 = vpop.permute.xlu1 %3678 }
 0x799   : > { %v4487_v33 = vpop.permute.xlu0 %4486  ;;  %v5182_v8 = vld [vmem:[#allocation2 + $0x70] sm:$0xff]  ;;  %3752 = vst.msk [vmem:[#allocation2 + $0x90] sm:$0xff] %vm11532_vm9, %v3679_v43  ;;  %vm11534_vm9 = vcmask 194688   ;;  %v4630_v43 = vld [vmem:[#allocation3 + $0xe8] sm:$0x7f] }
 0x79a   : > { %4567 = vst.msk [vmem:[#allocation2 + $0x88] sm:$0x7f] %vm4550_vm14, %v4487_v33  ;;  %6256 = vmatprep.mubr.msk.f32.mxu1 %vm5209_vm0, %v5182_v8  ;;  %4709 = vrot.lane.b32.xlu1 %v4626_v52, %s6496_s16  ;;  %v3615_v52 = vld [vmem:[#allocation3 + $0xe8] sm:$0xff] }
 0x79b   : > { %4292 = vrot.lane.b32.xlu0 %v4810_v14, %s6494_s23 }
 0x79c   : > { %v4485_v41 = vpop.permute.xlu1 %4484 }
 0x79d   : > { %v3879_v18 = vpop.permute.xlu0 %3878  ;;  %4566 = vst.msk [vmem:[#allocation2 + $0x80] sm:$0xff] %vm10820_vm2, %v4485_v41 }
 0x79e   : > { %3953 = vst.msk [vmem:[#allocation2 + $0x90] sm:$0xff] %vm10819_vm11, %v3879_v18  ;;  %4290 = vrot.lane.b32.xlu1 %v9601_v19, %s6494_s23  ;;  %vm11535_vm11 = vcmask 64512  }
 0x79f   : > { %4594 = vst.msk [vmem:[#allocation2 + $0x80] sm:$0x1] %vm10821_vm5, %v11478_v22  ;;  %5091 = vrot.lane.b32.xlu0 %v5009_v31, %s6498_s30 }
 0x7a0   : > { %3977 = vst.msk [vmem:[#allocation2 + $0x90] sm:$0x1] %vm3967_vm4, %v11478_v22  ;;  %v5078_v57 = vpop.permute.xlu1 %5077 }
 0x7a1   : > { %v4696_v25 = vpop.permute.xlu0 %4695  ;;  %5153 = vst.msk [vmem:[#allocation2 + $0x78] sm:$0x7f] %vm5138_vm13, %v5078_v57 }
 0x7a2   : > { %4770 = vst.msk [vmem:[#allocation2 + $0x81] sm:$0xff] %vm11533_vm15, %v4696_v25  ;;  %4893 = vrot.lane.b32.xlu1 %v4810_v14, %s6497_s17  ;;  %vm11536_vm15 = vmmov %vm11535_vm11 }
 0x7a3   : > { %3696 = vrot.lane.b32.xlu0 %v4810_v14, %s6491_s12 }
 0x7a4   : > { %v3881_v60 = vpop.permute.xlu1 %3880  ;;  %v10052_v35 = vpop.f32.mrb[32].mxu0 }
 0x7a5   : > { %3954 = vst.msk [vmem:[#allocation2 + $0x98] sm:$0x7f] %vm11534_vm9, %v3881_v60  ;;  %v5532_v15 = vsel %vm11535_vm11, %v10052_v35, 0.0  ;;  %v4087_v46 = vpop.permute.xlu0 %4086  ;;  %v10057_v39 = vpop.f32.mrb[33].mxu0  ;;  %vm11537_vm9 = vcmask 261312   ;;  %vm11538_vm11 = vcmask 385344  }
 0x7a6   : > { %3694 = vrot.lane.b32.xlu1 %v9601_v19, %s6491_s12  ;;  %4165 = vst.msk [vmem:[#allocation2 + $0x99] sm:$0x7f] %vm4146_vm10, %v4087_v46  ;;  %v5531_v59 = vsel %vm11536_vm15, %v10057_v39, 0.0  ;;  %vm11539_vm15 = vcmask 130112  }
 0x7a7   : > { %4502 = vrot.lane.b32.xlu0 %v4413_v34, %s6495_s15  ;;  %v5533_v27 = vadd.f32 %v5532_v15, %v5531_v59  ;;  %v3814_v59 = vld [vmem:[#allocation3 + $0xe1] sm:$0xff] }
 0x7a8   : > { %v4085_v11 = vpop.permute.xlu1 %4084  ;;  %v5183_v2 = vld [vmem:[#allocation2 + $0x78] sm:$0xff] }
 0x7a9   : > { %4164 = vst.msk [vmem:[#allocation2 + $0x91] sm:$0xff] %vm11537_vm9, %v4085_v11  ;;  %6257 = vmatmul.mubr.msk.f32.gmra.mrb[12].mxu1 %vm5209_vm0, %v5183_v2  ;;  %v4880_v7 = vpop.permute.xlu0 %4879  ;;  %vm11540_vm9 = vmmov %vm11539_vm15  ;;  %v3815_v2 = vld [vmem:[#allocation3 + $0xe9] sm:$0x7f] }
 0x7aa   : > { %4500 = vrot.lane.b32.xlu1 %v5009_v31, %s6495_s15  ;;  %4953 = vst.msk [vmem:[#allocation2 + $0x80] sm:$0xff] %vm4784_vm7, %v4880_v7 }
 0x7ab   : > { %3894 = vrot.lane.b32.xlu0 %v5009_v31, %s6487_s8 }
 0x7ac   : > { %v4698_v19 = vpop.permute.xlu1 %4697 }
 0x7ad   : > { %4771 = vst.msk [vmem:[#allocation2 + $0x89] sm:$0x7f] %vm4754_vm8, %v4698_v19  ;;  %v4281_v5 = vpop.permute.xlu0 %4280 }
 0x7ae   : > { %5093 = vrot.lane.b32.xlu1 %v5010_v51, %s6498_s30  ;;  %4358 = vst.msk [vmem:[#allocation2 + $0x98] sm:$0xff] %vm4338_vm3, %v4281_v5  ;;  %v4417_v51 = vld [vmem:[#allocation3 + $0xe9] sm:$0x7f] }
 0x7af   : > { %4711 = vrot.lane.b32.xlu0 %v9609_v61, %s6496_s16  ;;  %4381 = vst.msk [vmem:[#allocation2 + $0x9f] sm:$0x1] %vm11538_vm11, %v11478_v22  ;;  %vm11541_vm11 = vcmask 64512  }
 0x7b0   : > { %v4279_v3 = vpop.permute.xlu1 %4278 }
 0x7b1   : > { %4357 = vst.msk [vmem:[#allocation2 + $0x90] sm:$0xff] %vm4338_vm3, %v4279_v3  ;;  %v5080_v42 = vpop.permute.xlu0 %5079 }
 0x7b2   : > { %3896 = vrot.lane.b32.xlu1 %v3811_v36, %s6487_s8  ;;  %5154 = vst.msk [vmem:[#allocation2 + $0x80] sm:$0xff] %vm4967_vm6, %v5080_v42  ;;  %v4631_v36 = vld [vmem:[#allocation3 + $0xf0] sm:$0xff] }
 0x7b3   : > { %4102 = vrot.lane.b32.xlu0 %v4011_v9, %s6492_s13  ;;  %v5014_v9 = vld [vmem:[#allocation3 + $0xe9] sm:$0x7f] }
 0x7b4   : > { %v4882_v49 = vpop.permute.xlu1 %4881 }
 0x7b5   : > { %4954 = vst.msk [vmem:[#allocation2 + $0x88] sm:$0xff] %vm4784_vm7, %v4882_v49  ;;  %v3685_v13 = vpop.permute.xlu0 %3684 }
 0x7b6   : > { %4979 = vst.msk [vmem:[#allocation2 + $0x8f] sm:$0x1] %vm4970_vm12, %v11478_v22  ;;  %4100 = vrot.lane.b32.xlu1 %v9609_v61, %s6492_s13 }
 0x7b7   : > { %4895 = vrot.lane.b32.xlu0 %v9609_v61, %s6497_s17  ;;  %3755 = vst.msk [vmem:[#allocation2 + $0xa8] sm:$0xff] %vm11539_vm15, %v3685_v13  ;;  %vm11542_vm15 = vcmask 195712   ;;  %v4015_v13 = vld [vmem:[#allocation3 + $0xf8] sm:$0x7f] }
 0x7b8   : > { %3780 = vst.msk [vmem:[#allocation2 + $0xaf] sm:$0x1] %vm3769_vm1, %v11478_v22  ;;  %v3683_v63 = vpop.permute.xlu1 %3682 }
 0x7b9   : > { %v4491_v58 = vpop.permute.xlu0 %4490  ;;  %v5184_v23 = vld [vmem:[#allocation2 + $0x80] sm:$0xff]  ;;  %3754 = vst.msk [vmem:[#allocation2 + $0xa0] sm:$0xff] %vm11540_vm9, %v3683_v63  ;;  %vm11543_vm9 = vmmov %vm11541_vm11 }
 0x7ba   : > { %4713 = vrot.lane.b32.xlu1 %v4628_v6, %s6496_s16  ;;  %4569 = vst.msk [vmem:[#allocation2 + $0x98] sm:$0x7f] %vm4550_vm14, %v4491_v58  ;;  %6259 = vmatprep.mubr.msk.f32.mxu1 %vm5209_vm0, %v5184_v23  ;;  %v4632_v58 = vld [vmem:[#allocation3 + $0xf8] sm:$0x7f] }
 0x7bb   : > { %4296 = vrot.lane.b32.xlu0 %v4812_v40, %s6494_s23 }
 0x7bc   : > { %v4489_v1 = vpop.permute.xlu1 %4488  ;;  %v10096_v38 = vpop.f32.mrb[0].mxu1 }
 0x7bd   : > { %4568 = vst.msk [vmem:[#allocation2 + $0x90] sm:$0xff] %vm10820_vm2, %v4489_v1  ;;  %v10099_v30 = vpop.f32.mrb[1].mxu1  ;;  %v3883_v53 = vpop.permute.xlu0 %3882  ;;  %v5536_v4 = vsel %vm11543_vm9, %v10096_v38, 0.0  ;;  %vm11546_vm9 = vcmask 261312  }
 0x7be   : > { %4595 = vst.msk [vmem:[#allocation2 + $0x90] sm:$0x1] %vm10821_vm5, %v11478_v22  ;;  %v5534_v12 = vsel %vm11541_vm11, %v10099_v30, 0.0  ;;  %4294 = vrot.lane.b32.xlu1 %v9609_v61, %s6494_s23  ;;  %vm11544_vm11 = vcmask 458112  }
 0x7bf   : > { %3955 = vst.msk [vmem:[#allocation2 + $0xa0] sm:$0xff] %vm11542_vm15, %v3883_v53  ;;  %v5535_v48 = vadd.f32 %v5534_v12, %v5533_v27  ;;  %5095 = vrot.lane.b32.xlu0 %v5011_v55, %s6498_s30  ;;  %vm11545_vm15 = vcmask 194688   ;;  %v4209_v53 = vld [vmem:[#allocation3 + $0xf8] sm:$0xff] }
 0x7c0   : > { %3978 = vst.msk [vmem:[#allocation2 + $0xa0] sm:$0x1] %vm3967_vm4, %v11478_v22  ;;  %v5082_v16 = vpop.permute.xlu1 %5081 }
 0x7c1   : > { %5155 = vst.msk [vmem:[#allocation2 + $0x88] sm:$0x7f] %vm5138_vm13, %v5082_v16  ;;  %v4700_v62 = vpop.permute.xlu0 %4699  ;;  %v5537_v28 = vadd.f32 %v5536_v4, %v5535_v48 }
 0x7c2   : > { %4897 = vrot.lane.b32.xlu1 %v4812_v40, %s6497_s17  ;;  %4772 = vst.msk [vmem:[#allocation2 + $0x91] sm:$0xff] %vm11544_vm11, %v4700_v62  ;;  %vm11547_vm11 = vcmask 385344  }
 0x7c3   : > { %3700 = vrot.lane.b32.xlu0 %v4812_v40, %s6491_s12 }
 0x7c4   : > { %v3885_v21 = vpop.permute.xlu1 %3884 }
 0x7c5   : > { %3956 = vst.msk [vmem:[#allocation2 + $0xa8] sm:$0x7f] %vm11545_vm15, %v3885_v21  ;;  %v4091_v10 = vpop.permute.xlu0 %4090  ;;  %vm11548_vm15 = vcmask 130112  }
 0x7c6   : > { %3698 = vrot.lane.b32.xlu1 %v9609_v61, %s6491_s12  ;;  %4167 = vst.msk [vmem:[#allocation2 + $0xa9] sm:$0x7f] %vm4146_vm10, %v4091_v10  ;;  %v5012_v61 = vld [vmem:[#allocation3 + $0xd9] sm:$0x7f]  ;;  %v4418_v10 = vld [vmem:[#allocation3 + $0xf1] sm:$0xff] }
 0x7c7   : > { %4506 = vrot.lane.b32.xlu0 %v4415_v37, %s6495_s15 }
 0x7c8   : > { %v4089_v32 = vpop.permute.xlu1 %4088  ;;  %v5185_v20 = vld [vmem:[#allocation2 + $0x88] sm:$0xff] }
 0x7c9   : > { %4166 = vst.msk [vmem:[#allocation2 + $0xa1] sm:$0xff] %vm11546_vm9, %v4089_v32  ;;  %6260 = vmatmul.mubr.msk.f32.gmra.mrb[14].mxu1 %vm5209_vm0, %v5185_v20  ;;  %v4884_v26 = vpop.permute.xlu0 %4883  ;;  %vm11549_vm9 = vmmov %vm11548_vm15  ;;  %v4419_v20 = vld [vmem:[#allocation3 + $0xf9] sm:$0x7f] }
 0x7ca   : > { %4504 = vrot.lane.b32.xlu1 %v5011_v55, %s6495_s15  ;;  %4955 = vst.msk [vmem:[#allocation2 + $0x90] sm:$0xff] %vm4784_vm7, %v4884_v26 }
 0x7cb   : > { %3898 = vrot.lane.b32.xlu0 %v5011_v55, %s6487_s8 }
 0x7cc   : > { %v4702_v50 = vpop.permute.xlu1 %4701 }
 0x7cd   : > { %4773 = vst.msk [vmem:[#allocation2 + $0x99] sm:$0x7f] %vm4754_vm8, %v4702_v50  ;;  %v4285_v54 = vpop.permute.xlu0 %4284 }
 0x7ce   : > { %5097 = vrot.lane.b32.xlu1 %v5012_v61, %s6498_s30  ;;  %4360 = vst.msk [vmem:[#allocation2 + $0xa8] sm:$0xff] %vm4338_vm3, %v4285_v54 }
 0x7cf   : > { %4382 = vst.msk [vmem:[#allocation2 + $0xaf] sm:$0x1] %vm11547_vm11, %v11478_v22  ;;  %4715 = vrot.lane.b32.xlu0 %v9617_v0, %s6496_s16  ;;  %vm11550_vm11 = vcmask 64512  }
 0x7d0   : > { %v4283_v24 = vpop.permute.xlu1 %4282 }
 0x7d1   : > { %4359 = vst.msk [vmem:[#allocation2 + $0xa0] sm:$0xff] %vm4338_vm3, %v4283_v24  ;;  %v5084_v45 = vpop.permute.xlu0 %5083  ;;  %v5016_v24 = vld [vmem:[#allocation3 + $0xf9] sm:$0x7f] }
 0x7d2   : > { %3900 = vrot.lane.b32.xlu1 %v3813_v44, %s6487_s8  ;;  %5156 = vst.msk [vmem:[#allocation2 + $0x90] sm:$0xff] %vm4967_vm6, %v5084_v45 }
 0x7d3   : > { %4106 = vrot.lane.b32.xlu0 %v4013_v47, %s6492_s13 }
 0x7d4   : > { %v4886_v29 = vpop.permute.xlu1 %4885 }
 0x7d5   : > { %4956 = vst.msk [vmem:[#allocation2 + $0x98] sm:$0xff] %vm4784_vm7, %v4886_v29  ;;  %v3689_v17 = vpop.permute.xlu0 %3688 }
 0x7d6   : > { %4980 = vst.msk [vmem:[#allocation2 + $0x9f] sm:$0x1] %vm4970_vm12, %v11478_v22  ;;  %4104 = vrot.lane.b32.xlu1 %v9617_v0, %s6492_s13 }
 0x7d7   : > { %3757 = vst.msk [vmem:[#allocation2 + $0xb8] sm:$0xff] %vm11548_vm15, %v3689_v17  ;;  %4899 = vrot.lane.b32.xlu0 %v9617_v0, %s6497_s17  ;;  %vm11551_vm15 = vcmask 195712  }
 0x7d8   : > { %3781 = vst.msk [vmem:[#allocation2 + $0xbf] sm:$0x1] %vm3769_vm1, %v11478_v22  ;;  %v3687_v56 = vpop.permute.xlu1 %3686 }
 0x7d9   : > { %v4495_v33 = vpop.permute.xlu0 %4494  ;;  %v5186_v8 = vld [vmem:[#allocation2 + $0x90] sm:$0xff]  ;;  %3756 = vst.msk [vmem:[#allocation2 + $0xb0] sm:$0xff] %vm11549_vm9, %v3687_v56  ;;  %vm11552_vm9 = vmmov %vm11550_vm11 }
 0x7da   : > { %4717 = vrot.lane.b32.xlu1 %v4630_v43, %s6496_s16  ;;  %4571 = vst.msk [vmem:[#allocation2 + $0xa8] sm:$0x7f] %vm4550_vm14, %v4495_v33  ;;  %6262 = vmatprep.mubr.msk.f32.mxu1 %vm5209_vm0, %v5186_v8 }
 0x7db   : > { %3704 = vrot.lane.b32.xlu0 %v3615_v52, %s6491_s12 }
 0x7dc   : > { %v4493_v14 = vpop.permute.xlu1 %4492  ;;  %v10153_v41 = vpop.f32.mrb[2].mxu1 }
 0x7dd   : > { %4570 = vst.msk [vmem:[#allocation2 + $0xa0] sm:$0xff] %vm10820_vm2, %v4493_v14  ;;  %v10156_v18 = vpop.f32.mrb[3].mxu1  ;;  %v3887_v31 = vpop.permute.xlu0 %3886  ;;  %v5540_v60 = vsel %vm11552_vm9, %v10153_v41, 0.0  ;;  %vm11555_vm9 = vcmask 261312  }
 0x7de   : > { %4596 = vst.msk [vmem:[#allocation2 + $0xa0] sm:$0x1] %vm10821_vm5, %v11478_v22  ;;  %v5538_v57 = vsel %vm11550_vm11, %v10156_v18, 0.0  ;;  %3702 = vrot.lane.b32.xlu1 %v9617_v0, %s6491_s12  ;;  %vm11553_vm11 = vcmask 458112  }
 0x7df   : > { %3957 = vst.msk [vmem:[#allocation2 + $0xb0] sm:$0xff] %vm11551_vm15, %v3887_v31  ;;  %v5539_v25 = vadd.f32 %v5538_v57, %v5537_v28  ;;  %4300 = vrot.lane.b32.xlu0 %v3615_v52, %s6494_s23  ;;  %vm11554_vm15 = vcmask 194688  }
 0x7e0   : > { %3979 = vst.msk [vmem:[#allocation2 + $0xb0] sm:$0x1] %vm3967_vm4, %v11478_v22  ;;  %v5086_v15 = vpop.permute.xlu1 %5085 }
 0x7e1   : > { %5157 = vst.msk [vmem:[#allocation2 + $0x98] sm:$0x7f] %vm5138_vm13, %v5086_v15  ;;  %v4704_v46 = vpop.permute.xlu0 %4703  ;;  %v10171_v34 = vadd.f32 %v5540_v60, %v5539_v25 }
 0x7e2   : > { %4298 = vrot.lane.b32.xlu1 %v9617_v0, %s6494_s23  ;;  %4774 = vst.msk [vmem:[#allocation2 + $0xa1] sm:$0xff] %vm11553_vm11, %v4704_v46  ;;  %vm11556_vm11 = vcmask 385344  }
 0x7e3   : > { %5099 = vrot.lane.b32.xlu0 %v3814_v59, %s6498_s30 }
 0x7e4   : > { %v3889_v27 = vpop.permute.xlu1 %3888 }
 0x7e5   : > { %3958 = vst.msk [vmem:[#allocation2 + $0xb8] sm:$0x7f] %vm11554_vm15, %v3889_v27  ;;  %v4095_v11 = vpop.permute.xlu0 %4094  ;;  %vm11557_vm15 = vcmask 130112  }
 0x7e6   : > { %4901 = vrot.lane.b32.xlu1 %v3615_v52, %s6497_s17  ;;  %4169 = vst.msk [vmem:[#allocation2 + $0xb9] sm:$0x7f] %vm4146_vm10, %v4095_v11 }
 0x7e7   : > { %3904 = vrot.lane.b32.xlu0 %v3815_v2, %s6487_s8 }
 0x7e8   : > { %v4093_v7 = vpop.permute.xlu1 %4092  ;;  %v5187_v19 = vld [vmem:[#allocation2 + $0x98] sm:$0xff] }
 0x7e9   : > { %4168 = vst.msk [vmem:[#allocation2 + $0xb1] sm:$0xff] %vm11555_vm9, %v4093_v7  ;;  %6263 = vmatmul.mubr.msk.f32.gmra.mrb[16].mxu1 %vm5209_vm0, %v5187_v19  ;;  %v4888_v0 = vpop.permute.xlu0 %4887  ;;  %vm11558_vm9 = vmmov %vm11557_vm15 }
 0x7ea   : > { %3902 = vrot.lane.b32.xlu1 %v3814_v59, %s6487_s8  ;;  %4957 = vst.msk [vmem:[#allocation2 + $0xa0] sm:$0xff] %vm4784_vm7, %v4888_v0 }
 0x7eb   : > { %4510 = vrot.lane.b32.xlu0 %v4417_v51, %s6495_s15 }
 0x7ec   : > { %v4706_v5 = vpop.permute.xlu1 %4705 }
 0x7ed   : > { %4775 = vst.msk [vmem:[#allocation2 + $0xa9] sm:$0x7f] %vm4754_vm8, %v4706_v5  ;;  %v4289_v3 = vpop.permute.xlu0 %4288 }
 0x7ee   : > { %4508 = vrot.lane.b32.xlu1 %v3814_v59, %s6495_s15  ;;  %4362 = vst.msk [vmem:[#allocation2 + $0xb8] sm:$0xff] %vm4338_vm3, %v4289_v3 }
 0x7ef   : > { %4383 = vst.msk [vmem:[#allocation2 + $0xbf] sm:$0x1] %vm11556_vm11, %v11478_v22  ;;  %4108 = vrot.lane.b32.xlu0 %v4631_v36, %s6492_s13  ;;  %vm11559_vm11 = vcmask 64512  }
 0x7f0   : > { %v4287_v42 = vpop.permute.xlu1 %4286 }
 0x7f1   : > { %4361 = vst.msk [vmem:[#allocation2 + $0xb0] sm:$0xff] %vm4338_vm3, %v4287_v42  ;;  %v5088_v49 = vpop.permute.xlu0 %5087 }
 0x7f2   : > { %5101 = vrot.lane.b32.xlu1 %v5014_v9, %s6498_s30  ;;  %5158 = vst.msk [vmem:[#allocation2 + $0xa0] sm:$0xff] %vm4967_vm6, %v5088_v49 }
 0x7f3   : > { %4110 = vrot.lane.b32.xlu0 %v4015_v13, %s6492_s13 }
 0x7f4   : > { %v4890_v63 = vpop.permute.xlu1 %4889 }
 0x7f5   : > { %4958 = vst.msk [vmem:[#allocation2 + $0xa8] sm:$0xff] %vm4784_vm7, %v4890_v63  ;;  %v3693_v6 = vpop.permute.xlu0 %3692 }
 0x7f6   : > { %4981 = vst.msk [vmem:[#allocation2 + $0xaf] sm:$0x1] %vm4970_vm12, %v11478_v22  ;;  %4719 = vrot.lane.b32.xlu1 %v4631_v36, %s6496_s16 }
 0x7f7   : > { %3759 = vst.msk [vmem:[#allocation2 + $0xc8] sm:$0xff] %vm11557_vm15, %v3693_v6  ;;  %4721 = vrot.lane.b32.xlu0 %v4632_v58, %s6496_s16  ;;  %vm11560_vm15 = vcmask 195712  }
 0x7f8   : > { %3782 = vst.msk [vmem:[#allocation2 + $0xcf] sm:$0x1] %vm3769_vm1, %v11478_v22  ;;  %v3691_v23 = vpop.permute.xlu1 %3690 }
 0x7f9   : > { %v4499_v40 = vpop.permute.xlu0 %4498  ;;  %v5188_v1 = vld [vmem:[#allocation2 + $0xa0] sm:$0xff]  ;;  %3758 = vst.msk [vmem:[#allocation2 + $0xc0] sm:$0xff] %vm11558_vm9, %v3691_v23  ;;  %vm11561_vm9 = vmmov %vm11559_vm11 }
 0x7fa   : > { %4302 = vrot.lane.b32.xlu1 %v4631_v36, %s6494_s23  ;;  %4573 = vst.msk [vmem:[#allocation2 + $0xb8] sm:$0x7f] %vm4550_vm14, %v4499_v40  ;;  %6265 = vmatprep.mubr.msk.f32.mxu1 %vm5209_vm0, %v5188_v1 }
 0x7fb   : > { %4304 = vrot.lane.b32.xlu0 %v4209_v53, %s6494_s23 }
 0x7fc   : > { %v4497_v12 = vpop.permute.xlu1 %4496  ;;  %v10209_v55 = vpop.f32.mrb[4].mxu1 }
 0x7fd   : > { %4572 = vst.msk [vmem:[#allocation2 + $0xb0] sm:$0xff] %vm10820_vm2, %v4497_v12  ;;  %v10212_v48 = vpop.f32.mrb[5].mxu1  ;;  %v3891_v4 = vpop.permute.xlu0 %3890  ;;  %v5544_v28 = vsel %vm11561_vm9, %v10209_v55, 0.0  ;;  %vm11564_vm9 = vcmask 261312  }
 0x7fe   : > { %4597 = vst.msk [vmem:[#allocation2 + $0xb0] sm:$0x1] %vm10821_vm5, %v11478_v22  ;;  %v5542_v16 = vsel %vm11559_vm11, %v10212_v48, 0.0  ;;  %4903 = vrot.lane.b32.xlu1 %v4631_v36, %s6497_s17  ;;  %vm11562_vm11 = vcmask 458112  }
 0x7ff   : > { %3959 = vst.msk [vmem:[#allocation2 + $0xc0] sm:$0xff] %vm11560_vm15, %v3891_v4  ;;  %v5543_v62 = vadd.f32 %v5542_v16, %v10171_v34  ;;  %4905 = vrot.lane.b32.xlu0 %v4209_v53, %s6497_s17  ;;  %vm11563_vm15 = vcmask 194688  }
 0x800   : > { %3980 = vst.msk [vmem:[#allocation2 + $0xc0] sm:$0x1] %vm3967_vm4, %v11478_v22  ;;  %v5090_v21 = vpop.permute.xlu1 %5089 }
 0x801   : > { %5159 = vst.msk [vmem:[#allocation2 + $0xa8] sm:$0x7f] %vm5138_vm13, %v5090_v21  ;;  %v4708_v37 = vpop.permute.xlu0 %4707  ;;  %v5545_v32 = vadd.f32 %v5544_v28, %v5543_v62 }
 0x802   : > { %4512 = vrot.lane.b32.xlu1 %v4418_v10, %s6495_s15  ;;  %4776 = vst.msk [vmem:[#allocation2 + $0xb1] sm:$0xff] %vm11562_vm11, %v4708_v37  ;;  %vm11565_vm11 = vcmask 385344  }
 0x803   : > { %4514 = vrot.lane.b32.xlu0 %v4419_v20, %s6495_s15 }
 0x804   : > { %v3893_v26 = vpop.permute.xlu1 %3892 }
 0x805   : > { %3960 = vst.msk [vmem:[#allocation2 + $0xc8] sm:$0x7f] %vm11563_vm15, %v3893_v26  ;;  %v4099_v50 = vpop.permute.xlu0 %4098  ;;  %vm11566_vm15 = vcmask 130112  }
 0x806   : > { %5103 = vrot.lane.b32.xlu1 %v4418_v10, %s6498_s30  ;;  %4171 = vst.msk [vmem:[#allocation2 + $0xc9] sm:$0x7f] %vm4146_vm10, %v4099_v50 }
 0x808   : > { %v4097_v61 = vpop.permute.xlu1 %4096  ;;  %v5189_v54 = vld [vmem:[#allocation2 + $0xa8] sm:$0xff] }
 0x809   : > { %4170 = vst.msk [vmem:[#allocation2 + $0xc1] sm:$0xff] %vm11564_vm9, %v4097_v61  ;;  %6266 = vmatmul.mubr.msk.f32.gmra.mrb[18].mxu1 %vm5209_vm0, %v5189_v54  ;;  %v4892_v44 = vpop.permute.xlu0 %4891  ;;  %vm11567_vm9 = vmmov %vm11566_vm15 }
 0x80a   : > { %5105 = vrot.lane.b32.xlu1 %v5016_v24, %s6498_s30  ;;  %4959 = vst.msk [vmem:[#allocation2 + $0xb0] sm:$0xff] %vm4784_vm7, %v4892_v44 }
 0x80c   : > { %v4710_v45 = vpop.permute.xlu1 %4709 }
 0x80d   : > { %4777 = vst.msk [vmem:[#allocation2 + $0xb9] sm:$0x7f] %vm4754_vm8, %v4710_v45  ;;  %v4293_v47 = vpop.permute.xlu0 %4292 }
 0x80e   : > { %4364 = vst.msk [vmem:[#allocation2 + $0xc8] sm:$0xff] %vm4338_vm3, %v4293_v47 }
 0x80f   : > { %4384 = vst.msk [vmem:[#allocation2 + $0xcf] sm:$0x1] %vm11565_vm11, %v11478_v22  ;;  %vm11568_vm11 = vcmask 64512  }
 0x810   : > { %v4291_v29 = vpop.permute.xlu1 %4290 }
 0x811   : > { %4363 = vst.msk [vmem:[#allocation2 + $0xc0] sm:$0xff] %vm4338_vm3, %v4291_v29  ;;  %v5092_v17 = vpop.permute.xlu0 %5091 }
 0x812   : > { %5160 = vst.msk [vmem:[#allocation2 + $0xb0] sm:$0xff] %vm4967_vm6, %v5092_v17 }
 0x814   : > { %v4894_v56 = vpop.permute.xlu1 %4893 }
 0x815   : > { %4960 = vst.msk [vmem:[#allocation2 + $0xb8] sm:$0xff] %vm4784_vm7, %v4894_v56  ;;  %v3697_v43 = vpop.permute.xlu0 %3696 }
 0x816   : > { %4982 = vst.msk [vmem:[#allocation2 + $0xbf] sm:$0x1] %vm4970_vm12, %v11478_v22 }
 0x817   : > { %3761 = vst.msk [vmem:[#allocation2 + $0xd8] sm:$0xff] %vm11566_vm15, %v3697_v43  ;;  %vm11569_vm15 = vcmask 195712  }
 0x818   : > { %3783 = vst.msk [vmem:[#allocation2 + $0xdf] sm:$0x1] %vm3769_vm1, %v11478_v22  ;;  %v3695_v33 = vpop.permute.xlu1 %3694 }
 0x819   : > { %v4503_v8 = vpop.permute.xlu0 %4502  ;;  %v5190_v52 = vld [vmem:[#allocation2 + $0xb0] sm:$0xff]  ;;  %3760 = vst.msk [vmem:[#allocation2 + $0xd0] sm:$0xff] %vm11567_vm9, %v3695_v33  ;;  %vm11570_vm9 = vmmov %vm11568_vm11 }
 0x81a   : > { %4575 = vst.msk [vmem:[#allocation2 + $0xc8] sm:$0x7f] %vm4550_vm14, %v4503_v8  ;;  %6268 = vmatprep.mubr.msk.f32.mxu1 %vm5209_vm0, %v5190_v52 }
 0x81c   : > { %v4501_v14 = vpop.permute.xlu1 %4500  ;;  %v10252_v31 = vpop.f32.mrb[6].mxu1 }
 0x81d   : > { %4574 = vst.msk [vmem:[#allocation2 + $0xc0] sm:$0xff] %vm10820_vm2, %v4501_v14  ;;  %v10255_v57 = vpop.f32.mrb[7].mxu1  ;;  %v3895_v25 = vpop.permute.xlu0 %3894  ;;  %v5548_v46 = vsel %vm11570_vm9, %v10252_v31, 0.0  ;;  %vm11571_vm2 = vcmask 458112   ;;  %vm11577_vm9 = vcmask 392512  }
 0x81e   : > { %4598 = vst.msk [vmem:[#allocation2 + $0xc0] sm:$0x1] %vm10821_vm5, %v11478_v22  ;;  %v5546_v60 = vsel %vm11568_vm11, %v10255_v57, 0.0  ;;  %vm11572_vm5 = vcmask 194688   ;;  %vm11573_vm11 = vcmask 261312  }
 0x81f   : > { %3961 = vst.msk [vmem:[#allocation2 + $0xd0] sm:$0xff] %vm11569_vm15, %v3895_v25  ;;  %v5547_v15 = vadd.f32 %v5546_v60, %v5545_v32 }
 0x820   : > { %3981 = vst.msk [vmem:[#allocation2 + $0xd0] sm:$0x1] %vm3967_vm4, %v11478_v22  ;;  %v5094_v34 = vpop.permute.xlu1 %5093 }
 0x821   : > { %5161 = vst.msk [vmem:[#allocation2 + $0xb8] sm:$0x7f] %vm5138_vm13, %v5094_v34  ;;  %v4712_v59 = vpop.permute.xlu0 %4711  ;;  %v5549_v27 = vadd.f32 %v5548_v46, %v5547_v15 }
 0x822   : > { %4778 = vst.msk [vmem:[#allocation2 + $0xc1] sm:$0xff] %vm11571_vm2, %v4712_v59  ;;  %vm11574_vm2 = vcmask 385344  }
 0x824   : > { %v3897_v11 = vpop.permute.xlu1 %3896 }
 0x825   : > { %3962 = vst.msk [vmem:[#allocation2 + $0xd8] sm:$0x7f] %vm11572_vm5, %v3897_v11  ;;  %v4103_v2 = vpop.permute.xlu0 %4102  ;;  %vm11575_vm5 = vcmask 130112  }
 0x826   : > { %4173 = vst.msk [vmem:[#allocation2 + $0xd9] sm:$0x7f] %vm4146_vm10, %v4103_v2  ;;  %vm11576_vm15 = vmmov %vm11575_vm5 }
 0x828   : > { %v4101_v7 = vpop.permute.xlu1 %4100  ;;  %v5191_v19 = vld [vmem:[#allocation2 + $0xb8] sm:$0xff] }
 0x829   : > { %4172 = vst.msk [vmem:[#allocation2 + $0xd1] sm:$0xff] %vm11573_vm11, %v4101_v7  ;;  %6269 = vmatmul.mubr.msk.f32.gmra.mrb[20].mxu1 %vm5209_vm0, %v5191_v19  ;;  %v4896_v0 = vpop.permute.xlu0 %4895  ;;  %vm11578_vm11 = vcmask 450944  }
 0x82a   : > { %4961 = vst.msk [vmem:[#allocation2 + $0xc0] sm:$0xff] %vm4784_vm7, %v4896_v0 }
 0x82c   : > { %v4714_v51 = vpop.permute.xlu1 %4713 }
 0x82d   : > { %4779 = vst.msk [vmem:[#allocation2 + $0xc9] sm:$0x7f] %vm4754_vm8, %v4714_v51  ;;  %v4297_v5 = vpop.permute.xlu0 %4296 }
 0x82e   : > { %4366 = vst.msk [vmem:[#allocation2 + $0xd8] sm:$0xff] %vm4338_vm3, %v4297_v5 }
 0x82f   : > { %4385 = vst.msk [vmem:[#allocation2 + $0xdf] sm:$0x1] %vm11574_vm2, %v11478_v22  ;;  %vm11579_vm2 = vcmask 64512  }
 0x830   : > { %v4295_v3 = vpop.permute.xlu1 %4294 }
 0x831   : > { %4365 = vst.msk [vmem:[#allocation2 + $0xd0] sm:$0xff] %vm4338_vm3, %v4295_v3  ;;  %v5096_v36 = vpop.permute.xlu0 %5095 }
 0x832   : > { %5162 = vst.msk [vmem:[#allocation2 + $0xc0] sm:$0xff] %vm4967_vm6, %v5096_v36 }
 0x834   : > { %v4898_v42 = vpop.permute.xlu1 %4897 }
 0x835   : > { %4962 = vst.msk [vmem:[#allocation2 + $0xc8] sm:$0xff] %vm4784_vm7, %v4898_v42  ;;  %v3701_v9 = vpop.permute.xlu0 %3700 }
 0x836   : > { %4983 = vst.msk [vmem:[#allocation2 + $0xcf] sm:$0x1] %vm4970_vm12, %v11478_v22 }
 0x837   : > { %3763 = vst.msk [vmem:[#allocation2 + $0xe8] sm:$0xff] %vm11575_vm5, %v3701_v9  ;;  %vm11580_vm5 = vcmask 195712  }
 0x838   : > { %3784 = vst.msk [vmem:[#allocation2 + $0xef] sm:$0x1] %vm3769_vm1, %v11478_v22  ;;  %v3699_v49 = vpop.permute.xlu1 %3698 }
 0x839   : > { %v4507_v13 = vpop.permute.xlu0 %4506  ;;  %v5192_v63 = vld [vmem:[#allocation2 + $0xc0] sm:$0xff]  ;;  %3762 = vst.msk [vmem:[#allocation2 + $0xe0] sm:$0xff] %vm11576_vm15, %v3699_v49  ;;  %vm11581_vm15 = vmmov %vm11579_vm2 }
 0x83a   : > { %4577 = vst.msk [vmem:[#allocation2 + $0xd8] sm:$0x7f] %vm4550_vm14, %v4507_v13  ;;  %6271 = vmatprep.mubr.msk.f32.mxu1 %vm5209_vm0, %v5192_v63 }
 0x83c   : > { %v4505_v6 = vpop.permute.xlu1 %4504  ;;  %v10288_v58 = vpop.f32.mrb[8].mxu1 }
 0x83d   : > { %4576 = vst.msk [vmem:[#allocation2 + $0xd0] sm:$0xff] %vm11577_vm9, %v4505_v6  ;;  %v10291_v23 = vpop.f32.mrb[9].mxu1  ;;  %v3899_v40 = vpop.permute.xlu0 %3898  ;;  %v5552_v12 = vsel %vm11581_vm15, %v10288_v58, 0.0  ;;  %vm11582_vm9 = vcmask 458112  }
 0x83e   : > { %4599 = vst.msk [vmem:[#allocation2 + $0xd0] sm:$0x1] %vm11578_vm11, %v11478_v22  ;;  %v5550_v1 = vsel %vm11579_vm2, %v10291_v23, 0.0  ;;  %vm11583_vm11 = vcmask 194688   ;;  %vm11584_vm2 = vcmask 261312  }
 0x83f   : > { %3963 = vst.msk [vmem:[#allocation2 + $0xe0] sm:$0xff] %vm11580_vm5, %v3899_v40  ;;  %v5551_v53 = vadd.f32 %v5550_v1, %v5549_v27  ;;  %vm11585_vm5 = vcmask 130112  }
 0x840   : > { %3982 = vst.msk [vmem:[#allocation2 + $0xe0] sm:$0x1] %vm3967_vm4, %v11478_v22  ;;  %v5098_v4 = vpop.permute.xlu1 %5097  ;;  %vm11586_vm15 = vmmov %vm11585_vm5 }
 0x841   : > { %5163 = vst.msk [vmem:[#allocation2 + $0xc8] sm:$0x7f] %vm5138_vm13, %v5098_v4  ;;  %v4716_v16 = vpop.permute.xlu0 %4715  ;;  %v5553_v62 = vadd.f32 %v5552_v12, %v5551_v53 }
 0x842   : > { %4780 = vst.msk [vmem:[#allocation2 + $0xd1] sm:$0xff] %vm11582_vm9, %v4716_v16  ;;  %vm11587_vm9 = vcmask 385344  }
 0x844   : > { %v3901_v28 = vpop.permute.xlu1 %3900 }
 0x845   : > { %3964 = vst.msk [vmem:[#allocation2 + $0xe8] sm:$0x7f] %vm11583_vm11, %v3901_v28  ;;  %v4107_v21 = vpop.permute.xlu0 %4106 }
 0x846   : > { %4175 = vst.msk [vmem:[#allocation2 + $0xe9] sm:$0x7f] %vm4146_vm10, %v4107_v21 }
 0x848   : > { %v4105_v10 = vpop.permute.xlu1 %4104  ;;  %v5193_v37 = vld [vmem:[#allocation2 + $0xc8] sm:$0xff] }
 0x849   : > { %4174 = vst.msk [vmem:[#allocation2 + $0xe1] sm:$0xff] %vm11584_vm2, %v4105_v10  ;;  %6272 = vmatmul.mubr.msk.f32.gmra.mrb[22].mxu1 %vm5209_vm0, %v5193_v37  ;;  %v4900_v32 = vpop.permute.xlu0 %4899  ;;  %vm11590_vm2 = vcmask 64512  }
 0x84a   : > { %4963 = vst.msk [vmem:[#allocation2 + $0xd0] sm:$0xff] %vm4784_vm7, %v4900_v32 }
 0x84c   : > { %v4718_v20 = vpop.permute.xlu1 %4717 }
 0x84d   : > { %4781 = vst.msk [vmem:[#allocation2 + $0xd9] sm:$0x7f] %vm4754_vm8, %v4718_v20  ;;  %v3705_v26 = vpop.permute.xlu0 %3704 }
 0x84e   : > { %3765 = vst.msk [vmem:[#allocation2 + $0xf8] sm:$0xff] %vm11585_vm5, %v3705_v26  ;;  %vm11591_vm5 = vmmov %vm11590_vm2 }
 0x84f   : > { %3785 = vst.msk [vmem:[#allocation2 + $0xff] sm:$0x1] %vm3769_vm1, %v11478_v22  ;;  %vm11588_vm1 = vmmov %vm11583_vm11  ;;  %vm11589_vm11 = vcmask 195712  }
 0x850   : > { %v3703_v50 = vpop.permute.xlu1 %3702 }
 0x851   : > { %v4301_v61 = vpop.permute.xlu0 %4300  ;;  %3764 = vst.msk [vmem:[#allocation2 + $0xf0] sm:$0xff] %vm11586_vm15, %v3703_v50  ;;  %vm11592_vm15 = vcmask 392512  }
 0x852   : > { %4368 = vst.msk [vmem:[#allocation2 + $0xe8] sm:$0xff] %vm4338_vm3, %v4301_v61 }
 0x853   : > { %4386 = vst.msk [vmem:[#allocation2 + $0xef] sm:$0x1] %vm11587_vm9, %v11478_v22  ;;  %vm11593_vm9 = vcmask 450944  }
 0x854   : > { %v4299_v54 = vpop.permute.xlu1 %4298 }
 0x855   : > { %4367 = vst.msk [vmem:[#allocation2 + $0xe0] sm:$0xff] %vm4338_vm3, %v4299_v54  ;;  %v5100_v24 = vpop.permute.xlu0 %5099 }
 0x856   : > { %5164 = vst.msk [vmem:[#allocation2 + $0xd0] sm:$0xff] %vm4967_vm6, %v5100_v24 }
 0x858   : > { %v4902_v44 = vpop.permute.xlu1 %4901 }
 0x859   : > { %4964 = vst.msk [vmem:[#allocation2 + $0xd8] sm:$0xff] %vm4784_vm7, %v4902_v44  ;;  %v3905_v45 = vpop.permute.xlu0 %3904 }
 0x85a   : > { %4984 = vst.msk [vmem:[#allocation2 + $0xdf] sm:$0x1] %vm4970_vm12, %v11478_v22 }
 0x85b   : > { %3966 = vst.msk [vmem:[#allocation2 + $0xf8] sm:$0x7f] %vm11588_vm1, %v3905_v45  ;;  %vm11595_vm1 = vcmask 458112  }
 0x85c   : > { %v3903_v47 = vpop.permute.xlu1 %3902  ;;  %v10323_v29 = vpop.f32.mrb[10].mxu1 }
 0x85d   : > { %3965 = vst.msk [vmem:[#allocation2 + $0xf0] sm:$0xff] %vm11589_vm11, %v3903_v47  ;;  %v10326_v17 = vpop.f32.mrb[11].mxu1  ;;  %v4511_v56 = vpop.permute.xlu0 %4510  ;;  %v5194_v43 = vld [vmem:[#allocation2 + $0xd0] sm:$0xff]  ;;  %v5556_v52 = vsel %vm11591_vm5, %v10323_v29, 0.0  ;;  %vm11596_vm11 = vcmask 385344  }
 0x85e   : > { %3983 = vst.msk [vmem:[#allocation2 + $0xf0] sm:$0x1] %vm3967_vm4, %v11478_v22  ;;  %v5554_v33 = vsel %vm11590_vm2, %v10326_v17, 0.0  ;;  %6274 = vmatprep.mubr.msk.f32.mxu1 %vm5209_vm0, %v5194_v43  ;;  %vm11594_vm4 = vcmask 261312   ;;  %vm11600_vm2 = vmmov %vm11595_vm1 }
 0x85f   : > { %4579 = vst.msk [vmem:[#allocation2 + $0xe8] sm:$0x7f] %vm4550_vm14, %v4511_v56  ;;  %v5555_v8 = vadd.f32 %v5554_v33, %v5553_v62 }
 0x860   : > { %v4509_v14 = vpop.permute.xlu1 %4508 }
 0x861   : > { %4578 = vst.msk [vmem:[#allocation2 + $0xe0] sm:$0xff] %vm11592_vm15, %v4509_v14  ;;  %v4109_v25 = vpop.permute.xlu0 %4108  ;;  %v5557_v60 = vadd.f32 %v5556_v52, %v5555_v8 }
 0x862   : > { %4600 = vst.msk [vmem:[#allocation2 + $0xe0] sm:$0x1] %vm11593_vm9, %v11478_v22 }
 0x863   : > { %4176 = vst.msk [vmem:[#allocation2 + $0xf1] sm:$0xff] %vm11594_vm4, %v4109_v25 }
 0x864   : > { %v5102_v15 = vpop.permute.xlu1 %5101 }
 0x865   : > { %5165 = vst.msk [vmem:[#allocation2 + $0xd8] sm:$0x7f] %vm5138_vm13, %v5102_v15  ;;  %v4111_v46 = vpop.permute.xlu0 %4110 }
 0x866   : > { %4177 = vst.msk [vmem:[#allocation2 + $0xf9] sm:$0x7f] %vm4146_vm10, %v4111_v46  ;;  %vm11597_vm10 = vmmov %vm11592_vm15 }
 0x868   : > { %v4720_v34 = vpop.permute.xlu1 %4719 }
 0x869   : > { %4782 = vst.msk [vmem:[#allocation2 + $0xe1] sm:$0xff] %vm11595_vm1, %v4720_v34  ;;  %v4722_v59 = vpop.permute.xlu0 %4721 }
 0x86a   : > { %4783 = vst.msk [vmem:[#allocation2 + $0xe9] sm:$0x7f] %vm4754_vm8, %v4722_v59  ;;  %vm11598_vm8 = vmmov %vm11595_vm1 }
 0x86c   : > { %v4303_v27 = vpop.permute.xlu1 %4302  ;;  %v5195_v11 = vld [vmem:[#allocation2 + $0xd8] sm:$0xff] }
 0x86d   : > { %4369 = vst.msk [vmem:[#allocation2 + $0xf0] sm:$0xff] %vm4338_vm3, %v4303_v27  ;;  %6275 = vmatmul.mubr.msk.f32.gmra.mrb[24].mxu1 %vm5209_vm0, %v5195_v11  ;;  %v4305_v2 = vpop.permute.xlu0 %4304 }
 0x86e   : > { %4370 = vst.msk [vmem:[#allocation2 + $0xf8] sm:$0xff] %vm4338_vm3, %v4305_v2  ;;  %vm11599_vm3 = vmmov %vm11593_vm9 }
 0x86f   : > { %4387 = vst.msk [vmem:[#allocation2 + $0xff] sm:$0x1] %vm11596_vm11, %v11478_v22 }
 0x870   : > { %v4904_v7 = vpop.permute.xlu1 %4903 }
 0x871   : > { %4965 = vst.msk [vmem:[#allocation2 + $0xe0] sm:$0xff] %vm4784_vm7, %v4904_v7  ;;  %v4906_v19 = vpop.permute.xlu0 %4905 }
 0x872   : > { %4966 = vst.msk [vmem:[#allocation2 + $0xe8] sm:$0xff] %vm4784_vm7, %v4906_v19 }
 0x873   : > { %4985 = vst.msk [vmem:[#allocation2 + $0xef] sm:$0x1] %vm4970_vm12, %v11478_v22 }
 0x874   : > { %v4513_v0 = vpop.permute.xlu1 %4512 }
 0x875   : > { %4580 = vst.msk [vmem:[#allocation2 + $0xf0] sm:$0xff] %vm11597_vm10, %v4513_v0  ;;  %v4515_v51 = vpop.permute.xlu0 %4514 }
 0x876   : > { %4583 = vst.msk [vmem:[#allocation2 + $0xf0] sm:$0xff] %vm11598_vm8, %v11478_v22 }
 0x877   : > { %4581 = vst.msk [vmem:[#allocation2 + $0xf8] sm:$0x7f] %vm4550_vm14, %v4515_v51  ;;  %vm11601_vm14 = vmmov %vm11591_vm5 }
 0x878   : > { %4601 = vst.msk [vmem:[#allocation2 + $0xf0] sm:$0x1] %vm11599_vm3, %v11478_v22  ;;  %v5104_v5 = vpop.permute.xlu1 %5103 }
 0x879   : > { %4584 = vst.msk [vmem:[#allocation2 + $0xf8] sm:$0xff] %vm11600_vm2, %v11478_v22 }
 0x87a   : > { %4785 = vst.msk [vmem:[#allocation2 + $0xf0] sm:$0xff] %vm4784_vm7, %v11478_v22  ;;  %4786 = vst.msk [vmem:[#allocation2 + $0xf8] sm:$0xff] %vm4784_vm7, %v11478_v22 }
 0x87b   : > { %4968 = vst.msk [vmem:[#allocation2 + $0xf0] sm:$0xff] %vm4967_vm6, %v11478_v22  ;;  %5166 = vst.msk [vmem:[#allocation2 + $0xe0] sm:$0xff] %vm4967_vm6, %v5104_v5 }
 0x87c   : > { %4969 = vst.msk [vmem:[#allocation2 + $0xf8] sm:$0xff] %vm4967_vm6, %v11478_v22  ;;  %v5106_v3 = vpop.permute.xlu1 %5105  ;;  %v10372_v36 = vpop.f32.mrb[12].mxu1  ;;  %vm11602_vm7 = vmmov %vm11591_vm5 }
 0x87d   : > { %4986 = vst.msk [vmem:[#allocation2 + $0xff] sm:$0x1] %vm4970_vm12, %v11478_v22  ;;  %v10375_v42 = vpop.f32.mrb[13].mxu1  ;;  %v5560_v13 = vsel %vm11602_vm7, %v10372_v36, 0.0  ;;  %vm11604_vm12 = vmmov %vm11591_vm5 }
 0x87e   : > { %5167 = vst.msk [vmem:[#allocation2 + $0xe8] sm:$0x7f] %vm5138_vm13, %v5106_v3  ;;  %v5558_v9 = vsel %vm11601_vm14, %v10375_v42, 0.0  ;;  %vm11603_vm13 = vmmov %vm11591_vm5 }
 0x87f   : > { %v5559_v49 = vadd.f32 %v5558_v9, %v5557_v60  ;;  %vm11605_vm6 = vmmov %vm11591_vm5 }
 0x881   : > { %v5561_v6 = vadd.f32 %v5560_v13, %v5559_v49 }
 0x882   : > { %v5196_v63 = vld [vmem:[#allocation2 + $0xe0] sm:$0xff]  ;;  %v5198_v40 = vld [vmem:[#allocation2 + $0xf0] sm:$0xff] }
 0x883   : > { %6277 = vmatprep.mubr.msk.f32.mxu1 %vm5209_vm0, %v5196_v63 }
 0x884   : > { %v5199_v1 = vld [vmem:[#allocation2 + $0xf8] sm:$0xff] }
 0x885   : > { %v5197_v22 = vld [vmem:[#allocation2 + $0xe8] sm:$0xff] }
 0x886   : > { %6278 = vmatmul.mubr.msk.f32.gmra.mrb[26].mxu1 %vm5209_vm0, %v5197_v22 }
 0x887   : > { %6280 = vmatprep.mubr.msk.f32.mxu1 %vm5209_vm0, %v5198_v40 }
 0x88a   : > { %6281 = vmatmul.mubr.msk.f32.gmra.mrb[28].mxu1 %vm5209_vm0, %v5199_v1  ;;  %vm11606_vm0 = vmmov %vm11591_vm5 }
 0x88b   : > { %vm11607_vm5 = vmmov %vm11606_vm0 }
 0x88c   : > { %vm11608_vm15 = vmmov %vm11606_vm0 }
 0x88d   : > { %vm11609_vm9 = vmmov %vm11606_vm0 }
 0x88e   : > { %vm11610_vm4 = vmmov %vm11606_vm0 }
 0x88f   : > { %vm11611_vm1 = vmmov %vm11606_vm0 }
 0x890   : > { %vm11612_vm11 = vmmov %vm11606_vm0 }
 0x891   : > { %vm11613_vm10 = vmmov %vm11606_vm0 }
 0x892   : > { %vm11614_vm8 = vmmov %vm11606_vm0 }
 0x893   : > { %vm11615_vm3 = vmmov %vm11606_vm0 }
 0x894   : > { %vm11616_vm2 = vmmov %vm11606_vm0 }
 0x895   : > { %vm11617_vm14 = vmmov %vm11606_vm0 }
 0x896   : > { %vm11618_vm7 = vmmov %vm11606_vm0 }
 0x89c   : > { %v10385_v53 = vpop.f32.mrb[14].mxu1 }
 0x89d   : > { %v10387_v12 = vpop.f32.mrb[15].mxu1  ;;  %v5564_v62 = vsel %vm11604_vm12, %v10385_v53, 0.0  ;;  %vm11620_vm12 = vmmov %vm11606_vm0 }
 0x89e   : > { %v5562_v4 = vsel %vm11603_vm13, %v10387_v12, 0.0  ;;  %vm11619_vm13 = vmmov %vm11606_vm0 }
 0x89f   : > { %v5563_v16 = vadd.f32 %v5562_v4, %v5561_v6 }
 0x8a1   : > { %v5565_v28 = vadd.f32 %v5564_v62, %v5563_v16 }
 0x8bc   : > { %v10393_v21 = vpop.f32.mrb[16].mxu1 }
 0x8bd   : > { %v10395_v10 = vpop.f32.mrb[17].mxu1  ;;  %v5568_v20 = vsel %vm11606_vm0, %v10393_v21, 0.0 }
 0x8be   : > { %v5566_v37 = vsel %vm11605_vm6, %v10395_v10, 0.0  ;;  %vm11621_vm6 = vmmov %vm11606_vm0 }
 0x8bf   : > { %v5567_v32 = vadd.f32 %v5566_v37, %v5565_v28 }
 0x8c1   : > { %v5569_v26 = vadd.f32 %v5568_v20, %v5567_v32 }
 0x8dc   : > { %v10401_v50 = vpop.f32.mrb[18].mxu1 }
 0x8dd   : > { %v10403_v61 = vpop.f32.mrb[19].mxu1  ;;  %v5572_v44 = vsel %vm11608_vm15, %v10401_v50, 0.0  ;;  %vm11623_vm15 = vmmov %vm11606_vm0 }
 0x8de   : > { %v5570_v54 = vsel %vm11607_vm5, %v10403_v61, 0.0  ;;  %vm11622_vm5 = vmmov %vm11606_vm0 }
 0x8df   : > { %v5571_v24 = vadd.f32 %v5570_v54, %v5569_v26 }
 0x8e1   : > { %v5573_v45 = vadd.f32 %v5572_v44, %v5571_v24 }
 0x8fc   : > { %v10409_v47 = vpop.f32.mrb[20].mxu1 }
 0x8fd   : > { %v10411_v56 = vpop.f32.mrb[21].mxu1  ;;  %v5576_v8 = vsel %vm11610_vm4, %v10409_v47, 0.0  ;;  %vm11625_vm4 = vmmov %vm11606_vm0 }
 0x8fe   : > { %v5574_v43 = vsel %vm11609_vm9, %v10411_v56, 0.0  ;;  %vm11624_vm9 = vmmov %vm11606_vm0 }
 0x8ff   : > { %v5575_v33 = vadd.f32 %v5574_v43, %v5573_v45 }
 0x901   : > { %v5577_v52 = vadd.f32 %v5576_v8, %v5575_v33 }
 0x91c   : > { %v10417_v14 = vpop.f32.mrb[22].mxu1 }
 0x91d   : > { %v10419_v25 = vpop.f32.mrb[23].mxu1  ;;  %v5580_v46 = vsel %vm11612_vm11, %v10417_v14, 0.0  ;;  %vm11627_vm11 = vmmov %vm11606_vm0 }
 0x91e   : > { %v5578_v60 = vsel %vm11611_vm1, %v10419_v25, 0.0  ;;  %vm11626_vm1 = vmmov %vm11606_vm0 }
 0x91f   : > { %v5579_v15 = vadd.f32 %v5578_v60, %v5577_v52 }
 0x921   : > { %v5581_v34 = vadd.f32 %v5580_v46, %v5579_v15 }
 0x940   : > { %v10425_v59 = vpop.f32.mrb[24].mxu1 }
 0x941   : > { %v10427_v27 = vpop.f32.mrb[25].mxu1  ;;  %v5584_v7 = vsel %vm11614_vm8, %v10425_v59, 0.0  ;;  %vm11629_vm8 = vmmov %vm11606_vm0 }
 0x942   : > { %v5582_v11 = vsel %vm11613_vm10, %v10427_v27, 0.0  ;;  %vm11628_vm10 = vmmov %vm11606_vm0 }
 0x943   : > { %v5583_v2 = vadd.f32 %v5582_v11, %v5581_v34 }
 0x945   : > { %v5585_v19 = vadd.f32 %v5584_v7, %v5583_v2 }
 0x959   : > { %v10433_v0 = vpop.f32.mrb[26].mxu1 }
 0x95a   : > { %v10435_v51 = vpop.f32.mrb[27].mxu1  ;;  %v5588_v9 = vsel %vm11616_vm2, %v10433_v0, 0.0  ;;  %vm11631_vm2 = vmmov %vm11606_vm0 }
 0x95b   : > { %v5586_v5 = vsel %vm11615_vm3, %v10435_v51, 0.0  ;;  %vm11630_vm3 = vmmov %vm11606_vm0 }
 0x95c   : > { %v5587_v3 = vadd.f32 %v5586_v5, %v5585_v19 }
 0x95d   : > { %v10441_v49 = vpop.f32.mrb[28].mxu1 }
 0x95e   : > { %v10443_v13 = vpop.f32.mrb[29].mxu1  ;;  %v5589_v63 = vadd.f32 %v5588_v9, %v5587_v3  ;;  %v5592_v22 = vsel %vm11618_vm7, %v10441_v49, 0.0  ;;  %vm11633_vm7 = vmmov %vm11606_vm0 }
 0x95f   : > { %v5590_v6 = vsel %vm11617_vm14, %v10443_v13, 0.0  ;;  %vm11632_vm14 = vmmov %vm11606_vm0 }
 0x960   : > { %v5591_v40 = vadd.f32 %v5590_v6, %v5589_v63 }
 0x962   : > { %v5593_v1 = vadd.f32 %v5592_v22, %v5591_v40 }
 0x964   : > { %5594 = vadd.xlane.f32.xlu0 %v5593_v1 }
 0x9f1   : > { %v5595_v4 = vpop.xlane.xlu0 %5594 }
 0x9f2   : > { %v5596_v16 = vrot.slane %v5595_v4, 4 }
 0x9f4   : > { %v5597_v62 = vadd.f32 %v5596_v16, %v5595_v4 }
 0x9f6   : > { %v5598_v28 = vrot.slane %v5597_v62, 2 }
 0x9f8   : > { %v5599_v37 = vadd.f32 %v5598_v28, %v5597_v62 }
 0x9fa   : > { %v5600_v32 = vrot.slane %v5599_v37, 1 }
 0x9fc   : > { %v5601_v20 = vadd.f32 %v5600_v32, %v5599_v37 }
 0x9fe   : > { %6321 = vpush %v5601_v20 }
 0xa2f   : > { %s6322_s8 = spop %6321 }
 0xa30   : > { %v5603_v26 = vstv %s6322_s8 }
 0xa31   : > { %v10449_v54 = vmul.f32 0.00048828125, %v5603_v26 }
 0xa33   : > { %v5605_v24 = vsub.f32 %v10057_v39, %v10449_v54  ;;  %v5606_v44 = vsub.f32 %v10052_v35, %v10449_v54  ;;  %v5607_v45 = vsub.f32 %v10099_v30, %v10449_v54  ;;  %v5608_v43 = vsub.f32 %v10096_v38, %v10449_v54 }
 0xa34   : > { %v5609_v52 = vsub.f32 %v10156_v18, %v10449_v54  ;;  %v5610_v15 = vsub.f32 %v10153_v41, %v10449_v54  ;;  %v5611_v7 = vsub.f32 %v10212_v48, %v10449_v54  ;;  %v5612_v9 = vsub.f32 %v10209_v55, %v10449_v54 }
 0xa35   : > { %v5637_v33 = vmul.f32 %v5605_v24, %v5605_v24  ;;  %v5638_v8 = vmul.f32 %v5606_v44, %v5606_v44  ;;  %v5639_v60 = vmul.f32 %v5607_v45, %v5607_v45  ;;  %v5640_v46 = vmul.f32 %v5608_v43, %v5608_v43 }
 0xa36   : > { %v5641_v19 = vmul.f32 %v5609_v52, %v5609_v52  ;;  %v5642_v63 = vmul.f32 %v5610_v15, %v5610_v15  ;;  %v5613_v22 = vsub.f32 %v10255_v57, %v10449_v54  ;;  %v5643_v1 = vmul.f32 %v5611_v7, %v5611_v7 }
 0xa37   : > { %v5669_v34 = vsel %vm11619_vm13, %v5637_v33, 0.0  ;;  %v5670_v11 = vsel %vm11620_vm12, %v5638_v8, 0.0  ;;  %v5672_v5 = vsel %vm11621_vm6, %v5639_v60, 0.0  ;;  %v5674_v6 = vsel %vm11606_vm0, %v5640_v46, 0.0  ;;  %vm11634_vm13 = vmmov %vm11606_vm0 }
 0xa38   : > { %v5671_v2 = vadd.f32 %v5670_v11, %v5669_v34  ;;  %v5676_v4 = vsel %vm11622_vm5, %v5641_v19, 0.0  ;;  %v5614_v62 = vsub.f32 %v10252_v31, %v10449_v54  ;;  %v5644_v28 = vmul.f32 %v5612_v9, %v5612_v9  ;;  %vm11635_vm12 = vmmov %vm11606_vm0 }
 0xa39   : > { %v5678_v37 = vsel %vm11623_vm15, %v5642_v63, 0.0  ;;  %v5615_v20 = vsub.f32 %v10291_v23, %v10449_v54  ;;  %v5645_v26 = vmul.f32 %v5613_v22, %v5613_v22  ;;  %v5680_v24 = vsel %vm11624_vm9, %v5643_v1, 0.0  ;;  %vm11636_vm6 = vmmov %vm11606_vm0 }
 0xa3a   : > { %v5673_v3 = vadd.f32 %v5672_v5, %v5671_v2  ;;  %v5616_v45 = vsub.f32 %v10288_v58, %v10449_v54  ;;  %v5646_v43 = vmul.f32 %v5614_v62, %v5614_v62  ;;  %v5682_v33 = vsel %vm11625_vm4, %v5644_v28, 0.0  ;;  %vm11637_vm5 = vmmov %vm11606_vm0 }
 0xa3b   : > { %v5617_v52 = vsub.f32 %v10326_v17, %v10449_v54  ;;  %v5647_v60 = vmul.f32 %v5615_v20, %v5615_v20  ;;  %v5684_v15 = vsel %vm11626_vm1, %v5645_v26, 0.0  ;;  %v5618_v34 = vsub.f32 %v10323_v29, %v10449_v54  ;;  %vm11638_vm15 = vmmov %vm11606_vm0 }
 0xa3c   : > { %v5675_v40 = vadd.f32 %v5674_v6, %v5673_v3  ;;  %v5648_v11 = vmul.f32 %v5616_v45, %v5616_v45  ;;  %v5686_v2 = vsel %vm11627_vm11, %v5646_v43, 0.0  ;;  %v5619_v19 = vsub.f32 %v10375_v42, %v10449_v54  ;;  %vm11639_vm9 = vmmov %vm11606_vm0 }
 0xa3d   : > { %v5649_v5 = vmul.f32 %v5617_v52, %v5617_v52  ;;  %v5688_v3 = vsel %vm11628_vm10, %v5647_v60, 0.0  ;;  %v5620_v63 = vsub.f32 %v10372_v36, %v10449_v54  ;;  %v5650_v6 = vmul.f32 %v5618_v34, %v5618_v34  ;;  %vm11640_vm4 = vmmov %vm11606_vm0 }
 0xa3e   : > { %v5677_v16 = vadd.f32 %v5676_v4, %v5675_v40  ;;  %v5690_v40 = vsel %vm11629_vm8, %v5648_v11, 0.0  ;;  %v5621_v1 = vsub.f32 %v10387_v12, %v10449_v54  ;;  %v5651_v4 = vmul.f32 %v5619_v19, %v5619_v19  ;;  %vm11641_vm1 = vmmov %vm11606_vm0 }
 0xa3f   : > { %v5622_v28 = vsub.f32 %v10385_v53, %v10449_v54  ;;  %v5623_v26 = vsub.f32 %v10395_v10, %v10449_v54  ;;  %v5624_v43 = vsub.f32 %v10393_v21, %v10449_v54  ;;  %v5625_v60 = vsub.f32 %v10403_v61, %v10449_v54  ;;  %vm11642_vm11 = vmmov %vm11606_vm0 }
 0xa40   : > { %v5679_v32 = vadd.f32 %v5678_v37, %v5677_v16  ;;  %v5692_v16 = vsel %vm11630_vm3, %v5649_v5, 0.0  ;;  %v5652_v37 = vmul.f32 %v5620_v63, %v5620_v63  ;;  %v5626_v11 = vsub.f32 %v10401_v50, %v10449_v54  ;;  %vm11643_vm10 = vmmov %vm11606_vm0 }
 0xa41   : > { %v5627_v5 = vsub.f32 %v10411_v56, %v10449_v54  ;;  %vm11644_vm8 = vmmov %vm11606_vm0 }
 0xa42   : > { %v5681_v44 = vadd.f32 %v5680_v24, %v5679_v32  ;;  %v5694_v32 = vsel %vm11631_vm2, %v5650_v6, 0.0  ;;  %v5653_v24 = vmul.f32 %v5621_v1, %v5621_v1  ;;  %v5628_v6 = vsub.f32 %v10409_v47, %v10449_v54  ;;  %vm11645_vm3 = vmmov %vm11606_vm0 }
 0xa43   : > { %vm11646_vm2 = vmmov %vm11606_vm0 }
 0xa44   : > { %v5683_v8 = vadd.f32 %v5682_v33, %v5681_v44  ;;  %v5696_v44 = vsel %vm11632_vm14, %v5651_v4, 0.0  ;;  %v5654_v33 = vmul.f32 %v5622_v28, %v5622_v28  ;;  %v5629_v4 = vsub.f32 %v10419_v25, %v10449_v54  ;;  %vm11647_vm14 = vmmov %vm11606_vm0 }
 0xa46   : > { %v5685_v46 = vadd.f32 %v5684_v15, %v5683_v8  ;;  %v5698_v8 = vsel %vm11633_vm7, %v5652_v37, 0.0  ;;  %v5655_v15 = vmul.f32 %v5623_v26, %v5623_v26  ;;  %v5630_v37 = vsub.f32 %v10417_v14, %v10449_v54  ;;  %vm11648_vm7 = vmmov %vm11606_vm0 }
 0xa48   : > { %v5687_v7 = vadd.f32 %v5686_v2, %v5685_v46  ;;  %v5700_v46 = vsel %vm11634_vm13, %v5653_v24, 0.0  ;;  %v5656_v2 = vmul.f32 %v5624_v43, %v5624_v43  ;;  %v5631_v24 = vsub.f32 %v10427_v27, %v10449_v54  ;;  %vm11650_vm13 = vmmov %vm11606_vm0 }
 0xa4a   : > { %v5689_v9 = vadd.f32 %v5688_v3, %v5687_v7  ;;  %v5702_v7 = vsel %vm11635_vm12, %v5654_v33, 0.0  ;;  %v5657_v3 = vmul.f32 %v5625_v60, %v5625_v60  ;;  %v5632_v33 = vsub.f32 %v10425_v59, %v10449_v54  ;;  %vm11651_vm12 = vmmov %vm11606_vm0 }
 0xa4c   : > { %v5691_v22 = vadd.f32 %v5690_v40, %v5689_v9  ;;  %v5704_v9 = vsel %vm11636_vm6, %v5655_v15, 0.0  ;;  %v5658_v40 = vmul.f32 %v5626_v11, %v5626_v11  ;;  %v5633_v15 = vsub.f32 %v10435_v51, %v10449_v54  ;;  %vm11652_vm6 = vmmov %vm11606_vm0 }
 0xa4e   : > { %v5693_v62 = vadd.f32 %v5692_v16, %v5691_v22  ;;  %v5706_v22 = vsel %vm11606_vm0, %v5656_v2, 0.0  ;;  %v5659_v16 = vmul.f32 %v5627_v5, %v5627_v5  ;;  %v5634_v2 = vsub.f32 %v10433_v0, %v10449_v54 }
 0xa50   : > { %v5695_v20 = vadd.f32 %v5694_v32, %v5693_v62  ;;  %v5708_v62 = vsel %vm11637_vm5, %v5657_v3, 0.0  ;;  %v5660_v32 = vmul.f32 %v5628_v6, %v5628_v6  ;;  %v5635_v3 = vsub.f32 %v10443_v13, %v10449_v54  ;;  %vm11653_vm5 = vmmov %vm11606_vm0 }
 0xa52   : > { %v5697_v45 = vadd.f32 %v5696_v44, %v5695_v20  ;;  %v5710_v20 = vsel %vm11638_vm15, %v5658_v40, 0.0  ;;  %v5661_v44 = vmul.f32 %v5629_v4, %v5629_v4  ;;  %v5636_v40 = vsub.f32 %v10441_v49, %v10449_v54  ;;  %vm11654_vm15 = vmmov %vm11606_vm0 }
 0xa54   : > { %v5699_v52 = vadd.f32 %v5698_v8, %v5697_v45  ;;  %v5712_v45 = vsel %vm11639_vm9, %v5659_v16, 0.0  ;;  %v5662_v8 = vmul.f32 %v5630_v37, %v5630_v37  ;;  %v5667_v16 = vmul.f32 %v5635_v3, %v5635_v3  ;;  %v5747_v3 = vld [vmem:[%s10668_s6] sm:$0x1]  ;;  %vm11655_vm9 = vmmov %vm11606_vm0 }
 0xa55   : > { %v5668_v37 = vmul.f32 %v5636_v40, %v5636_v40 }
 0xa56   : > { %v5701_v34 = vadd.f32 %v5700_v46, %v5699_v52  ;;  %v5714_v52 = vsel %vm11640_vm4, %v5660_v32, 0.0  ;;  %v5663_v46 = vmul.f32 %v5631_v24, %v5631_v24  ;;  %vm11656_vm4 = vmmov %vm11606_vm0 }
 0xa58   : > { %v5703_v19 = vadd.f32 %v5702_v7, %v5701_v34  ;;  %v5716_v34 = vsel %vm11641_vm1, %v5661_v44, 0.0  ;;  %v5664_v7 = vmul.f32 %v5632_v33, %v5632_v33  ;;  %v5730_v44 = vsel %vm11648_vm7, %v5668_v37, 0.0  ;;  %vm11657_vm1 = vmmov %vm11606_vm0 }
 0xa59   : > { %vm11664_vm7 = vmmov %vm11606_vm0 }
 0xa5a   : > { %v5705_v63 = vadd.f32 %v5704_v9, %v5703_v19  ;;  %v5718_v19 = vsel %vm11642_vm11, %v5662_v8, 0.0  ;;  %v5665_v9 = vmul.f32 %v5633_v15, %v5633_v15  ;;  %vm11658_vm11 = vmmov %vm11606_vm0 }
 0xa5c   : > { %v5707_v1 = vadd.f32 %v5706_v22, %v5705_v63  ;;  %v5720_v63 = vsel %vm11643_vm10, %v5663_v46, 0.0  ;;  %v5666_v22 = vmul.f32 %v5634_v2, %v5634_v2  ;;  %vm11659_vm10 = vmmov %vm11606_vm0 }
 0xa5e   : > { %v5709_v28 = vadd.f32 %v5708_v62, %v5707_v1  ;;  %v5722_v1 = vsel %vm11644_vm8, %v5664_v7, 0.0  ;;  %v5724_v62 = vsel %vm11645_vm3, %v5665_v9, 0.0  ;;  %v5726_v32 = vsel %vm11646_vm2, %v5666_v22, 0.0  ;;  %v5745_v7 = vld [vmem:[%s10667_s5] sm:$0x1]  ;;  %vm11660_vm8 = vmmov %vm11606_vm0 }
 0xa5f   : > { %vm11661_vm3 = vmmov %vm11606_vm0 }
 0xa60   : > { %v5711_v26 = vadd.f32 %v5710_v20, %v5709_v28  ;;  %vm11662_vm2 = vmmov %vm11606_vm0 }
 0xa62   : > { %v5713_v43 = vadd.f32 %v5712_v45, %v5711_v26  ;;  %v5728_v26 = vsel %vm11647_vm14, %v5667_v16, 0.0  ;;  %vm11663_vm14 = vmmov %vm11606_vm0 }
 0xa64   : > { %v5715_v60 = vadd.f32 %v5714_v52, %v5713_v43 }
 0xa66   : > { %v5717_v11 = vadd.f32 %v5716_v34, %v5715_v60 }
 0xa68   : > { %v5719_v5 = vadd.f32 %v5718_v19, %v5717_v11 }
 0xa6a   : > { %v5721_v6 = vadd.f32 %v5720_v63, %v5719_v5  ;;  %v11649_v63 = vld [vmem:[#allocation4_spill] sm:$0xff] }
 0xa6c   : > { %v5723_v4 = vadd.f32 %v5722_v1, %v5721_v6 }
 0xa6e   : > { %v5725_v28 = vadd.f32 %v5724_v62, %v5723_v4 }
 0xa70   : > { %v5727_v20 = vadd.f32 %v5726_v32, %v5725_v28 }
 0xa72   : > { %v5729_v24 = vadd.f32 %v5728_v26, %v5727_v20 }
 0xa74   : > { %v5731_v45 = vadd.f32 %v5730_v44, %v5729_v24 }
 0xa76   : > { %5732 = vadd.xlane.f32.xlu1 %v5731_v45 }
 0xb03   : > { %v5733_v43 = vpop.xlane.xlu1 %5732 }
 0xb04   : > { %v5734_v33 = vrot.slane %v5733_v43, 4 }
 0xb06   : > { %v5735_v8 = vadd.f32 %v5734_v33, %v5733_v43 }
 0xb08   : > { %v5736_v52 = vrot.slane %v5735_v8, 2 }
 0xb0a   : > { %v5737_v60 = vadd.f32 %v5736_v52, %v5735_v8 }
 0xb0c   : > { %v5738_v15 = vrot.slane %v5737_v60, 1 }
 0xb0e   : > { %v5739_v46 = vadd.f32 %v5738_v15, %v5737_v60 }
 0xb10   : > { %6323 = vpush %v5739_v46 }
 0xb41   : > { %s6324_s12 = spop %6323 }
 0xb42   : > { %v5741_v34 = vstv %s6324_s12 }
 0xb43   : > { %v5742_v11 = vmul.f32 0.00048828125, %v5741_v34 }
 0xb45   : > { %v5743_v2 = vadd.f32 1e-05, %v5742_v11 }
 0xb47   : > { %6476 = vrsqrt.f32 %v5743_v2 }
 0xb51   : > { %v6477_v19 = vpop.eup %6476 }
 0xb52   : > { %v5746_v5 = vmul.f32 %v6477_v19, %v5745_v7 }
 0xb54   : > { %v5748_v9 = vmul.f32 %v5746_v5, %v10449_v54  ;;  %v5754_v6 = vrot.slane %v5746_v5, %v11649_v63 }
 0xb56   : > { %v5749_v40 = vsub.f32 %v5747_v3, %v5748_v9  ;;  %v5756_v22 = vmul.f32 %v5754_v6, %v10057_v39  ;;  %v5757_v1 = vmul.f32 %v10052_v35, %v5754_v6  ;;  %v5758_v4 = vmul.f32 %v5754_v6, %v10099_v30 }
 0xb57   : > { %v5759_v16 = vmul.f32 %v10096_v38, %v5754_v6  ;;  %v5760_v62 = vmul.f32 %v5754_v6, %v10156_v18  ;;  %v5761_v28 = vmul.f32 %v10153_v41, %v5754_v6  ;;  %v5762_v37 = vmul.f32 %v5754_v6, %v10212_v48 }
 0xb58   : > { %v5763_v32 = vmul.f32 %v10209_v55, %v5754_v6  ;;  %v5764_v54 = vmul.f32 %v5754_v6, %v10255_v57  ;;  %v5765_v20 = vmul.f32 %v10252_v31, %v5754_v6  ;;  %v5766_v39 = vmul.f32 %v5754_v6, %v10291_v23 }
 0xb59   : > { %v5767_v35 = vmul.f32 %v10288_v58, %v5754_v6  ;;  %v5768_v30 = vmul.f32 %v5754_v6, %v10326_v17  ;;  %v5769_v38 = vmul.f32 %v10323_v29, %v5754_v6  ;;  %v5770_v18 = vmul.f32 %v5754_v6, %v10375_v42 }
 0xb5a   : > { %v5771_v41 = vmul.f32 %v10372_v36, %v5754_v6  ;;  %v5772_v48 = vmul.f32 %v5754_v6, %v10387_v12  ;;  %v5773_v55 = vmul.f32 %v10385_v53, %v5754_v6  ;;  %v5774_v57 = vmul.f32 %v5754_v6, %v10395_v10 }
 0xb5b   : > { %v5775_v31 = vmul.f32 %v10393_v21, %v5754_v6  ;;  %v5776_v23 = vmul.f32 %v5754_v6, %v10403_v61  ;;  %v5777_v58 = vmul.f32 %v10401_v50, %v5754_v6  ;;  %v5778_v17 = vmul.f32 %v5754_v6, %v10411_v56 }
 0xb5c   : > { %v5779_v29 = vmul.f32 %v10409_v47, %v5754_v6  ;;  %v5780_v42 = vmul.f32 %v5754_v6, %v10419_v25  ;;  %v5781_v36 = vmul.f32 %v10417_v14, %v5754_v6  ;;  %v5782_v12 = vmul.f32 %v5754_v6, %v10427_v27 }
 0xb5d   : > { %v5783_v53 = vmul.f32 %v10425_v59, %v5754_v6  ;;  %v5792_v10 = vrot.slane %v5749_v40, %v11649_v63  ;;  %v5784_v21 = vmul.f32 %v5754_v6, %v10435_v51  ;;  %v5785_v50 = vmul.f32 %v10433_v0, %v5754_v6 }
 0xb5e   : > { %v5786_v61 = vmul.f32 %v5754_v6, %v10443_v13  ;;  %v5787_v47 = vmul.f32 %v10441_v49, %v5754_v6 }
 0xb5f   : > { %v5794_v56 = vadd.f32 %v5792_v10, %v5756_v22  ;;  %v5795_v14 = vadd.f32 %v5792_v10, %v5757_v1  ;;  %v5796_v25 = vadd.f32 %v5792_v10, %v5758_v4  ;;  %v5797_v59 = vadd.f32 %v5792_v10, %v5759_v16 }
 0xb60   : > { %v5798_v27 = vadd.f32 %v5792_v10, %v5760_v62  ;;  %v5799_v26 = vadd.f32 %v5792_v10, %v5761_v28  ;;  %v5800_v24 = vadd.f32 %v5792_v10, %v5762_v37  ;;  %v5801_v51 = vadd.f32 %v5792_v10, %v5763_v32 }
 0xb61   : > { %v5802_v0 = vadd.f32 %v5792_v10, %v5764_v54  ;;  %v5803_v44 = vadd.f32 %v5792_v10, %v5765_v20  ;;  %v5804_v45 = vadd.f32 %v5792_v10, %v5766_v39  ;;  %v5805_v13 = vadd.f32 %v5792_v10, %v5767_v35  ;;  %5826 = vst.msk [vmem:[%s10589_s29] sm:$0xff] %vm11650_vm13, %v5794_v56  ;;  %vm11665_vm13 = vmmov %vm11606_vm0 }
 0xb62   : > { %5827 = vst.msk [vmem:[%s10589_s29 + $0x8] sm:$0xff] %vm11651_vm12, %v5795_v14  ;;  %v5806_v49 = vadd.f32 %v5792_v10, %v5768_v30  ;;  %v5807_v43 = vadd.f32 %v5792_v10, %v5769_v38  ;;  %v5808_v33 = vadd.f32 %v5792_v10, %v5770_v18  ;;  %v5809_v8 = vadd.f32 %v5792_v10, %v5771_v41  ;;  %vm11666_vm12 = vmmov %vm11606_vm0 }
 0xb63   : > { %5828 = vst.msk [vmem:[%s10589_s29 + $0x10] sm:$0xff] %vm11652_vm6, %v5796_v25  ;;  %v5810_v52 = vadd.f32 %v5792_v10, %v5772_v48  ;;  %v5811_v60 = vadd.f32 %v5792_v10, %v5773_v55  ;;  %v5812_v15 = vadd.f32 %v5792_v10, %v5774_v57  ;;  %v5813_v46 = vadd.f32 %v5792_v10, %v5775_v31  ;;  %vm11667_vm6 = vmmov %vm11606_vm0 }
 0xb64   : > { %5829 = vst.msk [vmem:[%s10589_s29 + $0x18] sm:$0xff] %vm11606_vm0, %v5797_v59  ;;  %v5814_v34 = vadd.f32 %v5792_v10, %v5776_v23  ;;  %v5815_v11 = vadd.f32 %v5792_v10, %v5777_v58  ;;  %v5816_v2 = vadd.f32 %v5792_v10, %v5778_v17  ;;  %v5817_v7 = vadd.f32 %v5792_v10, %v5779_v29 }
 0xb65   : > { %5830 = vst.msk [vmem:[%s10589_s29 + $0x20] sm:$0xff] %vm11653_vm5, %v5798_v27  ;;  %v5818_v19 = vadd.f32 %v5792_v10, %v5780_v42  ;;  %v5819_v5 = vadd.f32 %v5792_v10, %v5781_v36  ;;  %v5820_v3 = vadd.f32 %v5792_v10, %v5782_v12  ;;  %v5821_v9 = vadd.f32 %v5792_v10, %v5783_v53  ;;  %vm11668_vm5 = vmmov %vm11606_vm0 }
 0xb66   : > { %5831 = vst.msk [vmem:[%s10589_s29 + $0x28] sm:$0xff] %vm11654_vm15, %v5799_v26  ;;  %v5822_v63 = vadd.f32 %v5792_v10, %v5784_v21  ;;  %v5823_v6 = vadd.f32 %v5792_v10, %v5785_v50  ;;  %v5824_v40 = vadd.f32 %v5792_v10, %v5786_v61  ;;  %v5825_v22 = vadd.f32 %v5792_v10, %v5787_v47  ;;  %vm11669_vm15 = vmmov %vm11606_vm0 }
 0xb67   : > { %5832 = vst.msk [vmem:[%s10589_s29 + $0x30] sm:$0xff] %vm11655_vm9, %v5800_v24  ;;  %vm11670_vm9 = vmmov %vm11606_vm0 }
 0xb68   : > { %5833 = vst.msk [vmem:[%s10589_s29 + $0x38] sm:$0xff] %vm11656_vm4, %v5801_v51  ;;  %vm11671_vm4 = vmmov %vm11606_vm0 }
 0xb69   : > { %5834 = vst.msk [vmem:[%s10589_s29 + $0x40] sm:$0xff] %vm11657_vm1, %v5802_v0  ;;  %vm11672_vm1 = vmmov %vm11606_vm0 }
 0xb6a   : > { %5835 = vst.msk [vmem:[%s10589_s29 + $0x48] sm:$0xff] %vm11658_vm11, %v5803_v44  ;;  %vm11673_vm11 = vmmov %vm11606_vm0 }
 0xb6b   : > { %5836 = vst.msk [vmem:[%s10589_s29 + $0x50] sm:$0xff] %vm11659_vm10, %v5804_v45  ;;  %vm11674_vm10 = vmmov %vm11606_vm0 }
 0xb6c   : > { %5837 = vst.msk [vmem:[%s10589_s29 + $0x58] sm:$0xff] %vm11660_vm8, %v5805_v13  ;;  %vm11675_vm8 = vmmov %vm11606_vm0 }
 0xb6d   : > { %5838 = vst.msk [vmem:[%s10589_s29 + $0x60] sm:$0xff] %vm11661_vm3, %v5806_v49  ;;  %vm11676_vm3 = vmmov %vm11606_vm0 }
 0xb6e   : > { %5839 = vst.msk [vmem:[%s10589_s29 + $0x68] sm:$0xff] %vm11662_vm2, %v5807_v43  ;;  %vm11677_vm2 = vmmov %vm11606_vm0 }
 0xb6f   : > { %5840 = vst.msk [vmem:[%s10589_s29 + $0x70] sm:$0xff] %vm11663_vm14, %v5808_v33  ;;  %vm11678_vm14 = vmmov %vm11606_vm0 }
 0xb70   : > { %5841 = vst.msk [vmem:[%s10589_s29 + $0x78] sm:$0xff] %vm11664_vm7, %v5809_v8  ;;  %vm11679_vm7 = vmmov %vm11606_vm0 }
 0xb71   : > { %5842 = vst.msk [vmem:[%s10589_s29 + $0x80] sm:$0xff] %vm11665_vm13, %v5810_v52 }
 0xb72   : > { %5843 = vst.msk [vmem:[%s10589_s29 + $0x88] sm:$0xff] %vm11666_vm12, %v5811_v60 }
 0xb73   : > { %5844 = vst.msk [vmem:[%s10589_s29 + $0x90] sm:$0xff] %vm11667_vm6, %v5812_v15 }
 0xb74   : > { %5845 = vst.msk [vmem:[%s10589_s29 + $0x98] sm:$0xff] %vm11606_vm0, %v5813_v46 }
 0xb75   : > { %5846 = vst.msk [vmem:[%s10589_s29 + $0xa0] sm:$0xff] %vm11668_vm5, %v5814_v34 }
 0xb76   : > { %5847 = vst.msk [vmem:[%s10589_s29 + $0xa8] sm:$0xff] %vm11669_vm15, %v5815_v11 }
 0xb77   : > { %5848 = vst.msk [vmem:[%s10589_s29 + $0xb0] sm:$0xff] %vm11670_vm9, %v5816_v2 }
 0xb78   : > { %5849 = vst.msk [vmem:[%s10589_s29 + $0xb8] sm:$0xff] %vm11671_vm4, %v5817_v7 }
 0xb79   : > { %5850 = vst.msk [vmem:[%s10589_s29 + $0xc0] sm:$0xff] %vm11672_vm1, %v5818_v19 }
 0xb7a   : > { %5851 = vst.msk [vmem:[%s10589_s29 + $0xc8] sm:$0xff] %vm11673_vm11, %v5819_v5 }
 0xb7b   : > { %5852 = vst.msk [vmem:[%s10589_s29 + $0xd0] sm:$0xff] %vm11674_vm10, %v5820_v3 }
 0xb7c   : > { %5853 = vst.msk [vmem:[%s10589_s29 + $0xd8] sm:$0xff] %vm11675_vm8, %v5821_v9 }
 0xb7d   : > { %5854 = vst.msk [vmem:[%s10589_s29 + $0xe0] sm:$0xff] %vm11676_vm3, %v5822_v63 }
 0xb7e   : > { %5855 = vst.msk [vmem:[%s10589_s29 + $0xe8] sm:$0xff] %vm11677_vm2, %v5823_v6 }
 0xb7f   : > { %5856 = vst.msk [vmem:[%s10589_s29 + $0xf0] sm:$0xff] %vm11678_vm14, %v5824_v40 }
 0xb80   : > { %5857 = vst.msk [vmem:[%s10589_s29 + $0xf8] sm:$0xff] %vm11679_vm7, %v5825_v22 }
 0xb81 PF: > { %s17_s24 = sadd.s32 1, %s6484_s24  }
 0xb82   : > { %p14_p4 = scmp.ge.s32.totalorder %s17_s24, 4  }
 0xb84   :  { %16 = sbr.rel (!%p14_p4) target bundleno = 1 (0x1), region = 82 }

</bundles_post_ra>
